<compile_context>
chip_gen: v6e
topology: v6e:2x2x1
jax: 0.10.0
libtpu: 0.0.40
codegen_flags: <defaults>
</compile_context>

<pallas_src>
import jax
import jax.numpy as jnp
from jax.experimental import pallas as pl
from jax.experimental.pallas import tpu as pltpu

EMB_SIZE = 256
IN_FEATURES = 2304          # eca_nfnet_l0 classifier in_features
H1 = EMB_SIZE * 2           # 512
H2 = EMB_SIZE               # 256
BN_EPS = 1e-5
LANE_OUT = 128              # lane-dense output width (sliced to 1 in glue)
MAX_TD = 1024               # max K-tile width over the flattened-image axis
MAX_BM = 256                # max rows per image per batch block


# ------------------------------ fused kernel --------------------------------
def fused_siamese_kernel(x1_ref, x2_ref, bbw_ref, wh_ref, b_ref,
                         out_ref, f1_acc, f2_acc):
    kd = pl.program_id(1)

    @pl.when(kd == 0)
    def _():
        f1_acc[...] = jnp.zeros_like(f1_acc)
        f2_acc[...] = jnp.zeros_like(f2_acc)

    # Backbone (stand-in) projection for both images; int8 weight slab is
    # dequantized (unscaled) to f32 - the per-channel scales are folded into
    # wh downstream.  The backbone bias is omitted: it cancels exactly in
    # |feat1 - feat2| for a linear backbone.
    # TODO(synk): the real timm eca_nfnet_l0 backbone (NF blocks, weight-
    # standardized convs, ECA attention, SiLU, global pool) is not implemented;
    # flatten+linear stand-in.
    w = bbw_ref[...].astype(jnp.float32)                         # (TD, NF)
    f1_acc[...] += jnp.dot(x1_ref[...].astype(jnp.float32), w,
                           preferred_element_type=jnp.float32)
    f2_acc[...] += jnp.dot(x2_ref[...].astype(jnp.float32), w,
                           preferred_element_type=jnp.float32)

    @pl.when(kd == pl.num_programs(1) - 1)
    def _():
        dis = jnp.abs(f1_acc[...] - f2_acc[...])                 # (BM, NF) f32
        # Whole head (2 weight-normed linears + 2 eval BNs + dropout + final
        # linear) folded in glue into one NF->1 affine map: VPU mul + lane
        # reduce instead of three MXU matmuls with M=8.
        logit = jnp.sum(dis * wh_ref[...], axis=-1, keepdims=True) + b_ref[0, 0]
        denom = 1.0 + jnp.exp(-logit)
        prob = pl.reciprocal(denom, approx=True)                 # sigmoid on EUP
        out_ref[...] = jnp.broadcast_to(prob, out_ref.shape)     # lane-dense store


def _pick_td(d_pad):
    """Largest 128-aligned K tile <= MAX_TD that evenly divides d_pad."""
    q = d_pad // 128
    for cand in range(min(q, MAX_TD // 128), 0, -1):
        if q % cand == 0:
            return cand * 128
    return 128


def siamese_pallas(x1, x2, bb_w_q, w_head, b_all):
    bp, d_pad = x1.shape
    nf = bb_w_q.shape[1]
    bm = bp if bp <= MAX_BM else MAX_BM          # wrapper guarantees divisibility
    nb = bp // bm
    td = _pick_td(d_pad)
    kd = d_pad // td

    grid_spec = pltpu.PrefetchScalarGridSpec(
        num_scalar_prefetch=0,
        grid=(nb, kd),
        in_specs=[
            pl.BlockSpec((bm, td), lambda b, k: (b, k)),        # first images
            pl.BlockSpec((bm, td), lambda b, k: (b, k)),        # second images
            pl.BlockSpec((td, nf), lambda b, k: (k, 0)),        # int8 backbone weight slab
            pl.BlockSpec((1, nf), lambda b, k: (0, 0)),         # folded head vector
            pl.BlockSpec(memory_space=pltpu.MemorySpace.SMEM),  # folded head bias (scalar)
        ],
        out_specs=pl.BlockSpec((bm, LANE_OUT), lambda b, k: (b, 0)),
        scratch_shapes=[pltpu.VMEM((bm, nf), jnp.float32),      # feat accumulator (first)
                        pltpu.VMEM((bm, nf), jnp.float32)],     # feat accumulator (second)
    )
    return pl.pallas_call(
        fused_siamese_kernel,
        out_shape=jax.ShapeDtypeStruct((bp, LANE_OUT), jnp.float32),
        grid_spec=grid_spec,
        compiler_params=pltpu.CompilerParams(
            # batch blocks are independent (2 TCs on v7x); d axis is a reduction
            dimension_semantics=("parallel", "arbitrary"),
            vmem_limit_bytes=32 * 1024 * 1024,
        ),
    )(x1, x2, bb_w_q, w_head, b_all)


# ------------------------------ parameters ----------------------------------
def _weight_norm(v, g, dim):
    # PyTorch nn.utils.weight_norm: w = g * v / ||v||
    if dim is None:                              # dim=None -> single scalar norm
        return g * v / jnp.sqrt(jnp.sum(v * v))
    # default dim=0 -> per-output-row norm for nn.Linear weight (out, in)
    norm = jnp.sqrt(jnp.sum(v * v, axis=1, keepdims=True))
    return v * (jnp.reshape(g, (-1, 1)) / norm)


def _bn_fold(gamma, beta, mean, var):
    s = gamma / jnp.sqrt(var + BN_EPS)
    return s, beta - mean * s


def init_params(key, img_dim):
    ks = jax.random.split(key, 16)

    def rnd(k, shape, scale=0.02):
        return scale * jax.random.normal(k, shape, dtype=jnp.float32)

    # stand-in backbone projection (see TODO in kernel); bias omitted - it
    # cancels in |feat1 - feat2| for a linear backbone.
    bb_w = rnd(ks[0], (img_dim, IN_FEATURES))

    # post[0]: weight_norm(Linear(IN_FEATURES, 512), dim=None)
    v1 = rnd(ks[2], (H1, IN_FEATURES))
    w1 = _weight_norm(v1, jnp.float32(1.5), None).T                   # (F, 512)
    b1 = rnd(ks[3], (H1,))
    # post[1]: BatchNorm1d(512) eval stats -> fold
    s1, t1 = _bn_fold(1.0 + rnd(ks[4], (H1,), 0.1), rnd(ks[5], (H1,), 0.1),
                      rnd(ks[6], (H1,), 0.1), 1.0 + jnp.abs(rnd(ks[7], (H1,), 0.1)))
    w1f = w1 * s1[None, :]
    b1f = b1 * s1 + t1

    # post[2]: Dropout(p=0.2) -> identity at inference.
    # post[3]: weight_norm(Linear(512, 256)), default dim=0
    v2 = rnd(ks[8], (H2, H1))
    w2 = _weight_norm(v2, 1.0 + rnd(ks[9], (H2,), 0.1), 0).T          # (512, 256)
    b2 = rnd(ks[10], (H2,))
    # post[4]: BatchNorm1d(256) eval stats -> fold
    s2, t2 = _bn_fold(1.0 + rnd(ks[11], (H2,), 0.1), rnd(ks[12], (H2,), 0.1),
                      rnd(ks[13], (H2,), 0.1), 1.0 + jnp.abs(rnd(ks[14], (H2,), 0.1)))
    w2f = w2 * s2[None, :]
    b2f = b2 * s2 + t2

    # post[5]: weight_norm(Linear(256, 1)), default dim=0
    v3 = rnd(ks[15], (1, H2))
    w3v = _weight_norm(v3, jnp.ones((1,), jnp.float32), 0).reshape(H2)  # (256,)
    b3 = jnp.float32(0.0)

    # Fold the fully-affine head (Lin->BN->Drop->Lin->BN->Lin) into one
    # IN_FEATURES -> 1 affine map.
    w_all = w1f @ (w2f @ w3v)                                         # (F,)
    b_all = (b1f @ w2f + b2f) @ w3v + b3                              # scalar

    # int8-quantize the backbone weight per output channel; fold the scales
    # into the folded head vector (|s*x| = s*|x| for s > 0).
    scale = jnp.maximum(jnp.max(jnp.abs(bb_w), axis=0) / 127.0, 1e-8)  # (F,)
    bb_q = jnp.clip(jnp.round(bb_w / scale[None, :]), -127, 127).astype(jnp.int8)
    w_head = (w_all * scale).reshape(1, IN_FEATURES).astype(jnp.float32)

    # pad the flattened-image axis to a multiple of 128 for lane-aligned K tiling
    d_pad = ((img_dim + 127) // 128) * 128
    bb_q = jnp.pad(bb_q, ((0, d_pad - img_dim), (0, 0)))

    return dict(
        bb_w_q=bb_q,                                   # (d_pad, F) int8
        w_head=w_head,                                 # (1, F)     f32
        b_all=jnp.reshape(b_all, (1, 1)).astype(jnp.float32),
    )


# ------------------------------- forward ------------------------------------
@jax.jit
def siamese_forward(first, second, params):
    b = first.shape[0]
    d = first.reshape(b, -1).shape[1]
    d_pad = params["bb_w_q"].shape[0]

    # pad the per-image batch to full sublanes (and to a multiple of the batch
    # block if it exceeds MAX_BM rows)
    bp = max(8, ((b + 7) // 8) * 8)
    if bp > MAX_BM:
        bp = ((bp + MAX_BM - 1) // MAX_BM) * MAX_BM

    def prep(x):
        x = x.reshape(b, -1).astype(jnp.bfloat16)
        return jnp.pad(x, ((0, bp - b), (0, d_pad - d)))

    out = siamese_pallas(prep(first), prep(second),
                         params["bb_w_q"], params["w_head"], params["b_all"])
    return out[:b, :1]                                  # (B, 1)


def siamese_reference(first, second, params):
    """Pure-JAX reference on the same folded / quantized parameters."""
    b = first.shape[0]
    d = first.reshape(b, -1).shape[1]
    x1 = first.reshape(b, -1).astype(jnp.bfloat16).astype(jnp.float32)
    x2 = second.reshape(b, -1).astype(jnp.bfloat16).astype(jnp.float32)
    wq = params["bb_w_q"][:d].astype(jnp.float32)
    dis = jnp.abs(x1 @ wq - x2 @ wq)
    logit = dis @ params["w_head"][0] + params["b_all"][0, 0]
    return jax.nn.sigmoid(logit)[:, None]


if __name__ == "__main__":
    key = jax.random.PRNGKey(0)
    k_first, k_second, k_params = jax.random.split(key, 3)

    B, C, H, W = 2, 3, 16, 16                    # NCHW, as in the PyTorch module
    first = jax.random.normal(k_first, (B, C, H, W), dtype=jnp.float32)
    second = jax.random.normal(k_second, (B, C, H, W), dtype=jnp.float32)
    params = init_params(k_params, C * H * W)

    out = siamese_forward(first, second, params)
    out = jax.block_until_ready(out)

    ref = siamese_reference(first, second, params)

    assert out.shape == (B, 1), out.shape
    assert bool(jnp.all(jnp.isfinite(out)))
    assert bool(jnp.all((out >= -1e-5) & (out <= 1.0 + 1e-5)))   # sigmoid range
    assert bool(jnp.allclose(out, ref, atol=1e-2)), (out, ref)
    print("KERNEL_OK")
</pallas_src>

<mosaic_0001>
module attributes {stable_mosaic.version = 11 : i64} {
  func.func @fused_siamese_kernel(%arg0: i32, %arg1: i32, %arg2: memref<8x768xbf16, #tpu.memory_space<vmem>>, %arg3: memref<8x768xbf16, #tpu.memory_space<vmem>>, %arg4: memref<768x2304xi8, #tpu.memory_space<vmem>>, %arg5: memref<1x2304xf32, #tpu.memory_space<vmem>>, %arg6: memref<1x1xf32, #tpu.memory_space<smem>>, %arg7: memref<8x128xf32, #tpu.memory_space<vmem>>, %arg8: memref<8x2304xf32, #tpu.memory_space<vmem>>, %arg9: memref<8x2304xf32, #tpu.memory_space<vmem>>) attributes {dimension_semantics = [#tpu.dimension_semantics<parallel>, #tpu.dimension_semantics<arbitrary>], iteration_bounds = array<i64: 1, 1>, scalar_prefetch = 0 : i64, scratch_operands = 2 : i64, tpu.core_type = #tpu.core_type<tc>, window_params = [{transform_indices = @transform_0, window_bounds = array<i64: 8, 768>}, {transform_indices = @transform_1, window_bounds = array<i64: 8, 768>}, {transform_indices = @transform_2, window_bounds = array<i64: 768, 2304>}, {pipeline_mode = #tpu.pipeline_mode<synchronous>, transform_indices = @transform_3, window_bounds = array<i64: 1, 2304>}, {transform_indices = @transform_4, window_bounds = array<i64: 1, 1>}, {transform_indices = @transform_5, window_bounds = array<i64: 8, 128>}]} {
    %c0_i32 = arith.constant 0 : i32
    %0 = arith.cmpi eq, %arg1, %c0_i32 : i32
    %1 = arith.extui %0 : i1 to i32
    %c0_i32_0 = arith.constant 0 : i32
    %2 = arith.cmpi ne, %1, %c0_i32_0 : i32
    scf.if %2 {
      %cst_17 = arith.constant 0.000000e+00 : f32
      %20 = vector.broadcast %cst_17 : f32 to vector<8x2304xf32>
      %c0_18 = arith.constant 0 : index
      %c0_19 = arith.constant 0 : index
      %21 = vector.load %arg8[%c0_18, %c0_19] : memref<8x2304xf32, #tpu.memory_space<vmem>>, vector<8x2304xf32>
      tpu.vector_store %arg8[%c0_18, %c0_19], %20 {strides = array<i32>} : memref<8x2304xf32, #tpu.memory_space<vmem>>, vector<8x2304xf32>,
      %cst_20 = arith.constant 0.000000e+00 : f32
      %22 = vector.broadcast %cst_20 : f32 to vector<8x2304xf32>
      %c0_21 = arith.constant 0 : index
      %c0_22 = arith.constant 0 : index
      %23 = vector.load %arg9[%c0_21, %c0_22] : memref<8x2304xf32, #tpu.memory_space<vmem>>, vector<8x2304xf32>
      tpu.vector_store %arg9[%c0_21, %c0_22], %22 {strides = array<i32>} : memref<8x2304xf32, #tpu.memory_space<vmem>>, vector<8x2304xf32>,
    } else {
    }
    %c0 = arith.constant 0 : index
    %c0_1 = arith.constant 0 : index
    %3 = vector.load %arg4[%c0, %c0_1] : memref<768x2304xi8, #tpu.memory_space<vmem>>, vector<768x2304xi8>
    %4 = arith.sitofp %3 : vector<768x2304xi8> to vector<768x2304xf32>
    %c0_2 = arith.constant 0 : index
    %c0_3 = arith.constant 0 : index
    %5 = vector.load %arg8[%c0_2, %c0_3] : memref<8x2304xf32, #tpu.memory_space<vmem>>, vector<8x2304xf32>
    %c0_4 = arith.constant 0 : index
    %c0_5 = arith.constant 0 : index
    %6 = vector.load %arg2[%c0_4, %c0_5] : memref<8x768xbf16, #tpu.memory_space<vmem>>, vector<8x768xbf16>
    %7 = arith.extf %6 : vector<8x768xbf16> to vector<8x768xf32>
    %cst = arith.constant dense<0.000000e+00> : vector<8x2304xf32>
    %8 = tpu.matmul %7, %4, %cst {dimension_numbers = #tpu.dot_dimension_numbers<[1], [0], [0], [1], [0, 0, 1, 1], [], []>} : vector<8x768xf32>, vector<768x2304xf32>, vector<8x2304xf32> -> vector<8x2304xf32>
    %9 = arith.addf %5, %8 : vector<8x2304xf32>
    %c0_6 = arith.constant 0 : index
    %c0_7 = arith.constant 0 : index
    %10 = vector.load %arg8[%c0_6, %c0_7] : memref<8x2304xf32, #tpu.memory_space<vmem>>, vector<8x2304xf32>
    tpu.vector_store %arg8[%c0_6, %c0_7], %9 {strides = array<i32>} : memref<8x2304xf32, #tpu.memory_space<vmem>>, vector<8x2304xf32>,
    %c0_8 = arith.constant 0 : index
    %c0_9 = arith.constant 0 : index
    %11 = vector.load %arg9[%c0_8, %c0_9] : memref<8x2304xf32, #tpu.memory_space<vmem>>, vector<8x2304xf32>
    %c0_10 = arith.constant 0 : index
    %c0_11 = arith.constant 0 : index
    %12 = vector.load %arg3[%c0_10, %c0_11] : memref<8x768xbf16, #tpu.memory_space<vmem>>, vector<8x768xbf16>
    %13 = arith.extf %12 : vector<8x768xbf16> to vector<8x768xf32>
    %cst_12 = arith.constant dense<0.000000e+00> : vector<8x2304xf32>
    %14 = tpu.matmul %13, %4, %cst_12 {dimension_numbers = #tpu.dot_dimension_numbers<[1], [0], [0], [1], [0, 0, 1, 1], [], []>} : vector<8x768xf32>, vector<768x2304xf32>, vector<8x2304xf32> -> vector<8x2304xf32>
    %15 = arith.addf %11, %14 : vector<8x2304xf32>
    %c0_13 = arith.constant 0 : index
    %c0_14 = arith.constant 0 : index
    %16 = vector.load %arg9[%c0_13, %c0_14] : memref<8x2304xf32, #tpu.memory_space<vmem>>, vector<8x2304xf32>
    tpu.vector_store %arg9[%c0_13, %c0_14], %15 {strides = array<i32>} : memref<8x2304xf32, #tpu.memory_space<vmem>>, vector<8x2304xf32>,
    %c0_i32_15 = arith.constant 0 : i32
    %17 = arith.cmpi eq, %arg1, %c0_i32_15 : i32
    %18 = arith.extui %17 : i1 to i32
    %c0_i32_16 = arith.constant 0 : i32
    %19 = arith.cmpi ne, %18, %c0_i32_16 : i32
    scf.if %19 {
      %c0_17 = arith.constant 0 : index
      %c0_18 = arith.constant 0 : index
      %20 = vector.load %arg8[%c0_17, %c0_18] : memref<8x2304xf32, #tpu.memory_space<vmem>>, vector<8x2304xf32>
      %c0_19 = arith.constant 0 : index
      %c0_20 = arith.constant 0 : index
      %21 = vector.load %arg9[%c0_19, %c0_20] : memref<8x2304xf32, #tpu.memory_space<vmem>>, vector<8x2304xf32>
      %22 = arith.subf %20, %21 : vector<8x2304xf32>
      %23 = math.absf %22 : vector<8x2304xf32>
      %c0_21 = arith.constant 0 : index
      %c0_22 = arith.constant 0 : index
      %24 = vector.load %arg5[%c0_21, %c0_22] : memref<1x2304xf32, #tpu.memory_space<vmem>>, vector<1x2304xf32>
      %25 = vector.broadcast %24 : vector<1x2304xf32> to vector<8x2304xf32>
      %26 = arith.mulf %23, %25 : vector<8x2304xf32>
      %cst_23 = arith.constant dense<0.000000e+00> : vector<8xf32>
      %27 = vector.multi_reduction <add>, %26, %cst_23 [1] : vector<8x2304xf32> to vector<8xf32>
      %28 = vector.shape_cast %27 : vector<8xf32> to vector<8x1xf32>
      %c0_24 = arith.constant 0 : index
      %c0_25 = arith.constant 0 : index
      %29 = memref.load %arg6[%c0_24, %c0_25] : memref<1x1xf32, #tpu.memory_space<smem>>
      %30 = vector.broadcast %29 : f32 to vector<8x1xf32>
      %31 = arith.addf %28, %30 : vector<8x1xf32>
      %cst_26 = arith.constant 0.000000e+00 : f32
      %32 = vector.broadcast %cst_26 : f32 to vector<8x1xf32>
      %33 = arith.subf %32, %31 : vector<8x1xf32>
      %34 = math.exp %33 : vector<8x1xf32>
      %cst_27 = arith.constant 1.000000e+00 : f32
      %35 = vector.broadcast %cst_27 : f32 to vector<8x1xf32>
      %36 = arith.addf %35, %34 : vector<8x1xf32>
      %37 = tpu.reciprocal %36 {approx = true} : vector<8x1xf32> -> vector<8x1xf32>
      %38 = vector.shape_cast %37 : vector<8x1xf32> to vector<8x1xf32>
      %39 = vector.broadcast %38 : vector<8x1xf32> to vector<8x128xf32>
      %c0_28 = arith.constant 0 : index
      %c0_29 = arith.constant 0 : index
      %40 = vector.load %arg7[%c0_28, %c0_29] : memref<8x128xf32, #tpu.memory_space<vmem>>, vector<8x128xf32>
      tpu.vector_store %arg7[%c0_28, %c0_29], %39 {strides = array<i32>} : memref<8x128xf32, #tpu.memory_space<vmem>>, vector<8x128xf32>,
    } else {
    }
    return
  }
  func.func @transform_0(%arg0: i32, %arg1: i32) -> (i32, i32) {
    %c0_i32 = arith.constant 0 : i32
    return %arg0, %arg1 : i32, i32
  }
  func.func @transform_1(%arg0: i32, %arg1: i32) -> (i32, i32) {
    %c0_i32 = arith.constant 0 : i32
    return %arg0, %arg1 : i32, i32
  }
  func.func @transform_2(%arg0: i32, %arg1: i32) -> (i32, i32) {
    %c0_i32 = arith.constant 0 : i32
    %c0_i32_0 = arith.constant 0 : i32
    return %arg1, %c0_i32 : i32, i32
  }
  func.func @transform_3(%arg0: i32, %arg1: i32) -> (i32, i32) {
    %c0_i32 = arith.constant 0 : i32
    %c0_i32_0 = arith.constant 0 : i32
    %c0_i32_1 = arith.constant 0 : i32
    return %c0_i32, %c0_i32_0 : i32, i32
  }
  func.func @transform_4(%arg0: i32, %arg1: i32) -> (i32, i32) {
    %c0_i32 = arith.constant 0 : i32
    %c0_i32_0 = arith.constant 0 : i32
    %c0_i32_1 = arith.constant 0 : i32
    return %c0_i32, %c0_i32_0 : i32, i32
  }
  func.func @transform_5(%arg0: i32, %arg1: i32) -> (i32, i32) {
    %c0_i32 = arith.constant 0 : i32
    %c0_i32_0 = arith.constant 0 : i32
    return %arg0, %c0_i32 : i32, i32
  }
}

</mosaic_0001>

<bundles_post_ra>
// kernel: siamese_forward.1
= control target key start
LH: loop header
LB: loop body
LE: loop exit
PB: predicated region body
PF: predicated region fallthrough
CT: control target
= control target key end

     0   :  { %11 = vsyncpa [#allocation6], 0  ;;  %s17275_s0 = inlined_call_operand.vmem [shape: bf16[8,768], index: 0, kind: input, shape index: {}]   ;;  %s17276_s1 = inlined_call_operand.vmem [shape: bf16[8,768], index: 1, kind: input, shape index: {}]   ;;  %s17277_s2 = inlined_call_operand.hbm [shape: s8[768,2304], index: 2, kind: input, shape index: {}]   ;;  %s17278_s3 = inlined_call_operand.hbm [shape: f32[1,2304], index: 3, kind: input, shape index: {}]   ;;  %s17279_s4 = inlined_call_operand.<no memory space> [shape: f32[1,1], index: 4, kind: input, shape index: {}]   ;;  %s17280_s5 = inlined_call_operand.vmem [shape: f32[8,128], index: 5, kind: output, shape index: {}]  }
   0x1   :  { %12 = vsyncpa [#allocation8], 0  ;;  %s11666_s18 = smov [#allocation5]  }
   0x2   :  { %s22_s19 = sshll.u32 %s11666_s18, 4  ;;  %s23_s19 = int_to_ptr.vmem [resolvable:$true] %s22_s19 }
   0x3   :  { %s11630_s20 = scalar_lea.vmem %s23_s19, 55296  ;;  %p11635_p1 = scmp.lt.s32.totalorder %s23_s19, %s23_s19 }
   0x4   :  { %p11631_p0 = scmp.ne.s32.totalorder %s23_s19, %s11630_s20  ;;  %p11636_p2 = scmp.lt.s32.totalorder %s11630_s20, %s11630_s20 }
   0x6   :  { %p11637_p3 = por %p11636_p2, %p11635_p1 }
   0x8   :  { %p11638_p4 = pnand %p11637_p3, %p11631_p0 }
   0xa   :  { %11641 = shalt.err (!%p11638_p4)
}
   0xb   :  { %s11667_s21 = smov 2304   ;;  %s11668_s22 = smov 144  }
   0xc   :  { %28 = dma.hbm_to_vmem [thread:$0]  %s17277_s2, 55296, %s23_s19, [#allocation6], %s11667_s21, %s11667_s21, %s11668_s22  }
   0xd   :  { %s11669_s25 = smov [#allocation7]  }
   0xe   :  { %s35_s26 = sshll.u32 %s11669_s25, 4  ;;  %s36_s26 = int_to_ptr.vmem [resolvable:$true] %s35_s26 }
   0xf   :  { %s11650_s27 = scalar_lea.vmem %s36_s26, 288  ;;  %p11655_p6 = scmp.lt.s32.totalorder %s36_s26, %s36_s26 }
  0x10   :  { %p11651_p5 = scmp.ne.s32.totalorder %s36_s26, %s11650_s27  ;;  %p11656_p7 = scmp.lt.s32.totalorder %s11650_s27, %s11650_s27 }
  0x12   :  { %p11657_p8 = por %p11656_p7, %p11655_p6 }
  0x14   :  { %p11658_p9 = pnand %p11657_p8, %p11651_p5 }
  0x16   :  { %11661 = shalt.err (!%p11658_p9)
}
  0x17   :  { %38 = dma.hbm_to_vmem [thread:$0]  %s17278_s3, 288, %s36_s26, [#allocation8]  }
  0x18   :  { %11662 = dma.done.wait [#allocation6], 55296  }
  0x19   :  { %11663 = vsyncadd [#allocation6], 4294912000 }
  0x1a   :  { %11664 = dma.done.wait [#allocation8], 288  }
  0x1b   :  { %11665 = vsyncadd [#allocation8], 4294967008  ;;  %v11706_v0 = vld [vmem:[#allocation5 + $0x1b8] sm:$0xff]  ;;  %v11710_v2 = vld [vmem:[#allocation5 + $0x1b0] sm:$0xff] }
  0x1c   :  { %v11708_v1 = vld [vmem:[#allocation5 + $0x638] sm:$0xff]  ;;  %v17370_v3 = vunpack.c.h.s8.bf16 %v11706_v0  ;;  %v17364_v4 = vunpack.c.l.s8.bf16 %v11706_v0  ;;  %v11716_v7 = vld [vmem:[#allocation5 + $0x630] sm:$0xff]  ;;  %v17365_v8 = vunpack.c.h.s8.bf16 %v11710_v2  ;;  %v11720_v10 = vld [vmem:[#allocation5 + $0x128] sm:$0xff]  ;;  %v17359_v12 = vunpack.c.l.s8.bf16 %v11710_v2 }
  0x1d   :  { %v17303_v5 = vunpack.c.h.s8.bf16 %v11708_v1  ;;  %v17300_v6 = vunpack.c.l.s8.bf16 %v11708_v1  ;;  %v17302_v9 = vunpack.c.h.s8.bf16 %v11716_v7  ;;  %v11722_v11 = vld [vmem:[#allocation5 + $0x5a8] sm:$0xff]  ;;  %v17298_v13 = vunpack.c.l.s8.bf16 %v11716_v7  ;;  %v11740_v16 = vld [vmem:[#allocation5 + $0x120] sm:$0xff]  ;;  %v11756_v22 = vld [vmem:[#allocation5 + $0x98] sm:$0xff] }
  0x1e   :  { %8159 = vmatprep.subr.bf16.mxu0 %v17370_v3  ;;  %v17358_v14 = vunpack.c.h.s8.bf16 %v11720_v10  ;;  %v17297_v15 = vunpack.c.h.s8.bf16 %v11722_v11  ;;  %v11742_v17 = vld [vmem:[#allocation5 + $0x5a0] sm:$0xff]  ;;  %v17353_v18 = vunpack.c.h.s8.bf16 %v11740_v16  ;;  %v17352_v20 = vunpack.c.l.s8.bf16 %v11720_v10  ;;  %v11758_v23 = vld [vmem:[#allocation5 + $0x518] sm:$0xff]  ;;  %v11772_v28 = vld [vmem:[#allocation5 + $0x90] sm:$0xff] }
  0x1f   :  { %8223 = vmatprep.subr.bf16.mxu1 %v17303_v5  ;;  %8161 = vmatpush1.bf16.msra.mxu0 %v17365_v8  ;;  %v17296_v19 = vunpack.c.h.s8.bf16 %v11742_v17  ;;  %v17294_v21 = vunpack.c.l.s8.bf16 %v11722_v11  ;;  %v17347_v24 = vunpack.c.l.s8.bf16 %v11740_v16  ;;  %v17292_v25 = vunpack.c.l.s8.bf16 %v11742_v17  ;;  %v11774_v29 = vld [vmem:[#allocation5 + $0x510] sm:$0xff]  ;;  %v11779_v30 = vld [vmem:[%s17275_s0] sm:$0xff]  ;;  %v11784_v31 = vld [vmem:[%s17275_s0 + $0x8] sm:$0xff] }
  0x20   :  { %8225 = vmatpush1.bf16.msra.mxu1 %v17302_v9  ;;  %8163 = vmatprep.subr.bf16.mxu0 %v17364_v4  ;;  %v17346_v26 = vunpack.c.h.s8.bf16 %v11756_v22  ;;  %v17291_v27 = vunpack.c.h.s8.bf16 %v11758_v23  ;;  %v17341_v32 = vunpack.c.h.s8.bf16 %v11772_v28  ;;  %v17290_v33 = vunpack.c.h.s8.bf16 %v11774_v29  ;;  %v11804_v38 = vld [vmem:[#allocation5 + $0x8] sm:$0xff]  ;;  %v11822_v44 = vld [vmem:[#allocation5] sm:$0xff]  ;;  %v11838_v50 = vld [vmem:[#allocation5 + $0x3f8] sm:$0xff] }
  0x21   :  { %8227 = vmatprep.subr.bf16.mxu1 %v17300_v6  ;;  %v17340_v34 = vunpack.c.l.s8.bf16 %v11756_v22  ;;  %v17288_v35 = vunpack.c.l.s8.bf16 %v11758_v23  ;;  %v11799_v36 = vunpack.c.h.bf16 %v11779_v30  ;;  %v11802_v37 = vunpack.c.h.bf16 %v11784_v31  ;;  %v11806_v39 = vld [vmem:[#allocation5 + $0x488] sm:$0xff]  ;;  %v11824_v45 = vld [vmem:[#allocation5 + $0x480] sm:$0xff]  ;;  %v11840_v51 = vld [vmem:[#allocation5 + $0x878] sm:$0xff] }
  0x22   :  { %v17335_v40 = vunpack.c.l.s8.bf16 %v11772_v28  ;;  %v17286_v41 = vunpack.c.l.s8.bf16 %v11774_v29  ;;  %v17334_v42 = vunpack.c.h.s8.bf16 %v11804_v38  ;;  %v17285_v43 = vunpack.c.h.s8.bf16 %v11806_v39  ;;  %v11854_v56 = vld [vmem:[#allocation5 + $0x3f0] sm:$0xff]  ;;  %v11870_v62 = vld [vmem:[#allocation5 + $0x368] sm:$0xff]  ;;  %v12112_v8 = vld [vmem:[#allocation5 + $0xcf8] sm:$0xff] }
  0x23   :  { %8165 = vmatpush1.bf16.msra.mxu0 %v17359_v12  ;;  %4066 = vmatprep.mubr.f32.mxu0 %v11799_v36  ;;  %v17333_v46 = vunpack.c.h.s8.bf16 %v11822_v44  ;;  %v17284_v47 = vunpack.c.h.s8.bf16 %v11824_v45  ;;  %v17328_v48 = vunpack.c.l.s8.bf16 %v11804_v38  ;;  %v17282_v49 = vunpack.c.l.s8.bf16 %v11806_v39  ;;  %v11856_v57 = vld [vmem:[#allocation5 + $0x870] sm:$0xff]  ;;  %v11872_v63 = vld [vmem:[#allocation5 + $0x7e8] sm:$0xff]  ;;  %v12096_v12 = vld [vmem:[#allocation5 + $0x900] sm:$0xff] }
  0x24   :  { %8229 = vmatpush1.bf16.msra.mxu1 %v17298_v13  ;;  %8167 = vmatprep.subr.bf16.mxu0 %v17358_v14  ;;  %v17327_v52 = vunpack.c.l.s8.bf16 %v11822_v44  ;;  %v17281_v53 = vunpack.c.l.s8.bf16 %v11824_v45  ;;  %v17324_v54 = vunpack.c.h.s8.bf16 %v11838_v50  ;;  %v17283_v55 = vunpack.c.h.s8.bf16 %v11840_v51  ;;  %v11920_v13 = vld [vmem:[#allocation5 + $0x750] sm:$0xff]  ;;  %v11934_v5 = vld [vmem:[#allocation5 + $0x248] sm:$0xff] }
  0x25   :  { %8231 = vmatprep.subr.bf16.mxu1 %v17297_v15  ;;  %4137 = vmatprep.mubr.f32.mxu1 %v11802_v37  ;;  %v17321_v58 = vunpack.c.h.s8.bf16 %v11854_v56  ;;  %v17287_v59 = vunpack.c.h.s8.bf16 %v11856_v57  ;;  %v17320_v60 = vunpack.c.l.s8.bf16 %v11838_v50  ;;  %v17289_v61 = vunpack.c.l.s8.bf16 %v11840_v51  ;;  %v11918_v15 = vld [vmem:[#allocation5 + $0x2d0] sm:$0xff]  ;;  %18860 = vst [vmem:[#allocation13_spill] sm:$0xff] %v11920_v13 }
  0x26   :  { %v17311_v6 = vunpack.c.h.s8.bf16 %v11920_v13 }
  0x27   :  { %8169 = vmatpush1.bf16.msra.mxu0 %v17353_v18  ;;  %v12080_v18 = vld [vmem:[#allocation5 + $0x908] sm:$0xff] }
  0x28   :  { %8233 = vmatpush1.bf16.msra.mxu1 %v17296_v19  ;;  %8171 = vmatprep.subr.bf16.mxu0 %v17352_v20 }
  0x29   :  { %8235 = vmatprep.subr.bf16.mxu1 %v17294_v21 }
  0x2b   :  { %8173 = vmatpush1.bf16.msra.mxu0 %v17347_v24  ;;  %v12064_v24 = vld [vmem:[#allocation5 + $0x990] sm:$0xff] }
  0x2c   :  { %8237 = vmatpush1.bf16.msra.mxu1 %v17292_v25  ;;  %8175 = vmatprep.subr.bf16.mxu0 %v17346_v26  ;;  %v11904_v25 = vld [vmem:[#allocation5 + $0x758] sm:$0xff] }
  0x2d   :  { %8239 = vmatprep.subr.bf16.mxu1 %v17291_v27  ;;  %v11902_v27 = vld [vmem:[#allocation5 + $0x2d8] sm:$0xff]  ;;  %18859 = vst [vmem:[#allocation12_spill] sm:$0xff] %v11904_v25  ;;  %v17307_v19 = vunpack.c.h.s8.bf16 %v11904_v25  ;;  %v17313_v9 = vunpack.c.l.s8.bf16 %v11904_v25  ;;  %v12817_v25 = vld [vmem:[#allocation5 + $0x150] sm:$0xff] }
  0x2e   :  { %18958 = vst [vmem:[#allocation108_spill] sm:$0xff] %v12817_v25 }
  0x2f   :  { %8177 = vmatpush1.bf16.msra.mxu0 %v17341_v32  ;;  %v12048_v32 = vld [vmem:[#allocation5 + $0x998] sm:$0xff] }
  0x30   :  { %8241 = vmatpush1.bf16.msra.mxu1 %v17290_v33  ;;  %8179 = vmatprep.subr.bf16.mxu0 %v17340_v34  ;;  %v17301_v33 = vunpack.c.l.s8.bf16 %v11872_v63 }
  0x31   :  { %8243 = vmatprep.subr.bf16.mxu1 %v17288_v35 }
  0x33   :  { %8181 = vmatpush1.bf16.msra.mxu0 %v17335_v40  ;;  %v12030_v40 = vld [vmem:[#allocation5 + $0xa20] sm:$0xff] }
  0x34   :  { %8245 = vmatpush1.bf16.msra.mxu1 %v17286_v41  ;;  %8183 = vmatprep.subr.bf16.mxu0 %v17334_v42  ;;  %v11888_v41 = vld [vmem:[#allocation5 + $0x7e0] sm:$0xff] }
  0x35   :  { %8247 = vmatprep.subr.bf16.mxu1 %v17285_v43  ;;  %v11886_v43 = vld [vmem:[#allocation5 + $0x360] sm:$0xff]  ;;  %18858 = vst [vmem:[#allocation11_spill] sm:$0xff] %v11888_v41  ;;  %v17299_v35 = vunpack.c.h.s8.bf16 %v11888_v41  ;;  %v17305_v21 = vunpack.c.l.s8.bf16 %v11888_v41 }
  0x36   :  { %v13345_v41 = vld [vmem:[#allocation5 + $0x5e0] sm:$0xff] }
  0x37   :  { %8185 = vmatpush1.bf16.msra.mxu0 %v17333_v46  ;;  %19029 = vst [vmem:[#allocation174_spill] sm:$0xff] %v13345_v41 }
  0x38   :  { %8249 = vmatpush1.bf16.msra.mxu1 %v17284_v47  ;;  %8187 = vmatprep.subr.bf16.mxu0 %v17328_v48  ;;  %v17295_v47 = vunpack.c.h.s8.bf16 %v11872_v63  ;;  %v12009_v48 = vld [vmem:[#allocation5 + $0xa28] sm:$0xff] }
  0x39   :  { %8251 = vmatprep.subr.bf16.mxu1 %v17282_v49  ;;  %v17293_v49 = vunpack.c.l.s8.bf16 %v11856_v57  ;;  %v17344_v46 = vunpack.c.h.s8.bf16 %v12009_v48 }
  0x3b   :  { %8189 = vmatpush1.bf16.msra.mxu0 %v17327_v52 }
  0x3c   :  { %8253 = vmatpush1.bf16.msra.mxu1 %v17281_v53  ;;  %8191 = vmatprep.subr.bf16.mxu0 %v17324_v54  ;;  %v17315_v53 = vunpack.c.l.s8.bf16 %v11854_v56  ;;  %v11990_v54 = vunpack.c.l.bf16 %v11784_v31 }
  0x3d   :  { %8255 = vmatprep.subr.bf16.mxu1 %v17283_v55  ;;  %v17314_v55 = vunpack.c.h.s8.bf16 %v11870_v62 }
  0x3f   :  { %8193 = vmatpush2.bf16.msra.mxu0 %v17321_v58  ;;  %v11982_v58 = vld [vmem:[#allocation5 + $0xab0] sm:$0xff] }
  0x40   :  { %8257 = vmatpush2.bf16.msra.mxu1 %v17287_v59  ;;  %8195 = vmatprep.subr.bf16.mxu0 %v17320_v60  ;;  %v17309_v59 = vunpack.c.h.s8.bf16 %v11886_v43 }
  0x41   :  { %8259 = vmatprep.subr.bf16.mxu1 %v17289_v61  ;;  %v17308_v61 = vunpack.c.l.s8.bf16 %v11870_v62 }
  0x43   :  { %8197 = vmatpush2.bf16.msra.mxu0 %v17315_v53  ;;  %v11966_v53 = vld [vmem:[#allocation5 + $0xab8] sm:$0xff] }
  0x44   :  { %8261 = vmatpush2.bf16.msra.mxu1 %v17293_v49  ;;  %8199 = vmatprep.subr.bf16.mxu0 %v17314_v55  ;;  %v17304_v49 = vunpack.c.l.s8.bf16 %v11886_v43 }
  0x45   :  { %8263 = vmatprep.subr.bf16.mxu1 %v17295_v47  ;;  %v17306_v47 = vunpack.c.h.s8.bf16 %v11902_v27 }
  0x47   :  { %8201 = vmatpush2.bf16.msra.mxu0 %v17309_v59  ;;  %v11950_v59 = vld [vmem:[#allocation5 + $0x240] sm:$0xff] }
  0x48   :  { %8265 = vmatpush2.bf16.msra.mxu1 %v17299_v35  ;;  %8203 = vmatprep.subr.bf16.mxu0 %v17308_v61  ;;  %v17310_v35 = vunpack.c.h.s8.bf16 %v11918_v15 }
  0x49   :  { %8267 = vmatprep.subr.bf16.mxu1 %v17301_v33  ;;  %v17312_v33 = vunpack.c.l.s8.bf16 %v11902_v27 }
  0x4b   :  { %8205 = vmatpush2.bf16.msra.mxu0 %v17304_v49  ;;  %v11936_v49 = vld [vmem:[#allocation5 + $0x6c8] sm:$0xff] }
  0x4c   :  { %8269 = vmatpush2.bf16.msra.mxu1 %v17305_v21  ;;  %8207 = vmatprep.subr.bf16.mxu0 %v17306_v47  ;;  %18861 = vst [vmem:[#allocation14_spill] sm:$0xff] %v11936_v49  ;;  %v17316_v21 = vunpack.c.l.s8.bf16 %v11918_v15  ;;  %v17317_v47 = vunpack.c.l.s8.bf16 %v11920_v13  ;;  %v17319_v61 = vunpack.c.h.s8.bf16 %v11936_v49  ;;  %v17326_v55 = vunpack.c.l.s8.bf16 %v11936_v49  ;;  %v12240_v49 = vld [vmem:[#allocation5 + $0x648] sm:$0xff] }
  0x4d   :  { %8271 = vmatprep.subr.bf16.mxu1 %v17307_v19  ;;  %v17318_v19 = vunpack.c.h.s8.bf16 %v11934_v5  ;;  %18884 = vst [vmem:[#allocation37_spill] sm:$0xff] %v12240_v49 }
  0x4f   :  { %8209 = vmatpush2.bf16.msra.mxu0 %v17310_v35  ;;  %v11952_v35 = vld [vmem:[#allocation5 + $0x6c0] sm:$0xff] }
  0x50   :  { %8273 = vmatpush2.bf16.msra.mxu1 %v17311_v6  ;;  %8211 = vmatprep.subr.bf16.mxu0 %v17312_v33  ;;  %18862 = vst [vmem:[#allocation15_spill] sm:$0xff] %v11952_v35  ;;  %v17322_v6 = vunpack.c.h.s8.bf16 %v11950_v59  ;;  %v17323_v33 = vunpack.c.h.s8.bf16 %v11952_v35 }
  0x51   :  { %8275 = vmatprep.subr.bf16.mxu1 %v17313_v9  ;;  %v17325_v9 = vunpack.c.l.s8.bf16 %v11934_v5 }
  0x53   :  { %8213 = vmatpush2.bf16.msra.mxu0 %v17316_v21  ;;  %v11968_v21 = vld [vmem:[#allocation5 + $0x1c8] sm:$0xff] }
  0x54   :  { %8277 = vmatpush2.bf16.msra.mxu1 %v17317_v47  ;;  %8215 = vmatprep.subr.bf16.mxu0 %v17318_v19  ;;  %18863 = vst [vmem:[#allocation16_spill] sm:$0xff] %v11968_v21  ;;  %v17329_v47 = vunpack.c.l.s8.bf16 %v11950_v59  ;;  %v17330_v19 = vunpack.c.l.s8.bf16 %v11952_v35  ;;  %v17331_v60 = vunpack.c.h.s8.bf16 %v11968_v21  ;;  %v17337_v31 = vunpack.c.l.s8.bf16 %v11968_v21  ;;  %v12208_v21 = vld [vmem:[#allocation5 + $0xb48] sm:$0xff]  ;;  %v12224_v35 = vld [vmem:[#allocation5 + $0xb40] sm:$0xff] }
  0x55   :  { %8279 = vmatprep.subr.bf16.mxu1 %v17319_v61  ;;  %v17332_v61 = vunpack.c.h.s8.bf16 %v11966_v53  ;;  %18880 = vst [vmem:[#allocation33_spill] sm:$0xff] %v12208_v21  ;;  %18882 = vst [vmem:[#allocation35_spill] sm:$0xff] %v12224_v35 }
  0x57   :  { %8217 = vmatpush2.bf16.msra.mxu0 %v17322_v6  ;;  %v11984_v6 = vld [vmem:[#allocation5 + $0x1c0] sm:$0xff] }
  0x58   :  { %8281 = vmatpush2.bf16.msra.mxu1 %v17323_v33  ;;  %8219 = vmatprep.subr.bf16.mxu0 %v17325_v9  ;;  %18864 = vst [vmem:[#allocation17_spill] sm:$0xff] %v11984_v6  ;;  %v11987_v33 = vunpack.c.l.bf16 %v11779_v30  ;;  %v11995_v9 = vld [vmem:[%s17275_s0 + $0x10] sm:$0xff]  ;;  %v17338_v52 = vunpack.c.h.s8.bf16 %v11984_v6  ;;  %v17339_v30 = vunpack.c.l.s8.bf16 %v11966_v53 }
  0x59   :  { %8283 = vmatprep.subr.bf16.mxu1 %v17326_v55  ;;  %v17336_v55 = vunpack.c.h.s8.bf16 %v11982_v58 }
  0x5b   :  { %8221 = vmatpush2.bf16.msra.mxu0 %v17329_v47  ;;  %v12011_v47 = vld [vmem:[#allocation5 + $0x138] sm:$0xff] }
  0x5c   :  { %8285 = vmatpush2.bf16.msra.mxu1 %v17330_v19  ;;  %8287 = vmatprep.subr.bf16.mxu0 %v17332_v61  ;;  %18865 = vst [vmem:[#allocation18_spill] sm:$0xff] %v12011_v47  ;;  %v12014_v19 = vunpack.c.h.bf16 %v11995_v9  ;;  %v17343_v61 = vunpack.c.l.s8.bf16 %v11984_v6  ;;  %v17345_v42 = vunpack.c.h.s8.bf16 %v12011_v47  ;;  %v17351_v34 = vunpack.c.l.s8.bf16 %v12011_v47  ;;  %v12176_v47 = vld [vmem:[#allocation5 + $0xbd8] sm:$0xff]  ;;  %v12192_v6 = vld [vmem:[#allocation5 + $0xbd0] sm:$0xff] }
  0x5d   :  { %8351 = vmatprep.subr.bf16.mxu1 %v17331_v60  ;;  %v17342_v60 = vunpack.c.l.s8.bf16 %v11982_v58  ;;  %18876 = vst [vmem:[#allocation29_spill] sm:$0xff] %v12176_v47  ;;  %18878 = vst [vmem:[#allocation31_spill] sm:$0xff] %v12192_v6 }
  0x5e   :  { %4067 = vmatmul.mubr.f32.vlgmr.msra.gmra.mxu0 %v11987_v33 }
  0x5f   :  { %4138 = vmatmul.mubr.f32.vlgmr.msra.gmra.mxu1 %v11990_v54  ;;  %8289 = vmatpush1.bf16.msra.mxu0 %v17336_v55  ;;  %v12032_v55 = vld [vmem:[#allocation5 + $0x130] sm:$0xff] }
  0x60   :  { %8353 = vmatpush1.bf16.msra.mxu1 %v17338_v52  ;;  %8291 = vmatprep.subr.bf16.mxu0 %v17339_v30  ;;  %18866 = vst [vmem:[#allocation19_spill] sm:$0xff] %v12032_v55  ;;  %v17349_v52 = vunpack.c.h.s8.bf16 %v12032_v55  ;;  %v17350_v30 = vunpack.c.l.s8.bf16 %v12009_v48 }
  0x61   :  { %8355 = vmatprep.subr.bf16.mxu1 %v17337_v31  ;;  %4208 = vmatprep.mubr.f32.mxu0 %v12014_v19  ;;  %v17348_v31 = vunpack.c.h.s8.bf16 %v12030_v40 }
  0x62   :  { %4279 = vmatprep.mubr.f32.mxu1 %v11799_v36 }
  0x63   :  { %8293 = vmatpush1.bf16.msra.mxu0 %v17342_v60  ;;  %v12050_v60 = vld [vmem:[#allocation5 + $0xa8] sm:$0xff] }
  0x64   :  { %8357 = vmatpush1.bf16.msra.mxu1 %v17343_v61  ;;  %8295 = vmatprep.subr.bf16.mxu0 %v17344_v46  ;;  %18867 = vst [vmem:[#allocation20_spill] sm:$0xff] %v12050_v60  ;;  %v17354_v61 = vunpack.c.l.s8.bf16 %v12030_v40  ;;  %v17355_v46 = vunpack.c.l.s8.bf16 %v12032_v55  ;;  %v17357_v26 = vunpack.c.h.s8.bf16 %v12050_v60  ;;  %v17363_v20 = vunpack.c.l.s8.bf16 %v12050_v60  ;;  %v12144_v60 = vld [vmem:[#allocation5 + $0xc68] sm:$0xff]  ;;  %v12160_v55 = vld [vmem:[#allocation5 + $0xc60] sm:$0xff] }
  0x65   :  { %8359 = vmatprep.subr.bf16.mxu1 %v17345_v42  ;;  %v17356_v42 = vunpack.c.h.s8.bf16 %v12048_v32  ;;  %18874 = vst [vmem:[#allocation27_spill] sm:$0xff] %v12160_v55 }
  0x67   :  { %8297 = vmatpush1.bf16.msra.mxu0 %v17348_v31  ;;  %v12066_v31 = vld [vmem:[#allocation5 + $0xa0] sm:$0xff] }
  0x68   :  { %8361 = vmatpush1.bf16.msra.mxu1 %v17349_v52  ;;  %8299 = vmatprep.subr.bf16.mxu0 %v17350_v30  ;;  %18868 = vst [vmem:[#allocation21_spill] sm:$0xff] %v12066_v31  ;;  %v17360_v52 = vunpack.c.h.s8.bf16 %v12064_v24  ;;  %v17361_v30 = vunpack.c.h.s8.bf16 %v12066_v31 }
  0x69   :  { %8363 = vmatprep.subr.bf16.mxu1 %v17351_v34  ;;  %v17362_v34 = vunpack.c.l.s8.bf16 %v12048_v32 }
  0x6b   :  { %8301 = vmatpush1.bf16.msra.mxu0 %v17354_v61  ;;  %v12082_v61 = vld [vmem:[#allocation5 + $0x18] sm:$0xff] }
  0x6c   :  { %8365 = vmatpush1.bf16.msra.mxu1 %v17355_v46  ;;  %8303 = vmatprep.subr.bf16.mxu0 %v17356_v42  ;;  %18869 = vst [vmem:[#allocation22_spill] sm:$0xff] %v12082_v61  ;;  %v17366_v46 = vunpack.c.l.s8.bf16 %v12064_v24  ;;  %v17367_v42 = vunpack.c.l.s8.bf16 %v12066_v31  ;;  %v17369_v14 = vunpack.c.h.s8.bf16 %v12082_v61  ;;  %v17376_v4 = vunpack.c.l.s8.bf16 %v12082_v61  ;;  %v12128_v31 = vld [vmem:[#allocation5 + $0xcf0] sm:$0xff] }
  0x6d   :  { %8367 = vmatprep.subr.bf16.mxu1 %v17357_v26  ;;  %v17368_v26 = vunpack.c.h.s8.bf16 %v12080_v18 }
  0x6f   :  { %8305 = vmatpush1.bf16.msra.mxu0 %v17360_v52  ;;  %v12098_v52 = vld [vmem:[#allocation5 + $0x10] sm:$0xff] }
  0x70   :  { %8369 = vmatpush1.bf16.msra.mxu1 %v17361_v30  ;;  %8307 = vmatprep.subr.bf16.mxu0 %v17362_v34  ;;  %18870 = vst [vmem:[#allocation23_spill] sm:$0xff] %v12098_v52  ;;  %v17373_v30 = vunpack.c.h.s8.bf16 %v12096_v12  ;;  %v17374_v34 = vunpack.c.h.s8.bf16 %v12098_v52 }
  0x71   :  { %8371 = vmatprep.subr.bf16.mxu1 %v17363_v20  ;;  %v17375_v20 = vunpack.c.l.s8.bf16 %v12080_v18 }
  0x73   :  { %8309 = vmatpush1.bf16.msra.mxu0 %v17366_v46  ;;  %v12114_v46 = vld [vmem:[#allocation5 + $0x408] sm:$0xff] }
  0x74   :  { %8373 = vmatpush1.bf16.msra.mxu1 %v17367_v42  ;;  %8311 = vmatprep.subr.bf16.mxu0 %v17368_v26  ;;  %18871 = vst [vmem:[#allocation24_spill] sm:$0xff] %v12114_v46  ;;  %v17381_v42 = vunpack.c.l.s8.bf16 %v12096_v12  ;;  %v17382_v26 = vunpack.c.l.s8.bf16 %v12098_v52  ;;  %v17384_v3 = vunpack.c.h.s8.bf16 %v12114_v46  ;;  %v17392_v61 = vunpack.c.l.s8.bf16 %v12114_v46 }
  0x75   :  { %8375 = vmatprep.subr.bf16.mxu1 %v17369_v14  ;;  %v17383_v14 = vunpack.c.h.s8.bf16 %v12112_v8 }
  0x77   :  { %8313 = vmatpush1.bf16.msra.mxu0 %v17373_v30  ;;  %v12130_v30 = vld [vmem:[#allocation5 + $0x400] sm:$0xff] }
  0x78   :  { %8377 = vmatpush1.bf16.msra.mxu1 %v17374_v34  ;;  %8315 = vmatprep.subr.bf16.mxu0 %v17375_v20  ;;  %18872 = vst [vmem:[#allocation25_spill] sm:$0xff] %v12130_v30  ;;  %v17389_v34 = vunpack.c.h.s8.bf16 %v12128_v31  ;;  %v17390_v20 = vunpack.c.h.s8.bf16 %v12130_v30 }
  0x79   :  { %8379 = vmatprep.subr.bf16.mxu1 %v17376_v4  ;;  %v17391_v4 = vunpack.c.l.s8.bf16 %v12112_v8 }
  0x7b   :  { %8317 = vmatpush1.bf16.msra.mxu0 %v17381_v42  ;;  %v12146_v42 = vld [vmem:[#allocation5 + $0x378] sm:$0xff] }
  0x7c   :  { %8381 = vmatpush1.bf16.msra.mxu1 %v17382_v26  ;;  %8319 = vmatprep.subr.bf16.mxu0 %v17383_v14  ;;  %18873 = vst [vmem:[#allocation26_spill] sm:$0xff] %v12146_v42  ;;  %v17397_v26 = vunpack.c.l.s8.bf16 %v12128_v31  ;;  %v17398_v14 = vunpack.c.l.s8.bf16 %v12130_v30  ;;  %v17400_v52 = vunpack.c.h.s8.bf16 %v12146_v42  ;;  %v17408_v46 = vunpack.c.l.s8.bf16 %v12146_v42 }
  0x7d   :  { %8383 = vmatprep.subr.bf16.mxu1 %v17384_v3  ;;  %v17399_v3 = vunpack.c.h.s8.bf16 %v12144_v60 }
  0x7f   :  { %8321 = vmatpush2.bf16.msra.mxu0 %v17389_v34  ;;  %v12162_v34 = vld [vmem:[#allocation5 + $0x370] sm:$0xff] }
  0x80   :  { %8385 = vmatpush2.bf16.msra.mxu1 %v17390_v20  ;;  %8323 = vmatprep.subr.bf16.mxu0 %v17391_v4  ;;  %18875 = vst [vmem:[#allocation28_spill] sm:$0xff] %v12162_v34  ;;  %v17405_v20 = vunpack.c.h.s8.bf16 %v12160_v55  ;;  %v17406_v4 = vunpack.c.h.s8.bf16 %v12162_v34 }
  0x81   :  { %8387 = vmatprep.subr.bf16.mxu1 %v17392_v61  ;;  %v17407_v61 = vunpack.c.l.s8.bf16 %v12144_v60 }
  0x83   :  { %8325 = vmatpush2.bf16.msra.mxu0 %v17397_v26  ;;  %v12178_v26 = vld [vmem:[#allocation5 + $0x2e8] sm:$0xff] }
  0x84   :  { %8389 = vmatpush2.bf16.msra.mxu1 %v17398_v14  ;;  %8327 = vmatprep.subr.bf16.mxu0 %v17399_v3  ;;  %18877 = vst [vmem:[#allocation30_spill] sm:$0xff] %v12178_v26  ;;  %v17413_v14 = vunpack.c.l.s8.bf16 %v12160_v55  ;;  %v17414_v3 = vunpack.c.l.s8.bf16 %v12162_v34  ;;  %v17416_v30 = vunpack.c.h.s8.bf16 %v12178_v26  ;;  %v17424_v42 = vunpack.c.l.s8.bf16 %v12178_v26 }
  0x85   :  { %8391 = vmatprep.subr.bf16.mxu1 %v17400_v52  ;;  %v17415_v52 = vunpack.c.h.s8.bf16 %v12176_v47 }
  0x87   :  { %8329 = vmatpush2.bf16.msra.mxu0 %v17405_v20  ;;  %v12194_v20 = vld [vmem:[#allocation5 + $0x2e0] sm:$0xff] }
  0x88   :  { %8393 = vmatpush2.bf16.msra.mxu1 %v17406_v4  ;;  %8331 = vmatprep.subr.bf16.mxu0 %v17407_v61  ;;  %18879 = vst [vmem:[#allocation32_spill] sm:$0xff] %v12194_v20  ;;  %v17421_v4 = vunpack.c.h.s8.bf16 %v12192_v6  ;;  %v17422_v61 = vunpack.c.h.s8.bf16 %v12194_v20 }
  0x89   :  { %8395 = vmatprep.subr.bf16.mxu1 %v17408_v46  ;;  %v17423_v46 = vunpack.c.l.s8.bf16 %v12176_v47 }
  0x8b   :  { %8333 = vmatpush2.bf16.msra.mxu0 %v17413_v14  ;;  %v12210_v14 = vld [vmem:[#allocation5 + $0x258] sm:$0xff] }
  0x8c   :  { %8397 = vmatpush2.bf16.msra.mxu1 %v17414_v3  ;;  %8335 = vmatprep.subr.bf16.mxu0 %v17415_v52  ;;  %18881 = vst [vmem:[#allocation34_spill] sm:$0xff] %v12210_v14  ;;  %v17429_v3 = vunpack.c.l.s8.bf16 %v12192_v6  ;;  %v17430_v52 = vunpack.c.l.s8.bf16 %v12194_v20  ;;  %v17432_v34 = vunpack.c.h.s8.bf16 %v12210_v14  ;;  %v17440_v26 = vunpack.c.l.s8.bf16 %v12210_v14  ;;  %v12256_v6 = vld [vmem:[#allocation5 + $0x640] sm:$0xff] }
  0x8d   :  { %8399 = vmatprep.subr.bf16.mxu1 %v17416_v30  ;;  %v17431_v30 = vunpack.c.h.s8.bf16 %v12208_v21  ;;  %18886 = vst [vmem:[#allocation39_spill] sm:$0xff] %v12256_v6  ;;  %v17456_v14 = vunpack.c.l.s8.bf16 %v12240_v49 }
  0x8f   :  { %8337 = vmatpush2.bf16.msra.mxu0 %v17421_v4  ;;  %v12226_v4 = vld [vmem:[#allocation5 + $0x250] sm:$0xff] }
  0x90   :  { %8401 = vmatpush2.bf16.msra.mxu1 %v17422_v61  ;;  %8339 = vmatprep.subr.bf16.mxu0 %v17423_v46  ;;  %18883 = vst [vmem:[#allocation36_spill] sm:$0xff] %v12226_v4  ;;  %v17437_v61 = vunpack.c.h.s8.bf16 %v12224_v35  ;;  %v17438_v46 = vunpack.c.h.s8.bf16 %v12226_v4 }
  0x91   :  { %8403 = vmatprep.subr.bf16.mxu1 %v17424_v42  ;;  %v17439_v42 = vunpack.c.l.s8.bf16 %v12208_v21  ;;  %v12275_v21 = vld [vmem:[#allocation5 + $0x5b8] sm:$0xff] }
  0x92   :  { %18888 = vst [vmem:[#allocation41_spill] sm:$0xff] %v12275_v21 }
  0x93   :  { %8341 = vmatpush2.bf16.msra.mxu0 %v17429_v3  ;;  %v12242_v3 = vld [vmem:[#allocation5 + $0xac8] sm:$0xff] }
  0x94   :  { %8405 = vmatpush2.bf16.msra.mxu1 %v17430_v52  ;;  %8343 = vmatprep.subr.bf16.mxu0 %v17431_v30  ;;  %18885 = vst [vmem:[#allocation38_spill] sm:$0xff] %v12242_v3  ;;  %v17445_v52 = vunpack.c.l.s8.bf16 %v12224_v35  ;;  %v17447_v30 = vunpack.c.l.s8.bf16 %v12226_v4  ;;  %v17446_v20 = vunpack.c.h.s8.bf16 %v12242_v3  ;;  %v12293_v35 = vld [vmem:[#allocation5 + $0x5b0] sm:$0xff] }
  0x95   :  { %8407 = vmatprep.subr.bf16.mxu1 %v17432_v34  ;;  %v17448_v34 = vunpack.c.h.s8.bf16 %v12240_v49  ;;  %18890 = vst [vmem:[#allocation43_spill] sm:$0xff] %v12293_v35  ;;  %v12311_v49 = vld [vmem:[#allocation5 + $0x528] sm:$0xff] }
  0x96   :  { %18892 = vst [vmem:[#allocation45_spill] sm:$0xff] %v12311_v49 }
  0x97   :  { %8345 = vmatpush2.bf16.msra.mxu0 %v17437_v61  ;;  %v12258_v61 = vld [vmem:[#allocation5 + $0xac0] sm:$0xff] }
  0x98   :  { %8409 = vmatpush2.bf16.msra.mxu1 %v17438_v46  ;;  %8347 = vmatprep.subr.bf16.mxu0 %v17439_v42  ;;  %18887 = vst [vmem:[#allocation40_spill] sm:$0xff] %v12258_v61  ;;  %v12261_v46 = vunpack.c.l.bf16 %v11995_v9  ;;  %v17453_v42 = vunpack.c.h.s8.bf16 %v12256_v6  ;;  %v17454_v9 = vunpack.c.l.s8.bf16 %v12242_v3 }
  0x99   :  { %8411 = vmatprep.subr.bf16.mxu1 %v17440_v26  ;;  %v17455_v26 = vunpack.c.h.s8.bf16 %v12258_v61 }
  0x9b   :  { %8349 = vmatpush2.bf16.msra.mxu0 %v17445_v52  ;;  %v12277_v52 = vld [vmem:[#allocation5 + $0xa38] sm:$0xff] }
  0x9c   :  { %8413 = vmatpush2.bf16.msra.mxu1 %v17447_v30  ;;  %8415 = vmatprep.subr.bf16.mxu0 %v17448_v34  ;;  %18889 = vst [vmem:[#allocation42_spill] sm:$0xff] %v12277_v52  ;;  %v17462_v30 = vunpack.c.l.s8.bf16 %v12258_v61  ;;  %v17463_v34 = vunpack.c.h.s8.bf16 %v12275_v21  ;;  %v17464_v4 = vunpack.c.h.s8.bf16 %v12277_v52  ;;  %v17472_v3 = vunpack.c.l.s8.bf16 %v12277_v52 }
  0x9d   :  { %8479 = vmatprep.subr.bf16.mxu1 %v17446_v20  ;;  %v17461_v20 = vunpack.c.l.s8.bf16 %v12256_v6  ;;  %v12327_v6 = vld [vmem:[#allocation5 + $0x520] sm:$0xff] }
  0x9e   :  { %4209 = vmatmul.mubr.f32.vlgmr.msra.gmra.mxu0 %v12261_v46  ;;  %18894 = vst [vmem:[#allocation47_spill] sm:$0xff] %v12327_v6 }
  0x9f   :  { %4280 = vmatmul.mubr.f32.vlgmr.msra.gmra.mxu1 %v11987_v33  ;;  %8417 = vmatpush1.bf16.msra.mxu0 %v17453_v42  ;;  %v12295_v42 = vld [vmem:[#allocation5 + $0xa30] sm:$0xff] }
  0xa0   :  { %8481 = vmatpush1.bf16.msra.mxu1 %v17455_v26  ;;  %8419 = vmatprep.subr.bf16.mxu0 %v17456_v14  ;;  %18891 = vst [vmem:[#allocation44_spill] sm:$0xff] %v12295_v42  ;;  %v17470_v26 = vunpack.c.h.s8.bf16 %v12295_v42  ;;  %v17471_v14 = vunpack.c.l.s8.bf16 %v12275_v21  ;;  %v12343_v21 = vld [vmem:[#allocation5 + $0x498] sm:$0xff] }
  0xa1   :  { %8483 = vmatprep.subr.bf16.mxu1 %v17454_v9  ;;  %4350 = vmatprep.mubr.f32.mxu0 %v11802_v37  ;;  %v17469_v9 = vunpack.c.h.s8.bf16 %v12293_v35  ;;  %18896 = vst [vmem:[#allocation49_spill] sm:$0xff] %v12343_v21 }
  0xa2   :  { %4421 = vmatprep.mubr.f32.mxu1 %v12014_v19 }
  0xa3   :  { %8421 = vmatpush1.bf16.msra.mxu0 %v17461_v20  ;;  %v12313_v20 = vld [vmem:[#allocation5 + $0x9a8] sm:$0xff] }
  0xa4   :  { %8485 = vmatpush1.bf16.msra.mxu1 %v17462_v30  ;;  %8423 = vmatprep.subr.bf16.mxu0 %v17463_v34  ;;  %18893 = vst [vmem:[#allocation46_spill] sm:$0xff] %v12313_v20  ;;  %v17477_v30 = vunpack.c.l.s8.bf16 %v12293_v35  ;;  %v17478_v34 = vunpack.c.l.s8.bf16 %v12295_v42  ;;  %v17480_v61 = vunpack.c.h.s8.bf16 %v12313_v20  ;;  %v17488_v52 = vunpack.c.l.s8.bf16 %v12313_v20  ;;  %v12359_v35 = vld [vmem:[#allocation5 + $0x490] sm:$0xff] }
  0xa5   :  { %8487 = vmatprep.subr.bf16.mxu1 %v17464_v4  ;;  %v17479_v4 = vunpack.c.h.s8.bf16 %v12311_v49  ;;  %18898 = vst [vmem:[#allocation51_spill] sm:$0xff] %v12359_v35 }
  0xa7   :  { %8425 = vmatpush1.bf16.msra.mxu0 %v17469_v9  ;;  %v12329_v9 = vld [vmem:[#allocation5 + $0x9a0] sm:$0xff] }
  0xa8   :  { %8489 = vmatpush1.bf16.msra.mxu1 %v17470_v26  ;;  %8427 = vmatprep.subr.bf16.mxu0 %v17471_v14  ;;  %18895 = vst [vmem:[#allocation48_spill] sm:$0xff] %v12329_v9  ;;  %v17485_v26 = vunpack.c.h.s8.bf16 %v12327_v6  ;;  %v17486_v14 = vunpack.c.h.s8.bf16 %v12329_v9 }
  0xa9   :  { %8491 = vmatprep.subr.bf16.mxu1 %v17472_v3  ;;  %v17487_v3 = vunpack.c.l.s8.bf16 %v12311_v49  ;;  %v12375_v49 = vld [vmem:[#allocation5 + $0x888] sm:$0xff] }
  0xaa   :  { %18900 = vst [vmem:[#allocation53_spill] sm:$0xff] %v12375_v49 }
  0xab   :  { %8429 = vmatpush1.bf16.msra.mxu0 %v17477_v30  ;;  %v12345_v30 = vld [vmem:[#allocation5 + $0x918] sm:$0xff] }
  0xac   :  { %8493 = vmatpush1.bf16.msra.mxu1 %v17478_v34  ;;  %8431 = vmatprep.subr.bf16.mxu0 %v17479_v4  ;;  %18897 = vst [vmem:[#allocation50_spill] sm:$0xff] %v12345_v30  ;;  %v17493_v34 = vunpack.c.l.s8.bf16 %v12327_v6  ;;  %v17494_v4 = vunpack.c.l.s8.bf16 %v12329_v9  ;;  %v17496_v42 = vunpack.c.h.s8.bf16 %v12345_v30  ;;  %v17504_v20 = vunpack.c.l.s8.bf16 %v12345_v30  ;;  %v12391_v6 = vld [vmem:[#allocation5 + $0x880] sm:$0xff] }
  0xad   :  { %8495 = vmatprep.subr.bf16.mxu1 %v17480_v61  ;;  %v17495_v61 = vunpack.c.h.s8.bf16 %v12343_v21  ;;  %18902 = vst [vmem:[#allocation55_spill] sm:$0xff] %v12391_v6 }
  0xaf   :  { %8433 = vmatpush1.bf16.msra.mxu0 %v17485_v26  ;;  %v12361_v26 = vld [vmem:[#allocation5 + $0x910] sm:$0xff] }
  0xb0   :  { %8497 = vmatpush1.bf16.msra.mxu1 %v17486_v14  ;;  %8435 = vmatprep.subr.bf16.mxu0 %v17487_v3  ;;  %18899 = vst [vmem:[#allocation52_spill] sm:$0xff] %v12361_v26  ;;  %v17501_v14 = vunpack.c.h.s8.bf16 %v12359_v35  ;;  %v17502_v3 = vunpack.c.h.s8.bf16 %v12361_v26 }
  0xb1   :  { %8499 = vmatprep.subr.bf16.mxu1 %v17488_v52  ;;  %v17503_v52 = vunpack.c.l.s8.bf16 %v12343_v21  ;;  %v12407_v21 = vld [vmem:[#allocation5 + $0x7f8] sm:$0xff] }
  0xb2   :  { %18904 = vst [vmem:[#allocation57_spill] sm:$0xff] %v12407_v21 }
  0xb3   :  { %8437 = vmatpush1.bf16.msra.mxu0 %v17493_v34  ;;  %v12377_v34 = vld [vmem:[#allocation5 + $0xd08] sm:$0xff] }
  0xb4   :  { %8501 = vmatpush1.bf16.msra.mxu1 %v17494_v4  ;;  %8439 = vmatprep.subr.bf16.mxu0 %v17495_v61  ;;  %18901 = vst [vmem:[#allocation54_spill] sm:$0xff] %v12377_v34  ;;  %v17509_v4 = vunpack.c.l.s8.bf16 %v12359_v35  ;;  %v17510_v61 = vunpack.c.l.s8.bf16 %v12361_v26  ;;  %v17512_v9 = vunpack.c.h.s8.bf16 %v12377_v34  ;;  %v17520_v30 = vunpack.c.l.s8.bf16 %v12377_v34  ;;  %v12423_v35 = vld [vmem:[#allocation5 + $0x7f0] sm:$0xff] }
  0xb5   :  { %8503 = vmatprep.subr.bf16.mxu1 %v17496_v42  ;;  %v17511_v42 = vunpack.c.h.s8.bf16 %v12375_v49  ;;  %18906 = vst [vmem:[#allocation59_spill] sm:$0xff] %v12423_v35 }
  0xb7   :  { %8441 = vmatpush1.bf16.msra.mxu0 %v17501_v14  ;;  %v12393_v14 = vld [vmem:[#allocation5 + $0xd00] sm:$0xff] }
  0xb8   :  { %8505 = vmatpush1.bf16.msra.mxu1 %v17502_v3  ;;  %8443 = vmatprep.subr.bf16.mxu0 %v17503_v52  ;;  %18903 = vst [vmem:[#allocation56_spill] sm:$0xff] %v12393_v14  ;;  %v17517_v3 = vunpack.c.h.s8.bf16 %v12391_v6  ;;  %v17518_v52 = vunpack.c.h.s8.bf16 %v12393_v14 }
  0xb9   :  { %8507 = vmatprep.subr.bf16.mxu1 %v17504_v20  ;;  %v17519_v20 = vunpack.c.l.s8.bf16 %v12375_v49  ;;  %v12439_v49 = vld [vmem:[#allocation5 + $0x768] sm:$0xff] }
  0xba   :  { %18908 = vst [vmem:[#allocation61_spill] sm:$0xff] %v12439_v49 }
  0xbb   :  { %8445 = vmatpush1.bf16.msra.mxu0 %v17509_v4  ;;  %v12409_v4 = vld [vmem:[#allocation5 + $0xc78] sm:$0xff] }
  0xbc   :  { %8509 = vmatpush1.bf16.msra.mxu1 %v17510_v61  ;;  %8447 = vmatprep.subr.bf16.mxu0 %v17511_v42  ;;  %18905 = vst [vmem:[#allocation58_spill] sm:$0xff] %v12409_v4  ;;  %v17525_v61 = vunpack.c.l.s8.bf16 %v12391_v6  ;;  %v17526_v42 = vunpack.c.l.s8.bf16 %v12393_v14  ;;  %v17528_v26 = vunpack.c.h.s8.bf16 %v12409_v4  ;;  %v17536_v34 = vunpack.c.l.s8.bf16 %v12409_v4  ;;  %v12455_v6 = vld [vmem:[#allocation5 + $0x760] sm:$0xff] }
  0xbd   :  { %8511 = vmatprep.subr.bf16.mxu1 %v17512_v9  ;;  %v17527_v9 = vunpack.c.h.s8.bf16 %v12407_v21  ;;  %18910 = vst [vmem:[#allocation63_spill] sm:$0xff] %v12455_v6 }
  0xbf   :  { %8449 = vmatpush2.bf16.msra.mxu0 %v17517_v3  ;;  %v12425_v3 = vld [vmem:[#allocation5 + $0xc70] sm:$0xff] }
  0xc0   :  { %8513 = vmatpush2.bf16.msra.mxu1 %v17518_v52  ;;  %8451 = vmatprep.subr.bf16.mxu0 %v17519_v20  ;;  %18907 = vst [vmem:[#allocation60_spill] sm:$0xff] %v12425_v3  ;;  %v17533_v52 = vunpack.c.h.s8.bf16 %v12423_v35  ;;  %v17534_v20 = vunpack.c.h.s8.bf16 %v12425_v3 }
  0xc1   :  { %8515 = vmatprep.subr.bf16.mxu1 %v17520_v30  ;;  %v17535_v30 = vunpack.c.l.s8.bf16 %v12407_v21  ;;  %v12471_v21 = vld [vmem:[#allocation5 + $0x6d8] sm:$0xff] }
  0xc2   :  { %18912 = vst [vmem:[#allocation65_spill] sm:$0xff] %v12471_v21 }
  0xc3   :  { %8453 = vmatpush2.bf16.msra.mxu0 %v17525_v61  ;;  %v12441_v61 = vld [vmem:[#allocation5 + $0xbe8] sm:$0xff] }
  0xc4   :  { %8517 = vmatpush2.bf16.msra.mxu1 %v17526_v42  ;;  %8455 = vmatprep.subr.bf16.mxu0 %v17527_v9  ;;  %18909 = vst [vmem:[#allocation62_spill] sm:$0xff] %v12441_v61  ;;  %v17541_v42 = vunpack.c.l.s8.bf16 %v12423_v35  ;;  %v17542_v9 = vunpack.c.l.s8.bf16 %v12425_v3  ;;  %v17544_v14 = vunpack.c.h.s8.bf16 %v12441_v61  ;;  %v17552_v4 = vunpack.c.l.s8.bf16 %v12441_v61  ;;  %v12487_v35 = vld [vmem:[#allocation5 + $0x6d0] sm:$0xff] }
  0xc5   :  { %8519 = vmatprep.subr.bf16.mxu1 %v17528_v26  ;;  %v17543_v26 = vunpack.c.h.s8.bf16 %v12439_v49  ;;  %18914 = vst [vmem:[#allocation67_spill] sm:$0xff] %v12487_v35 }
  0xc7   :  { %8457 = vmatpush2.bf16.msra.mxu0 %v17533_v52  ;;  %v12457_v52 = vld [vmem:[#allocation5 + $0xbe0] sm:$0xff] }
  0xc8   :  { %8521 = vmatpush2.bf16.msra.mxu1 %v17534_v20  ;;  %8459 = vmatprep.subr.bf16.mxu0 %v17535_v30  ;;  %18911 = vst [vmem:[#allocation64_spill] sm:$0xff] %v12457_v52  ;;  %v17549_v20 = vunpack.c.h.s8.bf16 %v12455_v6  ;;  %v17550_v30 = vunpack.c.h.s8.bf16 %v12457_v52 }
  0xc9   :  { %8523 = vmatprep.subr.bf16.mxu1 %v17536_v34  ;;  %v17551_v34 = vunpack.c.l.s8.bf16 %v12439_v49  ;;  %v12503_v49 = vld [vmem:[#allocation5 + $0x1d8] sm:$0xff] }
  0xca   :  { %18916 = vst [vmem:[#allocation69_spill] sm:$0xff] %v12503_v49 }
  0xcb   :  { %8461 = vmatpush2.bf16.msra.mxu0 %v17541_v42  ;;  %v12473_v42 = vld [vmem:[#allocation5 + $0xb58] sm:$0xff] }
  0xcc   :  { %8525 = vmatpush2.bf16.msra.mxu1 %v17542_v9  ;;  %8463 = vmatprep.subr.bf16.mxu0 %v17543_v26  ;;  %18913 = vst [vmem:[#allocation66_spill] sm:$0xff] %v12473_v42  ;;  %v17557_v9 = vunpack.c.l.s8.bf16 %v12455_v6  ;;  %v17558_v26 = vunpack.c.l.s8.bf16 %v12457_v52  ;;  %v17560_v3 = vunpack.c.h.s8.bf16 %v12473_v42  ;;  %v17568_v61 = vunpack.c.l.s8.bf16 %v12473_v42  ;;  %v12519_v6 = vld [vmem:[#allocation5 + $0x1d0] sm:$0xff] }
  0xcd   :  { %8527 = vmatprep.subr.bf16.mxu1 %v17544_v14  ;;  %v17559_v14 = vunpack.c.h.s8.bf16 %v12471_v21  ;;  %18918 = vst [vmem:[#allocation71_spill] sm:$0xff] %v12519_v6 }
  0xcf   :  { %8465 = vmatpush2.bf16.msra.mxu0 %v17549_v20  ;;  %v12489_v20 = vld [vmem:[#allocation5 + $0xb50] sm:$0xff] }
  0xd0   :  { %8529 = vmatpush2.bf16.msra.mxu1 %v17550_v30  ;;  %8467 = vmatprep.subr.bf16.mxu0 %v17551_v34  ;;  %18915 = vst [vmem:[#allocation68_spill] sm:$0xff] %v12489_v20  ;;  %v17565_v30 = vunpack.c.h.s8.bf16 %v12487_v35  ;;  %v17566_v34 = vunpack.c.h.s8.bf16 %v12489_v20 }
  0xd1   :  { %8531 = vmatprep.subr.bf16.mxu1 %v17552_v4  ;;  %v17567_v4 = vunpack.c.l.s8.bf16 %v12471_v21  ;;  %v12535_v21 = vld [vmem:[#allocation5 + $0x148] sm:$0xff] }
  0xd2   :  { %18920 = vst [vmem:[#allocation73_spill] sm:$0xff] %v12535_v21 }
  0xd3   :  { %8469 = vmatpush2.bf16.msra.mxu0 %v17557_v9  ;;  %v12505_v9 = vld [vmem:[#allocation5 + $0x658] sm:$0xff] }
  0xd4   :  { %8533 = vmatpush2.bf16.msra.mxu1 %v17558_v26  ;;  %8471 = vmatprep.subr.bf16.mxu0 %v17559_v14  ;;  %18917 = vst [vmem:[#allocation70_spill] sm:$0xff] %v12505_v9  ;;  %v17573_v26 = vunpack.c.l.s8.bf16 %v12487_v35  ;;  %v17575_v14 = vunpack.c.l.s8.bf16 %v12489_v20  ;;  %v17574_v52 = vunpack.c.h.s8.bf16 %v12505_v9  ;;  %v17582_v42 = vunpack.c.l.s8.bf16 %v12505_v9  ;;  %v12553_v35 = vld [vmem:[#allocation5 + $0x140] sm:$0xff] }
  0xd5   :  { %8535 = vmatprep.subr.bf16.mxu1 %v17560_v3  ;;  %v17576_v3 = vunpack.c.h.s8.bf16 %v12503_v49  ;;  %18922 = vst [vmem:[#allocation75_spill] sm:$0xff] %v12553_v35 }
  0xd7   :  { %8473 = vmatpush2.bf16.msra.mxu0 %v17565_v30  ;;  %v12521_v30 = vld [vmem:[#allocation5 + $0x650] sm:$0xff] }
  0xd8   :  { %8537 = vmatpush2.bf16.msra.mxu1 %v17566_v34  ;;  %8475 = vmatprep.subr.bf16.mxu0 %v17567_v4  ;;  %18919 = vst [vmem:[#allocation72_spill] sm:$0xff] %v12521_v30  ;;  %v17581_v34 = vunpack.c.h.s8.bf16 %v12519_v6  ;;  %v17583_v4 = vunpack.c.h.s8.bf16 %v12521_v30 }
  0xd9   :  { %8539 = vmatprep.subr.bf16.mxu1 %v17568_v61  ;;  %v17584_v61 = vunpack.c.l.s8.bf16 %v12503_v49  ;;  %v12571_v49 = vld [vmem:[#allocation5 + $0xb8] sm:$0xff] }
  0xda   :  { %18924 = vst [vmem:[#allocation77_spill] sm:$0xff] %v12571_v49 }
  0xdb   :  { %8477 = vmatpush2.bf16.msra.mxu0 %v17573_v26  ;;  %v12537_v26 = vld [vmem:[#allocation5 + $0x5c8] sm:$0xff] }
  0xdc   :  { %8541 = vmatpush2.bf16.msra.mxu1 %v17575_v14  ;;  %8543 = vmatprep.subr.bf16.mxu0 %v17576_v3  ;;  %18921 = vst [vmem:[#allocation74_spill] sm:$0xff] %v12537_v26  ;;  %v17590_v14 = vunpack.c.l.s8.bf16 %v12521_v30  ;;  %v17591_v3 = vunpack.c.h.s8.bf16 %v12535_v21  ;;  %v17592_v20 = vunpack.c.h.s8.bf16 %v12537_v26  ;;  %v17600_v9 = vunpack.c.l.s8.bf16 %v12537_v26 }
  0xdd   :  { %8607 = vmatprep.subr.bf16.mxu1 %v17574_v52  ;;  %v17589_v52 = vunpack.c.l.s8.bf16 %v12519_v6  ;;  %v12587_v6 = vld [vmem:[#allocation5 + $0xb0] sm:$0xff] }
  0xde   :  { %4351 = vmatmul.mubr.f32.vlgmr.msra.gmra.mxu0 %v11990_v54  ;;  %18926 = vst [vmem:[#allocation79_spill] sm:$0xff] %v12587_v6 }
  0xdf   :  { %4422 = vmatmul.mubr.f32.vlgmr.msra.gmra.mxu1 %v12261_v46  ;;  %8545 = vmatpush1.bf16.msra.mxu0 %v17581_v34  ;;  %v12555_v34 = vld [vmem:[#allocation5 + $0x5c0] sm:$0xff] }
  0xe0   :  { %8609 = vmatpush1.bf16.msra.mxu1 %v17583_v4  ;;  %8547 = vmatprep.subr.bf16.mxu0 %v17584_v61  ;;  %18923 = vst [vmem:[#allocation76_spill] sm:$0xff] %v12555_v34  ;;  %v17598_v4 = vunpack.c.h.s8.bf16 %v12555_v34  ;;  %v17599_v61 = vunpack.c.l.s8.bf16 %v12535_v21  ;;  %v12603_v21 = vld [vmem:[#allocation5 + $0x28] sm:$0xff] }
  0xe1   :  { %8611 = vmatprep.subr.bf16.mxu1 %v17582_v42  ;;  %4492 = vmatprep.mubr.f32.mxu0 %v11799_v36  ;;  %v17597_v42 = vunpack.c.h.s8.bf16 %v12553_v35  ;;  %18928 = vst [vmem:[#allocation81_spill] sm:$0xff] %v12603_v21 }
  0xe2   :  { %4563 = vmatprep.mubr.f32.mxu1 %v11802_v37 }
  0xe3   :  { %8549 = vmatpush1.bf16.msra.mxu0 %v17589_v52  ;;  %v12573_v52 = vld [vmem:[#allocation5 + $0x538] sm:$0xff] }
  0xe4   :  { %8613 = vmatpush1.bf16.msra.mxu1 %v17590_v14  ;;  %8551 = vmatprep.subr.bf16.mxu0 %v17591_v3  ;;  %18925 = vst [vmem:[#allocation78_spill] sm:$0xff] %v12573_v52  ;;  %v17605_v14 = vunpack.c.l.s8.bf16 %v12553_v35  ;;  %v17606_v3 = vunpack.c.l.s8.bf16 %v12555_v34  ;;  %v17608_v30 = vunpack.c.h.s8.bf16 %v12573_v52  ;;  %v17616_v26 = vunpack.c.l.s8.bf16 %v12573_v52  ;;  %v12619_v35 = vld [vmem:[#allocation5 + $0x20] sm:$0xff] }
  0xe5   :  { %8615 = vmatprep.subr.bf16.mxu1 %v17592_v20  ;;  %v17607_v20 = vunpack.c.h.s8.bf16 %v12571_v49  ;;  %18930 = vst [vmem:[#allocation83_spill] sm:$0xff] %v12619_v35 }
  0xe7   :  { %8553 = vmatpush1.bf16.msra.mxu0 %v17597_v42  ;;  %v12589_v42 = vld [vmem:[#allocation5 + $0x530] sm:$0xff] }
  0xe8   :  { %8617 = vmatpush1.bf16.msra.mxu1 %v17598_v4  ;;  %8555 = vmatprep.subr.bf16.mxu0 %v17599_v61  ;;  %18927 = vst [vmem:[#allocation80_spill] sm:$0xff] %v12589_v42  ;;  %v17613_v4 = vunpack.c.h.s8.bf16 %v12587_v6  ;;  %v17614_v61 = vunpack.c.h.s8.bf16 %v12589_v42 }
  0xe9   :  { %8619 = vmatprep.subr.bf16.mxu1 %v17600_v9  ;;  %v17615_v9 = vunpack.c.l.s8.bf16 %v12571_v49  ;;  %v12635_v49 = vld [vmem:[#allocation5 + $0x418] sm:$0xff] }
  0xea   :  { %18932 = vst [vmem:[#allocation85_spill] sm:$0xff] %v12635_v49 }
  0xeb   :  { %8557 = vmatpush1.bf16.msra.mxu0 %v17605_v14  ;;  %v12605_v14 = vld [vmem:[#allocation5 + $0x4a8] sm:$0xff] }
  0xec   :  { %8621 = vmatpush1.bf16.msra.mxu1 %v17606_v3  ;;  %8559 = vmatprep.subr.bf16.mxu0 %v17607_v20  ;;  %18929 = vst [vmem:[#allocation82_spill] sm:$0xff] %v12605_v14  ;;  %v17621_v3 = vunpack.c.l.s8.bf16 %v12587_v6  ;;  %v17622_v20 = vunpack.c.l.s8.bf16 %v12589_v42  ;;  %v17624_v34 = vunpack.c.h.s8.bf16 %v12605_v14  ;;  %v17632_v52 = vunpack.c.l.s8.bf16 %v12605_v14  ;;  %v12651_v6 = vld [vmem:[#allocation5 + $0x410] sm:$0xff] }
  0xed   :  { %8623 = vmatprep.subr.bf16.mxu1 %v17608_v30  ;;  %v17623_v30 = vunpack.c.h.s8.bf16 %v12603_v21  ;;  %18934 = vst [vmem:[#allocation87_spill] sm:$0xff] %v12651_v6 }
  0xef   :  { %8561 = vmatpush1.bf16.msra.mxu0 %v17613_v4  ;;  %v12621_v4 = vld [vmem:[#allocation5 + $0x4a0] sm:$0xff] }
  0xf0   :  { %8625 = vmatpush1.bf16.msra.mxu1 %v17614_v61  ;;  %8563 = vmatprep.subr.bf16.mxu0 %v17615_v9  ;;  %18931 = vst [vmem:[#allocation84_spill] sm:$0xff] %v12621_v4  ;;  %v17629_v61 = vunpack.c.h.s8.bf16 %v12619_v35  ;;  %v17630_v9 = vunpack.c.h.s8.bf16 %v12621_v4 }
  0xf1   :  { %8627 = vmatprep.subr.bf16.mxu1 %v17616_v26  ;;  %v17631_v26 = vunpack.c.l.s8.bf16 %v12603_v21  ;;  %v12667_v21 = vld [vmem:[#allocation5 + $0x388] sm:$0xff] }
  0xf2   :  { %18936 = vst [vmem:[#allocation89_spill] sm:$0xff] %v12667_v21 }
  0xf3   :  { %8565 = vmatpush1.bf16.msra.mxu0 %v17621_v3  ;;  %v12637_v3 = vld [vmem:[#allocation5 + $0x898] sm:$0xff] }
  0xf4   :  { %8629 = vmatpush1.bf16.msra.mxu1 %v17622_v20  ;;  %8567 = vmatprep.subr.bf16.mxu0 %v17623_v30  ;;  %18933 = vst [vmem:[#allocation86_spill] sm:$0xff] %v12637_v3  ;;  %v17637_v20 = vunpack.c.l.s8.bf16 %v12619_v35  ;;  %v17638_v30 = vunpack.c.l.s8.bf16 %v12621_v4  ;;  %v17640_v42 = vunpack.c.h.s8.bf16 %v12637_v3  ;;  %v17648_v14 = vunpack.c.l.s8.bf16 %v12637_v3  ;;  %v12683_v35 = vld [vmem:[#allocation5 + $0x380] sm:$0xff] }
  0xf5   :  { %8631 = vmatprep.subr.bf16.mxu1 %v17624_v34  ;;  %v17639_v34 = vunpack.c.h.s8.bf16 %v12635_v49  ;;  %18938 = vst [vmem:[#allocation91_spill] sm:$0xff] %v12683_v35 }
  0xf7   :  { %8569 = vmatpush1.bf16.msra.mxu0 %v17629_v61  ;;  %v12653_v61 = vld [vmem:[#allocation5 + $0x890] sm:$0xff] }
  0xf8   :  { %8633 = vmatpush1.bf16.msra.mxu1 %v17630_v9  ;;  %8571 = vmatprep.subr.bf16.mxu0 %v17631_v26  ;;  %18935 = vst [vmem:[#allocation88_spill] sm:$0xff] %v12653_v61  ;;  %v17645_v9 = vunpack.c.h.s8.bf16 %v12651_v6  ;;  %v17646_v26 = vunpack.c.h.s8.bf16 %v12653_v61 }
  0xf9   :  { %8635 = vmatprep.subr.bf16.mxu1 %v17632_v52  ;;  %v17647_v52 = vunpack.c.l.s8.bf16 %v12635_v49  ;;  %v12699_v49 = vld [vmem:[#allocation5 + $0x2f8] sm:$0xff] }
  0xfa   :  { %18940 = vst [vmem:[#allocation93_spill] sm:$0xff] %v12699_v49 }
  0xfb   :  { %8573 = vmatpush1.bf16.msra.mxu0 %v17637_v20  ;;  %v12669_v20 = vld [vmem:[#allocation5 + $0x808] sm:$0xff] }
  0xfc   :  { %8637 = vmatpush1.bf16.msra.mxu1 %v17638_v30  ;;  %8575 = vmatprep.subr.bf16.mxu0 %v17639_v34  ;;  %18937 = vst [vmem:[#allocation90_spill] sm:$0xff] %v12669_v20  ;;  %v17653_v30 = vunpack.c.l.s8.bf16 %v12651_v6  ;;  %v17654_v34 = vunpack.c.l.s8.bf16 %v12653_v61  ;;  %v17656_v4 = vunpack.c.h.s8.bf16 %v12669_v20  ;;  %v17664_v3 = vunpack.c.l.s8.bf16 %v12669_v20  ;;  %v12715_v6 = vld [vmem:[#allocation5 + $0x2f0] sm:$0xff] }
  0xfd   :  { %8639 = vmatprep.subr.bf16.mxu1 %v17640_v42  ;;  %v17655_v42 = vunpack.c.h.s8.bf16 %v12667_v21  ;;  %18942 = vst [vmem:[#allocation95_spill] sm:$0xff] %v12715_v6 }
  0xff   :  { %8577 = vmatpush2.bf16.msra.mxu0 %v17645_v9  ;;  %v12685_v9 = vld [vmem:[#allocation5 + $0x800] sm:$0xff] }
 0x100   :  { %8641 = vmatpush2.bf16.msra.mxu1 %v17646_v26  ;;  %8579 = vmatprep.subr.bf16.mxu0 %v17647_v52  ;;  %18939 = vst [vmem:[#allocation92_spill] sm:$0xff] %v12685_v9  ;;  %v17661_v26 = vunpack.c.h.s8.bf16 %v12683_v35  ;;  %v17662_v52 = vunpack.c.h.s8.bf16 %v12685_v9 }
 0x101   :  { %8643 = vmatprep.subr.bf16.mxu1 %v17648_v14  ;;  %v17663_v14 = vunpack.c.l.s8.bf16 %v12667_v21  ;;  %v12731_v21 = vld [vmem:[#allocation5 + $0x268] sm:$0xff] }
 0x102   :  { %18944 = vst [vmem:[#allocation97_spill] sm:$0xff] %v12731_v21 }
 0x103   :  { %8581 = vmatpush2.bf16.msra.mxu0 %v17653_v30  ;;  %v12701_v30 = vld [vmem:[#allocation5 + $0x778] sm:$0xff] }
 0x104   :  { %8645 = vmatpush2.bf16.msra.mxu1 %v17654_v34  ;;  %8583 = vmatprep.subr.bf16.mxu0 %v17655_v42  ;;  %18941 = vst [vmem:[#allocation94_spill] sm:$0xff] %v12701_v30  ;;  %v17669_v34 = vunpack.c.l.s8.bf16 %v12683_v35  ;;  %v17670_v42 = vunpack.c.l.s8.bf16 %v12685_v9  ;;  %v17672_v61 = vunpack.c.h.s8.bf16 %v12701_v30  ;;  %v17680_v20 = vunpack.c.l.s8.bf16 %v12701_v30  ;;  %v12747_v35 = vld [vmem:[#allocation5 + $0x260] sm:$0xff] }
 0x105   :  { %8647 = vmatprep.subr.bf16.mxu1 %v17656_v4  ;;  %v17671_v4 = vunpack.c.h.s8.bf16 %v12699_v49  ;;  %18946 = vst [vmem:[#allocation99_spill] sm:$0xff] %v12747_v35 }
 0x107   :  { %8585 = vmatpush2.bf16.msra.mxu0 %v17661_v26  ;;  %v12717_v26 = vld [vmem:[#allocation5 + $0x770] sm:$0xff] }
 0x108   :  { %8649 = vmatpush2.bf16.msra.mxu1 %v17662_v52  ;;  %8587 = vmatprep.subr.bf16.mxu0 %v17663_v14  ;;  %18943 = vst [vmem:[#allocation96_spill] sm:$0xff] %v12717_v26  ;;  %v17677_v52 = vunpack.c.h.s8.bf16 %v12715_v6  ;;  %v17678_v14 = vunpack.c.h.s8.bf16 %v12717_v26 }
 0x109   :  { %8651 = vmatprep.subr.bf16.mxu1 %v17664_v3  ;;  %v17679_v3 = vunpack.c.l.s8.bf16 %v12699_v49  ;;  %v12763_v49 = vld [vmem:[#allocation5 + $0xad8] sm:$0xff] }
 0x10a   :  { %18948 = vst [vmem:[#allocation101_spill] sm:$0xff] %v12763_v49  ;;  %v18955_v13 = vunpack.c.l.s8.bf16 %v12763_v49 }
 0x10b   :  { %8589 = vmatpush2.bf16.msra.mxu0 %v17669_v34  ;;  %v12733_v34 = vld [vmem:[#allocation5 + $0x6e8] sm:$0xff] }
 0x10c   :  { %8653 = vmatpush2.bf16.msra.mxu1 %v17670_v42  ;;  %8591 = vmatprep.subr.bf16.mxu0 %v17671_v4  ;;  %18945 = vst [vmem:[#allocation98_spill] sm:$0xff] %v12733_v34  ;;  %v17685_v42 = vunpack.c.l.s8.bf16 %v12715_v6  ;;  %v17686_v4 = vunpack.c.l.s8.bf16 %v12717_v26  ;;  %v17688_v9 = vunpack.c.h.s8.bf16 %v12733_v34  ;;  %v17696_v30 = vunpack.c.l.s8.bf16 %v12733_v34  ;;  %v12779_v6 = vld [vmem:[#allocation5 + $0xad0] sm:$0xff] }
 0x10d   :  { %8655 = vmatprep.subr.bf16.mxu1 %v17672_v61  ;;  %v17687_v61 = vunpack.c.h.s8.bf16 %v12731_v21  ;;  %18950 = vst [vmem:[#allocation103_spill] sm:$0xff] %v12779_v6 }
 0x10f   :  { %8593 = vmatpush2.bf16.msra.mxu0 %v17677_v52  ;;  %v12749_v52 = vld [vmem:[#allocation5 + $0x6e0] sm:$0xff] }
 0x110   :  { %8657 = vmatpush2.bf16.msra.mxu1 %v17678_v14  ;;  %8595 = vmatprep.subr.bf16.mxu0 %v17679_v3  ;;  %18947 = vst [vmem:[#allocation100_spill] sm:$0xff] %v12749_v52  ;;  %v17693_v14 = vunpack.c.h.s8.bf16 %v12747_v35  ;;  %v17694_v3 = vunpack.c.h.s8.bf16 %v12749_v52 }
 0x111   :  { %8659 = vmatprep.subr.bf16.mxu1 %v17680_v20  ;;  %v17695_v20 = vunpack.c.l.s8.bf16 %v12731_v21  ;;  %v12795_v21 = vld [vmem:[#allocation5 + $0xa48] sm:$0xff] }
 0x112   :  { %18952 = vst [vmem:[#allocation105_spill] sm:$0xff] %v12795_v21 }
 0x113   :  { %8597 = vmatpush2.bf16.msra.mxu0 %v17685_v42  ;;  %v12765_v42 = vld [vmem:[#allocation5 + $0x1e8] sm:$0xff] }
 0x114   :  { %8661 = vmatpush2.bf16.msra.mxu1 %v17686_v4  ;;  %8599 = vmatprep.subr.bf16.mxu0 %v17687_v61  ;;  %18949 = vst [vmem:[#allocation102_spill] sm:$0xff] %v12765_v42  ;;  %v17701_v4 = vunpack.c.l.s8.bf16 %v12747_v35  ;;  %v17704_v61 = vunpack.c.l.s8.bf16 %v12749_v52  ;;  %v17705_v26 = vunpack.c.h.s8.bf16 %v12765_v42  ;;  %v18956_v47 = vunpack.c.l.s8.bf16 %v12765_v42  ;;  %v12835_v42 = vld [vmem:[#allocation5 + $0x9b8] sm:$0xff] }
 0x115   :  { %8663 = vmatprep.subr.bf16.mxu1 %v17688_v9  ;;  %v17706_v9 = vunpack.c.h.s8.bf16 %v12763_v49  ;;  %18959 = vst [vmem:[#allocation109_spill] sm:$0xff] %v12835_v42 }
 0x117   :  { %8601 = vmatpush2.bf16.msra.mxu0 %v17693_v14  ;;  %v12781_v14 = vld [vmem:[#allocation5 + $0x1e0] sm:$0xff] }
 0x118   :  { %8665 = vmatpush2.bf16.msra.mxu1 %v17694_v3  ;;  %8603 = vmatprep.subr.bf16.mxu0 %v17695_v20  ;;  %18951 = vst [vmem:[#allocation104_spill] sm:$0xff] %v12781_v14  ;;  %v17713_v3 = vunpack.c.h.s8.bf16 %v12779_v6  ;;  %v17719_v34 = vunpack.c.l.s8.bf16 %v12781_v14 }
 0x119   :  { %8667 = vmatprep.subr.bf16.mxu1 %v17696_v30 }
 0x11b   :  { %8605 = vmatpush2.bf16.msra.mxu0 %v17701_v4  ;;  %v12797_v4 = vld [vmem:[#allocation5 + $0x158] sm:$0xff] }
 0x11c   :  { %8669 = vmatpush2.bf16.msra.mxu1 %v17704_v61  ;;  %8671 = vmatprep.subr.bf16.mxu0 %v17706_v9  ;;  %18953 = vst [vmem:[#allocation106_spill] sm:$0xff] %v12797_v4  ;;  %v17718_v9 = vunpack.c.l.s8.bf16 %v12779_v6  ;;  %v12851_v6 = vld [vmem:[#allocation5 + $0x9b0] sm:$0xff] }
 0x11d   :  { %8735 = vmatprep.subr.bf16.mxu1 %v17705_v26  ;;  %v18954_v26 = vunpack.c.h.s8.bf16 %v12781_v14  ;;  %18961 = vst [vmem:[#allocation111_spill] sm:$0xff] %v12851_v6 }
 0x11e   :  { %v4068_v52 = vpop.f32.mrf.mxu0  ;;  %4493 = vmatmul.mubr.f32.vlgmr.msra.gmra.mxu0 %v11987_v33 }
 0x11f   :  { %v4139_v61 = vpop.f32.mrf.mxu1  ;;  %4564 = vmatmul.mubr.f32.vlgmr.msra.gmra.mxu1 %v11990_v54  ;;  %8673 = vmatpush1.bf16.msra.mxu0 %v17713_v3  ;;  %v12815_v3 = vld [vmem:[#allocation5 + $0xa40] sm:$0xff] }
 0x120   :  { %v12801_v20 = vadd.f32 %v4139_v61, %v4068_v52  ;;  %8737 = vmatpush1.bf16.msra.mxu1 %v18954_v26  ;;  %v4070_v30 = vpop.f32.mrf.mxu0  ;;  %8675 = vmatprep.subr.bf16.mxu0 %v18955_v13  ;;  %v17720_v52 = vunpack.c.h.s8.bf16 %v12795_v21  ;;  %v17721_v61 = vunpack.c.h.s8.bf16 %v12797_v4  ;;  %18957 = vst [vmem:[#allocation107_spill] sm:$0xff] %v12815_v3  ;;  %v17726_v13 = vunpack.c.h.s8.bf16 %v12815_v3 }
 0x121   :  { %v4141_v35 = vpop.f32.mrf.mxu1  ;;  %8739 = vmatprep.subr.bf16.mxu1 %v18956_v47  ;;  %4634 = vmatprep.mubr.f32.mxu0 %v12014_v19  ;;  %v17727_v47 = vunpack.c.h.s8.bf16 %v12817_v25 }
 0x122   :  { %v12819_v26 = vadd.f32 %v4141_v35, %v4070_v30  ;;  %4705 = vmatprep.mubr.f32.mxu1 %v11799_v36  ;;  %v17728_v35 = vunpack.c.l.s8.bf16 %v12795_v21  ;;  %v17729_v30 = vunpack.c.l.s8.bf16 %v12797_v4  ;;  %v12867_v21 = vld [vmem:[#allocation5 + $0x928] sm:$0xff] }
 0x123   :  { %8677 = vmatpush1.bf16.msra.mxu0 %v17718_v9  ;;  %v12837_v9 = vld [vmem:[#allocation5 + $0xc8] sm:$0xff]  ;;  %18963 = vst [vmem:[#allocation113_spill] sm:$0xff] %v12867_v21 }
 0x124   :  { %8741 = vmatpush1.bf16.msra.mxu1 %v17719_v34  ;;  %8679 = vmatprep.subr.bf16.mxu0 %v17720_v52  ;;  %18960 = vst [vmem:[#allocation110_spill] sm:$0xff] %v12837_v9  ;;  %v17734_v34 = vunpack.c.l.s8.bf16 %v12815_v3  ;;  %v17735_v52 = vunpack.c.l.s8.bf16 %v12817_v25  ;;  %v17737_v14 = vunpack.c.h.s8.bf16 %v12837_v9  ;;  %v17745_v4 = vunpack.c.l.s8.bf16 %v12837_v9  ;;  %v12883_v3 = vld [vmem:[#allocation5 + $0x920] sm:$0xff] }
 0x125   :  { %8743 = vmatprep.subr.bf16.mxu1 %v17721_v61  ;;  %v17736_v61 = vunpack.c.h.s8.bf16 %v12835_v42  ;;  %18965 = vst [vmem:[#allocation115_spill] sm:$0xff] %v12883_v3 }
 0x127   :  { %8681 = vmatpush1.bf16.msra.mxu0 %v17726_v13  ;;  %v12853_v13 = vld [vmem:[#allocation5 + $0xc0] sm:$0xff] }
 0x128   :  { %8745 = vmatpush1.bf16.msra.mxu1 %v17727_v47  ;;  %8683 = vmatprep.subr.bf16.mxu0 %v17728_v35  ;;  %18962 = vst [vmem:[#allocation112_spill] sm:$0xff] %v12853_v13  ;;  %v17742_v47 = vunpack.c.h.s8.bf16 %v12851_v6  ;;  %v17743_v35 = vunpack.c.h.s8.bf16 %v12853_v13 }
 0x129   :  { %8747 = vmatprep.subr.bf16.mxu1 %v17729_v30  ;;  %v17744_v30 = vunpack.c.l.s8.bf16 %v12835_v42  ;;  %v12899_v42 = vld [vmem:[#allocation5 + $0xd18] sm:$0xff] }
 0x12a   :  { %18967 = vst [vmem:[#allocation117_spill] sm:$0xff] %v12899_v42 }
 0x12b   :  { %8685 = vmatpush1.bf16.msra.mxu0 %v17734_v34  ;;  %v12869_v34 = vld [vmem:[#allocation5 + $0x38] sm:$0xff] }
 0x12c   :  { %8749 = vmatpush1.bf16.msra.mxu1 %v17735_v52  ;;  %8687 = vmatprep.subr.bf16.mxu0 %v17736_v61  ;;  %18964 = vst [vmem:[#allocation114_spill] sm:$0xff] %v12869_v34  ;;  %v17750_v52 = vunpack.c.l.s8.bf16 %v12851_v6  ;;  %v17751_v61 = vunpack.c.l.s8.bf16 %v12853_v13  ;;  %v17753_v25 = vunpack.c.h.s8.bf16 %v12869_v34  ;;  %v17761_v9 = vunpack.c.l.s8.bf16 %v12869_v34  ;;  %v12915_v6 = vld [vmem:[#allocation5 + $0xd10] sm:$0xff] }
 0x12d   :  { %8751 = vmatprep.subr.bf16.mxu1 %v17737_v14  ;;  %v17752_v14 = vunpack.c.h.s8.bf16 %v12867_v21  ;;  %18969 = vst [vmem:[#allocation119_spill] sm:$0xff] %v12915_v6 }
 0x12f   :  { %8689 = vmatpush1.bf16.msra.mxu0 %v17742_v47  ;;  %v12885_v47 = vld [vmem:[#allocation5 + $0x30] sm:$0xff] }
 0x130   :  { %8753 = vmatpush1.bf16.msra.mxu1 %v17743_v35  ;;  %8691 = vmatprep.subr.bf16.mxu0 %v17744_v30  ;;  %18966 = vst [vmem:[#allocation116_spill] sm:$0xff] %v12885_v47  ;;  %v17758_v35 = vunpack.c.h.s8.bf16 %v12883_v3  ;;  %v17759_v30 = vunpack.c.h.s8.bf16 %v12885_v47 }
 0x131   :  { %8755 = vmatprep.subr.bf16.mxu1 %v17745_v4  ;;  %v17760_v4 = vunpack.c.l.s8.bf16 %v12867_v21  ;;  %v12931_v21 = vld [vmem:[#allocation5 + $0xc88] sm:$0xff] }
 0x132   :  { %18971 = vst [vmem:[#allocation121_spill] sm:$0xff] %v12931_v21 }
 0x133   :  { %8693 = vmatpush1.bf16.msra.mxu0 %v17750_v52  ;;  %v12901_v52 = vld [vmem:[#allocation5 + $0x428] sm:$0xff] }
 0x134   :  { %8757 = vmatpush1.bf16.msra.mxu1 %v17751_v61  ;;  %8695 = vmatprep.subr.bf16.mxu0 %v17752_v14  ;;  %18968 = vst [vmem:[#allocation118_spill] sm:$0xff] %v12901_v52  ;;  %v17766_v61 = vunpack.c.l.s8.bf16 %v12883_v3  ;;  %v17767_v14 = vunpack.c.l.s8.bf16 %v12885_v47  ;;  %v17769_v13 = vunpack.c.h.s8.bf16 %v12901_v52  ;;  %v17777_v34 = vunpack.c.l.s8.bf16 %v12901_v52  ;;  %v12947_v3 = vld [vmem:[#allocation5 + $0xc80] sm:$0xff] }
 0x135   :  { %8759 = vmatprep.subr.bf16.mxu1 %v17753_v25  ;;  %v17768_v25 = vunpack.c.h.s8.bf16 %v12899_v42  ;;  %18973 = vst [vmem:[#allocation123_spill] sm:$0xff] %v12947_v3 }
 0x137   :  { %8697 = vmatpush1.bf16.msra.mxu0 %v17758_v35  ;;  %v12917_v35 = vld [vmem:[#allocation5 + $0x420] sm:$0xff] }
 0x138   :  { %8761 = vmatpush1.bf16.msra.mxu1 %v17759_v30  ;;  %8699 = vmatprep.subr.bf16.mxu0 %v17760_v4  ;;  %18970 = vst [vmem:[#allocation120_spill] sm:$0xff] %v12917_v35  ;;  %v17774_v30 = vunpack.c.h.s8.bf16 %v12915_v6  ;;  %v17775_v4 = vunpack.c.h.s8.bf16 %v12917_v35 }
 0x139   :  { %8763 = vmatprep.subr.bf16.mxu1 %v17761_v9  ;;  %v17776_v9 = vunpack.c.l.s8.bf16 %v12899_v42  ;;  %v12963_v42 = vld [vmem:[#allocation5 + $0xbf8] sm:$0xff] }
 0x13a   :  { %18975 = vst [vmem:[#allocation125_spill] sm:$0xff] %v12963_v42 }
 0x13b   :  { %8701 = vmatpush1.bf16.msra.mxu0 %v17766_v61  ;;  %v12933_v61 = vld [vmem:[#allocation5 + $0x398] sm:$0xff] }
 0x13c   :  { %8765 = vmatpush1.bf16.msra.mxu1 %v17767_v14  ;;  %8703 = vmatprep.subr.bf16.mxu0 %v17768_v25  ;;  %18972 = vst [vmem:[#allocation122_spill] sm:$0xff] %v12933_v61  ;;  %v17782_v14 = vunpack.c.l.s8.bf16 %v12915_v6  ;;  %v17783_v25 = vunpack.c.l.s8.bf16 %v12917_v35  ;;  %v17785_v47 = vunpack.c.h.s8.bf16 %v12933_v61  ;;  %v17793_v52 = vunpack.c.l.s8.bf16 %v12933_v61  ;;  %v12979_v6 = vld [vmem:[#allocation5 + $0xbf0] sm:$0xff] }
 0x13d   :  { %8767 = vmatprep.subr.bf16.mxu1 %v17769_v13  ;;  %v17784_v13 = vunpack.c.h.s8.bf16 %v12931_v21  ;;  %18977 = vst [vmem:[#allocation127_spill] sm:$0xff] %v12979_v6 }
 0x13f   :  { %8705 = vmatpush2.bf16.msra.mxu0 %v17774_v30  ;;  %v12949_v30 = vld [vmem:[#allocation5 + $0x390] sm:$0xff] }
 0x140   :  { %8769 = vmatpush2.bf16.msra.mxu1 %v17775_v4  ;;  %8707 = vmatprep.subr.bf16.mxu0 %v17776_v9  ;;  %18974 = vst [vmem:[#allocation124_spill] sm:$0xff] %v12949_v30  ;;  %v17790_v4 = vunpack.c.h.s8.bf16 %v12947_v3  ;;  %v17791_v9 = vunpack.c.h.s8.bf16 %v12949_v30 }
 0x141   :  { %8771 = vmatprep.subr.bf16.mxu1 %v17777_v34  ;;  %v17792_v34 = vunpack.c.l.s8.bf16 %v12931_v21  ;;  %v12995_v21 = vld [vmem:[#allocation5 + $0xb68] sm:$0xff] }
 0x142   :  { %18979 = vst [vmem:[#allocation129_spill] sm:$0xff] %v12995_v21 }
 0x143   :  { %8709 = vmatpush2.bf16.msra.mxu0 %v17782_v14  ;;  %v12965_v14 = vld [vmem:[#allocation5 + $0x308] sm:$0xff] }
 0x144   :  { %8773 = vmatpush2.bf16.msra.mxu1 %v17783_v25  ;;  %8711 = vmatprep.subr.bf16.mxu0 %v17784_v13  ;;  %18976 = vst [vmem:[#allocation126_spill] sm:$0xff] %v12965_v14  ;;  %v17798_v25 = vunpack.c.l.s8.bf16 %v12947_v3  ;;  %v17799_v13 = vunpack.c.l.s8.bf16 %v12949_v30  ;;  %v17801_v35 = vunpack.c.h.s8.bf16 %v12965_v14  ;;  %v17809_v61 = vunpack.c.l.s8.bf16 %v12965_v14  ;;  %v13011_v3 = vld [vmem:[#allocation5 + $0xb60] sm:$0xff] }
 0x145   :  { %8775 = vmatprep.subr.bf16.mxu1 %v17785_v47  ;;  %v17800_v47 = vunpack.c.h.s8.bf16 %v12963_v42  ;;  %18981 = vst [vmem:[#allocation131_spill] sm:$0xff] %v13011_v3 }
 0x147   :  { %8713 = vmatpush2.bf16.msra.mxu0 %v17790_v4  ;;  %v12981_v4 = vld [vmem:[#allocation5 + $0x300] sm:$0xff] }
 0x148   :  { %8777 = vmatpush2.bf16.msra.mxu1 %v17791_v9  ;;  %8715 = vmatprep.subr.bf16.mxu0 %v17792_v34  ;;  %18978 = vst [vmem:[#allocation128_spill] sm:$0xff] %v12981_v4  ;;  %v17806_v9 = vunpack.c.h.s8.bf16 %v12979_v6  ;;  %v17807_v34 = vunpack.c.h.s8.bf16 %v12981_v4 }
 0x149   :  { %8779 = vmatprep.subr.bf16.mxu1 %v17793_v52  ;;  %v17808_v52 = vunpack.c.l.s8.bf16 %v12963_v42  ;;  %v13027_v42 = vld [vmem:[#allocation5 + $0x668] sm:$0xff] }
 0x14a   :  { %18983 = vst [vmem:[#allocation133_spill] sm:$0xff] %v13027_v42 }
 0x14b   :  { %8717 = vmatpush2.bf16.msra.mxu0 %v17798_v25  ;;  %v12997_v25 = vld [vmem:[#allocation5 + $0x278] sm:$0xff] }
 0x14c   :  { %8781 = vmatpush2.bf16.msra.mxu1 %v17799_v13  ;;  %8719 = vmatprep.subr.bf16.mxu0 %v17800_v47  ;;  %18980 = vst [vmem:[#allocation130_spill] sm:$0xff] %v12997_v25  ;;  %v17814_v13 = vunpack.c.l.s8.bf16 %v12979_v6  ;;  %v17815_v47 = vunpack.c.l.s8.bf16 %v12981_v4  ;;  %v17817_v30 = vunpack.c.h.s8.bf16 %v12997_v25  ;;  %v17825_v14 = vunpack.c.l.s8.bf16 %v12997_v25  ;;  %v13043_v6 = vld [vmem:[#allocation5 + $0x660] sm:$0xff] }
 0x14d   :  { %8783 = vmatprep.subr.bf16.mxu1 %v17801_v35  ;;  %v17816_v35 = vunpack.c.h.s8.bf16 %v12995_v21  ;;  %18985 = vst [vmem:[#allocation135_spill] sm:$0xff] %v13043_v6 }
 0x14f   :  { %8721 = vmatpush2.bf16.msra.mxu0 %v17806_v9  ;;  %v13013_v9 = vld [vmem:[#allocation5 + $0x270] sm:$0xff] }
 0x150   :  { %8785 = vmatpush2.bf16.msra.mxu1 %v17807_v34  ;;  %8723 = vmatprep.subr.bf16.mxu0 %v17808_v52  ;;  %18982 = vst [vmem:[#allocation132_spill] sm:$0xff] %v13013_v9  ;;  %v17822_v34 = vunpack.c.h.s8.bf16 %v13011_v3  ;;  %v17823_v52 = vunpack.c.h.s8.bf16 %v13013_v9 }
 0x151   :  { %8787 = vmatprep.subr.bf16.mxu1 %v17809_v61  ;;  %v17824_v61 = vunpack.c.l.s8.bf16 %v12995_v21  ;;  %v13059_v21 = vld [vmem:[#allocation5 + $0x5d8] sm:$0xff] }
 0x152   :  { %18987 = vst [vmem:[#allocation137_spill] sm:$0xff] %v13059_v21 }
 0x153   :  { %8725 = vmatpush2.bf16.msra.mxu0 %v17814_v13  ;;  %v13029_v13 = vld [vmem:[#allocation5 + $0xae8] sm:$0xff] }
 0x154   :  { %8789 = vmatpush2.bf16.msra.mxu1 %v17815_v47  ;;  %8727 = vmatprep.subr.bf16.mxu0 %v17816_v35  ;;  %18984 = vst [vmem:[#allocation134_spill] sm:$0xff] %v13029_v13  ;;  %v17830_v47 = vunpack.c.l.s8.bf16 %v13011_v3  ;;  %v17833_v35 = vunpack.c.l.s8.bf16 %v13013_v9  ;;  %v17834_v4 = vunpack.c.h.s8.bf16 %v13029_v13  ;;  %v18990_v3 = vunpack.c.l.s8.bf16 %v13029_v13  ;;  %v13101_v13 = vld [vmem:[#allocation5 + $0x548] sm:$0xff] }
 0x155   :  { %8791 = vmatprep.subr.bf16.mxu1 %v17817_v30  ;;  %v17835_v30 = vunpack.c.h.s8.bf16 %v13027_v42  ;;  %18994 = vst [vmem:[#allocation143_spill] sm:$0xff] %v13101_v13 }
 0x157   :  { %8729 = vmatpush2.bf16.msra.mxu0 %v17822_v34  ;;  %v13045_v34 = vld [vmem:[#allocation5 + $0xae0] sm:$0xff] }
 0x158   :  { %8793 = vmatpush2.bf16.msra.mxu1 %v17823_v52  ;;  %8731 = vmatprep.subr.bf16.mxu0 %v17824_v61  ;;  %18986 = vst [vmem:[#allocation136_spill] sm:$0xff] %v13045_v34  ;;  %v17838_v52 = vunpack.c.h.s8.bf16 %v13043_v6  ;;  %v17839_v61 = vunpack.c.h.s8.bf16 %v13045_v34 }
 0x159   :  { %8795 = vmatprep.subr.bf16.mxu1 %v17825_v14  ;;  %v17840_v14 = vunpack.c.l.s8.bf16 %v13027_v42 }
 0x15b   :  { %8733 = vmatpush2.bf16.msra.mxu0 %v17830_v47  ;;  %v13061_v47 = vld [vmem:[#allocation5 + $0xa58] sm:$0xff] }
 0x15c   :  { %8797 = vmatpush2.bf16.msra.mxu1 %v17833_v35  ;;  %8799 = vmatprep.subr.bf16.mxu0 %v17835_v30  ;;  %18988 = vst [vmem:[#allocation138_spill] sm:$0xff] %v13061_v47  ;;  %v17844_v30 = vunpack.c.l.s8.bf16 %v13045_v34 }
 0x15d   :  { %8863 = vmatprep.subr.bf16.mxu1 %v17834_v4  ;;  %v17843_v4 = vunpack.c.l.s8.bf16 %v13043_v6  ;;  %v13309_v6 = vld [vmem:[#allocation5 + $0x1f0] sm:$0xff] }
 0x15e   :  { %v4210_v9 = vpop.f32.mrf.mxu0  ;;  %4635 = vmatmul.mubr.f32.vlgmr.msra.gmra.mxu0 %v12261_v46  ;;  %19020 = vst [vmem:[#allocation169_spill] sm:$0xff] %v13309_v6 }
 0x15f   :  { %4706 = vmatmul.mubr.f32.vlgmr.msra.gmra.mxu1 %v11987_v33  ;;  %v13066_v35 = vadd.f32 %v4210_v9, %v12801_v20  ;;  %8801 = vmatpush1.bf16.msra.mxu0 %v17838_v52  ;;  %v17845_v20 = vunpack.c.h.s8.bf16 %v13059_v21  ;;  %v17846_v9 = vunpack.c.h.s8.bf16 %v13061_v47  ;;  %v13082_v52 = vld [vmem:[#allocation5 + $0xa50] sm:$0xff] }
 0x160   :  { %8865 = vmatpush1.bf16.msra.mxu1 %v17839_v61  ;;  %v4212_v25 = vpop.f32.mrf.mxu0  ;;  %8803 = vmatprep.subr.bf16.mxu0 %v17840_v14  ;;  %18992 = vst [vmem:[#allocation141_spill] sm:$0xff] %v13082_v52  ;;  %v17850_v14 = vunpack.c.h.s8.bf16 %v13082_v52 }
 0x161   :  { %18989 = vst [vmem:[#allocation139_spill] sm:$0xff] %v13066_v35  ;;  %8867 = vmatprep.subr.bf16.mxu1 %v18990_v3  ;;  %v13080_v35 = vld [vmem:[#allocation5 + $0x5d0] sm:$0xff]  ;;  %v13085_v61 = vadd.f32 %v4212_v25, %v12819_v26  ;;  %4776 = vmatprep.mubr.f32.mxu0 %v11802_v37  ;;  %v17851_v25 = vunpack.c.l.s8.bf16 %v13059_v21  ;;  %v17852_v26 = vunpack.c.l.s8.bf16 %v13061_v47  ;;  %v13133_v21 = vld [vmem:[#allocation5 + $0x4b8] sm:$0xff] }
 0x162   :  { %18991 = vst [vmem:[#allocation140_spill] sm:$0xff] %v13080_v35  ;;  %4847 = vmatprep.mubr.f32.mxu1 %v12014_v19  ;;  %v17849_v3 = vunpack.c.h.s8.bf16 %v13080_v35  ;;  %18998 = vst [vmem:[#allocation147_spill] sm:$0xff] %v13133_v21 }
 0x163   :  { %18993 = vst [vmem:[#allocation142_spill] sm:$0xff] %v13085_v61  ;;  %8805 = vmatpush1.bf16.msra.mxu0 %v17843_v4  ;;  %v13103_v4 = vld [vmem:[#allocation5 + $0x9c8] sm:$0xff]  ;;  %v13117_v61 = vld [vmem:[#allocation5 + $0x540] sm:$0xff] }
 0x164   :  { %8869 = vmatpush1.bf16.msra.mxu1 %v17844_v30  ;;  %8807 = vmatprep.subr.bf16.mxu0 %v17845_v20  ;;  %18995 = vst [vmem:[#allocation144_spill] sm:$0xff] %v13103_v4  ;;  %v17857_v30 = vunpack.c.l.s8.bf16 %v13080_v35  ;;  %v17858_v20 = vunpack.c.l.s8.bf16 %v13082_v52  ;;  %v17860_v34 = vunpack.c.h.s8.bf16 %v13103_v4  ;;  %18996 = vst [vmem:[#allocation145_spill] sm:$0xff] %v13117_v61  ;;  %v17868_v47 = vunpack.c.l.s8.bf16 %v13103_v4  ;;  %v13149_v35 = vld [vmem:[#allocation5 + $0x4b0] sm:$0xff] }
 0x165   :  { %8871 = vmatprep.subr.bf16.mxu1 %v17846_v9  ;;  %v17859_v9 = vunpack.c.h.s8.bf16 %v13101_v13  ;;  %19000 = vst [vmem:[#allocation149_spill] sm:$0xff] %v13149_v35 }
 0x167   :  { %8809 = vmatpush1.bf16.msra.mxu0 %v17849_v3  ;;  %v13119_v3 = vld [vmem:[#allocation5 + $0x9c0] sm:$0xff] }
 0x168   :  { %8873 = vmatpush1.bf16.msra.mxu1 %v17850_v14  ;;  %8811 = vmatprep.subr.bf16.mxu0 %v17851_v25  ;;  %18997 = vst [vmem:[#allocation146_spill] sm:$0xff] %v13119_v3  ;;  %v17865_v14 = vunpack.c.h.s8.bf16 %v13117_v61  ;;  %v17866_v25 = vunpack.c.h.s8.bf16 %v13119_v3 }
 0x169   :  { %8875 = vmatprep.subr.bf16.mxu1 %v17852_v26  ;;  %v17867_v26 = vunpack.c.l.s8.bf16 %v13101_v13  ;;  %v13165_v13 = vld [vmem:[#allocation5 + $0x8a8] sm:$0xff] }
 0x16a   :  { %19002 = vst [vmem:[#allocation151_spill] sm:$0xff] %v13165_v13 }
 0x16b   :  { %8813 = vmatpush1.bf16.msra.mxu0 %v17857_v30  ;;  %v13135_v30 = vld [vmem:[#allocation5 + $0x938] sm:$0xff] }
 0x16c   :  { %8877 = vmatpush1.bf16.msra.mxu1 %v17858_v20  ;;  %8815 = vmatprep.subr.bf16.mxu0 %v17859_v9  ;;  %18999 = vst [vmem:[#allocation148_spill] sm:$0xff] %v13135_v30  ;;  %v17873_v20 = vunpack.c.l.s8.bf16 %v13117_v61  ;;  %v17874_v9 = vunpack.c.l.s8.bf16 %v13119_v3  ;;  %v17876_v52 = vunpack.c.h.s8.bf16 %v13135_v30  ;;  %v17884_v4 = vunpack.c.l.s8.bf16 %v13135_v30  ;;  %v13181_v61 = vld [vmem:[#allocation5 + $0x8a0] sm:$0xff] }
 0x16d   :  { %8879 = vmatprep.subr.bf16.mxu1 %v17860_v34  ;;  %v17875_v34 = vunpack.c.h.s8.bf16 %v13133_v21  ;;  %19004 = vst [vmem:[#allocation153_spill] sm:$0xff] %v13181_v61 }
 0x16f   :  { %8817 = vmatpush1.bf16.msra.mxu0 %v17865_v14  ;;  %v13151_v14 = vld [vmem:[#allocation5 + $0x930] sm:$0xff] }
 0x170   :  { %8881 = vmatpush1.bf16.msra.mxu1 %v17866_v25  ;;  %8819 = vmatprep.subr.bf16.mxu0 %v17867_v26  ;;  %19001 = vst [vmem:[#allocation150_spill] sm:$0xff] %v13151_v14  ;;  %v17881_v25 = vunpack.c.h.s8.bf16 %v13149_v35  ;;  %v17882_v26 = vunpack.c.h.s8.bf16 %v13151_v14 }
 0x171   :  { %8883 = vmatprep.subr.bf16.mxu1 %v17868_v47  ;;  %v17883_v47 = vunpack.c.l.s8.bf16 %v13133_v21  ;;  %v13197_v21 = vld [vmem:[#allocation5 + $0x818] sm:$0xff] }
 0x172   :  { %19006 = vst [vmem:[#allocation155_spill] sm:$0xff] %v13197_v21 }
 0x173   :  { %8821 = vmatpush1.bf16.msra.mxu0 %v17873_v20  ;;  %v13167_v20 = vld [vmem:[#allocation5 + $0xd28] sm:$0xff] }
 0x174   :  { %8885 = vmatpush1.bf16.msra.mxu1 %v17874_v9  ;;  %8823 = vmatprep.subr.bf16.mxu0 %v17875_v34  ;;  %19003 = vst [vmem:[#allocation152_spill] sm:$0xff] %v13167_v20  ;;  %v17889_v9 = vunpack.c.l.s8.bf16 %v13149_v35  ;;  %v17890_v34 = vunpack.c.l.s8.bf16 %v13151_v14  ;;  %v17892_v3 = vunpack.c.h.s8.bf16 %v13167_v20  ;;  %v17900_v30 = vunpack.c.l.s8.bf16 %v13167_v20  ;;  %v13213_v35 = vld [vmem:[#allocation5 + $0x810] sm:$0xff] }
 0x175   :  { %8887 = vmatprep.subr.bf16.mxu1 %v17876_v52  ;;  %v17891_v52 = vunpack.c.h.s8.bf16 %v13165_v13  ;;  %19008 = vst [vmem:[#allocation157_spill] sm:$0xff] %v13213_v35 }
 0x177   :  { %8825 = vmatpush1.bf16.msra.mxu0 %v17881_v25  ;;  %v13183_v25 = vld [vmem:[#allocation5 + $0xd20] sm:$0xff] }
 0x178   :  { %8889 = vmatpush1.bf16.msra.mxu1 %v17882_v26  ;;  %8827 = vmatprep.subr.bf16.mxu0 %v17883_v47  ;;  %19005 = vst [vmem:[#allocation154_spill] sm:$0xff] %v13183_v25  ;;  %v17897_v26 = vunpack.c.h.s8.bf16 %v13181_v61  ;;  %v17898_v47 = vunpack.c.h.s8.bf16 %v13183_v25 }
 0x179   :  { %8891 = vmatprep.subr.bf16.mxu1 %v17884_v4  ;;  %v17899_v4 = vunpack.c.l.s8.bf16 %v13165_v13  ;;  %v13229_v13 = vld [vmem:[#allocation5 + $0x788] sm:$0xff] }
 0x17a   :  { %19010 = vst [vmem:[#allocation159_spill] sm:$0xff] %v13229_v13 }
 0x17b   :  { %8829 = vmatpush1.bf16.msra.mxu0 %v17889_v9  ;;  %v13199_v9 = vld [vmem:[#allocation5 + $0xc98] sm:$0xff] }
 0x17c   :  { %8893 = vmatpush1.bf16.msra.mxu1 %v17890_v34  ;;  %8831 = vmatprep.subr.bf16.mxu0 %v17891_v52  ;;  %19007 = vst [vmem:[#allocation156_spill] sm:$0xff] %v13199_v9  ;;  %v17905_v34 = vunpack.c.l.s8.bf16 %v13181_v61  ;;  %v17906_v52 = vunpack.c.l.s8.bf16 %v13183_v25  ;;  %v17908_v14 = vunpack.c.h.s8.bf16 %v13199_v9  ;;  %v17916_v20 = vunpack.c.l.s8.bf16 %v13199_v9  ;;  %v13245_v61 = vld [vmem:[#allocation5 + $0x780] sm:$0xff] }
 0x17d   :  { %8895 = vmatprep.subr.bf16.mxu1 %v17892_v3  ;;  %v17907_v3 = vunpack.c.h.s8.bf16 %v13197_v21  ;;  %19012 = vst [vmem:[#allocation161_spill] sm:$0xff] %v13245_v61 }
 0x17f   :  { %8833 = vmatpush2.bf16.msra.mxu0 %v17897_v26  ;;  %v13215_v26 = vld [vmem:[#allocation5 + $0xc90] sm:$0xff] }
 0x180   :  { %8897 = vmatpush2.bf16.msra.mxu1 %v17898_v47  ;;  %8835 = vmatprep.subr.bf16.mxu0 %v17899_v4  ;;  %19009 = vst [vmem:[#allocation158_spill] sm:$0xff] %v13215_v26  ;;  %v17913_v47 = vunpack.c.h.s8.bf16 %v13213_v35  ;;  %v17914_v4 = vunpack.c.h.s8.bf16 %v13215_v26 }
 0x181   :  { %8899 = vmatprep.subr.bf16.mxu1 %v17900_v30  ;;  %v17915_v30 = vunpack.c.l.s8.bf16 %v13197_v21  ;;  %v13261_v21 = vld [vmem:[#allocation5 + $0x6f8] sm:$0xff] }
 0x182   :  { %19014 = vst [vmem:[#allocation163_spill] sm:$0xff] %v13261_v21 }
 0x183   :  { %8837 = vmatpush2.bf16.msra.mxu0 %v17905_v34  ;;  %v13231_v34 = vld [vmem:[#allocation5 + $0xc08] sm:$0xff] }
 0x184   :  { %8901 = vmatpush2.bf16.msra.mxu1 %v17906_v52  ;;  %8839 = vmatprep.subr.bf16.mxu0 %v17907_v3  ;;  %19011 = vst [vmem:[#allocation160_spill] sm:$0xff] %v13231_v34  ;;  %v17921_v52 = vunpack.c.l.s8.bf16 %v13213_v35  ;;  %v17922_v3 = vunpack.c.l.s8.bf16 %v13215_v26  ;;  %v17924_v25 = vunpack.c.h.s8.bf16 %v13231_v34  ;;  %v17932_v9 = vunpack.c.l.s8.bf16 %v13231_v34  ;;  %v13277_v35 = vld [vmem:[#allocation5 + $0x6f0] sm:$0xff] }
 0x185   :  { %8903 = vmatprep.subr.bf16.mxu1 %v17908_v14  ;;  %v17923_v14 = vunpack.c.h.s8.bf16 %v13229_v13  ;;  %19016 = vst [vmem:[#allocation165_spill] sm:$0xff] %v13277_v35 }
 0x187   :  { %8841 = vmatpush2.bf16.msra.mxu0 %v17913_v47  ;;  %v13247_v47 = vld [vmem:[#allocation5 + $0xc00] sm:$0xff] }
 0x188   :  { %8905 = vmatpush2.bf16.msra.mxu1 %v17914_v4  ;;  %8843 = vmatprep.subr.bf16.mxu0 %v17915_v30  ;;  %19013 = vst [vmem:[#allocation162_spill] sm:$0xff] %v13247_v47  ;;  %v17929_v4 = vunpack.c.h.s8.bf16 %v13245_v61  ;;  %v17930_v30 = vunpack.c.h.s8.bf16 %v13247_v47 }
 0x189   :  { %8907 = vmatprep.subr.bf16.mxu1 %v17916_v20  ;;  %v17931_v20 = vunpack.c.l.s8.bf16 %v13229_v13  ;;  %v13293_v13 = vld [vmem:[#allocation5 + $0x1f8] sm:$0xff] }
 0x18a   :  { %19018 = vst [vmem:[#allocation167_spill] sm:$0xff] %v13293_v13  ;;  %v19026_v49 = vunpack.c.l.s8.bf16 %v13293_v13 }
 0x18b   :  { %8845 = vmatpush2.bf16.msra.mxu0 %v17921_v52  ;;  %v13263_v52 = vld [vmem:[#allocation5 + $0xb78] sm:$0xff] }
 0x18c   :  { %8909 = vmatpush2.bf16.msra.mxu1 %v17922_v3  ;;  %8847 = vmatprep.subr.bf16.mxu0 %v17923_v14  ;;  %19015 = vst [vmem:[#allocation164_spill] sm:$0xff] %v13263_v52  ;;  %v17937_v3 = vunpack.c.l.s8.bf16 %v13245_v61  ;;  %v17938_v14 = vunpack.c.l.s8.bf16 %v13247_v47  ;;  %v17942_v26 = vunpack.c.h.s8.bf16 %v13263_v52  ;;  %v17952_v34 = vunpack.c.l.s8.bf16 %v13263_v52  ;;  %v4281_v47 = vpop.f32.mrf.mxu1 }
 0x18d   :  { %8911 = vmatprep.subr.bf16.mxu1 %v17924_v25  ;;  %v17939_v25 = vunpack.c.h.s8.bf16 %v13261_v21 }
 0x18e   :  { %v4283_v52 = vpop.f32.mrf.mxu1 }
 0x18f   :  { %8849 = vmatpush2.bf16.msra.mxu0 %v17929_v4  ;;  %v13279_v4 = vld [vmem:[#allocation5 + $0xb70] sm:$0xff] }
 0x190   :  { %8913 = vmatpush2.bf16.msra.mxu1 %v17930_v30  ;;  %8851 = vmatprep.subr.bf16.mxu0 %v17931_v20  ;;  %19017 = vst [vmem:[#allocation166_spill] sm:$0xff] %v13279_v4  ;;  %v17947_v30 = vunpack.c.h.s8.bf16 %v13277_v35  ;;  %v17948_v20 = vunpack.c.h.s8.bf16 %v13279_v4 }
 0x191   :  { %8915 = vmatprep.subr.bf16.mxu1 %v17932_v9  ;;  %v17949_v9 = vunpack.c.l.s8.bf16 %v13261_v21 }
 0x193   :  { %8853 = vmatpush2.bf16.msra.mxu0 %v17937_v3  ;;  %v13295_v3 = vld [vmem:[#allocation5 + $0x678] sm:$0xff] }
 0x194   :  { %8917 = vmatpush2.bf16.msra.mxu1 %v17938_v14  ;;  %8855 = vmatprep.subr.bf16.mxu0 %v17939_v25  ;;  %19019 = vst [vmem:[#allocation168_spill] sm:$0xff] %v13295_v3  ;;  %v17957_v14 = vunpack.c.l.s8.bf16 %v13277_v35  ;;  %v17958_v25 = vunpack.c.l.s8.bf16 %v13279_v4  ;;  %v17960_v61 = vunpack.c.h.s8.bf16 %v13295_v3  ;;  %v13325_v35 = vld [vmem:[#allocation5 + $0x168] sm:$0xff]  ;;  %v19027_v55 = vunpack.c.l.s8.bf16 %v13295_v3  ;;  %v13429_v3 = vld [vmem:[#allocation5 + $0x438] sm:$0xff] }
 0x195   :  { %8919 = vmatprep.subr.bf16.mxu1 %v17942_v26  ;;  %v17959_v26 = vunpack.c.h.s8.bf16 %v13293_v13  ;;  %19022 = vst [vmem:[#allocation171_spill] sm:$0xff] %v13325_v35  ;;  %19044 = vst [vmem:[#allocation185_spill] sm:$0xff] %v13429_v3  ;;  %v14139_v13 = vld [vmem:[#allocation5 + $0x600] sm:$0xff] }
 0x196   :  { %19137 = vst [vmem:[#allocation270_spill] sm:$0xff] %v14139_v13 }
 0x197   :  { %8857 = vmatpush2.bf16.msra.mxu0 %v17947_v30  ;;  %v13311_v30 = vld [vmem:[#allocation5 + $0x670] sm:$0xff] }
 0x198   :  { %8921 = vmatpush2.bf16.msra.mxu1 %v17948_v20  ;;  %8859 = vmatprep.subr.bf16.mxu0 %v17949_v9  ;;  %19021 = vst [vmem:[#allocation170_spill] sm:$0xff] %v13311_v30 }
 0x199   :  { %8923 = vmatprep.subr.bf16.mxu1 %v17952_v34 }
 0x19b   :  { %8861 = vmatpush2.bf16.msra.mxu0 %v17957_v14  ;;  %v13327_v14 = vld [vmem:[#allocation5 + $0x5e8] sm:$0xff] }
 0x19c   :  { %8925 = vmatpush2.bf16.msra.mxu1 %v17958_v25  ;;  %8927 = vmatprep.subr.bf16.mxu0 %v17959_v26  ;;  %19023 = vst [vmem:[#allocation172_spill] sm:$0xff] %v13327_v14  ;;  %v19024_v26 = vunpack.c.h.s8.bf16 %v13309_v6 }
 0x19d   :  { %8991 = vmatprep.subr.bf16.mxu1 %v17960_v61  ;;  %v19025_v61 = vunpack.c.h.s8.bf16 %v13311_v30 }
 0x19e   :  { %v4352_v25 = vpop.f32.mrf.mxu0  ;;  %4777 = vmatmul.mubr.f32.vlgmr.msra.gmra.mxu0 %v11990_v54 }
 0x19f   :  { %v4423_v20 = vpop.f32.mrf.mxu1  ;;  %4848 = vmatmul.mubr.f32.vlgmr.msra.gmra.mxu1 %v12261_v46  ;;  %v4353_v9 = vadd.f32 %v4352_v25, %v4281_v47  ;;  %8929 = vmatpush1.bf16.msra.mxu0 %v19024_v26  ;;  %v13343_v26 = vld [vmem:[#allocation5 + $0x160] sm:$0xff]  ;;  %v17972_v47 = vunpack.c.h.s8.bf16 %v13345_v41 }
 0x1a0   :  { %8993 = vmatpush1.bf16.msra.mxu1 %v19025_v61  ;;  %v4354_v4 = vpop.f32.mrf.mxu0  ;;  %8931 = vmatprep.subr.bf16.mxu0 %v19026_v49  ;;  %19028 = vst [vmem:[#allocation173_spill] sm:$0xff] %v13343_v26  ;;  %v19032_v49 = vunpack.c.l.s8.bf16 %v13309_v6  ;;  %v17971_v25 = vunpack.c.h.s8.bf16 %v13343_v26 }
 0x1a1   :  { %v4425_v42 = vpop.f32.mrf.mxu1  ;;  %8995 = vmatprep.subr.bf16.mxu1 %v19027_v55  ;;  %v13347_v61 = vadd.f32 %v4423_v20, %v4353_v9  ;;  %v4355_v34 = vadd.f32 %v4354_v4, %v4283_v52  ;;  %4918 = vmatprep.mubr.f32.mxu0 %v11799_v36  ;;  %v19033_v55 = vunpack.c.l.s8.bf16 %v13311_v30  ;;  %v19034_v20 = vunpack.c.h.s8.bf16 %v13325_v35  ;;  %v13367_v9 = vld [vmem:[#allocation5 + $0x558] sm:$0xff]  ;;  %v13413_v30 = vld [vmem:[#allocation5 + $0x40] sm:$0xff] }
 0x1a2   :  { %4989 = vmatprep.mubr.f32.mxu1 %v11802_v37  ;;  %v19035_v4 = vunpack.c.h.s8.bf16 %v13327_v14  ;;  %v17973_v52 = vunpack.c.l.s8.bf16 %v13325_v35  ;;  %19037 = vst [vmem:[#allocation178_spill] sm:$0xff] %v13367_v9  ;;  %19042 = vst [vmem:[#allocation183_spill] sm:$0xff] %v13413_v30  ;;  %v13611_v35 = vld [vmem:[#allocation5 + $0x170] sm:$0xff] }
 0x1a3   :  { %19030 = vst [vmem:[#allocation175_spill] sm:$0xff] %v13347_v61  ;;  %v13351_v21 = vadd.f32 %v4425_v42, %v4355_v34  ;;  %8933 = vmatpush1.bf16.msra.mxu0 %v19032_v49  ;;  %v17974_v34 = vunpack.c.l.s8.bf16 %v13327_v14  ;;  %v13365_v42 = vld [vmem:[#allocation5 + $0xd8] sm:$0xff]  ;;  %v17977_v49 = vunpack.c.l.s8.bf16 %v13343_v26  ;;  %v17988_v14 = vunpack.c.l.s8.bf16 %v13367_v9  ;;  %v13397_v61 = vld [vmem:[#allocation5 + $0x48] sm:$0xff]  ;;  %19070 = vst [vmem:[#allocation208_spill] sm:$0xff] %v13611_v35 }
 0x1a4   :  { %8997 = vmatpush1.bf16.msra.mxu1 %v19033_v55  ;;  %8935 = vmatprep.subr.bf16.mxu0 %v19034_v20  ;;  %19036 = vst [vmem:[#allocation177_spill] sm:$0xff] %v13365_v42  ;;  %v17978_v55 = vunpack.c.l.s8.bf16 %v13345_v41  ;;  %v17979_v20 = vunpack.c.h.s8.bf16 %v13365_v42  ;;  %19040 = vst [vmem:[#allocation181_spill] sm:$0xff] %v13397_v61 }
 0x1a5   :  { %19031 = vst [vmem:[#allocation176_spill] sm:$0xff] %v13351_v21  ;;  %8999 = vmatprep.subr.bf16.mxu1 %v19035_v4  ;;  %v17980_v4 = vunpack.c.h.s8.bf16 %v13367_v9  ;;  %v13381_v21 = vld [vmem:[#allocation5 + $0xd0] sm:$0xff] }
 0x1a6   :  { %19038 = vst [vmem:[#allocation179_spill] sm:$0xff] %v13381_v21 }
 0x1a7   :  { %8937 = vmatpush1.bf16.msra.mxu0 %v17971_v25  ;;  %v13383_v25 = vld [vmem:[#allocation5 + $0x550] sm:$0xff] }
 0x1a8   :  { %9001 = vmatpush1.bf16.msra.mxu1 %v17972_v47  ;;  %8939 = vmatprep.subr.bf16.mxu0 %v17973_v52  ;;  %19039 = vst [vmem:[#allocation180_spill] sm:$0xff] %v13383_v25  ;;  %v17985_v47 = vunpack.c.h.s8.bf16 %v13381_v21  ;;  %v17986_v52 = vunpack.c.h.s8.bf16 %v13383_v25 }
 0x1a9   :  { %9003 = vmatprep.subr.bf16.mxu1 %v17974_v34  ;;  %v17987_v34 = vunpack.c.l.s8.bf16 %v13365_v42 }
 0x1ab   :  { %8941 = vmatpush1.bf16.msra.mxu0 %v17977_v49  ;;  %v13399_v49 = vld [vmem:[#allocation5 + $0x4c8] sm:$0xff] }
 0x1ac   :  { %9005 = vmatpush1.bf16.msra.mxu1 %v17978_v55  ;;  %8943 = vmatprep.subr.bf16.mxu0 %v17979_v20  ;;  %19041 = vst [vmem:[#allocation182_spill] sm:$0xff] %v13399_v49  ;;  %v17993_v55 = vunpack.c.l.s8.bf16 %v13381_v21  ;;  %v17994_v20 = vunpack.c.l.s8.bf16 %v13383_v25  ;;  %v17996_v41 = vunpack.c.h.s8.bf16 %v13399_v49  ;;  %v18004_v9 = vunpack.c.l.s8.bf16 %v13399_v49  ;;  %v13445_v21 = vld [vmem:[#allocation5 + $0x430] sm:$0xff] }
 0x1ad   :  { %9007 = vmatprep.subr.bf16.mxu1 %v17980_v4  ;;  %v17995_v4 = vunpack.c.h.s8.bf16 %v13397_v61  ;;  %19046 = vst [vmem:[#allocation187_spill] sm:$0xff] %v13445_v21 }
 0x1af   :  { %8945 = vmatpush1.bf16.msra.mxu0 %v17985_v47  ;;  %v13415_v47 = vld [vmem:[#allocation5 + $0x4c0] sm:$0xff] }
 0x1b0   :  { %9009 = vmatpush1.bf16.msra.mxu1 %v17986_v52  ;;  %8947 = vmatprep.subr.bf16.mxu0 %v17987_v34  ;;  %19043 = vst [vmem:[#allocation184_spill] sm:$0xff] %v13415_v47  ;;  %v18001_v52 = vunpack.c.h.s8.bf16 %v13413_v30  ;;  %v18002_v34 = vunpack.c.h.s8.bf16 %v13415_v47 }
 0x1b1   :  { %9011 = vmatprep.subr.bf16.mxu1 %v17988_v14  ;;  %v18003_v14 = vunpack.c.l.s8.bf16 %v13397_v61  ;;  %v13461_v61 = vld [vmem:[#allocation5 + $0x3a8] sm:$0xff] }
 0x1b2   :  { %19048 = vst [vmem:[#allocation189_spill] sm:$0xff] %v13461_v61 }
 0x1b3   :  { %8949 = vmatpush1.bf16.msra.mxu0 %v17993_v55  ;;  %v13431_v55 = vld [vmem:[#allocation5 + $0x8b8] sm:$0xff] }
 0x1b4   :  { %9013 = vmatpush1.bf16.msra.mxu1 %v17994_v20  ;;  %8951 = vmatprep.subr.bf16.mxu0 %v17995_v4  ;;  %19045 = vst [vmem:[#allocation186_spill] sm:$0xff] %v13431_v55  ;;  %v18009_v20 = vunpack.c.l.s8.bf16 %v13413_v30  ;;  %v18010_v4 = vunpack.c.l.s8.bf16 %v13415_v47  ;;  %v18012_v25 = vunpack.c.h.s8.bf16 %v13431_v55  ;;  %v18020_v49 = vunpack.c.l.s8.bf16 %v13431_v55  ;;  %v13477_v30 = vld [vmem:[#allocation5 + $0x3a0] sm:$0xff] }
 0x1b5   :  { %9015 = vmatprep.subr.bf16.mxu1 %v17996_v41  ;;  %v18011_v41 = vunpack.c.h.s8.bf16 %v13429_v3  ;;  %19050 = vst [vmem:[#allocation191_spill] sm:$0xff] %v13477_v30 }
 0x1b7   :  { %8953 = vmatpush1.bf16.msra.mxu0 %v18001_v52  ;;  %v13447_v52 = vld [vmem:[#allocation5 + $0x8b0] sm:$0xff] }
 0x1b8   :  { %9017 = vmatpush1.bf16.msra.mxu1 %v18002_v34  ;;  %8955 = vmatprep.subr.bf16.mxu0 %v18003_v14  ;;  %19047 = vst [vmem:[#allocation188_spill] sm:$0xff] %v13447_v52  ;;  %v18017_v34 = vunpack.c.h.s8.bf16 %v13445_v21  ;;  %v18018_v14 = vunpack.c.h.s8.bf16 %v13447_v52 }
 0x1b9   :  { %9019 = vmatprep.subr.bf16.mxu1 %v18004_v9  ;;  %v18019_v9 = vunpack.c.l.s8.bf16 %v13429_v3  ;;  %v13493_v3 = vld [vmem:[#allocation5 + $0x318] sm:$0xff] }
 0x1ba   :  { %19052 = vst [vmem:[#allocation193_spill] sm:$0xff] %v13493_v3 }
 0x1bb   :  { %8957 = vmatpush1.bf16.msra.mxu0 %v18009_v20  ;;  %v13463_v20 = vld [vmem:[#allocation5 + $0x828] sm:$0xff] }
 0x1bc   :  { %9021 = vmatpush1.bf16.msra.mxu1 %v18010_v4  ;;  %8959 = vmatprep.subr.bf16.mxu0 %v18011_v41  ;;  %19049 = vst [vmem:[#allocation190_spill] sm:$0xff] %v13463_v20  ;;  %v18025_v4 = vunpack.c.l.s8.bf16 %v13445_v21  ;;  %v18026_v41 = vunpack.c.l.s8.bf16 %v13447_v52  ;;  %v18028_v47 = vunpack.c.h.s8.bf16 %v13463_v20  ;;  %v18036_v55 = vunpack.c.l.s8.bf16 %v13463_v20  ;;  %v13509_v21 = vld [vmem:[#allocation5 + $0x310] sm:$0xff] }
 0x1bd   :  { %9023 = vmatprep.subr.bf16.mxu1 %v18012_v25  ;;  %v18027_v25 = vunpack.c.h.s8.bf16 %v13461_v61  ;;  %19054 = vst [vmem:[#allocation195_spill] sm:$0xff] %v13509_v21 }
 0x1bf   :  { %8961 = vmatpush2.bf16.msra.mxu0 %v18017_v34  ;;  %v13479_v34 = vld [vmem:[#allocation5 + $0x820] sm:$0xff] }
 0x1c0   :  { %9025 = vmatpush2.bf16.msra.mxu1 %v18018_v14  ;;  %8963 = vmatprep.subr.bf16.mxu0 %v18019_v9  ;;  %19051 = vst [vmem:[#allocation192_spill] sm:$0xff] %v13479_v34  ;;  %v18033_v14 = vunpack.c.h.s8.bf16 %v13477_v30  ;;  %v18034_v9 = vunpack.c.h.s8.bf16 %v13479_v34 }
 0x1c1   :  { %9027 = vmatprep.subr.bf16.mxu1 %v18020_v49  ;;  %v18035_v49 = vunpack.c.l.s8.bf16 %v13461_v61  ;;  %v13525_v61 = vld [vmem:[#allocation5 + $0x288] sm:$0xff] }
 0x1c2   :  { %19056 = vst [vmem:[#allocation197_spill] sm:$0xff] %v13525_v61 }
 0x1c3   :  { %8965 = vmatpush2.bf16.msra.mxu0 %v18025_v4  ;;  %v13495_v4 = vld [vmem:[#allocation5 + $0x798] sm:$0xff] }
 0x1c4   :  { %9029 = vmatpush2.bf16.msra.mxu1 %v18026_v41  ;;  %8967 = vmatprep.subr.bf16.mxu0 %v18027_v25  ;;  %19053 = vst [vmem:[#allocation194_spill] sm:$0xff] %v13495_v4  ;;  %v18041_v41 = vunpack.c.l.s8.bf16 %v13477_v30  ;;  %v18042_v25 = vunpack.c.l.s8.bf16 %v13479_v34  ;;  %v18044_v52 = vunpack.c.h.s8.bf16 %v13495_v4  ;;  %v18052_v20 = vunpack.c.l.s8.bf16 %v13495_v4  ;;  %v13541_v30 = vld [vmem:[#allocation5 + $0x280] sm:$0xff] }
 0x1c5   :  { %9031 = vmatprep.subr.bf16.mxu1 %v18028_v47  ;;  %v18043_v47 = vunpack.c.h.s8.bf16 %v13493_v3  ;;  %19058 = vst [vmem:[#allocation199_spill] sm:$0xff] %v13541_v30 }
 0x1c7   :  { %8969 = vmatpush2.bf16.msra.mxu0 %v18033_v14  ;;  %v13511_v14 = vld [vmem:[#allocation5 + $0x790] sm:$0xff] }
 0x1c8   :  { %9033 = vmatpush2.bf16.msra.mxu1 %v18034_v9  ;;  %8971 = vmatprep.subr.bf16.mxu0 %v18035_v49  ;;  %19055 = vst [vmem:[#allocation196_spill] sm:$0xff] %v13511_v14  ;;  %v18049_v9 = vunpack.c.h.s8.bf16 %v13509_v21  ;;  %v18050_v49 = vunpack.c.h.s8.bf16 %v13511_v14 }
 0x1c9   :  { %9035 = vmatprep.subr.bf16.mxu1 %v18036_v55  ;;  %v18051_v55 = vunpack.c.l.s8.bf16 %v13493_v3  ;;  %v13557_v3 = vld [vmem:[#allocation5 + $0xaf8] sm:$0xff] }
 0x1ca   :  { %19060 = vst [vmem:[#allocation201_spill] sm:$0xff] %v13557_v3  ;;  %v19067_v42 = vunpack.c.l.s8.bf16 %v13557_v3 }
 0x1cb   :  { %8973 = vmatpush2.bf16.msra.mxu0 %v18041_v41  ;;  %v13527_v41 = vld [vmem:[#allocation5 + $0x708] sm:$0xff] }
 0x1cc   :  { %9037 = vmatpush2.bf16.msra.mxu1 %v18042_v25  ;;  %8975 = vmatprep.subr.bf16.mxu0 %v18043_v47  ;;  %19057 = vst [vmem:[#allocation198_spill] sm:$0xff] %v13527_v41  ;;  %v18057_v25 = vunpack.c.l.s8.bf16 %v13509_v21  ;;  %v18058_v47 = vunpack.c.l.s8.bf16 %v13511_v14  ;;  %v18060_v34 = vunpack.c.h.s8.bf16 %v13527_v41  ;;  %v18068_v4 = vunpack.c.l.s8.bf16 %v13527_v41  ;;  %v13573_v21 = vld [vmem:[#allocation5 + $0xaf0] sm:$0xff] }
 0x1cd   :  { %9039 = vmatprep.subr.bf16.mxu1 %v18044_v52  ;;  %v18059_v52 = vunpack.c.h.s8.bf16 %v13525_v61  ;;  %19062 = vst [vmem:[#allocation203_spill] sm:$0xff] %v13573_v21 }
 0x1cf   :  { %8977 = vmatpush2.bf16.msra.mxu0 %v18049_v9  ;;  %v13543_v9 = vld [vmem:[#allocation5 + $0x700] sm:$0xff] }
 0x1d0   :  { %9041 = vmatpush2.bf16.msra.mxu1 %v18050_v49  ;;  %8979 = vmatprep.subr.bf16.mxu0 %v18051_v55  ;;  %19059 = vst [vmem:[#allocation200_spill] sm:$0xff] %v13543_v9  ;;  %v18065_v49 = vunpack.c.h.s8.bf16 %v13541_v30  ;;  %v18066_v55 = vunpack.c.h.s8.bf16 %v13543_v9 }
 0x1d1   :  { %9043 = vmatprep.subr.bf16.mxu1 %v18052_v20  ;;  %v18067_v20 = vunpack.c.l.s8.bf16 %v13525_v61  ;;  %v13589_v61 = vld [vmem:[#allocation5 + $0xa68] sm:$0xff] }
 0x1d2   :  { %19064 = vst [vmem:[#allocation205_spill] sm:$0xff] %v13589_v61 }
 0x1d3   :  { %8981 = vmatpush2.bf16.msra.mxu0 %v18057_v25  ;;  %v13559_v25 = vld [vmem:[#allocation5 + $0x208] sm:$0xff] }
 0x1d4   :  { %9045 = vmatpush2.bf16.msra.mxu1 %v18058_v47  ;;  %8983 = vmatprep.subr.bf16.mxu0 %v18059_v52  ;;  %19061 = vst [vmem:[#allocation202_spill] sm:$0xff] %v13559_v25  ;;  %v18073_v47 = vunpack.c.l.s8.bf16 %v13541_v30  ;;  %v18076_v52 = vunpack.c.l.s8.bf16 %v13543_v9  ;;  %v18077_v14 = vunpack.c.h.s8.bf16 %v13559_v25  ;;  %v19068_v26 = vunpack.c.l.s8.bf16 %v13559_v25  ;;  %v13629_v25 = vld [vmem:[#allocation5 + $0x9d8] sm:$0xff] }
 0x1d5   :  { %9047 = vmatprep.subr.bf16.mxu1 %v18060_v34  ;;  %v18078_v34 = vunpack.c.h.s8.bf16 %v13557_v3  ;;  %19071 = vst [vmem:[#allocation209_spill] sm:$0xff] %v13629_v25 }
 0x1d7   :  { %8985 = vmatpush2.bf16.msra.mxu0 %v18065_v49  ;;  %v13575_v49 = vld [vmem:[#allocation5 + $0x200] sm:$0xff] }
 0x1d8   :  { %9049 = vmatpush2.bf16.msra.mxu1 %v18066_v55  ;;  %8987 = vmatprep.subr.bf16.mxu0 %v18067_v20  ;;  %19063 = vst [vmem:[#allocation204_spill] sm:$0xff] %v13575_v49  ;;  %v18085_v55 = vunpack.c.h.s8.bf16 %v13573_v21  ;;  %v18091_v41 = vunpack.c.l.s8.bf16 %v13575_v49 }
 0x1d9   :  { %9051 = vmatprep.subr.bf16.mxu1 %v18068_v4 }
 0x1db   :  { %8989 = vmatpush2.bf16.msra.mxu0 %v18073_v47  ;;  %v13591_v47 = vld [vmem:[#allocation5 + $0x178] sm:$0xff] }
 0x1dc   :  { %9053 = vmatpush2.bf16.msra.mxu1 %v18076_v52  ;;  %9055 = vmatprep.subr.bf16.mxu0 %v18078_v34  ;;  %19065 = vst [vmem:[#allocation206_spill] sm:$0xff] %v13591_v47  ;;  %v18090_v34 = vunpack.c.l.s8.bf16 %v13573_v21  ;;  %v13645_v21 = vld [vmem:[#allocation5 + $0x9d0] sm:$0xff] }
 0x1dd   :  { %9119 = vmatprep.subr.bf16.mxu1 %v18077_v14  ;;  %v19066_v14 = vunpack.c.h.s8.bf16 %v13575_v49  ;;  %19073 = vst [vmem:[#allocation211_spill] sm:$0xff] %v13645_v21 }
 0x1de   :  { %v4494_v9 = vpop.f32.mrf.mxu0  ;;  %4919 = vmatmul.mubr.f32.vlgmr.msra.gmra.mxu0 %v11987_v33 }
 0x1df   :  { %v4565_v52 = vpop.f32.mrf.mxu1  ;;  %4990 = vmatmul.mubr.f32.vlgmr.msra.gmra.mxu1 %v11990_v54  ;;  %9057 = vmatpush1.bf16.msra.mxu0 %v18085_v55  ;;  %v13609_v55 = vld [vmem:[#allocation5 + $0xa60] sm:$0xff] }
 0x1e0   :  { %v13595_v20 = vadd.f32 %v4565_v52, %v4494_v9  ;;  %9121 = vmatpush1.bf16.msra.mxu1 %v19066_v14  ;;  %v4496_v4 = vpop.f32.mrf.mxu0  ;;  %9059 = vmatprep.subr.bf16.mxu0 %v19067_v42  ;;  %v18092_v52 = vunpack.c.h.s8.bf16 %v13589_v61  ;;  %v18093_v9 = vunpack.c.h.s8.bf16 %v13591_v47  ;;  %19069 = vst [vmem:[#allocation207_spill] sm:$0xff] %v13609_v55  ;;  %v18099_v42 = vunpack.c.h.s8.bf16 %v13611_v35 }
 0x1e1   :  { %v4567_v30 = vpop.f32.mrf.mxu1  ;;  %9123 = vmatprep.subr.bf16.mxu1 %v19068_v26  ;;  %5060 = vmatprep.mubr.f32.mxu0 %v12014_v19  ;;  %v18098_v26 = vunpack.c.h.s8.bf16 %v13609_v55 }
 0x1e2   :  { %v13613_v14 = vadd.f32 %v4567_v30, %v4496_v4  ;;  %5131 = vmatprep.mubr.f32.mxu1 %v11799_v36  ;;  %v18100_v30 = vunpack.c.l.s8.bf16 %v13589_v61  ;;  %v18101_v4 = vunpack.c.l.s8.bf16 %v13591_v47  ;;  %v13661_v61 = vld [vmem:[#allocation5 + $0x948] sm:$0xff] }
 0x1e3   :  { %9061 = vmatpush1.bf16.msra.mxu0 %v18090_v34  ;;  %v13631_v34 = vld [vmem:[#allocation5 + $0xe8] sm:$0xff]  ;;  %19075 = vst [vmem:[#allocation213_spill] sm:$0xff] %v13661_v61 }
 0x1e4   :  { %9125 = vmatpush1.bf16.msra.mxu1 %v18091_v41  ;;  %9063 = vmatprep.subr.bf16.mxu0 %v18092_v52  ;;  %19072 = vst [vmem:[#allocation210_spill] sm:$0xff] %v13631_v34  ;;  %v18106_v41 = vunpack.c.l.s8.bf16 %v13609_v55  ;;  %v18107_v52 = vunpack.c.l.s8.bf16 %v13611_v35  ;;  %v18109_v49 = vunpack.c.h.s8.bf16 %v13631_v34  ;;  %v18117_v47 = vunpack.c.l.s8.bf16 %v13631_v34  ;;  %v13677_v55 = vld [vmem:[#allocation5 + $0x940] sm:$0xff] }
 0x1e5   :  { %9127 = vmatprep.subr.bf16.mxu1 %v18093_v9  ;;  %v18108_v9 = vunpack.c.h.s8.bf16 %v13629_v25  ;;  %19077 = vst [vmem:[#allocation215_spill] sm:$0xff] %v13677_v55 }
 0x1e7   :  { %9065 = vmatpush1.bf16.msra.mxu0 %v18098_v26  ;;  %v13647_v26 = vld [vmem:[#allocation5 + $0xe0] sm:$0xff] }
 0x1e8   :  { %9129 = vmatpush1.bf16.msra.mxu1 %v18099_v42  ;;  %9067 = vmatprep.subr.bf16.mxu0 %v18100_v30  ;;  %19074 = vst [vmem:[#allocation212_spill] sm:$0xff] %v13647_v26  ;;  %v18114_v42 = vunpack.c.h.s8.bf16 %v13645_v21  ;;  %v18115_v30 = vunpack.c.h.s8.bf16 %v13647_v26 }
 0x1e9   :  { %9131 = vmatprep.subr.bf16.mxu1 %v18101_v4  ;;  %v18116_v4 = vunpack.c.l.s8.bf16 %v13629_v25  ;;  %v13693_v25 = vld [vmem:[#allocation5 + $0xd38] sm:$0xff] }
 0x1ea   :  { %19079 = vst [vmem:[#allocation217_spill] sm:$0xff] %v13693_v25 }
 0x1eb   :  { %9069 = vmatpush1.bf16.msra.mxu0 %v18106_v41  ;;  %v13663_v41 = vld [vmem:[#allocation5 + $0x58] sm:$0xff] }
 0x1ec   :  { %9133 = vmatpush1.bf16.msra.mxu1 %v18107_v52  ;;  %9071 = vmatprep.subr.bf16.mxu0 %v18108_v9  ;;  %19076 = vst [vmem:[#allocation214_spill] sm:$0xff] %v13663_v41  ;;  %v18122_v52 = vunpack.c.l.s8.bf16 %v13645_v21  ;;  %v18123_v9 = vunpack.c.l.s8.bf16 %v13647_v26  ;;  %v18125_v35 = vunpack.c.h.s8.bf16 %v13663_v41  ;;  %v18133_v34 = vunpack.c.l.s8.bf16 %v13663_v41  ;;  %v13709_v21 = vld [vmem:[#allocation5 + $0xd30] sm:$0xff] }
 0x1ed   :  { %9135 = vmatprep.subr.bf16.mxu1 %v18109_v49  ;;  %v18124_v49 = vunpack.c.h.s8.bf16 %v13661_v61  ;;  %19081 = vst [vmem:[#allocation219_spill] sm:$0xff] %v13709_v21 }
 0x1ef   :  { %9073 = vmatpush1.bf16.msra.mxu0 %v18114_v42  ;;  %v13679_v42 = vld [vmem:[#allocation5 + $0x50] sm:$0xff] }
 0x1f0   :  { %9137 = vmatpush1.bf16.msra.mxu1 %v18115_v30  ;;  %9075 = vmatprep.subr.bf16.mxu0 %v18116_v4  ;;  %19078 = vst [vmem:[#allocation216_spill] sm:$0xff] %v13679_v42  ;;  %v18130_v30 = vunpack.c.h.s8.bf16 %v13677_v55  ;;  %v18131_v4 = vunpack.c.h.s8.bf16 %v13679_v42 }
 0x1f1   :  { %9139 = vmatprep.subr.bf16.mxu1 %v18117_v47  ;;  %v18132_v47 = vunpack.c.l.s8.bf16 %v13661_v61  ;;  %v13725_v61 = vld [vmem:[#allocation5 + $0xca8] sm:$0xff] }
 0x1f2   :  { %19083 = vst [vmem:[#allocation221_spill] sm:$0xff] %v13725_v61 }
 0x1f3   :  { %9077 = vmatpush1.bf16.msra.mxu0 %v18122_v52  ;;  %v13695_v52 = vld [vmem:[#allocation5 + $0x448] sm:$0xff] }
 0x1f4   :  { %9141 = vmatpush1.bf16.msra.mxu1 %v18123_v9  ;;  %9079 = vmatprep.subr.bf16.mxu0 %v18124_v49  ;;  %19080 = vst [vmem:[#allocation218_spill] sm:$0xff] %v13695_v52  ;;  %v18138_v9 = vunpack.c.l.s8.bf16 %v13677_v55  ;;  %v18139_v49 = vunpack.c.l.s8.bf16 %v13679_v42  ;;  %v18141_v26 = vunpack.c.h.s8.bf16 %v13695_v52  ;;  %v18149_v41 = vunpack.c.l.s8.bf16 %v13695_v52  ;;  %v13741_v55 = vld [vmem:[#allocation5 + $0xca0] sm:$0xff] }
 0x1f5   :  { %9143 = vmatprep.subr.bf16.mxu1 %v18125_v35  ;;  %v18140_v35 = vunpack.c.h.s8.bf16 %v13693_v25  ;;  %19085 = vst [vmem:[#allocation223_spill] sm:$0xff] %v13741_v55 }
 0x1f7   :  { %9081 = vmatpush1.bf16.msra.mxu0 %v18130_v30  ;;  %v13711_v30 = vld [vmem:[#allocation5 + $0x440] sm:$0xff] }
 0x1f8   :  { %9145 = vmatpush1.bf16.msra.mxu1 %v18131_v4  ;;  %9083 = vmatprep.subr.bf16.mxu0 %v18132_v47  ;;  %19082 = vst [vmem:[#allocation220_spill] sm:$0xff] %v13711_v30  ;;  %v18146_v4 = vunpack.c.h.s8.bf16 %v13709_v21  ;;  %v18147_v47 = vunpack.c.h.s8.bf16 %v13711_v30 }
 0x1f9   :  { %9147 = vmatprep.subr.bf16.mxu1 %v18133_v34  ;;  %v18148_v34 = vunpack.c.l.s8.bf16 %v13693_v25  ;;  %v13757_v25 = vld [vmem:[#allocation5 + $0xc18] sm:$0xff] }
 0x1fa   :  { %19087 = vst [vmem:[#allocation225_spill] sm:$0xff] %v13757_v25 }
 0x1fb   :  { %9085 = vmatpush1.bf16.msra.mxu0 %v18138_v9  ;;  %v13727_v9 = vld [vmem:[#allocation5 + $0x3b8] sm:$0xff] }
 0x1fc   :  { %9149 = vmatpush1.bf16.msra.mxu1 %v18139_v49  ;;  %9087 = vmatprep.subr.bf16.mxu0 %v18140_v35  ;;  %19084 = vst [vmem:[#allocation222_spill] sm:$0xff] %v13727_v9  ;;  %v18154_v49 = vunpack.c.l.s8.bf16 %v13709_v21  ;;  %v18155_v35 = vunpack.c.l.s8.bf16 %v13711_v30  ;;  %v18157_v42 = vunpack.c.h.s8.bf16 %v13727_v9  ;;  %v18165_v52 = vunpack.c.l.s8.bf16 %v13727_v9  ;;  %v13773_v21 = vld [vmem:[#allocation5 + $0xc10] sm:$0xff] }
 0x1fd   :  { %9151 = vmatprep.subr.bf16.mxu1 %v18141_v26  ;;  %v18156_v26 = vunpack.c.h.s8.bf16 %v13725_v61  ;;  %19089 = vst [vmem:[#allocation227_spill] sm:$0xff] %v13773_v21 }
 0x1ff   :  { %9089 = vmatpush2.bf16.msra.mxu0 %v18146_v4  ;;  %v13743_v4 = vld [vmem:[#allocation5 + $0x3b0] sm:$0xff] }
 0x200   :  { %9153 = vmatpush2.bf16.msra.mxu1 %v18147_v47  ;;  %9091 = vmatprep.subr.bf16.mxu0 %v18148_v34  ;;  %19086 = vst [vmem:[#allocation224_spill] sm:$0xff] %v13743_v4  ;;  %v18162_v47 = vunpack.c.h.s8.bf16 %v13741_v55  ;;  %v18163_v34 = vunpack.c.h.s8.bf16 %v13743_v4 }
 0x201   :  { %9155 = vmatprep.subr.bf16.mxu1 %v18149_v41  ;;  %v18164_v41 = vunpack.c.l.s8.bf16 %v13725_v61  ;;  %v13789_v61 = vld [vmem:[#allocation5 + $0xb88] sm:$0xff] }
 0x202   :  { %19091 = vst [vmem:[#allocation229_spill] sm:$0xff] %v13789_v61 }
 0x203   :  { %9093 = vmatpush2.bf16.msra.mxu0 %v18154_v49  ;;  %v13759_v49 = vld [vmem:[#allocation5 + $0x328] sm:$0xff] }
 0x204   :  { %9157 = vmatpush2.bf16.msra.mxu1 %v18155_v35  ;;  %9095 = vmatprep.subr.bf16.mxu0 %v18156_v26  ;;  %19088 = vst [vmem:[#allocation226_spill] sm:$0xff] %v13759_v49  ;;  %v18170_v35 = vunpack.c.l.s8.bf16 %v13741_v55  ;;  %v18171_v26 = vunpack.c.l.s8.bf16 %v13743_v4  ;;  %v18173_v30 = vunpack.c.h.s8.bf16 %v13759_v49  ;;  %v18181_v9 = vunpack.c.l.s8.bf16 %v13759_v49  ;;  %v13805_v55 = vld [vmem:[#allocation5 + $0xb80] sm:$0xff] }
 0x205   :  { %9159 = vmatprep.subr.bf16.mxu1 %v18157_v42  ;;  %v18172_v42 = vunpack.c.h.s8.bf16 %v13757_v25  ;;  %19093 = vst [vmem:[#allocation231_spill] sm:$0xff] %v13805_v55 }
 0x207   :  { %9097 = vmatpush2.bf16.msra.mxu0 %v18162_v47  ;;  %v13775_v47 = vld [vmem:[#allocation5 + $0x320] sm:$0xff] }
 0x208   :  { %9161 = vmatpush2.bf16.msra.mxu1 %v18163_v34  ;;  %9099 = vmatprep.subr.bf16.mxu0 %v18164_v41  ;;  %19090 = vst [vmem:[#allocation228_spill] sm:$0xff] %v13775_v47  ;;  %v18178_v34 = vunpack.c.h.s8.bf16 %v13773_v21  ;;  %v18179_v41 = vunpack.c.h.s8.bf16 %v13775_v47 }
 0x209   :  { %9163 = vmatprep.subr.bf16.mxu1 %v18165_v52  ;;  %v18180_v52 = vunpack.c.l.s8.bf16 %v13757_v25  ;;  %v13821_v25 = vld [vmem:[#allocation5 + $0x688] sm:$0xff] }
 0x20a   :  { %19095 = vst [vmem:[#allocation233_spill] sm:$0xff] %v13821_v25 }
 0x20b   :  { %9101 = vmatpush2.bf16.msra.mxu0 %v18170_v35  ;;  %v13791_v35 = vld [vmem:[#allocation5 + $0x298] sm:$0xff] }
 0x20c   :  { %9165 = vmatpush2.bf16.msra.mxu1 %v18171_v26  ;;  %9103 = vmatprep.subr.bf16.mxu0 %v18172_v42  ;;  %19092 = vst [vmem:[#allocation230_spill] sm:$0xff] %v13791_v35  ;;  %v18186_v26 = vunpack.c.l.s8.bf16 %v13773_v21  ;;  %v18187_v42 = vunpack.c.l.s8.bf16 %v13775_v47  ;;  %v18189_v4 = vunpack.c.h.s8.bf16 %v13791_v35  ;;  %v18197_v49 = vunpack.c.l.s8.bf16 %v13791_v35  ;;  %v13837_v21 = vld [vmem:[#allocation5 + $0x680] sm:$0xff] }
 0x20d   :  { %9167 = vmatprep.subr.bf16.mxu1 %v18173_v30  ;;  %v18188_v30 = vunpack.c.h.s8.bf16 %v13789_v61  ;;  %19097 = vst [vmem:[#allocation235_spill] sm:$0xff] %v13837_v21 }
 0x20f   :  { %9105 = vmatpush2.bf16.msra.mxu0 %v18178_v34  ;;  %v13807_v34 = vld [vmem:[#allocation5 + $0x290] sm:$0xff] }
 0x210   :  { %9169 = vmatpush2.bf16.msra.mxu1 %v18179_v41  ;;  %9107 = vmatprep.subr.bf16.mxu0 %v18180_v52  ;;  %19094 = vst [vmem:[#allocation232_spill] sm:$0xff] %v13807_v34  ;;  %v18194_v41 = vunpack.c.h.s8.bf16 %v13805_v55  ;;  %v18195_v52 = vunpack.c.h.s8.bf16 %v13807_v34 }
 0x211   :  { %9171 = vmatprep.subr.bf16.mxu1 %v18181_v9  ;;  %v18196_v9 = vunpack.c.l.s8.bf16 %v13789_v61  ;;  %v13853_v61 = vld [vmem:[#allocation5 + $0x5f8] sm:$0xff] }
 0x212   :  { %19099 = vst [vmem:[#allocation237_spill] sm:$0xff] %v13853_v61 }
 0x213   :  { %9109 = vmatpush2.bf16.msra.mxu0 %v18186_v26  ;;  %v13823_v26 = vld [vmem:[#allocation5 + $0xb08] sm:$0xff] }
 0x214   :  { %9173 = vmatpush2.bf16.msra.mxu1 %v18187_v42  ;;  %9111 = vmatprep.subr.bf16.mxu0 %v18188_v30  ;;  %19096 = vst [vmem:[#allocation234_spill] sm:$0xff] %v13823_v26  ;;  %v18202_v42 = vunpack.c.l.s8.bf16 %v13805_v55  ;;  %v18205_v30 = vunpack.c.l.s8.bf16 %v13807_v34  ;;  %v18206_v47 = vunpack.c.h.s8.bf16 %v13823_v26  ;;  %v19102_v55 = vunpack.c.l.s8.bf16 %v13823_v26  ;;  %v13895_v26 = vld [vmem:[#allocation5 + $0x568] sm:$0xff] }
 0x215   :  { %9175 = vmatprep.subr.bf16.mxu1 %v18189_v4  ;;  %v18207_v4 = vunpack.c.h.s8.bf16 %v13821_v25  ;;  %19106 = vst [vmem:[#allocation243_spill] sm:$0xff] %v13895_v26 }
 0x217   :  { %9113 = vmatpush2.bf16.msra.mxu0 %v18194_v41  ;;  %v13839_v41 = vld [vmem:[#allocation5 + $0xb00] sm:$0xff] }
 0x218   :  { %9177 = vmatpush2.bf16.msra.mxu1 %v18195_v52  ;;  %9115 = vmatprep.subr.bf16.mxu0 %v18196_v9  ;;  %19098 = vst [vmem:[#allocation236_spill] sm:$0xff] %v13839_v41  ;;  %v18210_v52 = vunpack.c.h.s8.bf16 %v13837_v21  ;;  %v18211_v9 = vunpack.c.h.s8.bf16 %v13839_v41 }
 0x219   :  { %9179 = vmatprep.subr.bf16.mxu1 %v18197_v49  ;;  %v18212_v49 = vunpack.c.l.s8.bf16 %v13821_v25 }
 0x21b   :  { %9117 = vmatpush2.bf16.msra.mxu0 %v18202_v42  ;;  %v13855_v42 = vld [vmem:[#allocation5 + $0xa78] sm:$0xff] }
 0x21c   :  { %9181 = vmatpush2.bf16.msra.mxu1 %v18205_v30  ;;  %9183 = vmatprep.subr.bf16.mxu0 %v18207_v4  ;;  %19100 = vst [vmem:[#allocation238_spill] sm:$0xff] %v13855_v42  ;;  %v18216_v4 = vunpack.c.l.s8.bf16 %v13839_v41 }
 0x21d   :  { %9247 = vmatprep.subr.bf16.mxu1 %v18206_v47  ;;  %v18215_v47 = vunpack.c.l.s8.bf16 %v13837_v21  ;;  %v14103_v21 = vld [vmem:[#allocation5 + $0x210] sm:$0xff] }
 0x21e   :  { %v4636_v34 = vpop.f32.mrf.mxu0  ;;  %5061 = vmatmul.mubr.f32.vlgmr.msra.gmra.mxu0 %v12261_v46 }
 0x21f   :  { %5132 = vmatmul.mubr.f32.vlgmr.msra.gmra.mxu1 %v11987_v33  ;;  %v13860_v30 = vadd.f32 %v4636_v34, %v13595_v20  ;;  %9185 = vmatpush1.bf16.msra.mxu0 %v18210_v52  ;;  %v18217_v34 = vunpack.c.h.s8.bf16 %v13853_v61  ;;  %v18218_v20 = vunpack.c.h.s8.bf16 %v13855_v42  ;;  %v13876_v52 = vld [vmem:[#allocation5 + $0xa70] sm:$0xff] }
 0x220   :  { %9249 = vmatpush1.bf16.msra.mxu1 %v18211_v9  ;;  %v4638_v35 = vpop.f32.mrf.mxu0  ;;  %9187 = vmatprep.subr.bf16.mxu0 %v18212_v49  ;;  %19104 = vst [vmem:[#allocation241_spill] sm:$0xff] %v13876_v52  ;;  %v18222_v49 = vunpack.c.h.s8.bf16 %v13876_v52 }
 0x221   :  { %19101 = vst [vmem:[#allocation239_spill] sm:$0xff] %v13860_v30  ;;  %9251 = vmatprep.subr.bf16.mxu1 %v19102_v55  ;;  %v13874_v30 = vld [vmem:[#allocation5 + $0x5f0] sm:$0xff]  ;;  %v13879_v9 = vadd.f32 %v4638_v35, %v13613_v14  ;;  %5202 = vmatprep.mubr.f32.mxu0 %v11802_v37  ;;  %v18223_v35 = vunpack.c.l.s8.bf16 %v13853_v61  ;;  %v18224_v14 = vunpack.c.l.s8.bf16 %v13855_v42  ;;  %v13927_v61 = vld [vmem:[#allocation5 + $0x4d8] sm:$0xff] }
 0x222   :  { %19103 = vst [vmem:[#allocation240_spill] sm:$0xff] %v13874_v30  ;;  %5273 = vmatprep.mubr.f32.mxu1 %v12014_v19  ;;  %v18221_v55 = vunpack.c.h.s8.bf16 %v13874_v30  ;;  %19110 = vst [vmem:[#allocation247_spill] sm:$0xff] %v13927_v61 }
 0x223   :  { %19105 = vst [vmem:[#allocation242_spill] sm:$0xff] %v13879_v9  ;;  %9189 = vmatpush1.bf16.msra.mxu0 %v18215_v47  ;;  %v13897_v47 = vld [vmem:[#allocation5 + $0x9e8] sm:$0xff]  ;;  %v13911_v9 = vld [vmem:[#allocation5 + $0x560] sm:$0xff] }
 0x224   :  { %9253 = vmatpush1.bf16.msra.mxu1 %v18216_v4  ;;  %9191 = vmatprep.subr.bf16.mxu0 %v18217_v34  ;;  %19107 = vst [vmem:[#allocation244_spill] sm:$0xff] %v13897_v47  ;;  %v18229_v4 = vunpack.c.l.s8.bf16 %v13874_v30  ;;  %v18230_v34 = vunpack.c.l.s8.bf16 %v13876_v52  ;;  %v18232_v41 = vunpack.c.h.s8.bf16 %v13897_v47  ;;  %19108 = vst [vmem:[#allocation245_spill] sm:$0xff] %v13911_v9  ;;  %v18240_v42 = vunpack.c.l.s8.bf16 %v13897_v47  ;;  %v13943_v30 = vld [vmem:[#allocation5 + $0x4d0] sm:$0xff] }
 0x225   :  { %9255 = vmatprep.subr.bf16.mxu1 %v18218_v20  ;;  %v18231_v20 = vunpack.c.h.s8.bf16 %v13895_v26  ;;  %19112 = vst [vmem:[#allocation249_spill] sm:$0xff] %v13943_v30 }
 0x227   :  { %9193 = vmatpush1.bf16.msra.mxu0 %v18221_v55  ;;  %v13913_v55 = vld [vmem:[#allocation5 + $0x9e0] sm:$0xff] }
 0x228   :  { %9257 = vmatpush1.bf16.msra.mxu1 %v18222_v49  ;;  %9195 = vmatprep.subr.bf16.mxu0 %v18223_v35  ;;  %19109 = vst [vmem:[#allocation246_spill] sm:$0xff] %v13913_v55  ;;  %v18237_v49 = vunpack.c.h.s8.bf16 %v13911_v9  ;;  %v18238_v35 = vunpack.c.h.s8.bf16 %v13913_v55 }
 0x229   :  { %9259 = vmatprep.subr.bf16.mxu1 %v18224_v14  ;;  %v18239_v14 = vunpack.c.l.s8.bf16 %v13895_v26  ;;  %v13959_v26 = vld [vmem:[#allocation5 + $0x8c8] sm:$0xff] }
 0x22a   :  { %19114 = vst [vmem:[#allocation251_spill] sm:$0xff] %v13959_v26 }
 0x22b   :  { %9197 = vmatpush1.bf16.msra.mxu0 %v18229_v4  ;;  %v13929_v4 = vld [vmem:[#allocation5 + $0x958] sm:$0xff] }
 0x22c   :  { %9261 = vmatpush1.bf16.msra.mxu1 %v18230_v34  ;;  %9199 = vmatprep.subr.bf16.mxu0 %v18231_v20  ;;  %19111 = vst [vmem:[#allocation248_spill] sm:$0xff] %v13929_v4  ;;  %v18245_v34 = vunpack.c.l.s8.bf16 %v13911_v9  ;;  %v18246_v20 = vunpack.c.l.s8.bf16 %v13913_v55  ;;  %v18248_v52 = vunpack.c.h.s8.bf16 %v13929_v4  ;;  %v18256_v47 = vunpack.c.l.s8.bf16 %v13929_v4  ;;  %v13975_v9 = vld [vmem:[#allocation5 + $0x8c0] sm:$0xff] }
 0x22d   :  { %9263 = vmatprep.subr.bf16.mxu1 %v18232_v41  ;;  %v18247_v41 = vunpack.c.h.s8.bf16 %v13927_v61  ;;  %19116 = vst [vmem:[#allocation253_spill] sm:$0xff] %v13975_v9 }
 0x22f   :  { %9201 = vmatpush1.bf16.msra.mxu0 %v18237_v49  ;;  %v13945_v49 = vld [vmem:[#allocation5 + $0x950] sm:$0xff] }
 0x230   :  { %9265 = vmatpush1.bf16.msra.mxu1 %v18238_v35  ;;  %9203 = vmatprep.subr.bf16.mxu0 %v18239_v14  ;;  %19113 = vst [vmem:[#allocation250_spill] sm:$0xff] %v13945_v49  ;;  %v18253_v35 = vunpack.c.h.s8.bf16 %v13943_v30  ;;  %v18254_v14 = vunpack.c.h.s8.bf16 %v13945_v49 }
 0x231   :  { %9267 = vmatprep.subr.bf16.mxu1 %v18240_v42  ;;  %v18255_v42 = vunpack.c.l.s8.bf16 %v13927_v61  ;;  %v13991_v61 = vld [vmem:[#allocation5 + $0x838] sm:$0xff] }
 0x232   :  { %19118 = vst [vmem:[#allocation255_spill] sm:$0xff] %v13991_v61 }
 0x233   :  { %9205 = vmatpush1.bf16.msra.mxu0 %v18245_v34  ;;  %v13961_v34 = vld [vmem:[#allocation5 + $0xd48] sm:$0xff] }
 0x234   :  { %9269 = vmatpush1.bf16.msra.mxu1 %v18246_v20  ;;  %9207 = vmatprep.subr.bf16.mxu0 %v18247_v41  ;;  %19115 = vst [vmem:[#allocation252_spill] sm:$0xff] %v13961_v34  ;;  %v18261_v20 = vunpack.c.l.s8.bf16 %v13943_v30  ;;  %v18262_v41 = vunpack.c.l.s8.bf16 %v13945_v49  ;;  %v18264_v55 = vunpack.c.h.s8.bf16 %v13961_v34  ;;  %v18272_v4 = vunpack.c.l.s8.bf16 %v13961_v34  ;;  %v14007_v30 = vld [vmem:[#allocation5 + $0x830] sm:$0xff] }
 0x235   :  { %9271 = vmatprep.subr.bf16.mxu1 %v18248_v52  ;;  %v18263_v52 = vunpack.c.h.s8.bf16 %v13959_v26  ;;  %19120 = vst [vmem:[#allocation257_spill] sm:$0xff] %v14007_v30 }
 0x237   :  { %9209 = vmatpush1.bf16.msra.mxu0 %v18253_v35  ;;  %v13977_v35 = vld [vmem:[#allocation5 + $0xd40] sm:$0xff] }
 0x238   :  { %9273 = vmatpush1.bf16.msra.mxu1 %v18254_v14  ;;  %9211 = vmatprep.subr.bf16.mxu0 %v18255_v42  ;;  %19117 = vst [vmem:[#allocation254_spill] sm:$0xff] %v13977_v35  ;;  %v18269_v14 = vunpack.c.h.s8.bf16 %v13975_v9  ;;  %v18270_v42 = vunpack.c.h.s8.bf16 %v13977_v35 }
 0x239   :  { %9275 = vmatprep.subr.bf16.mxu1 %v18256_v47  ;;  %v18271_v47 = vunpack.c.l.s8.bf16 %v13959_v26  ;;  %v14023_v26 = vld [vmem:[#allocation5 + $0x7a8] sm:$0xff] }
 0x23a   :  { %19122 = vst [vmem:[#allocation259_spill] sm:$0xff] %v14023_v26 }
 0x23b   :  { %9213 = vmatpush1.bf16.msra.mxu0 %v18261_v20  ;;  %v13993_v20 = vld [vmem:[#allocation5 + $0xcb8] sm:$0xff] }
 0x23c   :  { %9277 = vmatpush1.bf16.msra.mxu1 %v18262_v41  ;;  %9215 = vmatprep.subr.bf16.mxu0 %v18263_v52  ;;  %19119 = vst [vmem:[#allocation256_spill] sm:$0xff] %v13993_v20  ;;  %v18277_v41 = vunpack.c.l.s8.bf16 %v13975_v9  ;;  %v18278_v52 = vunpack.c.l.s8.bf16 %v13977_v35  ;;  %v18280_v49 = vunpack.c.h.s8.bf16 %v13993_v20  ;;  %v18288_v34 = vunpack.c.l.s8.bf16 %v13993_v20  ;;  %v14039_v9 = vld [vmem:[#allocation5 + $0x7a0] sm:$0xff] }
 0x23d   :  { %9279 = vmatprep.subr.bf16.mxu1 %v18264_v55  ;;  %v18279_v55 = vunpack.c.h.s8.bf16 %v13991_v61  ;;  %19124 = vst [vmem:[#allocation261_spill] sm:$0xff] %v14039_v9 }
 0x23f   :  { %9217 = vmatpush2.bf16.msra.mxu0 %v18269_v14  ;;  %v14009_v14 = vld [vmem:[#allocation5 + $0xcb0] sm:$0xff] }
 0x240   :  { %9281 = vmatpush2.bf16.msra.mxu1 %v18270_v42  ;;  %9219 = vmatprep.subr.bf16.mxu0 %v18271_v47  ;;  %19121 = vst [vmem:[#allocation258_spill] sm:$0xff] %v14009_v14  ;;  %v18285_v42 = vunpack.c.h.s8.bf16 %v14007_v30  ;;  %v18286_v47 = vunpack.c.h.s8.bf16 %v14009_v14 }
 0x241   :  { %9283 = vmatprep.subr.bf16.mxu1 %v18272_v4  ;;  %v18287_v4 = vunpack.c.l.s8.bf16 %v13991_v61  ;;  %v14055_v61 = vld [vmem:[#allocation5 + $0x718] sm:$0xff] }
 0x242   :  { %19126 = vst [vmem:[#allocation263_spill] sm:$0xff] %v14055_v61 }
 0x243   :  { %9221 = vmatpush2.bf16.msra.mxu0 %v18277_v41  ;;  %v14025_v41 = vld [vmem:[#allocation5 + $0xc28] sm:$0xff] }
 0x244   :  { %9285 = vmatpush2.bf16.msra.mxu1 %v18278_v52  ;;  %9223 = vmatprep.subr.bf16.mxu0 %v18279_v55  ;;  %19123 = vst [vmem:[#allocation260_spill] sm:$0xff] %v14025_v41  ;;  %v18293_v52 = vunpack.c.l.s8.bf16 %v14007_v30  ;;  %v18294_v55 = vunpack.c.l.s8.bf16 %v14009_v14  ;;  %v18296_v35 = vunpack.c.h.s8.bf16 %v14025_v41  ;;  %v18304_v20 = vunpack.c.l.s8.bf16 %v14025_v41  ;;  %v14071_v30 = vld [vmem:[#allocation5 + $0x710] sm:$0xff] }
 0x245   :  { %9287 = vmatprep.subr.bf16.mxu1 %v18280_v49  ;;  %v18295_v49 = vunpack.c.h.s8.bf16 %v14023_v26  ;;  %19128 = vst [vmem:[#allocation265_spill] sm:$0xff] %v14071_v30 }
 0x247   :  { %9225 = vmatpush2.bf16.msra.mxu0 %v18285_v42  ;;  %v14041_v42 = vld [vmem:[#allocation5 + $0xc20] sm:$0xff] }
 0x248   :  { %9289 = vmatpush2.bf16.msra.mxu1 %v18286_v47  ;;  %9227 = vmatprep.subr.bf16.mxu0 %v18287_v4  ;;  %19125 = vst [vmem:[#allocation262_spill] sm:$0xff] %v14041_v42  ;;  %v18301_v47 = vunpack.c.h.s8.bf16 %v14039_v9  ;;  %v18302_v4 = vunpack.c.h.s8.bf16 %v14041_v42 }
 0x249   :  { %9291 = vmatprep.subr.bf16.mxu1 %v18288_v34  ;;  %v18303_v34 = vunpack.c.l.s8.bf16 %v14023_v26  ;;  %v14087_v26 = vld [vmem:[#allocation5 + $0x218] sm:$0xff] }
 0x24a   :  { %v19135_v3 = vunpack.c.l.s8.bf16 %v14087_v26 }
 0x24b   :  { %9229 = vmatpush2.bf16.msra.mxu0 %v18293_v52  ;;  %v14057_v52 = vld [vmem:[#allocation5 + $0xb98] sm:$0xff] }
 0x24c   :  { %9293 = vmatpush2.bf16.msra.mxu1 %v18294_v55  ;;  %9231 = vmatprep.subr.bf16.mxu0 %v18295_v49  ;;  %19127 = vst [vmem:[#allocation264_spill] sm:$0xff] %v14057_v52  ;;  %v18309_v55 = vunpack.c.l.s8.bf16 %v14039_v9  ;;  %v18310_v49 = vunpack.c.l.s8.bf16 %v14041_v42  ;;  %v18314_v14 = vunpack.c.h.s8.bf16 %v14057_v52  ;;  %v18324_v41 = vunpack.c.l.s8.bf16 %v14057_v52  ;;  %v4707_v42 = vpop.f32.mrf.mxu1 }
 0x24d   :  { %9295 = vmatprep.subr.bf16.mxu1 %v18296_v35  ;;  %v18311_v35 = vunpack.c.h.s8.bf16 %v14055_v61 }
 0x24e   :  { %v4709_v52 = vpop.f32.mrf.mxu1 }
 0x24f   :  { %9233 = vmatpush2.bf16.msra.mxu0 %v18301_v47  ;;  %v14073_v47 = vld [vmem:[#allocation5 + $0xb90] sm:$0xff] }
 0x250   :  { %9297 = vmatpush2.bf16.msra.mxu1 %v18302_v4  ;;  %9235 = vmatprep.subr.bf16.mxu0 %v18303_v34  ;;  %19129 = vst [vmem:[#allocation266_spill] sm:$0xff] %v14073_v47  ;;  %v18319_v4 = vunpack.c.h.s8.bf16 %v14071_v30  ;;  %v18320_v34 = vunpack.c.h.s8.bf16 %v14073_v47 }
 0x251   :  { %9299 = vmatprep.subr.bf16.mxu1 %v18304_v20  ;;  %v18321_v20 = vunpack.c.l.s8.bf16 %v14055_v61 }
 0x253   :  { %9237 = vmatpush2.bf16.msra.mxu0 %v18309_v55  ;;  %v14089_v55 = vld [vmem:[#allocation5 + $0x698] sm:$0xff] }
 0x254   :  { %9301 = vmatpush2.bf16.msra.mxu1 %v18310_v49  ;;  %9239 = vmatprep.subr.bf16.mxu0 %v18311_v35  ;;  %19130 = vst [vmem:[#allocation267_spill] sm:$0xff] %v14089_v55  ;;  %v18329_v49 = vunpack.c.l.s8.bf16 %v14071_v30  ;;  %v18330_v35 = vunpack.c.l.s8.bf16 %v14073_v47  ;;  %v18332_v9 = vunpack.c.h.s8.bf16 %v14089_v55  ;;  %v14119_v30 = vld [vmem:[#allocation5 + $0x188] sm:$0xff]  ;;  %v19136_v6 = vunpack.c.l.s8.bf16 %v14089_v55  ;;  %v14223_v55 = vld [vmem:[#allocation5 + $0x458] sm:$0xff] }
 0x255   :  { %9303 = vmatprep.subr.bf16.mxu1 %v18314_v14  ;;  %v18331_v14 = vunpack.c.h.s8.bf16 %v14087_v26  ;;  %19151 = vst [vmem:[#allocation280_spill] sm:$0xff] %v14223_v55 }
 0x257   :  { %9241 = vmatpush2.bf16.msra.mxu0 %v18319_v4  ;;  %v14105_v4 = vld [vmem:[#allocation5 + $0x690] sm:$0xff] }
 0x258   :  { %9305 = vmatpush2.bf16.msra.mxu1 %v18320_v34  ;;  %9243 = vmatprep.subr.bf16.mxu0 %v18321_v20  ;;  %19131 = vst [vmem:[#allocation268_spill] sm:$0xff] %v14105_v4 }
 0x259   :  { %9307 = vmatprep.subr.bf16.mxu1 %v18324_v41 }
 0x25b   :  { %9245 = vmatpush2.bf16.msra.mxu0 %v18329_v49  ;;  %v14121_v49 = vld [vmem:[#allocation5 + $0x608] sm:$0xff] }
 0x25c   :  { %9309 = vmatpush2.bf16.msra.mxu1 %v18330_v35  ;;  %9311 = vmatprep.subr.bf16.mxu0 %v18331_v14  ;;  %19132 = vst [vmem:[#allocation269_spill] sm:$0xff] %v14121_v49  ;;  %v19133_v14 = vunpack.c.h.s8.bf16 %v14103_v21 }
 0x25d   :  { %9375 = vmatprep.subr.bf16.mxu1 %v18332_v9  ;;  %v19134_v9 = vunpack.c.h.s8.bf16 %v14105_v4 }
 0x25e   :  { %v4778_v35 = vpop.f32.mrf.mxu0  ;;  %5203 = vmatmul.mubr.f32.vlgmr.msra.gmra.mxu0 %v11990_v54 }
 0x25f   :  { %v4849_v34 = vpop.f32.mrf.mxu1  ;;  %5274 = vmatmul.mubr.f32.vlgmr.msra.gmra.mxu1 %v12261_v46  ;;  %v4779_v20 = vadd.f32 %v4778_v35, %v4707_v42  ;;  %9313 = vmatpush1.bf16.msra.mxu0 %v19133_v14  ;;  %v14137_v14 = vld [vmem:[#allocation5 + $0x180] sm:$0xff]  ;;  %v18344_v42 = vunpack.c.h.s8.bf16 %v14139_v13 }
 0x260   :  { %9377 = vmatpush1.bf16.msra.mxu1 %v19134_v9  ;;  %v4780_v47 = vpop.f32.mrf.mxu0  ;;  %9315 = vmatprep.subr.bf16.mxu0 %v19135_v3  ;;  %v19140_v3 = vunpack.c.l.s8.bf16 %v14103_v21  ;;  %v18343_v35 = vunpack.c.h.s8.bf16 %v14137_v14 }
 0x261   :  { %v4851_v25 = vpop.f32.mrf.mxu1  ;;  %9379 = vmatprep.subr.bf16.mxu1 %v19136_v6  ;;  %v14141_v9 = vadd.f32 %v4849_v34, %v4779_v20  ;;  %v4781_v41 = vadd.f32 %v4780_v47, %v4709_v52  ;;  %5344 = vmatprep.mubr.f32.mxu0 %v11799_v36  ;;  %v19141_v6 = vunpack.c.l.s8.bf16 %v14105_v4  ;;  %v19142_v34 = vunpack.c.h.s8.bf16 %v14119_v30  ;;  %v14161_v20 = vld [vmem:[#allocation5 + $0x578] sm:$0xff]  ;;  %v14207_v4 = vld [vmem:[#allocation5 + $0x60] sm:$0xff] }
 0x262   :  { %5415 = vmatprep.mubr.f32.mxu1 %v11802_v37  ;;  %v19143_v47 = vunpack.c.h.s8.bf16 %v14121_v49  ;;  %v18345_v52 = vunpack.c.l.s8.bf16 %v14119_v30  ;;  %19144 = vst [vmem:[#allocation273_spill] sm:$0xff] %v14161_v20  ;;  %19149 = vst [vmem:[#allocation278_spill] sm:$0xff] %v14207_v4 }
 0x263   :  { %19138 = vst [vmem:[#allocation271_spill] sm:$0xff] %v14141_v9  ;;  %v14145_v61 = vadd.f32 %v4851_v25, %v4781_v41  ;;  %9317 = vmatpush1.bf16.msra.mxu0 %v19140_v3  ;;  %v18346_v41 = vunpack.c.l.s8.bf16 %v14121_v49  ;;  %v14159_v25 = vld [vmem:[#allocation5 + $0xf8] sm:$0xff]  ;;  %v18349_v3 = vunpack.c.l.s8.bf16 %v14137_v14  ;;  %v18360_v49 = vunpack.c.l.s8.bf16 %v14161_v20  ;;  %v14191_v9 = vld [vmem:[#allocation5 + $0x68] sm:$0xff] }
 0x264   :  { %9381 = vmatpush1.bf16.msra.mxu1 %v19141_v6  ;;  %9319 = vmatprep.subr.bf16.mxu0 %v19142_v34  ;;  %v18350_v6 = vunpack.c.l.s8.bf16 %v14139_v13  ;;  %v18351_v34 = vunpack.c.h.s8.bf16 %v14159_v25  ;;  %19147 = vst [vmem:[#allocation276_spill] sm:$0xff] %v14191_v9 }
 0x265   :  { %19139 = vst [vmem:[#allocation272_spill] sm:$0xff] %v14145_v61  ;;  %9383 = vmatprep.subr.bf16.mxu1 %v19143_v47  ;;  %v18352_v47 = vunpack.c.h.s8.bf16 %v14161_v20  ;;  %v14175_v61 = vld [vmem:[#allocation5 + $0xf0] sm:$0xff] }
 0x266   :  { %19145 = vst [vmem:[#allocation274_spill] sm:$0xff] %v14175_v61 }
 0x267   :  { %9321 = vmatpush1.bf16.msra.mxu0 %v18343_v35  ;;  %v14177_v35 = vld [vmem:[#allocation5 + $0x570] sm:$0xff] }
 0x268   :  { %9385 = vmatpush1.bf16.msra.mxu1 %v18344_v42  ;;  %9323 = vmatprep.subr.bf16.mxu0 %v18345_v52  ;;  %19146 = vst [vmem:[#allocation275_spill] sm:$0xff] %v14177_v35  ;;  %v18357_v42 = vunpack.c.h.s8.bf16 %v14175_v61  ;;  %v18358_v52 = vunpack.c.h.s8.bf16 %v14177_v35 }
 0x269   :  { %9387 = vmatprep.subr.bf16.mxu1 %v18346_v41  ;;  %v18359_v41 = vunpack.c.l.s8.bf16 %v14159_v25 }
 0x26b   :  { %9325 = vmatpush1.bf16.msra.mxu0 %v18349_v3  ;;  %v14193_v3 = vld [vmem:[#allocation5 + $0x4e8] sm:$0xff] }
 0x26c   :  { %9389 = vmatpush1.bf16.msra.mxu1 %v18350_v6  ;;  %9327 = vmatprep.subr.bf16.mxu0 %v18351_v34  ;;  %19148 = vst [vmem:[#allocation277_spill] sm:$0xff] %v14193_v3  ;;  %v18365_v6 = vunpack.c.l.s8.bf16 %v14175_v61  ;;  %v18366_v34 = vunpack.c.l.s8.bf16 %v14177_v35  ;;  %v18368_v13 = vunpack.c.h.s8.bf16 %v14193_v3  ;;  %v18376_v20 = vunpack.c.l.s8.bf16 %v14193_v3  ;;  %v14239_v61 = vld [vmem:[#allocation5 + $0x450] sm:$0xff] }
 0x26d   :  { %9391 = vmatprep.subr.bf16.mxu1 %v18352_v47  ;;  %v18367_v47 = vunpack.c.h.s8.bf16 %v14191_v9  ;;  %19153 = vst [vmem:[#allocation282_spill] sm:$0xff] %v14239_v61 }
 0x26f   :  { %9329 = vmatpush1.bf16.msra.mxu0 %v18357_v42  ;;  %v14209_v42 = vld [vmem:[#allocation5 + $0x4e0] sm:$0xff] }
 0x270   :  { %9393 = vmatpush1.bf16.msra.mxu1 %v18358_v52  ;;  %9331 = vmatprep.subr.bf16.mxu0 %v18359_v41  ;;  %19150 = vst [vmem:[#allocation279_spill] sm:$0xff] %v14209_v42  ;;  %v18373_v52 = vunpack.c.h.s8.bf16 %v14207_v4  ;;  %v18374_v41 = vunpack.c.h.s8.bf16 %v14209_v42 }
 0x271   :  { %9395 = vmatprep.subr.bf16.mxu1 %v18360_v49  ;;  %v18375_v49 = vunpack.c.l.s8.bf16 %v14191_v9  ;;  %v14255_v9 = vld [vmem:[#allocation5 + $0x3c8] sm:$0xff] }
 0x272   :  { %19155 = vst [vmem:[#allocation284_spill] sm:$0xff] %v14255_v9 }
 0x273   :  { %9333 = vmatpush1.bf16.msra.mxu0 %v18365_v6  ;;  %v14225_v6 = vld [vmem:[#allocation5 + $0x8d8] sm:$0xff] }
 0x274   :  { %9397 = vmatpush1.bf16.msra.mxu1 %v18366_v34  ;;  %9335 = vmatprep.subr.bf16.mxu0 %v18367_v47  ;;  %19152 = vst [vmem:[#allocation281_spill] sm:$0xff] %v14225_v6  ;;  %v18381_v34 = vunpack.c.l.s8.bf16 %v14207_v4  ;;  %v18382_v47 = vunpack.c.l.s8.bf16 %v14209_v42  ;;  %v18384_v35 = vunpack.c.h.s8.bf16 %v14225_v6  ;;  %v18392_v3 = vunpack.c.l.s8.bf16 %v14225_v6  ;;  %v14271_v4 = vld [vmem:[#allocation5 + $0x3c0] sm:$0xff] }
 0x275   :  { %9399 = vmatprep.subr.bf16.mxu1 %v18368_v13  ;;  %v18383_v13 = vunpack.c.h.s8.bf16 %v14223_v55  ;;  %19157 = vst [vmem:[#allocation286_spill] sm:$0xff] %v14271_v4 }
 0x277   :  { %9337 = vmatpush1.bf16.msra.mxu0 %v18373_v52  ;;  %v14241_v52 = vld [vmem:[#allocation5 + $0x8d0] sm:$0xff] }
 0x278   :  { %9401 = vmatpush1.bf16.msra.mxu1 %v18374_v41  ;;  %9339 = vmatprep.subr.bf16.mxu0 %v18375_v49  ;;  %19154 = vst [vmem:[#allocation283_spill] sm:$0xff] %v14241_v52  ;;  %v18389_v41 = vunpack.c.h.s8.bf16 %v14239_v61  ;;  %v18390_v49 = vunpack.c.h.s8.bf16 %v14241_v52 }
 0x279   :  { %9403 = vmatprep.subr.bf16.mxu1 %v18376_v20  ;;  %v18391_v20 = vunpack.c.l.s8.bf16 %v14223_v55  ;;  %v14287_v55 = vld [vmem:[#allocation5 + $0x338] sm:$0xff] }
 0x27a   :  { %19159 = vst [vmem:[#allocation288_spill] sm:$0xff] %v14287_v55 }
 0x27b   :  { %9341 = vmatpush1.bf16.msra.mxu0 %v18381_v34  ;;  %v14257_v34 = vld [vmem:[#allocation5 + $0x848] sm:$0xff] }
 0x27c   :  { %9405 = vmatpush1.bf16.msra.mxu1 %v18382_v47  ;;  %9343 = vmatprep.subr.bf16.mxu0 %v18383_v13  ;;  %19156 = vst [vmem:[#allocation285_spill] sm:$0xff] %v14257_v34  ;;  %v18397_v47 = vunpack.c.l.s8.bf16 %v14239_v61  ;;  %v18398_v13 = vunpack.c.l.s8.bf16 %v14241_v52  ;;  %v18400_v42 = vunpack.c.h.s8.bf16 %v14257_v34  ;;  %v18408_v6 = vunpack.c.l.s8.bf16 %v14257_v34  ;;  %v14303_v61 = vld [vmem:[#allocation5 + $0x330] sm:$0xff] }
 0x27d   :  { %9407 = vmatprep.subr.bf16.mxu1 %v18384_v35  ;;  %v18399_v35 = vunpack.c.h.s8.bf16 %v14255_v9  ;;  %19161 = vst [vmem:[#allocation290_spill] sm:$0xff] %v14303_v61 }
 0x27f   :  { %9345 = vmatpush2.bf16.msra.mxu0 %v18389_v41  ;;  %v14273_v41 = vld [vmem:[#allocation5 + $0x840] sm:$0xff] }
 0x280   :  { %9409 = vmatpush2.bf16.msra.mxu1 %v18390_v49  ;;  %9347 = vmatprep.subr.bf16.mxu0 %v18391_v20  ;;  %19158 = vst [vmem:[#allocation287_spill] sm:$0xff] %v14273_v41  ;;  %v18405_v49 = vunpack.c.h.s8.bf16 %v14271_v4  ;;  %v18406_v20 = vunpack.c.h.s8.bf16 %v14273_v41 }
 0x281   :  { %9411 = vmatprep.subr.bf16.mxu1 %v18392_v3  ;;  %v18407_v3 = vunpack.c.l.s8.bf16 %v14255_v9  ;;  %v14319_v9 = vld [vmem:[#allocation5 + $0x2a8] sm:$0xff] }
 0x282   :  { %19163 = vst [vmem:[#allocation292_spill] sm:$0xff] %v14319_v9 }
 0x283   :  { %9349 = vmatpush2.bf16.msra.mxu0 %v18397_v47  ;;  %v14289_v47 = vld [vmem:[#allocation5 + $0x7b8] sm:$0xff] }
 0x284   :  { %9413 = vmatpush2.bf16.msra.mxu1 %v18398_v13  ;;  %9351 = vmatprep.subr.bf16.mxu0 %v18399_v35  ;;  %19160 = vst [vmem:[#allocation289_spill] sm:$0xff] %v14289_v47  ;;  %v18413_v13 = vunpack.c.l.s8.bf16 %v14271_v4  ;;  %v18414_v35 = vunpack.c.l.s8.bf16 %v14273_v41  ;;  %v18416_v52 = vunpack.c.h.s8.bf16 %v14289_v47  ;;  %v18424_v34 = vunpack.c.l.s8.bf16 %v14289_v47  ;;  %v14335_v4 = vld [vmem:[#allocation5 + $0x2a0] sm:$0xff] }
 0x285   :  { %9415 = vmatprep.subr.bf16.mxu1 %v18400_v42  ;;  %v18415_v42 = vunpack.c.h.s8.bf16 %v14287_v55  ;;  %19165 = vst [vmem:[#allocation294_spill] sm:$0xff] %v14335_v4 }
 0x287   :  { %9353 = vmatpush2.bf16.msra.mxu0 %v18405_v49  ;;  %v14305_v49 = vld [vmem:[#allocation5 + $0x7b0] sm:$0xff] }
 0x288   :  { %9417 = vmatpush2.bf16.msra.mxu1 %v18406_v20  ;;  %9355 = vmatprep.subr.bf16.mxu0 %v18407_v3  ;;  %19162 = vst [vmem:[#allocation291_spill] sm:$0xff] %v14305_v49  ;;  %v18421_v20 = vunpack.c.h.s8.bf16 %v14303_v61  ;;  %v18422_v3 = vunpack.c.h.s8.bf16 %v14305_v49 }
 0x289   :  { %9419 = vmatprep.subr.bf16.mxu1 %v18408_v6  ;;  %v18423_v6 = vunpack.c.l.s8.bf16 %v14287_v55  ;;  %v14351_v55 = vld [vmem:[#allocation5 + $0xb18] sm:$0xff] }
 0x28a   :  { %19167 = vst [vmem:[#allocation296_spill] sm:$0xff] %v14351_v55 }
 0x28b   :  { %9357 = vmatpush2.bf16.msra.mxu0 %v18413_v13  ;;  %v14321_v13 = vld [vmem:[#allocation5 + $0x728] sm:$0xff] }
 0x28c   :  { %9421 = vmatpush2.bf16.msra.mxu1 %v18414_v35  ;;  %9359 = vmatprep.subr.bf16.mxu0 %v18415_v42  ;;  %19164 = vst [vmem:[#allocation293_spill] sm:$0xff] %v14321_v13  ;;  %v18429_v35 = vunpack.c.l.s8.bf16 %v14303_v61  ;;  %v18430_v42 = vunpack.c.l.s8.bf16 %v14305_v49  ;;  %v18432_v41 = vunpack.c.h.s8.bf16 %v14321_v13  ;;  %v18440_v47 = vunpack.c.l.s8.bf16 %v14321_v13  ;;  %v14367_v61 = vld [vmem:[#allocation5 + $0xb10] sm:$0xff] }
 0x28d   :  { %9423 = vmatprep.subr.bf16.mxu1 %v18416_v52  ;;  %v18431_v52 = vunpack.c.h.s8.bf16 %v14319_v9  ;;  %19169 = vst [vmem:[#allocation298_spill] sm:$0xff] %v14367_v61 }
 0x28f   :  { %9361 = vmatpush2.bf16.msra.mxu0 %v18421_v20  ;;  %v14337_v20 = vld [vmem:[#allocation5 + $0x720] sm:$0xff] }
 0x290   :  { %9425 = vmatpush2.bf16.msra.mxu1 %v18422_v3  ;;  %9363 = vmatprep.subr.bf16.mxu0 %v18423_v6  ;;  %19166 = vst [vmem:[#allocation295_spill] sm:$0xff] %v14337_v20  ;;  %v18437_v3 = vunpack.c.h.s8.bf16 %v14335_v4  ;;  %v18438_v6 = vunpack.c.h.s8.bf16 %v14337_v20 }
 0x291   :  { %9427 = vmatprep.subr.bf16.mxu1 %v18424_v34  ;;  %v18439_v34 = vunpack.c.l.s8.bf16 %v14319_v9  ;;  %v14383_v9 = vld [vmem:[#allocation5 + $0xa88] sm:$0xff] }
 0x292   :  { %19171 = vst [vmem:[#allocation300_spill] sm:$0xff] %v14383_v9 }
 0x293   :  { %9365 = vmatpush2.bf16.msra.mxu0 %v18429_v35  ;;  %v14353_v35 = vld [vmem:[#allocation5 + $0x228] sm:$0xff] }
 0x294   :  { %9429 = vmatpush2.bf16.msra.mxu1 %v18430_v42  ;;  %9367 = vmatprep.subr.bf16.mxu0 %v18431_v52  ;;  %19168 = vst [vmem:[#allocation297_spill] sm:$0xff] %v14353_v35  ;;  %v18445_v42 = vunpack.c.l.s8.bf16 %v14335_v4  ;;  %v18447_v52 = vunpack.c.l.s8.bf16 %v14337_v20  ;;  %v18446_v49 = vunpack.c.h.s8.bf16 %v14353_v35  ;;  %v18454_v13 = vunpack.c.l.s8.bf16 %v14353_v35  ;;  %v14401_v4 = vld [vmem:[#allocation5 + $0xa80] sm:$0xff] }
 0x295   :  { %9431 = vmatprep.subr.bf16.mxu1 %v18432_v41  ;;  %v18448_v41 = vunpack.c.h.s8.bf16 %v14351_v55  ;;  %19173 = vst [vmem:[#allocation302_spill] sm:$0xff] %v14401_v4 }
 0x297   :  { %9369 = vmatpush2.bf16.msra.mxu0 %v18437_v3  ;;  %v14369_v3 = vld [vmem:[#allocation5 + $0x220] sm:$0xff] }
 0x298   :  { %9433 = vmatpush2.bf16.msra.mxu1 %v18438_v6  ;;  %9371 = vmatprep.subr.bf16.mxu0 %v18439_v34  ;;  %19170 = vst [vmem:[#allocation299_spill] sm:$0xff] %v14369_v3  ;;  %v18453_v6 = vunpack.c.h.s8.bf16 %v14367_v61  ;;  %v18455_v34 = vunpack.c.h.s8.bf16 %v14369_v3 }
 0x299   :  { %9435 = vmatprep.subr.bf16.mxu1 %v18440_v47  ;;  %v18456_v47 = vunpack.c.l.s8.bf16 %v14351_v55  ;;  %v14419_v55 = vld [vmem:[#allocation5 + $0x9f8] sm:$0xff] }
 0x29a   :  { %19175 = vst [vmem:[#allocation304_spill] sm:$0xff] %v14419_v55 }
 0x29b   :  { %9373 = vmatpush2.bf16.msra.mxu0 %v18445_v42  ;;  %v14385_v42 = vld [vmem:[#allocation5 + $0x198] sm:$0xff] }
 0x29c   :  { %9437 = vmatpush2.bf16.msra.mxu1 %v18447_v52  ;;  %9439 = vmatprep.subr.bf16.mxu0 %v18448_v41  ;;  %19172 = vst [vmem:[#allocation301_spill] sm:$0xff] %v14385_v42  ;;  %v18462_v52 = vunpack.c.l.s8.bf16 %v14369_v3  ;;  %v18463_v41 = vunpack.c.h.s8.bf16 %v14383_v9  ;;  %v18464_v20 = vunpack.c.h.s8.bf16 %v14385_v42  ;;  %v18472_v35 = vunpack.c.l.s8.bf16 %v14385_v42 }
 0x29d   :  { %9503 = vmatprep.subr.bf16.mxu1 %v18446_v49  ;;  %v18461_v49 = vunpack.c.l.s8.bf16 %v14367_v61  ;;  %v14435_v61 = vld [vmem:[#allocation5 + $0x9f0] sm:$0xff] }
 0x29e   :  { %5345 = vmatmul.mubr.f32.vlgmr.msra.gmra.mxu0 %v11987_v33  ;;  %19177 = vst [vmem:[#allocation306_spill] sm:$0xff] %v14435_v61 }
 0x29f   :  { %5416 = vmatmul.mubr.f32.vlgmr.msra.gmra.mxu1 %v11990_v54  ;;  %9441 = vmatpush1.bf16.msra.mxu0 %v18453_v6  ;;  %v14403_v6 = vld [vmem:[#allocation5 + $0x190] sm:$0xff] }
 0x2a0   :  { %9505 = vmatpush1.bf16.msra.mxu1 %v18455_v34  ;;  %9443 = vmatprep.subr.bf16.mxu0 %v18456_v47  ;;  %19174 = vst [vmem:[#allocation303_spill] sm:$0xff] %v14403_v6  ;;  %v18470_v34 = vunpack.c.h.s8.bf16 %v14403_v6  ;;  %v18471_v47 = vunpack.c.l.s8.bf16 %v14383_v9  ;;  %v14451_v9 = vld [vmem:[#allocation5 + $0x968] sm:$0xff] }
 0x2a1   :  { %9507 = vmatprep.subr.bf16.mxu1 %v18454_v13  ;;  %5486 = vmatprep.mubr.f32.mxu0 %v12014_v19  ;;  %v18469_v13 = vunpack.c.h.s8.bf16 %v14401_v4  ;;  %19179 = vst [vmem:[#allocation308_spill] sm:$0xff] %v14451_v9 }
 0x2a2   :  { %5557 = vmatprep.mubr.f32.mxu1 %v11799_v36 }
 0x2a3   :  { %9445 = vmatpush1.bf16.msra.mxu0 %v18461_v49  ;;  %v14421_v49 = vld [vmem:[#allocation5 + $0x108] sm:$0xff] }
 0x2a4   :  { %9509 = vmatpush1.bf16.msra.mxu1 %v18462_v52  ;;  %9447 = vmatprep.subr.bf16.mxu0 %v18463_v41  ;;  %19176 = vst [vmem:[#allocation305_spill] sm:$0xff] %v14421_v49  ;;  %v18477_v52 = vunpack.c.l.s8.bf16 %v14401_v4  ;;  %v18478_v41 = vunpack.c.l.s8.bf16 %v14403_v6  ;;  %v18480_v3 = vunpack.c.h.s8.bf16 %v14421_v49  ;;  %v18488_v42 = vunpack.c.l.s8.bf16 %v14421_v49  ;;  %v14467_v4 = vld [vmem:[#allocation5 + $0x960] sm:$0xff] }
 0x2a5   :  { %9511 = vmatprep.subr.bf16.mxu1 %v18464_v20  ;;  %v18479_v20 = vunpack.c.h.s8.bf16 %v14419_v55  ;;  %19181 = vst [vmem:[#allocation310_spill] sm:$0xff] %v14467_v4 }
 0x2a7   :  { %9449 = vmatpush1.bf16.msra.mxu0 %v18469_v13  ;;  %v14437_v13 = vld [vmem:[#allocation5 + $0x100] sm:$0xff] }
 0x2a8   :  { %9513 = vmatpush1.bf16.msra.mxu1 %v18470_v34  ;;  %9451 = vmatprep.subr.bf16.mxu0 %v18471_v47  ;;  %19178 = vst [vmem:[#allocation307_spill] sm:$0xff] %v14437_v13  ;;  %v18485_v34 = vunpack.c.h.s8.bf16 %v14435_v61  ;;  %v18486_v47 = vunpack.c.h.s8.bf16 %v14437_v13 }
 0x2a9   :  { %9515 = vmatprep.subr.bf16.mxu1 %v18472_v35  ;;  %v18487_v35 = vunpack.c.l.s8.bf16 %v14419_v55  ;;  %v14483_v55 = vld [vmem:[#allocation5 + $0xd58] sm:$0xff] }
 0x2aa   :  { %19183 = vst [vmem:[#allocation312_spill] sm:$0xff] %v14483_v55 }
 0x2ab   :  { %9453 = vmatpush1.bf16.msra.mxu0 %v18477_v52  ;;  %v14453_v52 = vld [vmem:[#allocation5 + $0x78] sm:$0xff] }
 0x2ac   :  { %9517 = vmatpush1.bf16.msra.mxu1 %v18478_v41  ;;  %9455 = vmatprep.subr.bf16.mxu0 %v18479_v20  ;;  %19180 = vst [vmem:[#allocation309_spill] sm:$0xff] %v14453_v52  ;;  %v18493_v41 = vunpack.c.l.s8.bf16 %v14435_v61  ;;  %v18494_v20 = vunpack.c.l.s8.bf16 %v14437_v13  ;;  %v18496_v6 = vunpack.c.h.s8.bf16 %v14453_v52  ;;  %v18504_v49 = vunpack.c.l.s8.bf16 %v14453_v52  ;;  %v14499_v61 = vld [vmem:[#allocation5 + $0xd50] sm:$0xff] }
 0x2ad   :  { %9519 = vmatprep.subr.bf16.mxu1 %v18480_v3  ;;  %v18495_v3 = vunpack.c.h.s8.bf16 %v14451_v9  ;;  %19185 = vst [vmem:[#allocation314_spill] sm:$0xff] %v14499_v61 }
 0x2af   :  { %9457 = vmatpush1.bf16.msra.mxu0 %v18485_v34  ;;  %v14469_v34 = vld [vmem:[#allocation5 + $0x70] sm:$0xff] }
 0x2b0   :  { %9521 = vmatpush1.bf16.msra.mxu1 %v18486_v47  ;;  %9459 = vmatprep.subr.bf16.mxu0 %v18487_v35  ;;  %19182 = vst [vmem:[#allocation311_spill] sm:$0xff] %v14469_v34  ;;  %v18501_v47 = vunpack.c.h.s8.bf16 %v14467_v4  ;;  %v18502_v35 = vunpack.c.h.s8.bf16 %v14469_v34 }
 0x2b1   :  { %9523 = vmatprep.subr.bf16.mxu1 %v18488_v42  ;;  %v18503_v42 = vunpack.c.l.s8.bf16 %v14451_v9  ;;  %v14515_v9 = vld [vmem:[#allocation5 + $0xcc8] sm:$0xff] }
 0x2b2   :  { %19187 = vst [vmem:[#allocation316_spill] sm:$0xff] %v14515_v9 }
 0x2b3   :  { %9461 = vmatpush1.bf16.msra.mxu0 %v18493_v41  ;;  %v14485_v41 = vld [vmem:[#allocation5 + $0x468] sm:$0xff] }
 0x2b4   :  { %9525 = vmatpush1.bf16.msra.mxu1 %v18494_v20  ;;  %9463 = vmatprep.subr.bf16.mxu0 %v18495_v3  ;;  %19184 = vst [vmem:[#allocation313_spill] sm:$0xff] %v14485_v41  ;;  %v18509_v20 = vunpack.c.l.s8.bf16 %v14467_v4  ;;  %v18510_v3 = vunpack.c.l.s8.bf16 %v14469_v34  ;;  %v18512_v13 = vunpack.c.h.s8.bf16 %v14485_v41  ;;  %v18520_v52 = vunpack.c.l.s8.bf16 %v14485_v41  ;;  %v14531_v4 = vld [vmem:[#allocation5 + $0xcc0] sm:$0xff] }
 0x2b5   :  { %9527 = vmatprep.subr.bf16.mxu1 %v18496_v6  ;;  %v18511_v6 = vunpack.c.h.s8.bf16 %v14483_v55  ;;  %19189 = vst [vmem:[#allocation318_spill] sm:$0xff] %v14531_v4 }
 0x2b7   :  { %9465 = vmatpush1.bf16.msra.mxu0 %v18501_v47  ;;  %v14501_v47 = vld [vmem:[#allocation5 + $0x460] sm:$0xff] }
 0x2b8   :  { %9529 = vmatpush1.bf16.msra.mxu1 %v18502_v35  ;;  %9467 = vmatprep.subr.bf16.mxu0 %v18503_v42  ;;  %19186 = vst [vmem:[#allocation315_spill] sm:$0xff] %v14501_v47  ;;  %v18517_v35 = vunpack.c.h.s8.bf16 %v14499_v61  ;;  %v18518_v42 = vunpack.c.h.s8.bf16 %v14501_v47 }
 0x2b9   :  { %9531 = vmatprep.subr.bf16.mxu1 %v18504_v49  ;;  %v18519_v49 = vunpack.c.l.s8.bf16 %v14483_v55  ;;  %v14547_v55 = vld [vmem:[#allocation5 + $0xc38] sm:$0xff] }
 0x2ba   :  { %19191 = vst [vmem:[#allocation320_spill] sm:$0xff] %v14547_v55 }
 0x2bb   :  { %9469 = vmatpush1.bf16.msra.mxu0 %v18509_v20  ;;  %v14517_v20 = vld [vmem:[#allocation5 + $0x3d8] sm:$0xff] }
 0x2bc   :  { %9533 = vmatpush1.bf16.msra.mxu1 %v18510_v3  ;;  %9471 = vmatprep.subr.bf16.mxu0 %v18511_v6  ;;  %19188 = vst [vmem:[#allocation317_spill] sm:$0xff] %v14517_v20  ;;  %v18525_v3 = vunpack.c.l.s8.bf16 %v14499_v61  ;;  %v18526_v6 = vunpack.c.l.s8.bf16 %v14501_v47  ;;  %v18528_v34 = vunpack.c.h.s8.bf16 %v14517_v20  ;;  %v18536_v41 = vunpack.c.l.s8.bf16 %v14517_v20  ;;  %v14563_v61 = vld [vmem:[#allocation5 + $0xc30] sm:$0xff] }
 0x2bd   :  { %9535 = vmatprep.subr.bf16.mxu1 %v18512_v13  ;;  %v18527_v13 = vunpack.c.h.s8.bf16 %v14515_v9  ;;  %19193 = vst [vmem:[#allocation322_spill] sm:$0xff] %v14563_v61 }
 0x2bf   :  { %9473 = vmatpush2.bf16.msra.mxu0 %v18517_v35  ;;  %v14533_v35 = vld [vmem:[#allocation5 + $0x3d0] sm:$0xff] }
 0x2c0   :  { %9537 = vmatpush2.bf16.msra.mxu1 %v18518_v42  ;;  %9475 = vmatprep.subr.bf16.mxu0 %v18519_v49  ;;  %19190 = vst [vmem:[#allocation319_spill] sm:$0xff] %v14533_v35  ;;  %v18533_v42 = vunpack.c.h.s8.bf16 %v14531_v4  ;;  %v18534_v49 = vunpack.c.h.s8.bf16 %v14533_v35 }
 0x2c1   :  { %9539 = vmatprep.subr.bf16.mxu1 %v18520_v52  ;;  %v18535_v52 = vunpack.c.l.s8.bf16 %v14515_v9  ;;  %v14579_v9 = vld [vmem:[#allocation5 + $0xba8] sm:$0xff] }
 0x2c2   :  { %19195 = vst [vmem:[#allocation324_spill] sm:$0xff] %v14579_v9 }
 0x2c3   :  { %9477 = vmatpush2.bf16.msra.mxu0 %v18525_v3  ;;  %v14549_v3 = vld [vmem:[#allocation5 + $0x348] sm:$0xff] }
 0x2c4   :  { %9541 = vmatpush2.bf16.msra.mxu1 %v18526_v6  ;;  %9479 = vmatprep.subr.bf16.mxu0 %v18527_v13  ;;  %19192 = vst [vmem:[#allocation321_spill] sm:$0xff] %v14549_v3  ;;  %v18541_v6 = vunpack.c.l.s8.bf16 %v14531_v4  ;;  %v18542_v13 = vunpack.c.l.s8.bf16 %v14533_v35  ;;  %v18544_v47 = vunpack.c.h.s8.bf16 %v14549_v3  ;;  %v18552_v20 = vunpack.c.l.s8.bf16 %v14549_v3  ;;  %v14595_v4 = vld [vmem:[#allocation5 + $0xba0] sm:$0xff] }
 0x2c5   :  { %9543 = vmatprep.subr.bf16.mxu1 %v18528_v34  ;;  %v18543_v34 = vunpack.c.h.s8.bf16 %v14547_v55  ;;  %19197 = vst [vmem:[#allocation326_spill] sm:$0xff] %v14595_v4 }
 0x2c7   :  { %9481 = vmatpush2.bf16.msra.mxu0 %v18533_v42  ;;  %v14565_v42 = vld [vmem:[#allocation5 + $0x340] sm:$0xff] }
 0x2c8   :  { %9545 = vmatpush2.bf16.msra.mxu1 %v18534_v49  ;;  %9483 = vmatprep.subr.bf16.mxu0 %v18535_v52  ;;  %19194 = vst [vmem:[#allocation323_spill] sm:$0xff] %v14565_v42  ;;  %v18549_v49 = vunpack.c.h.s8.bf16 %v14563_v61  ;;  %v18550_v52 = vunpack.c.h.s8.bf16 %v14565_v42 }
 0x2c9   :  { %9547 = vmatprep.subr.bf16.mxu1 %v18536_v41  ;;  %v18551_v41 = vunpack.c.l.s8.bf16 %v14547_v55  ;;  %v14611_v55 = vld [vmem:[#allocation5 + $0x6a8] sm:$0xff] }
 0x2ca   :  { %19199 = vst [vmem:[#allocation328_spill] sm:$0xff] %v14611_v55 }
 0x2cb   :  { %9485 = vmatpush2.bf16.msra.mxu0 %v18541_v6  ;;  %v14581_v6 = vld [vmem:[#allocation5 + $0x2b8] sm:$0xff] }
 0x2cc   :  { %9549 = vmatpush2.bf16.msra.mxu1 %v18542_v13  ;;  %9487 = vmatprep.subr.bf16.mxu0 %v18543_v34  ;;  %19196 = vst [vmem:[#allocation325_spill] sm:$0xff] %v14581_v6  ;;  %v18557_v13 = vunpack.c.l.s8.bf16 %v14563_v61  ;;  %v18558_v34 = vunpack.c.l.s8.bf16 %v14565_v42  ;;  %v18560_v35 = vunpack.c.h.s8.bf16 %v14581_v6  ;;  %v18568_v3 = vunpack.c.l.s8.bf16 %v14581_v6  ;;  %v14627_v61 = vld [vmem:[#allocation5 + $0x6a0] sm:$0xff] }
 0x2cd   :  { %9551 = vmatprep.subr.bf16.mxu1 %v18544_v47  ;;  %v18559_v47 = vunpack.c.h.s8.bf16 %v14579_v9  ;;  %19201 = vst [vmem:[#allocation330_spill] sm:$0xff] %v14627_v61 }
 0x2cf   :  { %9489 = vmatpush2.bf16.msra.mxu0 %v18549_v49  ;;  %v14597_v49 = vld [vmem:[#allocation5 + $0x2b0] sm:$0xff] }
 0x2d0   :  { %9553 = vmatpush2.bf16.msra.mxu1 %v18550_v52  ;;  %9491 = vmatprep.subr.bf16.mxu0 %v18551_v41  ;;  %19198 = vst [vmem:[#allocation327_spill] sm:$0xff] %v14597_v49  ;;  %v18565_v52 = vunpack.c.h.s8.bf16 %v14595_v4  ;;  %v18566_v41 = vunpack.c.h.s8.bf16 %v14597_v49 }
 0x2d1   :  { %9555 = vmatprep.subr.bf16.mxu1 %v18552_v20  ;;  %v18567_v20 = vunpack.c.l.s8.bf16 %v14579_v9  ;;  %v14643_v9 = vld [vmem:[#allocation5 + $0x618] sm:$0xff] }
 0x2d2   :  { %19203 = vst [vmem:[#allocation332_spill] sm:$0xff] %v14643_v9 }
 0x2d3   :  { %9493 = vmatpush2.bf16.msra.mxu0 %v18557_v13  ;;  %v14613_v13 = vld [vmem:[#allocation5 + $0xb28] sm:$0xff] }
 0x2d4   :  { %9557 = vmatpush2.bf16.msra.mxu1 %v18558_v34  ;;  %9495 = vmatprep.subr.bf16.mxu0 %v18559_v47  ;;  %19200 = vst [vmem:[#allocation329_spill] sm:$0xff] %v14613_v13  ;;  %v18573_v34 = vunpack.c.l.s8.bf16 %v14595_v4  ;;  %v18575_v47 = vunpack.c.l.s8.bf16 %v14597_v49  ;;  %v18574_v42 = vunpack.c.h.s8.bf16 %v14613_v13  ;;  %v18582_v6 = vunpack.c.l.s8.bf16 %v14613_v13  ;;  %v14661_v4 = vld [vmem:[#allocation5 + $0x610] sm:$0xff] }
 0x2d5   :  { %9559 = vmatprep.subr.bf16.mxu1 %v18560_v35  ;;  %v18576_v35 = vunpack.c.h.s8.bf16 %v14611_v55  ;;  %19205 = vst [vmem:[#allocation334_spill] sm:$0xff] %v14661_v4 }
 0x2d7   :  { %9497 = vmatpush2.bf16.msra.mxu0 %v18565_v52  ;;  %v14629_v52 = vld [vmem:[#allocation5 + $0xb20] sm:$0xff] }
 0x2d8   :  { %9561 = vmatpush2.bf16.msra.mxu1 %v18566_v41  ;;  %9499 = vmatprep.subr.bf16.mxu0 %v18567_v20  ;;  %19202 = vst [vmem:[#allocation331_spill] sm:$0xff] %v14629_v52  ;;  %v18581_v41 = vunpack.c.h.s8.bf16 %v14627_v61  ;;  %v18583_v20 = vunpack.c.h.s8.bf16 %v14629_v52 }
 0x2d9   :  { %9563 = vmatprep.subr.bf16.mxu1 %v18568_v3  ;;  %v18584_v3 = vunpack.c.l.s8.bf16 %v14611_v55  ;;  %v14679_v55 = vld [vmem:[#allocation5 + $0x588] sm:$0xff] }
 0x2da   :  { %19207 = vst [vmem:[#allocation336_spill] sm:$0xff] %v14679_v55 }
 0x2db   :  { %9501 = vmatpush2.bf16.msra.mxu0 %v18573_v34  ;;  %v14645_v34 = vld [vmem:[#allocation5 + $0xa98] sm:$0xff] }
 0x2dc   :  { %9565 = vmatpush2.bf16.msra.mxu1 %v18575_v47  ;;  %9567 = vmatprep.subr.bf16.mxu0 %v18576_v35  ;;  %19204 = vst [vmem:[#allocation333_spill] sm:$0xff] %v14645_v34  ;;  %v18590_v47 = vunpack.c.l.s8.bf16 %v14629_v52  ;;  %v18591_v35 = vunpack.c.h.s8.bf16 %v14643_v9  ;;  %v18592_v49 = vunpack.c.h.s8.bf16 %v14645_v34  ;;  %v18600_v13 = vunpack.c.l.s8.bf16 %v14645_v34 }
 0x2dd   :  { %9631 = vmatprep.subr.bf16.mxu1 %v18574_v42  ;;  %v18589_v42 = vunpack.c.l.s8.bf16 %v14627_v61  ;;  %v14695_v61 = vld [vmem:[#allocation5 + $0x580] sm:$0xff] }
 0x2de   :  { %5487 = vmatmul.mubr.f32.vlgmr.msra.gmra.mxu0 %v12261_v46  ;;  %19209 = vst [vmem:[#allocation338_spill] sm:$0xff] %v14695_v61 }
 0x2df   :  { %5558 = vmatmul.mubr.f32.vlgmr.msra.gmra.mxu1 %v11987_v33  ;;  %9569 = vmatpush1.bf16.msra.mxu0 %v18581_v41  ;;  %v14663_v41 = vld [vmem:[#allocation5 + $0xa90] sm:$0xff] }
 0x2e0   :  { %9633 = vmatpush1.bf16.msra.mxu1 %v18583_v20  ;;  %9571 = vmatprep.subr.bf16.mxu0 %v18584_v3  ;;  %19206 = vst [vmem:[#allocation335_spill] sm:$0xff] %v14663_v41  ;;  %v18598_v20 = vunpack.c.h.s8.bf16 %v14663_v41  ;;  %v18599_v3 = vunpack.c.l.s8.bf16 %v14643_v9  ;;  %v14711_v9 = vld [vmem:[#allocation5 + $0x4f8] sm:$0xff] }
 0x2e1   :  { %9635 = vmatprep.subr.bf16.mxu1 %v18582_v6  ;;  %5628 = vmatprep.mubr.f32.mxu0 %v11802_v37  ;;  %v18597_v6 = vunpack.c.h.s8.bf16 %v14661_v4  ;;  %19211 = vst [vmem:[#allocation340_spill] sm:$0xff] %v14711_v9 }
 0x2e2   :  { %5699 = vmatprep.mubr.f32.mxu1 %v12014_v19 }
 0x2e3   :  { %9573 = vmatpush1.bf16.msra.mxu0 %v18589_v42  ;;  %v14681_v42 = vld [vmem:[#allocation5 + $0xa08] sm:$0xff] }
 0x2e4   :  { %9637 = vmatpush1.bf16.msra.mxu1 %v18590_v47  ;;  %9575 = vmatprep.subr.bf16.mxu0 %v18591_v35  ;;  %19208 = vst [vmem:[#allocation337_spill] sm:$0xff] %v14681_v42  ;;  %v18605_v47 = vunpack.c.l.s8.bf16 %v14661_v4  ;;  %v18606_v35 = vunpack.c.l.s8.bf16 %v14663_v41  ;;  %v18608_v52 = vunpack.c.h.s8.bf16 %v14681_v42  ;;  %v18616_v34 = vunpack.c.l.s8.bf16 %v14681_v42  ;;  %v14727_v4 = vld [vmem:[#allocation5 + $0x4f0] sm:$0xff] }
 0x2e5   :  { %9639 = vmatprep.subr.bf16.mxu1 %v18592_v49  ;;  %v18607_v49 = vunpack.c.h.s8.bf16 %v14679_v55  ;;  %19213 = vst [vmem:[#allocation342_spill] sm:$0xff] %v14727_v4 }
 0x2e7   :  { %9577 = vmatpush1.bf16.msra.mxu0 %v18597_v6  ;;  %v14697_v6 = vld [vmem:[#allocation5 + $0xa00] sm:$0xff] }
 0x2e8   :  { %9641 = vmatpush1.bf16.msra.mxu1 %v18598_v20  ;;  %9579 = vmatprep.subr.bf16.mxu0 %v18599_v3  ;;  %19210 = vst [vmem:[#allocation339_spill] sm:$0xff] %v14697_v6  ;;  %v18613_v20 = vunpack.c.h.s8.bf16 %v14695_v61  ;;  %v18614_v3 = vunpack.c.h.s8.bf16 %v14697_v6 }
 0x2e9   :  { %9643 = vmatprep.subr.bf16.mxu1 %v18600_v13  ;;  %v18615_v13 = vunpack.c.l.s8.bf16 %v14679_v55  ;;  %v14743_v55 = vld [vmem:[#allocation5 + $0x8e8] sm:$0xff] }
 0x2ea   :  { %19215 = vst [vmem:[#allocation344_spill] sm:$0xff] %v14743_v55 }
 0x2eb   :  { %9581 = vmatpush1.bf16.msra.mxu0 %v18605_v47  ;;  %v14713_v47 = vld [vmem:[#allocation5 + $0x978] sm:$0xff] }
 0x2ec   :  { %9645 = vmatpush1.bf16.msra.mxu1 %v18606_v35  ;;  %9583 = vmatprep.subr.bf16.mxu0 %v18607_v49  ;;  %19212 = vst [vmem:[#allocation341_spill] sm:$0xff] %v14713_v47  ;;  %v18621_v35 = vunpack.c.l.s8.bf16 %v14695_v61  ;;  %v18622_v49 = vunpack.c.l.s8.bf16 %v14697_v6  ;;  %v18624_v41 = vunpack.c.h.s8.bf16 %v14713_v47  ;;  %v18632_v42 = vunpack.c.l.s8.bf16 %v14713_v47  ;;  %v14759_v61 = vld [vmem:[#allocation5 + $0x8e0] sm:$0xff] }
 0x2ed   :  { %9647 = vmatprep.subr.bf16.mxu1 %v18608_v52  ;;  %v18623_v52 = vunpack.c.h.s8.bf16 %v14711_v9  ;;  %19217 = vst [vmem:[#allocation346_spill] sm:$0xff] %v14759_v61 }
 0x2ef   :  { %9585 = vmatpush1.bf16.msra.mxu0 %v18613_v20  ;;  %v14729_v20 = vld [vmem:[#allocation5 + $0x970] sm:$0xff] }
 0x2f0   :  { %9649 = vmatpush1.bf16.msra.mxu1 %v18614_v3  ;;  %9587 = vmatprep.subr.bf16.mxu0 %v18615_v13  ;;  %19214 = vst [vmem:[#allocation343_spill] sm:$0xff] %v14729_v20  ;;  %v18629_v3 = vunpack.c.h.s8.bf16 %v14727_v4  ;;  %v18630_v13 = vunpack.c.h.s8.bf16 %v14729_v20 }
 0x2f1   :  { %9651 = vmatprep.subr.bf16.mxu1 %v18616_v34  ;;  %v18631_v34 = vunpack.c.l.s8.bf16 %v14711_v9  ;;  %v14775_v9 = vld [vmem:[#allocation5 + $0x858] sm:$0xff] }
 0x2f2   :  { %19219 = vst [vmem:[#allocation348_spill] sm:$0xff] %v14775_v9 }
 0x2f3   :  { %9589 = vmatpush1.bf16.msra.mxu0 %v18621_v35  ;;  %v14745_v35 = vld [vmem:[#allocation5 + $0xd68] sm:$0xff] }
 0x2f4   :  { %9653 = vmatpush1.bf16.msra.mxu1 %v18622_v49  ;;  %9591 = vmatprep.subr.bf16.mxu0 %v18623_v52  ;;  %19216 = vst [vmem:[#allocation345_spill] sm:$0xff] %v14745_v35  ;;  %v18637_v49 = vunpack.c.l.s8.bf16 %v14727_v4  ;;  %v18638_v52 = vunpack.c.l.s8.bf16 %v14729_v20  ;;  %v18640_v6 = vunpack.c.h.s8.bf16 %v14745_v35  ;;  %v18648_v47 = vunpack.c.l.s8.bf16 %v14745_v35  ;;  %v14791_v4 = vld [vmem:[#allocation5 + $0x850] sm:$0xff] }
 0x2f5   :  { %9655 = vmatprep.subr.bf16.mxu1 %v18624_v41  ;;  %v18639_v41 = vunpack.c.h.s8.bf16 %v14743_v55  ;;  %19221 = vst [vmem:[#allocation350_spill] sm:$0xff] %v14791_v4 }
 0x2f7   :  { %9593 = vmatpush1.bf16.msra.mxu0 %v18629_v3  ;;  %v14761_v3 = vld [vmem:[#allocation5 + $0xd60] sm:$0xff] }
 0x2f8   :  { %9657 = vmatpush1.bf16.msra.mxu1 %v18630_v13  ;;  %9595 = vmatprep.subr.bf16.mxu0 %v18631_v34  ;;  %19218 = vst [vmem:[#allocation347_spill] sm:$0xff] %v14761_v3  ;;  %v18645_v13 = vunpack.c.h.s8.bf16 %v14759_v61  ;;  %v18646_v34 = vunpack.c.h.s8.bf16 %v14761_v3 }
 0x2f9   :  { %9659 = vmatprep.subr.bf16.mxu1 %v18632_v42  ;;  %v18647_v42 = vunpack.c.l.s8.bf16 %v14743_v55  ;;  %v14807_v55 = vld [vmem:[#allocation5 + $0x7c8] sm:$0xff] }
 0x2fa   :  { %19223 = vst [vmem:[#allocation352_spill] sm:$0xff] %v14807_v55 }
 0x2fb   :  { %9597 = vmatpush1.bf16.msra.mxu0 %v18637_v49  ;;  %v14777_v49 = vld [vmem:[#allocation5 + $0xcd8] sm:$0xff] }
 0x2fc   :  { %9661 = vmatpush1.bf16.msra.mxu1 %v18638_v52  ;;  %9599 = vmatprep.subr.bf16.mxu0 %v18639_v41  ;;  %19220 = vst [vmem:[#allocation349_spill] sm:$0xff] %v14777_v49  ;;  %v18653_v52 = vunpack.c.l.s8.bf16 %v14759_v61  ;;  %v18654_v41 = vunpack.c.l.s8.bf16 %v14761_v3  ;;  %v18656_v20 = vunpack.c.h.s8.bf16 %v14777_v49  ;;  %v18664_v35 = vunpack.c.l.s8.bf16 %v14777_v49  ;;  %v14823_v61 = vld [vmem:[#allocation5 + $0x7c0] sm:$0xff] }
 0x2fd   :  { %9663 = vmatprep.subr.bf16.mxu1 %v18640_v6  ;;  %v18655_v6 = vunpack.c.h.s8.bf16 %v14775_v9  ;;  %19225 = vst [vmem:[#allocation354_spill] sm:$0xff] %v14823_v61 }
 0x2ff   :  { %9601 = vmatpush2.bf16.msra.mxu0 %v18645_v13  ;;  %v14793_v13 = vld [vmem:[#allocation5 + $0xcd0] sm:$0xff] }
 0x300   :  { %9665 = vmatpush2.bf16.msra.mxu1 %v18646_v34  ;;  %9603 = vmatprep.subr.bf16.mxu0 %v18647_v42  ;;  %19222 = vst [vmem:[#allocation351_spill] sm:$0xff] %v14793_v13  ;;  %v18661_v34 = vunpack.c.h.s8.bf16 %v14791_v4  ;;  %v18662_v42 = vunpack.c.h.s8.bf16 %v14793_v13 }
 0x301   :  { %9667 = vmatprep.subr.bf16.mxu1 %v18648_v47  ;;  %v18663_v47 = vunpack.c.l.s8.bf16 %v14775_v9  ;;  %v14839_v9 = vld [vmem:[#allocation5 + $0x738] sm:$0xff] }
 0x302   :  { %19227 = vst [vmem:[#allocation356_spill] sm:$0xff] %v14839_v9 }
 0x303   :  { %9605 = vmatpush2.bf16.msra.mxu0 %v18653_v52  ;;  %v14809_v52 = vld [vmem:[#allocation5 + $0xc48] sm:$0xff] }
 0x304   :  { %9669 = vmatpush2.bf16.msra.mxu1 %v18654_v41  ;;  %9607 = vmatprep.subr.bf16.mxu0 %v18655_v6  ;;  %19224 = vst [vmem:[#allocation353_spill] sm:$0xff] %v14809_v52  ;;  %v18669_v41 = vunpack.c.l.s8.bf16 %v14791_v4  ;;  %v18670_v6 = vunpack.c.l.s8.bf16 %v14793_v13  ;;  %v18672_v3 = vunpack.c.h.s8.bf16 %v14809_v52  ;;  %v18680_v49 = vunpack.c.l.s8.bf16 %v14809_v52  ;;  %v14855_v4 = vld [vmem:[#allocation5 + $0x730] sm:$0xff] }
 0x305   :  { %9671 = vmatprep.subr.bf16.mxu1 %v18656_v20  ;;  %v18671_v20 = vunpack.c.h.s8.bf16 %v14807_v55  ;;  %19229 = vst [vmem:[#allocation358_spill] sm:$0xff] %v14855_v4 }
 0x307   :  { %9609 = vmatpush2.bf16.msra.mxu0 %v18661_v34  ;;  %v14825_v34 = vld [vmem:[#allocation5 + $0xc40] sm:$0xff] }
 0x308   :  { %9673 = vmatpush2.bf16.msra.mxu1 %v18662_v42  ;;  %9611 = vmatprep.subr.bf16.mxu0 %v18663_v47  ;;  %19226 = vst [vmem:[#allocation355_spill] sm:$0xff] %v14825_v34  ;;  %v18677_v42 = vunpack.c.h.s8.bf16 %v14823_v61  ;;  %v18678_v47 = vunpack.c.h.s8.bf16 %v14825_v34 }
 0x309   :  { %9675 = vmatprep.subr.bf16.mxu1 %v18664_v35  ;;  %v18679_v35 = vunpack.c.l.s8.bf16 %v14807_v55  ;;  %v14871_v55 = vld [vmem:[#allocation5 + $0x238] sm:$0xff] }
 0x30b   :  { %9613 = vmatpush2.bf16.msra.mxu0 %v18669_v41  ;;  %v14841_v41 = vld [vmem:[#allocation5 + $0xbb8] sm:$0xff] }
 0x30c   :  { %9677 = vmatpush2.bf16.msra.mxu1 %v18670_v6  ;;  %9615 = vmatprep.subr.bf16.mxu0 %v18671_v20  ;;  %19228 = vst [vmem:[#allocation357_spill] sm:$0xff] %v14841_v41  ;;  %v18685_v6 = vunpack.c.l.s8.bf16 %v14823_v61  ;;  %v18686_v20 = vunpack.c.l.s8.bf16 %v14825_v34  ;;  %v18688_v13 = vunpack.c.h.s8.bf16 %v14841_v41  ;;  %v18696_v52 = vunpack.c.l.s8.bf16 %v14841_v41  ;;  %v14887_v61 = vld [vmem:[#allocation5 + $0x230] sm:$0xff] }
 0x30d   :  { %9679 = vmatprep.subr.bf16.mxu1 %v18672_v3  ;;  %v18687_v3 = vunpack.c.h.s8.bf16 %v14839_v9 }
 0x30f   :  { %9617 = vmatpush2.bf16.msra.mxu0 %v18677_v42  ;;  %v14857_v42 = vld [vmem:[#allocation5 + $0xbb0] sm:$0xff] }
 0x310   :  { %9681 = vmatpush2.bf16.msra.mxu1 %v18678_v47  ;;  %9619 = vmatprep.subr.bf16.mxu0 %v18679_v35  ;;  %19230 = vst [vmem:[#allocation359_spill] sm:$0xff] %v14857_v42  ;;  %v18693_v47 = vunpack.c.h.s8.bf16 %v14855_v4  ;;  %v18694_v35 = vunpack.c.h.s8.bf16 %v14857_v42 }
 0x311   :  { %9683 = vmatprep.subr.bf16.mxu1 %v18680_v49  ;;  %v18695_v49 = vunpack.c.l.s8.bf16 %v14839_v9  ;;  %v14903_v9 = vld [vmem:[#allocation5 + $0x1a8] sm:$0xff] }
 0x312   :  { %19233 = vst [vmem:[#allocation362_spill] sm:$0xff] %v14903_v9 }
 0x313   :  { %9621 = vmatpush2.bf16.msra.mxu0 %v18685_v6  ;;  %v14873_v6 = vld [vmem:[#allocation5 + $0x6b8] sm:$0xff] }
 0x314   :  { %9685 = vmatpush2.bf16.msra.mxu1 %v18686_v20  ;;  %9623 = vmatprep.subr.bf16.mxu0 %v18687_v3  ;;  %19231 = vst [vmem:[#allocation360_spill] sm:$0xff] %v14873_v6  ;;  %v18701_v20 = vunpack.c.l.s8.bf16 %v14855_v4  ;;  %v18703_v3 = vunpack.c.l.s8.bf16 %v14857_v42  ;;  %v18702_v34 = vunpack.c.h.s8.bf16 %v14873_v6  ;;  %v18710_v41 = vunpack.c.l.s8.bf16 %v14873_v6  ;;  %v14921_v4 = vld [vmem:[#allocation5 + $0x1a0] sm:$0xff]  ;;  %v14955_v6 = vld [vmem:[#allocation5 + $0x110] sm:$0xff] }
 0x315   :  { %9687 = vmatprep.subr.bf16.mxu1 %v18688_v13  ;;  %v18704_v13 = vunpack.c.h.s8.bf16 %v14871_v55  ;;  %19235 = vst [vmem:[#allocation364_spill] sm:$0xff] %v14921_v4  ;;  %19239 = vst [vmem:[#allocation368_spill] sm:$0xff] %v14955_v6 }
 0x317   :  { %9625 = vmatpush2.bf16.msra.mxu0 %v18693_v47  ;;  %v14889_v47 = vld [vmem:[#allocation5 + $0x6b0] sm:$0xff] }
 0x318   :  { %9689 = vmatpush2.bf16.msra.mxu1 %v18694_v35  ;;  %9627 = vmatprep.subr.bf16.mxu0 %v18695_v49  ;;  %19232 = vst [vmem:[#allocation361_spill] sm:$0xff] %v14889_v47  ;;  %v18709_v35 = vunpack.c.h.s8.bf16 %v14887_v61  ;;  %v18711_v49 = vunpack.c.h.s8.bf16 %v14889_v47 }
 0x319   :  { %9691 = vmatprep.subr.bf16.mxu1 %v18696_v52  ;;  %v18712_v52 = vunpack.c.l.s8.bf16 %v14871_v55 }
 0x31b   :  { %9629 = vmatpush2.bf16.msra.mxu0 %v18701_v20  ;;  %v14905_v20 = vld [vmem:[#allocation5 + $0x628] sm:$0xff] }
 0x31c   :  { %9693 = vmatpush2.bf16.msra.mxu1 %v18703_v3  ;;  %9695 = vmatprep.subr.bf16.mxu0 %v18704_v13  ;;  %19234 = vst [vmem:[#allocation363_spill] sm:$0xff] %v14905_v20  ;;  %v18714_v3 = vunpack.c.l.s8.bf16 %v14889_v47  ;;  %v18715_v13 = vunpack.c.h.s8.bf16 %v14903_v9  ;;  %v18716_v42 = vunpack.c.h.s8.bf16 %v14905_v20 }
 0x31d   :  { %9759 = vmatprep.subr.bf16.mxu1 %v18702_v34  ;;  %v18713_v34 = vunpack.c.l.s8.bf16 %v14887_v61 }
 0x31e   :  { %5629 = vmatmul.mubr.f32.vlgmr.msra.gmra.mxu0 %v11990_v54 }
 0x31f   :  { %5700 = vmatmul.mubr.f32.vlgmr.msra.gmra.mxu1 %v12261_v46  ;;  %9697 = vmatpush1.bf16.msra.mxu0 %v18709_v35  ;;  %v14923_v35 = vld [vmem:[#allocation5 + $0x620] sm:$0xff] }
 0x320   :  { %9761 = vmatpush1.bf16.msra.mxu1 %v18711_v49  ;;  %9699 = vmatprep.subr.bf16.mxu0 %v18712_v52  ;;  %19236 = vst [vmem:[#allocation365_spill] sm:$0xff] %v14923_v35  ;;  %v18722_v49 = vunpack.c.h.s8.bf16 %v14923_v35  ;;  %v14939_v52 = vld [vmem:[#allocation5 + $0x118] sm:$0xff] }
 0x321   :  { %9763 = vmatprep.subr.bf16.mxu1 %v18710_v41  ;;  %5770 = vmatprep.mubr.f32.mxu0 %v11799_v36  ;;  %v18721_v41 = vunpack.c.h.s8.bf16 %v14921_v4  ;;  %v18723_v36 = vunpack.c.l.s8.bf16 %v14903_v9  ;;  %19237 = vst [vmem:[#allocation366_spill] sm:$0xff] %v14939_v52  ;;  %v14971_v9 = vld [vmem:[#allocation5 + $0x88] sm:$0xff] }
 0x322   :  { %5841 = vmatprep.mubr.f32.mxu1 %v11802_v37  ;;  %v18724_v37 = vunpack.c.l.s8.bf16 %v14905_v20  ;;  %19241 = vst [vmem:[#allocation370_spill] sm:$0xff] %v14971_v9 }
 0x323   :  { %9701 = vmatpush1.bf16.msra.mxu0 %v18713_v34  ;;  %v14941_v34 = vld [vmem:[#allocation5 + $0x598] sm:$0xff] }
 0x324   :  { %9765 = vmatpush1.bf16.msra.mxu1 %v18714_v3  ;;  %9703 = vmatprep.subr.bf16.mxu0 %v18715_v13  ;;  %19238 = vst [vmem:[#allocation367_spill] sm:$0xff] %v14941_v34  ;;  %v18729_v3 = vunpack.c.l.s8.bf16 %v14921_v4  ;;  %v18730_v13 = vunpack.c.l.s8.bf16 %v14923_v35  ;;  %v18732_v47 = vunpack.c.h.s8.bf16 %v14941_v34  ;;  %v18740_v20 = vunpack.c.l.s8.bf16 %v14941_v34  ;;  %v14987_v4 = vld [vmem:[#allocation5 + $0x80] sm:$0xff] }
 0x325   :  { %9767 = vmatprep.subr.bf16.mxu1 %v18716_v42  ;;  %v18731_v42 = vunpack.c.h.s8.bf16 %v14939_v52  ;;  %19243 = vst [vmem:[#allocation372_spill] sm:$0xff] %v14987_v4 }
 0x327   :  { %9705 = vmatpush1.bf16.msra.mxu0 %v18721_v41  ;;  %v14957_v41 = vld [vmem:[#allocation5 + $0x590] sm:$0xff] }
 0x328   :  { %9769 = vmatpush1.bf16.msra.mxu1 %v18722_v49  ;;  %9707 = vmatprep.subr.bf16.mxu0 %v18723_v36  ;;  %19240 = vst [vmem:[#allocation369_spill] sm:$0xff] %v14957_v41  ;;  %v18737_v49 = vunpack.c.h.s8.bf16 %v14955_v6  ;;  %v18738_v36 = vunpack.c.h.s8.bf16 %v14957_v41 }
 0x329   :  { %9771 = vmatprep.subr.bf16.mxu1 %v18724_v37  ;;  %v18739_v37 = vunpack.c.l.s8.bf16 %v14939_v52  ;;  %v15003_v52 = vld [vmem:[#allocation5 + $0x478] sm:$0xff] }
 0x32a   :  { %19245 = vst [vmem:[#allocation374_spill] sm:$0xff] %v15003_v52 }
 0x32b   :  { %9709 = vmatpush1.bf16.msra.mxu0 %v18729_v3  ;;  %v14973_v3 = vld [vmem:[#allocation5 + $0x508] sm:$0xff] }
 0x32c   :  { %9773 = vmatpush1.bf16.msra.mxu1 %v18730_v13  ;;  %9711 = vmatprep.subr.bf16.mxu0 %v18731_v42  ;;  %19242 = vst [vmem:[#allocation371_spill] sm:$0xff] %v14973_v3  ;;  %v18745_v13 = vunpack.c.l.s8.bf16 %v14955_v6  ;;  %v18746_v42 = vunpack.c.l.s8.bf16 %v14957_v41  ;;  %v18748_v35 = vunpack.c.h.s8.bf16 %v14973_v3  ;;  %v18756_v34 = vunpack.c.l.s8.bf16 %v14973_v3  ;;  %v15019_v6 = vld [vmem:[#allocation5 + $0x470] sm:$0xff] }
 0x32d   :  { %9775 = vmatprep.subr.bf16.mxu1 %v18732_v47  ;;  %v18747_v47 = vunpack.c.h.s8.bf16 %v14971_v9  ;;  %19247 = vst [vmem:[#allocation376_spill] sm:$0xff] %v15019_v6 }
 0x32f   :  { %9713 = vmatpush1.bf16.msra.mxu0 %v18737_v49  ;;  %v14989_v49 = vld [vmem:[#allocation5 + $0x500] sm:$0xff] }
 0x330   :  { %9777 = vmatpush1.bf16.msra.mxu1 %v18738_v36  ;;  %9715 = vmatprep.subr.bf16.mxu0 %v18739_v37  ;;  %19244 = vst [vmem:[#allocation373_spill] sm:$0xff] %v14989_v49  ;;  %v18753_v36 = vunpack.c.h.s8.bf16 %v14987_v4  ;;  %v18754_v37 = vunpack.c.h.s8.bf16 %v14989_v49 }
 0x331   :  { %9779 = vmatprep.subr.bf16.mxu1 %v18740_v20  ;;  %v18755_v20 = vunpack.c.l.s8.bf16 %v14971_v9  ;;  %v15035_v9 = vld [vmem:[#allocation5 + $0x3e8] sm:$0xff] }
 0x332   :  { %19249 = vst [vmem:[#allocation378_spill] sm:$0xff] %v15035_v9 }
 0x333   :  { %9717 = vmatpush1.bf16.msra.mxu0 %v18745_v13  ;;  %v15005_v13 = vld [vmem:[#allocation5 + $0x8f8] sm:$0xff] }
 0x334   :  { %9781 = vmatpush1.bf16.msra.mxu1 %v18746_v42  ;;  %9719 = vmatprep.subr.bf16.mxu0 %v18747_v47  ;;  %19246 = vst [vmem:[#allocation375_spill] sm:$0xff] %v15005_v13  ;;  %v18761_v42 = vunpack.c.l.s8.bf16 %v14987_v4  ;;  %v18762_v47 = vunpack.c.l.s8.bf16 %v14989_v49  ;;  %v18764_v41 = vunpack.c.h.s8.bf16 %v15005_v13  ;;  %v18772_v3 = vunpack.c.l.s8.bf16 %v15005_v13  ;;  %v15051_v4 = vld [vmem:[#allocation5 + $0x3e0] sm:$0xff] }
 0x335   :  { %9783 = vmatprep.subr.bf16.mxu1 %v18748_v35  ;;  %v18763_v35 = vunpack.c.h.s8.bf16 %v15003_v52  ;;  %19251 = vst [vmem:[#allocation380_spill] sm:$0xff] %v15051_v4 }
 0x337   :  { %9721 = vmatpush1.bf16.msra.mxu0 %v18753_v36  ;;  %v15021_v36 = vld [vmem:[#allocation5 + $0x8f0] sm:$0xff] }
 0x338   :  { %9785 = vmatpush1.bf16.msra.mxu1 %v18754_v37  ;;  %9723 = vmatprep.subr.bf16.mxu0 %v18755_v20  ;;  %19248 = vst [vmem:[#allocation377_spill] sm:$0xff] %v15021_v36  ;;  %v18769_v37 = vunpack.c.h.s8.bf16 %v15019_v6  ;;  %v18770_v20 = vunpack.c.h.s8.bf16 %v15021_v36 }
 0x339   :  { %9787 = vmatprep.subr.bf16.mxu1 %v18756_v34  ;;  %v18771_v34 = vunpack.c.l.s8.bf16 %v15003_v52  ;;  %v15067_v52 = vld [vmem:[#allocation5 + $0x358] sm:$0xff] }
 0x33a   :  { %19253 = vst [vmem:[#allocation382_spill] sm:$0xff] %v15067_v52 }
 0x33b   :  { %9725 = vmatpush1.bf16.msra.mxu0 %v18761_v42  ;;  %v15037_v42 = vld [vmem:[#allocation5 + $0x868] sm:$0xff] }
 0x33c   :  { %9789 = vmatpush1.bf16.msra.mxu1 %v18762_v47  ;;  %9727 = vmatprep.subr.bf16.mxu0 %v18763_v35  ;;  %19250 = vst [vmem:[#allocation379_spill] sm:$0xff] %v15037_v42  ;;  %v18777_v47 = vunpack.c.l.s8.bf16 %v15019_v6  ;;  %v18778_v35 = vunpack.c.l.s8.bf16 %v15021_v36  ;;  %v18780_v49 = vunpack.c.h.s8.bf16 %v15037_v42  ;;  %v18788_v13 = vunpack.c.l.s8.bf16 %v15037_v42  ;;  %v15083_v6 = vld [vmem:[#allocation5 + $0x350] sm:$0xff] }
 0x33d   :  { %9791 = vmatprep.subr.bf16.mxu1 %v18764_v41  ;;  %v18779_v41 = vunpack.c.h.s8.bf16 %v15035_v9 }
 0x33f   :  { %9729 = vmatpush2.bf16.msra.mxu0 %v18769_v37  ;;  %v15053_v37 = vld [vmem:[#allocation5 + $0x860] sm:$0xff] }
 0x340   :  { %9793 = vmatpush2.bf16.msra.mxu1 %v18770_v20  ;;  %9731 = vmatprep.subr.bf16.mxu0 %v18771_v34  ;;  %19252 = vst [vmem:[#allocation381_spill] sm:$0xff] %v15053_v37  ;;  %v18785_v20 = vunpack.c.h.s8.bf16 %v15051_v4  ;;  %v18786_v34 = vunpack.c.h.s8.bf16 %v15053_v37 }
 0x341   :  { %9795 = vmatprep.subr.bf16.mxu1 %v18772_v3  ;;  %v18787_v3 = vunpack.c.l.s8.bf16 %v15035_v9  ;;  %v15099_v9 = vld [vmem:[#allocation5 + $0x2c8] sm:$0xff] }
 0x343   :  { %9733 = vmatpush2.bf16.msra.mxu0 %v18777_v47  ;;  %v15069_v47 = vld [vmem:[#allocation5 + $0x7d8] sm:$0xff] }
 0x344   :  { %9797 = vmatpush2.bf16.msra.mxu1 %v18778_v35  ;;  %9735 = vmatprep.subr.bf16.mxu0 %v18779_v41  ;;  %19254 = vst [vmem:[#allocation383_spill] sm:$0xff] %v15069_v47  ;;  %v18793_v35 = vunpack.c.l.s8.bf16 %v15051_v4  ;;  %v18794_v41 = vunpack.c.l.s8.bf16 %v15053_v37  ;;  %v18796_v36 = vunpack.c.h.s8.bf16 %v15069_v47  ;;  %v18804_v42 = vunpack.c.l.s8.bf16 %v15069_v47  ;;  %v15115_v4 = vld [vmem:[#allocation5 + $0x2c0] sm:$0xff] }
 0x345   :  { %9799 = vmatprep.subr.bf16.mxu1 %v18780_v49  ;;  %v18795_v49 = vunpack.c.h.s8.bf16 %v15067_v52 }
 0x347   :  { %9737 = vmatpush2.bf16.msra.mxu0 %v18785_v20  ;;  %v15085_v20 = vld [vmem:[#allocation5 + $0x7d0] sm:$0xff] }
 0x348   :  { %9801 = vmatpush2.bf16.msra.mxu1 %v18786_v34  ;;  %9739 = vmatprep.subr.bf16.mxu0 %v18787_v3  ;;  %19255 = vst [vmem:[#allocation384_spill] sm:$0xff] %v15085_v20  ;;  %v18801_v34 = vunpack.c.h.s8.bf16 %v15083_v6  ;;  %v18802_v3 = vunpack.c.h.s8.bf16 %v15085_v20 }
 0x349   :  { %9803 = vmatprep.subr.bf16.mxu1 %v18788_v13  ;;  %v18803_v13 = vunpack.c.l.s8.bf16 %v15067_v52  ;;  %v15131_v52 = vld [vmem:[#allocation5 + $0xb38] sm:$0xff] }
 0x34b   :  { %9741 = vmatpush2.bf16.msra.mxu0 %v18793_v35  ;;  %v15101_v35 = vld [vmem:[#allocation5 + $0x748] sm:$0xff] }
 0x34c   :  { %9805 = vmatpush2.bf16.msra.mxu1 %v18794_v41  ;;  %9743 = vmatprep.subr.bf16.mxu0 %v18795_v49  ;;  %19256 = vst [vmem:[#allocation385_spill] sm:$0xff] %v15101_v35  ;;  %v18810_v41 = vunpack.c.l.s8.bf16 %v15083_v6  ;;  %v18809_v49 = vunpack.c.l.s8.bf16 %v15085_v20  ;;  %v18811_v37 = vunpack.c.h.s8.bf16 %v15101_v35  ;;  %v18815_v47 = vunpack.c.l.s8.bf16 %v15101_v35  ;;  %v15161_v35 = vld [vmem:[#allocation5 + $0xaa8] sm:$0xff] }
 0x34d   :  { %9807 = vmatprep.subr.bf16.mxu1 %v18796_v36  ;;  %v18812_v36 = vunpack.c.h.s8.bf16 %v15099_v9 }
 0x34f   :  { %9745 = vmatpush2.bf16.msra.mxu0 %v18801_v34  ;;  %v15117_v34 = vld [vmem:[#allocation5 + $0x740] sm:$0xff] }
 0x350   :  { %9809 = vmatpush2.bf16.msra.mxu1 %v18802_v3  ;;  %9747 = vmatprep.subr.bf16.mxu0 %v18803_v13  ;;  %19257 = vst [vmem:[#allocation386_spill] sm:$0xff] %v15117_v34  ;;  %v18813_v3 = vunpack.c.h.s8.bf16 %v15115_v4  ;;  %v18814_v13 = vunpack.c.h.s8.bf16 %v15117_v34 }
 0x351   :  { %9811 = vmatprep.subr.bf16.mxu1 %v18804_v42  ;;  %v18816_v42 = vunpack.c.l.s8.bf16 %v15099_v9 }
 0x353   :  { %9749 = vmatpush2.bf16.msra.mxu0 %v18810_v41  ;;  %v18821_v41 = vunpack.c.l.s8.bf16 %v15117_v34  ;;  %v15178_v34 = vld [vmem:[#allocation5 + $0xaa0] sm:$0xff] }
 0x354   :  { %9813 = vmatpush2.bf16.msra.mxu1 %v18809_v49  ;;  %9751 = vmatprep.subr.bf16.mxu0 %v18812_v36  ;;  %v18823_v49 = vunpack.c.l.s8.bf16 %v15115_v4  ;;  %v15144_v36 = vld [vmem:[#allocation5 + $0xb30] sm:$0xff] }
 0x355   :  { %9815 = vmatprep.subr.bf16.mxu1 %v18811_v37  ;;  %v18822_v37 = vunpack.c.h.s8.bf16 %v15131_v52 }
 0x357   :  { %9753 = vmatpush2.bf16.msra.mxu0 %v18813_v3  ;;  %v15149_v3 = vld [vmem:[%s17276_s1] sm:$0xff] }
 0x358   :  { %9817 = vmatpush2.bf16.msra.mxu1 %v18814_v13  ;;  %9755 = vmatprep.subr.bf16.mxu0 %v18816_v42  ;;  %v18856_v13 = vunpack.c.h.s8.bf16 %v15144_v36  ;;  %v18855_v42 = vunpack.c.l.s8.bf16 %v15131_v52  ;;  %v15164_v20 = vunpack.c.h.bf16 %v15149_v3 }
 0x359   :  { %9819 = vmatprep.subr.bf16.mxu1 %v18815_v47  ;;  %v19258_v47 = vunpack.c.h.s8.bf16 %v11706_v0 }
 0x35b   :  { %9757 = vmatpush2.bf16.msra.mxu0 %v18823_v49  ;;  %v18826_v49 = vunpack.c.h.s8.bf16 %v15161_v35 }
 0x35c   :  { %9821 = vmatpush2.bf16.msra.mxu1 %v18821_v41  ;;  %9823 = vmatprep.subr.bf16.mxu0 %v18822_v37  ;;  %v19259_v41 = vunpack.c.h.s8.bf16 %v11710_v2  ;;  %v18854_v37 = vunpack.c.l.s8.bf16 %v15144_v36 }
 0x35d   :  { %9887 = vmatprep.subr.bf16.mxu1 %v19258_v47  ;;  %v19260_v47 = vunpack.c.l.s8.bf16 %v11706_v0  ;;  %v19262_v0 = vunpack.c.h.s8.bf16 %v11720_v10 }
 0x35e   :  { %5771 = vmatmul.mubr.f32.vlgmr.msra.gmra.mxu0 %v11987_v33  ;;  %v19261_v33 = vunpack.c.l.s8.bf16 %v11710_v2  ;;  %v18829_v2 = vunpack.c.l.s8.bf16 %v15178_v34 }
 0x35f   :  { %5842 = vmatmul.mubr.f32.vlgmr.msra.gmra.mxu1 %v11990_v54  ;;  %9825 = vmatpush1.bf16.msra.mxu0 %v18856_v13  ;;  %v18827_v54 = vunpack.c.h.s8.bf16 %v15178_v34 }
 0x360   :  { %9889 = vmatpush1.bf16.msra.mxu1 %v19259_v41  ;;  %9827 = vmatprep.subr.bf16.mxu0 %v18855_v42  ;;  %v18828_v41 = vunpack.c.l.s8.bf16 %v15161_v35 }
 0x361   :  { %9891 = vmatprep.subr.bf16.mxu1 %v19260_v47  ;;  %5912 = vmatprep.mubr.f32.mxu0 %v12014_v19  ;;  %v15192_v47 = vld [vmem:[#allocation5 + $0xa18] sm:$0xff]  ;;  %v19263_v19 = vunpack.c.h.s8.bf16 %v11740_v16 }
 0x362   :  { %6046 = vmatprep.mubr.f32.mxu1 %v15164_v20 }
 0x363   :  { %9829 = vmatpush1.bf16.msra.mxu0 %v18854_v37 }
 0x364   :  { %9893 = vmatpush1.bf16.msra.mxu1 %v19261_v33  ;;  %9831 = vmatprep.subr.bf16.mxu0 %v18826_v49  ;;  %v19264_v33 = vunpack.c.l.s8.bf16 %v11720_v10  ;;  %v15204_v49 = vld [vmem:[#allocation5 + $0xa10] sm:$0xff]  ;;  %v18832_v10 = vunpack.c.l.s8.bf16 %v15192_v47 }
 0x365   :  { %9895 = vmatprep.subr.bf16.mxu1 %v19262_v0  ;;  %v18830_v0 = vunpack.c.h.s8.bf16 %v15192_v47 }
 0x367   :  { %9833 = vmatpush1.bf16.msra.mxu0 %v18827_v54  ;;  %v19265_v54 = vunpack.c.l.s8.bf16 %v11740_v16  ;;  %v18833_v16 = vunpack.c.l.s8.bf16 %v15204_v49 }
 0x368   :  { %9897 = vmatpush1.bf16.msra.mxu1 %v19263_v19  ;;  %9835 = vmatprep.subr.bf16.mxu0 %v18828_v41  ;;  %v18831_v19 = vunpack.c.h.s8.bf16 %v15204_v49  ;;  %v19266_v41 = vunpack.c.h.s8.bf16 %v11756_v22 }
 0x369   :  { %9899 = vmatprep.subr.bf16.mxu1 %v19264_v33  ;;  %v15216_v33 = vld [vmem:[#allocation5 + $0x988] sm:$0xff] }
 0x36b   :  { %9837 = vmatpush1.bf16.msra.mxu0 %v18829_v2  ;;  %v19267_v2 = vunpack.c.h.s8.bf16 %v11772_v28 }
 0x36c   :  { %9901 = vmatpush1.bf16.msra.mxu1 %v19265_v54  ;;  %9839 = vmatprep.subr.bf16.mxu0 %v18830_v0  ;;  %v19268_v54 = vunpack.c.l.s8.bf16 %v11756_v22  ;;  %v15228_v0 = vld [vmem:[#allocation5 + $0x980] sm:$0xff]  ;;  %v18836_v22 = vunpack.c.l.s8.bf16 %v15216_v33 }
 0x36d   :  { %9903 = vmatprep.subr.bf16.mxu1 %v19266_v41  ;;  %v18834_v41 = vunpack.c.h.s8.bf16 %v15216_v33 }
 0x36f   :  { %9841 = vmatpush1.bf16.msra.mxu0 %v18831_v19  ;;  %v19269_v19 = vunpack.c.l.s8.bf16 %v11772_v28  ;;  %v18837_v28 = vunpack.c.l.s8.bf16 %v15228_v0 }
 0x370   :  { %9905 = vmatpush1.bf16.msra.mxu1 %v19267_v2  ;;  %9843 = vmatprep.subr.bf16.mxu0 %v18832_v10  ;;  %v18835_v2 = vunpack.c.h.s8.bf16 %v15228_v0  ;;  %v19270_v10 = vunpack.c.h.s8.bf16 %v11804_v38 }
 0x371   :  { %9907 = vmatprep.subr.bf16.mxu1 %v19268_v54  ;;  %v15240_v54 = vld [vmem:[#allocation5 + $0xd78] sm:$0xff] }
 0x373   :  { %9845 = vmatpush1.bf16.msra.mxu0 %v18833_v16  ;;  %v19271_v16 = vunpack.c.h.s8.bf16 %v11822_v44 }
 0x374   :  { %9909 = vmatpush1.bf16.msra.mxu1 %v19269_v19  ;;  %9847 = vmatprep.subr.bf16.mxu0 %v18834_v41  ;;  %v19272_v19 = vunpack.c.l.s8.bf16 %v11804_v38  ;;  %v15252_v41 = vld [vmem:[#allocation5 + $0xd70] sm:$0xff]  ;;  %v18840_v38 = vunpack.c.l.s8.bf16 %v15240_v54 }
 0x375   :  { %9911 = vmatprep.subr.bf16.mxu1 %v19270_v10  ;;  %v18838_v10 = vunpack.c.h.s8.bf16 %v15240_v54 }
 0x377   :  { %9849 = vmatpush1.bf16.msra.mxu0 %v18835_v2  ;;  %v19273_v2 = vunpack.c.l.s8.bf16 %v11822_v44  ;;  %v18841_v44 = vunpack.c.l.s8.bf16 %v15252_v41 }
 0x378   :  { %9913 = vmatpush1.bf16.msra.mxu1 %v19271_v16  ;;  %9851 = vmatprep.subr.bf16.mxu0 %v18836_v22  ;;  %v18839_v16 = vunpack.c.h.s8.bf16 %v15252_v41  ;;  %v19274_v22 = vunpack.c.h.s8.bf16 %v11838_v50 }
 0x379   :  { %9915 = vmatprep.subr.bf16.mxu1 %v19272_v19  ;;  %v15264_v19 = vld [vmem:[#allocation5 + $0xce8] sm:$0xff] }
 0x37b   :  { %9853 = vmatpush1.bf16.msra.mxu0 %v18837_v28  ;;  %v19275_v28 = vunpack.c.h.s8.bf16 %v11854_v56 }
 0x37c   :  { %9917 = vmatpush1.bf16.msra.mxu1 %v19273_v2  ;;  %9855 = vmatprep.subr.bf16.mxu0 %v18838_v10  ;;  %v19276_v2 = vunpack.c.l.s8.bf16 %v11838_v50  ;;  %v15276_v10 = vld [vmem:[#allocation5 + $0xce0] sm:$0xff]  ;;  %v18844_v50 = vunpack.c.l.s8.bf16 %v15264_v19 }
 0x37d   :  { %9919 = vmatprep.subr.bf16.mxu1 %v19274_v22  ;;  %v18842_v22 = vunpack.c.h.s8.bf16 %v15264_v19 }
 0x37f   :  { %9857 = vmatpush2.bf16.msra.mxu0 %v18839_v16  ;;  %v19277_v16 = vunpack.c.l.s8.bf16 %v11854_v56  ;;  %v18845_v56 = vunpack.c.l.s8.bf16 %v15276_v10 }
 0x380   :  { %9921 = vmatpush2.bf16.msra.mxu1 %v19275_v28  ;;  %9859 = vmatprep.subr.bf16.mxu0 %v18840_v38  ;;  %v18843_v28 = vunpack.c.h.s8.bf16 %v15276_v10  ;;  %v19278_v38 = vunpack.c.h.s8.bf16 %v11870_v62 }
 0x381   :  { %9923 = vmatprep.subr.bf16.mxu1 %v19276_v2  ;;  %v15288_v2 = vld [vmem:[#allocation5 + $0xc58] sm:$0xff] }
 0x383   :  { %9861 = vmatpush2.bf16.msra.mxu0 %v18841_v44  ;;  %v19279_v44 = vunpack.c.h.s8.bf16 %v11886_v43 }
 0x384   :  { %9925 = vmatpush2.bf16.msra.mxu1 %v19277_v16  ;;  %9863 = vmatprep.subr.bf16.mxu0 %v18842_v22  ;;  %v19280_v16 = vunpack.c.l.s8.bf16 %v11870_v62  ;;  %v15300_v22 = vld [vmem:[#allocation5 + $0xc50] sm:$0xff]  ;;  %v18848_v62 = vunpack.c.l.s8.bf16 %v15288_v2 }
 0x385   :  { %9927 = vmatprep.subr.bf16.mxu1 %v19278_v38  ;;  %v18846_v38 = vunpack.c.h.s8.bf16 %v15288_v2 }
 0x387   :  { %9865 = vmatpush2.bf16.msra.mxu0 %v18843_v28  ;;  %v19281_v28 = vunpack.c.l.s8.bf16 %v11886_v43  ;;  %v18849_v43 = vunpack.c.l.s8.bf16 %v15300_v22 }
 0x388   :  { %9929 = vmatpush2.bf16.msra.mxu1 %v19279_v44  ;;  %9867 = vmatprep.subr.bf16.mxu0 %v18844_v50  ;;  %v18847_v44 = vunpack.c.h.s8.bf16 %v15300_v22  ;;  %v19282_v50 = vunpack.c.h.s8.bf16 %v11902_v27 }
 0x389   :  { %9931 = vmatprep.subr.bf16.mxu1 %v19280_v16  ;;  %v15312_v16 = vld [vmem:[#allocation5 + $0xbc8] sm:$0xff] }
 0x38b   :  { %9869 = vmatpush2.bf16.msra.mxu0 %v18845_v56  ;;  %v19283_v56 = vunpack.c.h.s8.bf16 %v11918_v15 }
 0x38c   :  { %9933 = vmatpush2.bf16.msra.mxu1 %v19281_v28  ;;  %9871 = vmatprep.subr.bf16.mxu0 %v18846_v38  ;;  %v19284_v28 = vunpack.c.l.s8.bf16 %v11902_v27  ;;  %v15324_v38 = vld [vmem:[#allocation5 + $0xbc0] sm:$0xff]  ;;  %v18850_v27 = vunpack.c.l.s8.bf16 %v15312_v16 }
 0x38d   :  { %9935 = vmatprep.subr.bf16.mxu1 %v19282_v50  ;;  %v18853_v50 = vunpack.c.h.s8.bf16 %v15312_v16 }
 0x38f   :  { %9873 = vmatpush2.bf16.msra.mxu0 %v18847_v44  ;;  %v19285_v44 = vunpack.c.l.s8.bf16 %v11918_v15  ;;  %v19288_v15 = vunpack.c.l.s8.bf16 %v11934_v5 }
 0x390   :  { %9937 = vmatpush2.bf16.msra.mxu1 %v19283_v56  ;;  %9875 = vmatprep.subr.bf16.mxu0 %v18848_v62  ;;  %v18851_v56 = vunpack.c.h.s8.bf16 %v15324_v38  ;;  %v19286_v62 = vunpack.c.h.s8.bf16 %v11934_v5  ;;  %v19290_v5 = vunpack.c.h.s8.bf16 %v11708_v1 }
 0x391   :  { %9939 = vmatprep.subr.bf16.mxu1 %v19284_v28  ;;  %v19287_v28 = vunpack.c.h.s8.bf16 %v11950_v59 }
 0x393   :  { %9877 = vmatpush2.bf16.msra.mxu0 %v18849_v43  ;;  %v18852_v43 = vunpack.c.l.s8.bf16 %v15324_v38 }
 0x394   :  { %9941 = vmatpush2.bf16.msra.mxu1 %v19285_v44  ;;  %9879 = vmatprep.subr.bf16.mxu0 %v18853_v50  ;;  %v15346_v44 = vunpack.c.l.bf16 %v15149_v3  ;;  %v19291_v3 = vunpack.c.h.s8.bf16 %v11966_v53 }
 0x395   :  { %9943 = vmatprep.subr.bf16.mxu1 %v19286_v62  ;;  %v15351_v62 = vld [vmem:[%s17276_s1 + $0x8] sm:$0xff] }
 0x397   :  { %9881 = vmatpush2.bf16.msra.mxu0 %v18851_v56 }
 0x398   :  { %9945 = vmatpush2.bf16.msra.mxu1 %v19287_v28  ;;  %9883 = vmatprep.subr.bf16.mxu0 %v18850_v27  ;;  %v15356_v28 = vld [vmem:[%s17276_s1 + $0x10] sm:$0xff]  ;;  %v19289_v27 = vunpack.c.l.s8.bf16 %v11950_v59  ;;  %v19293_v59 = vunpack.c.h.s8.bf16 %v11982_v58 }
 0x399   :  { %9947 = vmatprep.subr.bf16.mxu1 %v19288_v15  ;;  %v15367_v15 = vunpack.c.h.bf16 %v15351_v62  ;;  %v15370_v56 = vunpack.c.h.bf16 %v15356_v28 }
 0x39b   :  { %9885 = vmatpush2.bf16.msra.mxu0 %v18852_v43  ;;  %v19292_v43 = vunpack.c.h.s8.bf16 %v11716_v7 }
 0x39c   :  { %9949 = vmatpush2.bf16.msra.mxu1 %v19289_v27  ;;  %9951 = vmatprep.subr.bf16.mxu0 %v19290_v5  ;;  %v19294_v27 = vunpack.c.l.s8.bf16 %v11708_v1  ;;  %v19295_v5 = vunpack.c.l.s8.bf16 %v11966_v53  ;;  %v19300_v1 = vunpack.c.h.s8.bf16 %v11742_v17  ;;  %v19301_v53 = vunpack.c.h.s8.bf16 %v12030_v40 }
 0x39d   :  { %10015 = vmatprep.subr.bf16.mxu1 %v19291_v3  ;;  %v19297_v3 = vunpack.c.l.s8.bf16 %v11982_v58  ;;  %v19304_v58 = vunpack.c.l.s8.bf16 %v11742_v17  ;;  %v19311_v17 = vunpack.c.l.s8.bf16 %v12048_v32 }
 0x39e   :  { %5913 = vmatmul.mubr.f32.vlgmr.msra.gmra.mxu0 %v12261_v46  ;;  %v19296_v46 = vunpack.c.l.s8.bf16 %v11716_v7  ;;  %v19303_v7 = vunpack.c.l.s8.bf16 %v12009_v48 }
 0x39f   :  { %6047 = vmatmul.mubr.f32.vlgmr.msra.gmra.mxu1 %v15346_v44  ;;  %9953 = vmatpush1.bf16.msra.mxu0 %v19292_v43  ;;  %v19298_v43 = vunpack.c.h.s8.bf16 %v11722_v11 }
 0x3a0   :  { %10017 = vmatpush1.bf16.msra.mxu1 %v19293_v59  ;;  %9955 = vmatprep.subr.bf16.mxu0 %v19294_v27  ;;  %v19299_v59 = vunpack.c.h.s8.bf16 %v12009_v48  ;;  %v19302_v27 = vunpack.c.l.s8.bf16 %v11722_v11  ;;  %v19309_v11 = vunpack.c.h.s8.bf16 %v12064_v24  ;;  %v19310_v48 = vunpack.c.l.s8.bf16 %v11758_v23 }
 0x3a1   :  { %10019 = vmatprep.subr.bf16.mxu1 %v19295_v5  ;;  %6117 = vmatprep.mubr.f32.mxu0 %v15367_v15  ;;  %v19305_v5 = vunpack.c.l.s8.bf16 %v12030_v40  ;;  %v19312_v40 = vunpack.c.l.s8.bf16 %v11774_v29 }
 0x3a2   :  { %6188 = vmatprep.mubr.f32.mxu1 %v15370_v56 }
 0x3a3   :  { %9957 = vmatpush1.bf16.msra.mxu0 %v19296_v46  ;;  %v19306_v46 = vunpack.c.h.s8.bf16 %v11758_v23  ;;  %v19317_v23 = vunpack.c.h.s8.bf16 %v12096_v12 }
 0x3a4   :  { %10021 = vmatpush1.bf16.msra.mxu1 %v19297_v3  ;;  %9959 = vmatprep.subr.bf16.mxu0 %v19298_v43  ;;  %v19307_v3 = vunpack.c.h.s8.bf16 %v12048_v32  ;;  %v19308_v43 = vunpack.c.h.s8.bf16 %v11774_v29  ;;  %v19318_v32 = vunpack.c.l.s8.bf16 %v11806_v39  ;;  %v19319_v29 = vunpack.c.l.s8.bf16 %v12080_v18 }
 0x3a5   :  { %10023 = vmatprep.subr.bf16.mxu1 %v19299_v59  ;;  %v19313_v59 = vunpack.c.l.s8.bf16 %v12064_v24  ;;  %v19320_v24 = vunpack.c.l.s8.bf16 %v11824_v45 }
 0x3a7   :  { %9961 = vmatpush1.bf16.msra.mxu0 %v19300_v1  ;;  %v19314_v1 = vunpack.c.h.s8.bf16 %v11806_v39  ;;  %v19325_v39 = vunpack.c.h.s8.bf16 %v12128_v31 }
 0x3a8   :  { %10025 = vmatpush1.bf16.msra.mxu1 %v19301_v53  ;;  %9963 = vmatprep.subr.bf16.mxu0 %v19302_v27  ;;  %v19315_v53 = vunpack.c.h.s8.bf16 %v12080_v18  ;;  %v19316_v27 = vunpack.c.h.s8.bf16 %v11824_v45  ;;  %v19326_v18 = vunpack.c.l.s8.bf16 %v11840_v51  ;;  %v19327_v45 = vunpack.c.l.s8.bf16 %v12112_v8 }
 0x3a9   :  { %10027 = vmatprep.subr.bf16.mxu1 %v19303_v7  ;;  %v19321_v7 = vunpack.c.l.s8.bf16 %v12096_v12  ;;  %v19328_v12 = vunpack.c.l.s8.bf16 %v11856_v57 }
 0x3ab   :  { %9965 = vmatpush1.bf16.msra.mxu0 %v19304_v58  ;;  %v19322_v58 = vunpack.c.h.s8.bf16 %v11840_v51  ;;  %v19334_v51 = vld [vmem:[#allocation27_spill] sm:$0xff] }
 0x3ac   :  { %10029 = vmatpush1.bf16.msra.mxu1 %v19305_v5  ;;  %9967 = vmatprep.subr.bf16.mxu0 %v19306_v46  ;;  %v19323_v5 = vunpack.c.h.s8.bf16 %v12112_v8  ;;  %v19324_v46 = vunpack.c.h.s8.bf16 %v11856_v57  ;;  %v19336_v8 = vunpack.c.l.s8.bf16 %v11872_v63  ;;  %v19337_v57 = vunpack.c.l.s8.bf16 %v12144_v60 }
 0x3ad   :  { %10031 = vmatprep.subr.bf16.mxu1 %v19307_v3  ;;  %v19329_v3 = vunpack.c.l.s8.bf16 %v12128_v31 }
 0x3af   :  { %9969 = vmatpush1.bf16.msra.mxu0 %v19308_v43  ;;  %v19330_v43 = vunpack.c.h.s8.bf16 %v11872_v63  ;;  %v19346_v63 = vld [vmem:[#allocation31_spill] sm:$0xff] }
 0x3b0   :  { %10033 = vmatpush1.bf16.msra.mxu1 %v19309_v11  ;;  %9971 = vmatprep.subr.bf16.mxu0 %v19310_v48  ;;  %v19331_v11 = vunpack.c.h.s8.bf16 %v12144_v60  ;;  %v19332_v48 = vld [vmem:[#allocation11_spill] sm:$0xff] }
 0x3b1   :  { %10035 = vmatprep.subr.bf16.mxu1 %v19311_v17  ;;  %v19333_v17 = vunpack.c.h.s8.bf16 %v19332_v48  ;;  %v19338_v31 = vunpack.c.l.s8.bf16 %v19332_v48 }
 0x3b3   :  { %9973 = vmatpush1.bf16.msra.mxu0 %v19312_v40  ;;  %v19335_v40 = vunpack.c.h.s8.bf16 %v19334_v51 }
 0x3b4   :  { %10037 = vmatpush1.bf16.msra.mxu1 %v19313_v59  ;;  %9975 = vmatprep.subr.bf16.mxu0 %v19314_v1  ;;  %v19339_v59 = vunpack.c.l.s8.bf16 %v19334_v51  ;;  %v19340_v1 = vld [vmem:[#allocation12_spill] sm:$0xff]  ;;  %v15497_v51 = vunpack.c.l.bf16 %v15351_v62  ;;  %v19368_v62 = vld [vmem:[#allocation17_spill] sm:$0xff] }
 0x3b5   :  { %10039 = vmatprep.subr.bf16.mxu1 %v19315_v53  ;;  %v19341_v53 = vunpack.c.h.s8.bf16 %v19340_v1  ;;  %v19348_v60 = vunpack.c.l.s8.bf16 %v19340_v1  ;;  %v19366_v1 = vld [vmem:[#allocation37_spill] sm:$0xff] }
 0x3b7   :  { %9977 = vmatpush1.bf16.msra.mxu0 %v19316_v27  ;;  %v19342_v27 = vld [vmem:[#allocation29_spill] sm:$0xff] }
 0x3b8   :  { %10041 = vmatpush1.bf16.msra.mxu1 %v19317_v23  ;;  %9979 = vmatprep.subr.bf16.mxu0 %v19318_v32  ;;  %v19343_v23 = vunpack.c.h.s8.bf16 %v19342_v27  ;;  %v19344_v32 = vld [vmem:[#allocation13_spill] sm:$0xff] }
 0x3b9   :  { %10043 = vmatprep.subr.bf16.mxu1 %v19319_v29  ;;  %v19345_v29 = vunpack.c.h.s8.bf16 %v19344_v32 }
 0x3bb   :  { %9981 = vmatpush1.bf16.msra.mxu0 %v19320_v24  ;;  %v19347_v24 = vunpack.c.h.s8.bf16 %v19346_v63 }
 0x3bc   :  { %10045 = vmatpush1.bf16.msra.mxu1 %v19321_v7  ;;  %9983 = vmatprep.subr.bf16.mxu0 %v19322_v58  ;;  %v19349_v7 = vunpack.c.l.s8.bf16 %v19342_v27  ;;  %v19350_v58 = vunpack.c.l.s8.bf16 %v19344_v32  ;;  %v19369_v27 = vunpack.c.h.s8.bf16 %v19368_v62 }
 0x3bd   :  { %10047 = vmatprep.subr.bf16.mxu1 %v19323_v5  ;;  %v19351_v5 = vunpack.c.l.s8.bf16 %v19346_v63  ;;  %v19374_v63 = vunpack.c.l.s8.bf16 %v19368_v62 }
 0x3bf   :  { %9985 = vmatpush2.bf16.msra.mxu0 %v19324_v46  ;;  %v19352_v46 = vld [vmem:[#allocation14_spill] sm:$0xff] }
 0x3c0   :  { %10049 = vmatpush2.bf16.msra.mxu1 %v19325_v39  ;;  %9987 = vmatprep.subr.bf16.mxu0 %v19326_v18  ;;  %v19353_v39 = vunpack.c.h.s8.bf16 %v19352_v46  ;;  %v19354_v18 = vld [vmem:[#allocation33_spill] sm:$0xff]  ;;  %v19360_v48 = vunpack.c.l.s8.bf16 %v19352_v46  ;;  %v19380_v46 = vld [vmem:[#allocation19_spill] sm:$0xff] }
 0x3c1   :  { %10051 = vmatprep.subr.bf16.mxu1 %v19327_v45  ;;  %v19355_v45 = vunpack.c.h.s8.bf16 %v19354_v18 }
 0x3c3   :  { %9989 = vmatpush2.bf16.msra.mxu0 %v19328_v12  ;;  %v19356_v12 = vld [vmem:[#allocation15_spill] sm:$0xff] }
 0x3c4   :  { %10053 = vmatpush2.bf16.msra.mxu1 %v19329_v3  ;;  %9991 = vmatprep.subr.bf16.mxu0 %v19330_v43  ;;  %v19357_v3 = vunpack.c.h.s8.bf16 %v19356_v12  ;;  %v19358_v43 = vld [vmem:[#allocation35_spill] sm:$0xff] }
 0x3c5   :  { %10055 = vmatprep.subr.bf16.mxu1 %v19331_v11  ;;  %v19359_v11 = vunpack.c.h.s8.bf16 %v19358_v43 }
 0x3c7   :  { %9993 = vmatpush2.bf16.msra.mxu0 %v19333_v17  ;;  %v19361_v17 = vunpack.c.l.s8.bf16 %v19354_v18  ;;  %v19382_v18 = vld [vmem:[#allocation43_spill] sm:$0xff] }
 0x3c8   :  { %10057 = vmatpush2.bf16.msra.mxu1 %v19335_v40  ;;  %9995 = vmatprep.subr.bf16.mxu0 %v19336_v8  ;;  %v15500_v40 = vunpack.c.l.bf16 %v15356_v28  ;;  %v19362_v8 = vunpack.c.l.s8.bf16 %v19356_v12  ;;  %v19370_v28 = vld [vmem:[#allocation39_spill] sm:$0xff] }
 0x3c9   :  { %10059 = vmatprep.subr.bf16.mxu1 %v19337_v57  ;;  %v19363_v57 = vunpack.c.l.s8.bf16 %v19358_v43  ;;  %v19386_v43 = vunpack.c.l.s8.bf16 %v19380_v46 }
 0x3cb   :  { %9997 = vmatpush2.bf16.msra.mxu0 %v19338_v31  ;;  %v19364_v31 = vld [vmem:[#allocation16_spill] sm:$0xff] }
 0x3cc   :  { %10061 = vmatpush2.bf16.msra.mxu1 %v19339_v59  ;;  %9999 = vmatprep.subr.bf16.mxu0 %v19341_v53  ;;  %v19365_v59 = vunpack.c.h.s8.bf16 %v19364_v31  ;;  %v19367_v53 = vunpack.c.h.s8.bf16 %v19366_v1  ;;  %v19372_v32 = vunpack.c.l.s8.bf16 %v19364_v31  ;;  %v19392_v31 = vld [vmem:[#allocation21_spill] sm:$0xff] }
 0x3cd   :  { %10063 = vmatprep.subr.bf16.mxu1 %v19343_v23  ;;  %v19371_v23 = vunpack.c.h.s8.bf16 %v19370_v28 }
 0x3cf   :  { %10001 = vmatpush2.bf16.msra.mxu0 %v19345_v29  ;;  %v19373_v29 = vunpack.c.l.s8.bf16 %v19366_v1  ;;  %v19394_v1 = vld [vmem:[#allocation47_spill] sm:$0xff] }
 0x3d0   :  { %10065 = vmatpush2.bf16.msra.mxu1 %v19347_v24  ;;  %10003 = vmatprep.subr.bf16.mxu0 %v19348_v60  ;;  %v19375_v24 = vunpack.c.l.s8.bf16 %v19370_v28  ;;  %v19376_v60 = vld [vmem:[#allocation18_spill] sm:$0xff]  ;;  %v19398_v28 = vunpack.c.l.s8.bf16 %v19392_v31 }
 0x3d1   :  { %10067 = vmatprep.subr.bf16.mxu1 %v19349_v7  ;;  %v19377_v7 = vunpack.c.h.s8.bf16 %v19376_v60  ;;  %v19384_v12 = vunpack.c.l.s8.bf16 %v19376_v60  ;;  %v19404_v60 = vld [vmem:[#allocation23_spill] sm:$0xff] }
 0x3d3   :  { %10005 = vmatpush2.bf16.msra.mxu0 %v19350_v58  ;;  %v19378_v58 = vld [vmem:[#allocation41_spill] sm:$0xff] }
 0x3d4   :  { %10069 = vmatpush2.bf16.msra.mxu1 %v19351_v5  ;;  %10007 = vmatprep.subr.bf16.mxu0 %v19353_v39  ;;  %v19379_v5 = vunpack.c.h.s8.bf16 %v19378_v58  ;;  %v19381_v39 = vunpack.c.h.s8.bf16 %v19380_v46 }
 0x3d5   :  { %10071 = vmatprep.subr.bf16.mxu1 %v19355_v45  ;;  %v19383_v45 = vunpack.c.h.s8.bf16 %v19382_v18 }
 0x3d7   :  { %10009 = vmatpush2.bf16.msra.mxu0 %v19357_v3  ;;  %v19385_v3 = vunpack.c.l.s8.bf16 %v19378_v58  ;;  %v19406_v58 = vld [vmem:[#allocation51_spill] sm:$0xff] }
 0x3d8   :  { %10073 = vmatpush2.bf16.msra.mxu1 %v19359_v11  ;;  %10011 = vmatprep.subr.bf16.mxu0 %v19360_v48  ;;  %v19387_v11 = vunpack.c.l.s8.bf16 %v19382_v18  ;;  %v19388_v48 = vld [vmem:[#allocation20_spill] sm:$0xff]  ;;  %v19410_v18 = vunpack.c.l.s8.bf16 %v19404_v60 }
 0x3d9   :  { %10075 = vmatprep.subr.bf16.mxu1 %v19361_v17  ;;  %v19389_v17 = vunpack.c.h.s8.bf16 %v19388_v48  ;;  %v19396_v62 = vunpack.c.l.s8.bf16 %v19388_v48  ;;  %v19416_v48 = vld [vmem:[#allocation25_spill] sm:$0xff] }
 0x3db   :  { %10013 = vmatpush2.bf16.msra.mxu0 %v19362_v8  ;;  %v19390_v8 = vld [vmem:[#allocation45_spill] sm:$0xff] }
 0x3dc   :  { %10077 = vmatpush2.bf16.msra.mxu1 %v19363_v57  ;;  %10079 = vmatprep.subr.bf16.mxu0 %v19365_v59  ;;  %v19391_v57 = vunpack.c.h.s8.bf16 %v19390_v8  ;;  %v19393_v59 = vunpack.c.h.s8.bf16 %v19392_v31 }
 0x3dd   :  { %10143 = vmatprep.subr.bf16.mxu1 %v19367_v53  ;;  %v19395_v53 = vunpack.c.h.s8.bf16 %v19394_v1 }
 0x3de   :  { %6118 = vmatmul.mubr.f32.vlgmr.msra.gmra.mxu0 %v15497_v51 }
 0x3df   :  { %6189 = vmatmul.mubr.f32.vlgmr.msra.gmra.mxu1 %v15500_v40  ;;  %10081 = vmatpush1.bf16.msra.mxu0 %v19369_v27  ;;  %v19397_v27 = vunpack.c.l.s8.bf16 %v19390_v8  ;;  %v19418_v8 = vld [vmem:[#allocation55_spill] sm:$0xff] }
 0x3e0   :  { %10145 = vmatpush1.bf16.msra.mxu1 %v19371_v23  ;;  %10083 = vmatprep.subr.bf16.mxu0 %v19372_v32  ;;  %v19399_v23 = vunpack.c.l.s8.bf16 %v19394_v1  ;;  %v19400_v32 = vld [vmem:[#allocation22_spill] sm:$0xff]  ;;  %v19422_v1 = vunpack.c.l.s8.bf16 %v19416_v48 }
 0x3e1   :  { %10147 = vmatprep.subr.bf16.mxu1 %v19373_v29  ;;  %6259 = vmatprep.mubr.f32.mxu0 %v15164_v20  ;;  %v19401_v29 = vunpack.c.h.s8.bf16 %v19400_v32  ;;  %v19408_v46 = vunpack.c.l.s8.bf16 %v19400_v32  ;;  %v19428_v32 = vld [vmem:[#allocation28_spill] sm:$0xff] }
 0x3e2   :  { %6330 = vmatprep.mubr.f32.mxu1 %v15367_v15 }
 0x3e3   :  { %10085 = vmatpush1.bf16.msra.mxu0 %v19374_v63  ;;  %v19402_v63 = vld [vmem:[#allocation49_spill] sm:$0xff] }
 0x3e4   :  { %10149 = vmatpush1.bf16.msra.mxu1 %v19375_v24  ;;  %10087 = vmatprep.subr.bf16.mxu0 %v19377_v7  ;;  %v19403_v24 = vunpack.c.h.s8.bf16 %v19402_v63  ;;  %v19405_v7 = vunpack.c.h.s8.bf16 %v19404_v60 }
 0x3e5   :  { %10151 = vmatprep.subr.bf16.mxu1 %v19379_v5  ;;  %v19407_v5 = vunpack.c.h.s8.bf16 %v19406_v58 }
 0x3e7   :  { %10089 = vmatpush1.bf16.msra.mxu0 %v19381_v39  ;;  %v19409_v39 = vunpack.c.l.s8.bf16 %v19402_v63  ;;  %v19430_v63 = vld [vmem:[#allocation59_spill] sm:$0xff] }
 0x3e8   :  { %10153 = vmatpush1.bf16.msra.mxu1 %v19383_v45  ;;  %10091 = vmatprep.subr.bf16.mxu0 %v19384_v12  ;;  %v19411_v45 = vunpack.c.l.s8.bf16 %v19406_v58  ;;  %v19412_v12 = vld [vmem:[#allocation24_spill] sm:$0xff]  ;;  %v19434_v58 = vunpack.c.l.s8.bf16 %v19428_v32 }
 0x3e9   :  { %10155 = vmatprep.subr.bf16.mxu1 %v19385_v3  ;;  %v19413_v3 = vunpack.c.h.s8.bf16 %v19412_v12  ;;  %v19420_v31 = vunpack.c.l.s8.bf16 %v19412_v12  ;;  %v19440_v12 = vld [vmem:[#allocation32_spill] sm:$0xff] }
 0x3eb   :  { %10093 = vmatpush1.bf16.msra.mxu0 %v19386_v43  ;;  %v19414_v43 = vld [vmem:[#allocation53_spill] sm:$0xff] }
 0x3ec   :  { %10157 = vmatpush1.bf16.msra.mxu1 %v19387_v11  ;;  %10095 = vmatprep.subr.bf16.mxu0 %v19389_v17  ;;  %v19415_v11 = vunpack.c.h.s8.bf16 %v19414_v43  ;;  %v19417_v17 = vunpack.c.h.s8.bf16 %v19416_v48 }
 0x3ed   :  { %10159 = vmatprep.subr.bf16.mxu1 %v19391_v57  ;;  %v19419_v57 = vunpack.c.h.s8.bf16 %v19418_v8 }
 0x3ef   :  { %10097 = vmatpush1.bf16.msra.mxu0 %v19393_v59  ;;  %v19421_v59 = vunpack.c.l.s8.bf16 %v19414_v43  ;;  %v19442_v43 = vld [vmem:[#allocation63_spill] sm:$0xff] }
 0x3f0   :  { %10161 = vmatpush1.bf16.msra.mxu1 %v19395_v53  ;;  %10099 = vmatprep.subr.bf16.mxu0 %v19396_v62  ;;  %v19423_v53 = vunpack.c.l.s8.bf16 %v19418_v8  ;;  %v19424_v62 = vld [vmem:[#allocation26_spill] sm:$0xff]  ;;  %v19446_v8 = vunpack.c.l.s8.bf16 %v19440_v12 }
 0x3f1   :  { %10163 = vmatprep.subr.bf16.mxu1 %v19397_v27  ;;  %v19425_v27 = vunpack.c.h.s8.bf16 %v19424_v62  ;;  %v19432_v60 = vunpack.c.l.s8.bf16 %v19424_v62  ;;  %v19452_v62 = vld [vmem:[#allocation36_spill] sm:$0xff] }
 0x3f3   :  { %10101 = vmatpush1.bf16.msra.mxu0 %v19398_v28  ;;  %v19426_v28 = vld [vmem:[#allocation57_spill] sm:$0xff] }
 0x3f4   :  { %10165 = vmatpush1.bf16.msra.mxu1 %v19399_v23  ;;  %10103 = vmatprep.subr.bf16.mxu0 %v19401_v29  ;;  %v19427_v23 = vunpack.c.h.s8.bf16 %v19426_v28  ;;  %v19429_v29 = vunpack.c.h.s8.bf16 %v19428_v32 }
 0x3f5   :  { %10167 = vmatprep.subr.bf16.mxu1 %v19403_v24  ;;  %v19431_v24 = vunpack.c.h.s8.bf16 %v19430_v63 }
 0x3f7   :  { %10105 = vmatpush1.bf16.msra.mxu0 %v19405_v7  ;;  %v19433_v7 = vunpack.c.l.s8.bf16 %v19426_v28  ;;  %v19454_v28 = vld [vmem:[#allocation67_spill] sm:$0xff] }
 0x3f8   :  { %10169 = vmatpush1.bf16.msra.mxu1 %v19407_v5  ;;  %10107 = vmatprep.subr.bf16.mxu0 %v19408_v46  ;;  %v19435_v5 = vunpack.c.l.s8.bf16 %v19430_v63  ;;  %v19436_v46 = vld [vmem:[#allocation30_spill] sm:$0xff]  ;;  %v19458_v63 = vunpack.c.l.s8.bf16 %v19452_v62 }
 0x3f9   :  { %10171 = vmatprep.subr.bf16.mxu1 %v19409_v39  ;;  %v19437_v39 = vunpack.c.h.s8.bf16 %v19436_v46  ;;  %v19444_v48 = vunpack.c.l.s8.bf16 %v19436_v46  ;;  %v19464_v46 = vld [vmem:[#allocation40_spill] sm:$0xff] }
 0x3fb   :  { %10109 = vmatpush1.bf16.msra.mxu0 %v19410_v18  ;;  %v19438_v18 = vld [vmem:[#allocation61_spill] sm:$0xff] }
 0x3fc   :  { %10173 = vmatpush1.bf16.msra.mxu1 %v19411_v45  ;;  %10111 = vmatprep.subr.bf16.mxu0 %v19413_v3  ;;  %v19439_v45 = vunpack.c.h.s8.bf16 %v19438_v18  ;;  %v19441_v3 = vunpack.c.h.s8.bf16 %v19440_v12 }
 0x3fd   :  { %10175 = vmatprep.subr.bf16.mxu1 %v19415_v11  ;;  %v19443_v11 = vunpack.c.h.s8.bf16 %v19442_v43 }
 0x3ff   :  { %10113 = vmatpush2.bf16.msra.mxu0 %v19417_v17  ;;  %v19445_v17 = vunpack.c.l.s8.bf16 %v19438_v18  ;;  %v19466_v18 = vld [vmem:[#allocation71_spill] sm:$0xff] }
 0x400   :  { %10177 = vmatpush2.bf16.msra.mxu1 %v19419_v57  ;;  %10115 = vmatprep.subr.bf16.mxu0 %v19420_v31  ;;  %v19447_v57 = vunpack.c.l.s8.bf16 %v19442_v43  ;;  %v19448_v31 = vld [vmem:[#allocation34_spill] sm:$0xff]  ;;  %v19470_v43 = vunpack.c.l.s8.bf16 %v19464_v46 }
 0x401   :  { %10179 = vmatprep.subr.bf16.mxu1 %v19421_v59  ;;  %v19449_v59 = vunpack.c.h.s8.bf16 %v19448_v31  ;;  %v19456_v32 = vunpack.c.l.s8.bf16 %v19448_v31  ;;  %v19476_v31 = vld [vmem:[#allocation44_spill] sm:$0xff] }
 0x403   :  { %10117 = vmatpush2.bf16.msra.mxu0 %v19422_v1  ;;  %v19450_v1 = vld [vmem:[#allocation65_spill] sm:$0xff] }
 0x404   :  { %10181 = vmatpush2.bf16.msra.mxu1 %v19423_v53  ;;  %10119 = vmatprep.subr.bf16.mxu0 %v19425_v27  ;;  %v19451_v53 = vunpack.c.h.s8.bf16 %v19450_v1  ;;  %v19453_v27 = vunpack.c.h.s8.bf16 %v19452_v62 }
 0x405   :  { %10183 = vmatprep.subr.bf16.mxu1 %v19427_v23  ;;  %v19455_v23 = vunpack.c.h.s8.bf16 %v19454_v28 }
 0x407   :  { %10121 = vmatpush2.bf16.msra.mxu0 %v19429_v29  ;;  %v19457_v29 = vunpack.c.l.s8.bf16 %v19450_v1  ;;  %v19478_v1 = vld [vmem:[#allocation75_spill] sm:$0xff] }
 0x408   :  { %10185 = vmatpush2.bf16.msra.mxu1 %v19431_v24  ;;  %10123 = vmatprep.subr.bf16.mxu0 %v19432_v60  ;;  %v19459_v24 = vunpack.c.l.s8.bf16 %v19454_v28  ;;  %v19460_v60 = vld [vmem:[#allocation38_spill] sm:$0xff]  ;;  %v19482_v28 = vunpack.c.l.s8.bf16 %v19476_v31 }
 0x409   :  { %10187 = vmatprep.subr.bf16.mxu1 %v19433_v7  ;;  %v19461_v7 = vunpack.c.h.s8.bf16 %v19460_v60  ;;  %v19468_v12 = vunpack.c.l.s8.bf16 %v19460_v60  ;;  %v19488_v60 = vld [vmem:[#allocation48_spill] sm:$0xff] }
 0x40b   :  { %10125 = vmatpush2.bf16.msra.mxu0 %v19434_v58  ;;  %v19462_v58 = vld [vmem:[#allocation69_spill] sm:$0xff] }
 0x40c   :  { %10189 = vmatpush2.bf16.msra.mxu1 %v19435_v5  ;;  %10127 = vmatprep.subr.bf16.mxu0 %v19437_v39  ;;  %v19463_v5 = vunpack.c.h.s8.bf16 %v19462_v58  ;;  %v19465_v39 = vunpack.c.h.s8.bf16 %v19464_v46 }
 0x40d   :  { %10191 = vmatprep.subr.bf16.mxu1 %v19439_v45  ;;  %v19467_v45 = vunpack.c.h.s8.bf16 %v19466_v18 }
 0x40f   :  { %10129 = vmatpush2.bf16.msra.mxu0 %v19441_v3  ;;  %v19469_v3 = vunpack.c.l.s8.bf16 %v19462_v58  ;;  %v19490_v58 = vld [vmem:[#allocation79_spill] sm:$0xff] }
 0x410   :  { %10193 = vmatpush2.bf16.msra.mxu1 %v19443_v11  ;;  %10131 = vmatprep.subr.bf16.mxu0 %v19444_v48  ;;  %v19471_v11 = vunpack.c.l.s8.bf16 %v19466_v18  ;;  %v19472_v48 = vld [vmem:[#allocation42_spill] sm:$0xff]  ;;  %v19494_v18 = vunpack.c.l.s8.bf16 %v19488_v60 }
 0x411   :  { %10195 = vmatprep.subr.bf16.mxu1 %v19445_v17  ;;  %v19473_v17 = vunpack.c.h.s8.bf16 %v19472_v48  ;;  %v19480_v62 = vunpack.c.l.s8.bf16 %v19472_v48  ;;  %v19500_v48 = vld [vmem:[#allocation52_spill] sm:$0xff] }
 0x413   :  { %10133 = vmatpush2.bf16.msra.mxu0 %v19446_v8  ;;  %v19474_v8 = vld [vmem:[#allocation73_spill] sm:$0xff] }
 0x414   :  { %10197 = vmatpush2.bf16.msra.mxu1 %v19447_v57  ;;  %10135 = vmatprep.subr.bf16.mxu0 %v19449_v59  ;;  %v19475_v57 = vunpack.c.h.s8.bf16 %v19474_v8  ;;  %v19477_v59 = vunpack.c.h.s8.bf16 %v19476_v31 }
 0x415   :  { %10199 = vmatprep.subr.bf16.mxu1 %v19451_v53  ;;  %v19479_v53 = vunpack.c.h.s8.bf16 %v19478_v1 }
 0x417   :  { %10137 = vmatpush2.bf16.msra.mxu0 %v19453_v27  ;;  %v19481_v27 = vunpack.c.l.s8.bf16 %v19474_v8  ;;  %v19502_v8 = vld [vmem:[#allocation83_spill] sm:$0xff] }
 0x418   :  { %10201 = vmatpush2.bf16.msra.mxu1 %v19455_v23  ;;  %10139 = vmatprep.subr.bf16.mxu0 %v19456_v32  ;;  %v19483_v23 = vunpack.c.l.s8.bf16 %v19478_v1  ;;  %v19484_v32 = vld [vmem:[#allocation46_spill] sm:$0xff]  ;;  %v19506_v1 = vunpack.c.l.s8.bf16 %v19500_v48 }
 0x419   :  { %10203 = vmatprep.subr.bf16.mxu1 %v19457_v29  ;;  %v19485_v29 = vunpack.c.h.s8.bf16 %v19484_v32  ;;  %v19492_v46 = vunpack.c.l.s8.bf16 %v19484_v32  ;;  %v19512_v32 = vld [vmem:[#allocation56_spill] sm:$0xff] }
 0x41b   :  { %10141 = vmatpush2.bf16.msra.mxu0 %v19458_v63  ;;  %v19486_v63 = vld [vmem:[#allocation77_spill] sm:$0xff] }
 0x41c   :  { %10205 = vmatpush2.bf16.msra.mxu1 %v19459_v24  ;;  %10207 = vmatprep.subr.bf16.mxu0 %v19461_v7  ;;  %v19487_v24 = vunpack.c.h.s8.bf16 %v19486_v63  ;;  %v19489_v7 = vunpack.c.h.s8.bf16 %v19488_v60 }
 0x41d   :  { %10271 = vmatprep.subr.bf16.mxu1 %v19463_v5  ;;  %v19491_v5 = vunpack.c.h.s8.bf16 %v19490_v58 }
 0x41e   :  { %6260 = vmatmul.mubr.f32.vlgmr.msra.gmra.mxu0 %v15346_v44 }
 0x41f   :  { %6331 = vmatmul.mubr.f32.vlgmr.msra.gmra.mxu1 %v15497_v51  ;;  %10209 = vmatpush1.bf16.msra.mxu0 %v19465_v39  ;;  %v19493_v39 = vunpack.c.l.s8.bf16 %v19486_v63  ;;  %v19514_v63 = vld [vmem:[#allocation87_spill] sm:$0xff] }
 0x420   :  { %10273 = vmatpush1.bf16.msra.mxu1 %v19467_v45  ;;  %10211 = vmatprep.subr.bf16.mxu0 %v19468_v12  ;;  %v19495_v45 = vunpack.c.l.s8.bf16 %v19490_v58  ;;  %v19496_v12 = vld [vmem:[#allocation50_spill] sm:$0xff]  ;;  %v19518_v58 = vunpack.c.l.s8.bf16 %v19512_v32 }
 0x421   :  { %10275 = vmatprep.subr.bf16.mxu1 %v19469_v3  ;;  %6401 = vmatprep.mubr.f32.mxu0 %v15370_v56  ;;  %v19497_v3 = vunpack.c.h.s8.bf16 %v19496_v12  ;;  %v19504_v31 = vunpack.c.l.s8.bf16 %v19496_v12  ;;  %v19524_v12 = vld [vmem:[#allocation60_spill] sm:$0xff] }
 0x422   :  { %6472 = vmatprep.mubr.f32.mxu1 %v15164_v20 }
 0x423   :  { %10213 = vmatpush1.bf16.msra.mxu0 %v19470_v43  ;;  %v19498_v43 = vld [vmem:[#allocation81_spill] sm:$0xff] }
 0x424   :  { %10277 = vmatpush1.bf16.msra.mxu1 %v19471_v11  ;;  %10215 = vmatprep.subr.bf16.mxu0 %v19473_v17  ;;  %v19499_v11 = vunpack.c.h.s8.bf16 %v19498_v43  ;;  %v19501_v17 = vunpack.c.h.s8.bf16 %v19500_v48 }
 0x425   :  { %10279 = vmatprep.subr.bf16.mxu1 %v19475_v57  ;;  %v19503_v57 = vunpack.c.h.s8.bf16 %v19502_v8 }
 0x427   :  { %10217 = vmatpush1.bf16.msra.mxu0 %v19477_v59  ;;  %v19505_v59 = vunpack.c.l.s8.bf16 %v19498_v43  ;;  %v19526_v43 = vld [vmem:[#allocation91_spill] sm:$0xff] }
 0x428   :  { %10281 = vmatpush1.bf16.msra.mxu1 %v19479_v53  ;;  %10219 = vmatprep.subr.bf16.mxu0 %v19480_v62  ;;  %v19507_v53 = vunpack.c.l.s8.bf16 %v19502_v8  ;;  %v19508_v62 = vld [vmem:[#allocation54_spill] sm:$0xff]  ;;  %v19530_v8 = vunpack.c.l.s8.bf16 %v19524_v12 }
 0x429   :  { %10283 = vmatprep.subr.bf16.mxu1 %v19481_v27  ;;  %v19509_v27 = vunpack.c.h.s8.bf16 %v19508_v62  ;;  %v19516_v60 = vunpack.c.l.s8.bf16 %v19508_v62  ;;  %v19536_v62 = vld [vmem:[#allocation64_spill] sm:$0xff] }
 0x42b   :  { %10221 = vmatpush1.bf16.msra.mxu0 %v19482_v28  ;;  %v19510_v28 = vld [vmem:[#allocation85_spill] sm:$0xff] }
 0x42c   :  { %10285 = vmatpush1.bf16.msra.mxu1 %v19483_v23  ;;  %10223 = vmatprep.subr.bf16.mxu0 %v19485_v29  ;;  %v19511_v23 = vunpack.c.h.s8.bf16 %v19510_v28  ;;  %v19513_v29 = vunpack.c.h.s8.bf16 %v19512_v32 }
 0x42d   :  { %10287 = vmatprep.subr.bf16.mxu1 %v19487_v24  ;;  %v19515_v24 = vunpack.c.h.s8.bf16 %v19514_v63 }
 0x42f   :  { %10225 = vmatpush1.bf16.msra.mxu0 %v19489_v7  ;;  %v19517_v7 = vunpack.c.l.s8.bf16 %v19510_v28  ;;  %v19538_v28 = vld [vmem:[#allocation95_spill] sm:$0xff] }
 0x430   :  { %10289 = vmatpush1.bf16.msra.mxu1 %v19491_v5  ;;  %10227 = vmatprep.subr.bf16.mxu0 %v19492_v46  ;;  %v19519_v5 = vunpack.c.l.s8.bf16 %v19514_v63  ;;  %v19520_v46 = vld [vmem:[#allocation58_spill] sm:$0xff]  ;;  %v19542_v63 = vunpack.c.l.s8.bf16 %v19536_v62 }
 0x431   :  { %10291 = vmatprep.subr.bf16.mxu1 %v19493_v39  ;;  %v19521_v39 = vunpack.c.h.s8.bf16 %v19520_v46  ;;  %v19528_v48 = vunpack.c.l.s8.bf16 %v19520_v46  ;;  %v19548_v46 = vld [vmem:[#allocation68_spill] sm:$0xff] }
 0x433   :  { %10229 = vmatpush1.bf16.msra.mxu0 %v19494_v18  ;;  %v19522_v18 = vld [vmem:[#allocation89_spill] sm:$0xff] }
 0x434   :  { %10293 = vmatpush1.bf16.msra.mxu1 %v19495_v45  ;;  %10231 = vmatprep.subr.bf16.mxu0 %v19497_v3  ;;  %v19523_v45 = vunpack.c.h.s8.bf16 %v19522_v18  ;;  %v19525_v3 = vunpack.c.h.s8.bf16 %v19524_v12 }
 0x435   :  { %10295 = vmatprep.subr.bf16.mxu1 %v19499_v11  ;;  %v19527_v11 = vunpack.c.h.s8.bf16 %v19526_v43 }
 0x437   :  { %10233 = vmatpush1.bf16.msra.mxu0 %v19501_v17  ;;  %v19529_v17 = vunpack.c.l.s8.bf16 %v19522_v18  ;;  %v19550_v18 = vld [vmem:[#allocation99_spill] sm:$0xff] }
 0x438   :  { %10297 = vmatpush1.bf16.msra.mxu1 %v19503_v57  ;;  %10235 = vmatprep.subr.bf16.mxu0 %v19504_v31  ;;  %v19531_v57 = vunpack.c.l.s8.bf16 %v19526_v43  ;;  %v19532_v31 = vld [vmem:[#allocation62_spill] sm:$0xff]  ;;  %v19554_v43 = vunpack.c.l.s8.bf16 %v19548_v46 }
 0x439   :  { %10299 = vmatprep.subr.bf16.mxu1 %v19505_v59  ;;  %v19533_v59 = vunpack.c.h.s8.bf16 %v19532_v31  ;;  %v19540_v32 = vunpack.c.l.s8.bf16 %v19532_v31  ;;  %v19560_v31 = vld [vmem:[#allocation72_spill] sm:$0xff] }
 0x43b   :  { %10237 = vmatpush1.bf16.msra.mxu0 %v19506_v1  ;;  %v19534_v1 = vld [vmem:[#allocation93_spill] sm:$0xff] }
 0x43c   :  { %10301 = vmatpush1.bf16.msra.mxu1 %v19507_v53  ;;  %10239 = vmatprep.subr.bf16.mxu0 %v19509_v27  ;;  %v19535_v53 = vunpack.c.h.s8.bf16 %v19534_v1  ;;  %v19537_v27 = vunpack.c.h.s8.bf16 %v19536_v62 }
 0x43d   :  { %10303 = vmatprep.subr.bf16.mxu1 %v19511_v23  ;;  %v19539_v23 = vunpack.c.h.s8.bf16 %v19538_v28 }
 0x43f   :  { %10241 = vmatpush2.bf16.msra.mxu0 %v19513_v29  ;;  %v19541_v29 = vunpack.c.l.s8.bf16 %v19534_v1  ;;  %v19562_v1 = vld [vmem:[#allocation103_spill] sm:$0xff] }
 0x440   :  { %10305 = vmatpush2.bf16.msra.mxu1 %v19515_v24  ;;  %10243 = vmatprep.subr.bf16.mxu0 %v19516_v60  ;;  %v19543_v24 = vunpack.c.l.s8.bf16 %v19538_v28  ;;  %v19544_v60 = vld [vmem:[#allocation66_spill] sm:$0xff]  ;;  %v19566_v28 = vunpack.c.l.s8.bf16 %v19560_v31 }
 0x441   :  { %10307 = vmatprep.subr.bf16.mxu1 %v19517_v7  ;;  %v19545_v7 = vunpack.c.h.s8.bf16 %v19544_v60  ;;  %v19552_v12 = vunpack.c.l.s8.bf16 %v19544_v60  ;;  %v19572_v60 = vld [vmem:[#allocation76_spill] sm:$0xff] }
 0x443   :  { %10245 = vmatpush2.bf16.msra.mxu0 %v19518_v58  ;;  %v19546_v58 = vld [vmem:[#allocation97_spill] sm:$0xff] }
 0x444   :  { %10309 = vmatpush2.bf16.msra.mxu1 %v19519_v5  ;;  %10247 = vmatprep.subr.bf16.mxu0 %v19521_v39  ;;  %v19547_v5 = vunpack.c.h.s8.bf16 %v19546_v58  ;;  %v19549_v39 = vunpack.c.h.s8.bf16 %v19548_v46 }
 0x445   :  { %10311 = vmatprep.subr.bf16.mxu1 %v19523_v45  ;;  %v19551_v45 = vunpack.c.h.s8.bf16 %v19550_v18 }
 0x447   :  { %10249 = vmatpush2.bf16.msra.mxu0 %v19525_v3  ;;  %v19553_v3 = vunpack.c.l.s8.bf16 %v19546_v58  ;;  %v19574_v58 = vld [vmem:[#allocation107_spill] sm:$0xff] }
 0x448   :  { %10313 = vmatpush2.bf16.msra.mxu1 %v19527_v11  ;;  %10251 = vmatprep.subr.bf16.mxu0 %v19528_v48  ;;  %v19555_v11 = vunpack.c.l.s8.bf16 %v19550_v18  ;;  %v19556_v48 = vld [vmem:[#allocation70_spill] sm:$0xff]  ;;  %v19578_v18 = vunpack.c.l.s8.bf16 %v19572_v60 }
 0x449   :  { %10315 = vmatprep.subr.bf16.mxu1 %v19529_v17  ;;  %v19557_v17 = vunpack.c.h.s8.bf16 %v19556_v48  ;;  %v19564_v62 = vunpack.c.l.s8.bf16 %v19556_v48  ;;  %v15810_v48 = vpop.f32.mrf.mxu0 }
 0x44b   :  { %10253 = vmatpush2.bf16.msra.mxu0 %v19530_v8  ;;  %v19558_v8 = vld [vmem:[#allocation101_spill] sm:$0xff] }
 0x44c   :  { %10317 = vmatpush2.bf16.msra.mxu1 %v19531_v57  ;;  %10255 = vmatprep.subr.bf16.mxu0 %v19533_v59  ;;  %v19559_v57 = vunpack.c.h.s8.bf16 %v19558_v8  ;;  %v19561_v59 = vunpack.c.h.s8.bf16 %v19560_v31  ;;  %v19586_v31 = vld [vmem:[#allocation111_spill] sm:$0xff] }
 0x44d   :  { %10319 = vmatprep.subr.bf16.mxu1 %v19535_v53  ;;  %v19563_v53 = vunpack.c.h.s8.bf16 %v19562_v1 }
 0x44f   :  { %10257 = vmatpush2.bf16.msra.mxu0 %v19537_v27  ;;  %v19565_v27 = vunpack.c.l.s8.bf16 %v19558_v8  ;;  %v19584_v8 = vld [vmem:[#allocation80_spill] sm:$0xff] }
 0x450   :  { %10321 = vmatpush2.bf16.msra.mxu1 %v19539_v23  ;;  %10259 = vmatprep.subr.bf16.mxu0 %v19540_v32  ;;  %v19567_v23 = vunpack.c.l.s8.bf16 %v19562_v1  ;;  %v19568_v32 = vld [vmem:[#allocation74_spill] sm:$0xff] }
 0x451   :  { %10323 = vmatprep.subr.bf16.mxu1 %v19541_v29  ;;  %v19569_v29 = vunpack.c.h.s8.bf16 %v19568_v32  ;;  %v19576_v46 = vunpack.c.l.s8.bf16 %v19568_v32 }
 0x453   :  { %10261 = vmatpush2.bf16.msra.mxu0 %v19542_v63  ;;  %v19570_v63 = vld [vmem:[#allocation105_spill] sm:$0xff] }
 0x454   :  { %10325 = vmatpush2.bf16.msra.mxu1 %v19543_v24  ;;  %10263 = vmatprep.subr.bf16.mxu0 %v19545_v7  ;;  %v19571_v24 = vunpack.c.h.s8.bf16 %v19570_v63  ;;  %v19573_v7 = vunpack.c.h.s8.bf16 %v19572_v60  ;;  %v19594_v60 = vld [vmem:[#allocation113_spill] sm:$0xff] }
 0x455   :  { %10327 = vmatprep.subr.bf16.mxu1 %v19547_v5  ;;  %v19575_v5 = vunpack.c.h.s8.bf16 %v19574_v58 }
 0x457   :  { %10265 = vmatpush2.bf16.msra.mxu0 %v19549_v39  ;;  %v19577_v39 = vunpack.c.l.s8.bf16 %v19570_v63  ;;  %v19592_v63 = vld [vmem:[#allocation82_spill] sm:$0xff] }
 0x458   :  { %10329 = vmatpush2.bf16.msra.mxu1 %v19551_v45  ;;  %10267 = vmatprep.subr.bf16.mxu0 %v19552_v12  ;;  %v19579_v45 = vunpack.c.l.s8.bf16 %v19574_v58  ;;  %v19580_v12 = vld [vmem:[#allocation78_spill] sm:$0xff]  ;;  %v19596_v58 = vld [vmem:[#allocation84_spill] sm:$0xff] }
 0x459   :  { %10331 = vmatprep.subr.bf16.mxu1 %v19553_v3  ;;  %v19581_v3 = vunpack.c.h.s8.bf16 %v19580_v12  ;;  %v19588_v1 = vunpack.c.l.s8.bf16 %v19580_v12  ;;  %v19601_v12 = vunpack.c.l.s8.bf16 %v19592_v63 }
 0x45b   :  { %10269 = vmatpush2.bf16.msra.mxu0 %v19554_v43  ;;  %v19582_v43 = vld [vmem:[#allocation109_spill] sm:$0xff] }
 0x45c   :  { %10333 = vmatpush2.bf16.msra.mxu1 %v19555_v11  ;;  %10335 = vmatprep.subr.bf16.mxu0 %v19557_v17  ;;  %v19583_v11 = vunpack.c.h.s8.bf16 %v19582_v43  ;;  %v15812_v17 = vpop.f32.mrf.mxu1 }
 0x45d   :  { %10399 = vmatprep.subr.bf16.mxu1 %v19559_v57  ;;  %v19585_v57 = vunpack.c.h.s8.bf16 %v19584_v8 }
 0x45e   :  { %6402 = vmatmul.mubr.f32.vlgmr.msra.gmra.mxu0 %v15500_v40 }
 0x45f   :  { %6473 = vmatmul.mubr.f32.vlgmr.msra.gmra.mxu1 %v15346_v44  ;;  %10337 = vmatpush1.bf16.msra.mxu0 %v19561_v59  ;;  %v19587_v59 = vunpack.c.h.s8.bf16 %v19586_v31 }
 0x460   :  { %10401 = vmatpush1.bf16.msra.mxu1 %v19563_v53  ;;  %10339 = vmatprep.subr.bf16.mxu0 %v19564_v62  ;;  %v19589_v53 = vunpack.c.l.s8.bf16 %v19582_v43  ;;  %v15822_v62 = vpop.f32.mrf.mxu0 }
 0x461   :  { %10403 = vmatprep.subr.bf16.mxu1 %v19565_v27  ;;  %6543 = vmatprep.mubr.f32.mxu0 %v15367_v15  ;;  %v15824_v27 = vpop.f32.mrf.mxu1 }
 0x462   :  { %6614 = vmatprep.mubr.f32.mxu1 %v15370_v56  ;;  %v15830_v32 = vpop.f32.mrf.mxu0 }
 0x463   :  { %10341 = vmatpush1.bf16.msra.mxu0 %v19566_v28  ;;  %v19590_v28 = vunpack.c.l.s8.bf16 %v19584_v8  ;;  %v19604_v8 = vunpack.c.l.s8.bf16 %v19596_v58 }
 0x464   :  { %10405 = vmatpush1.bf16.msra.mxu1 %v19567_v23  ;;  %10343 = vmatprep.subr.bf16.mxu0 %v19569_v29  ;;  %v19591_v23 = vunpack.c.l.s8.bf16 %v19586_v31  ;;  %v15832_v29 = vpop.f32.mrf.mxu1  ;;  %v19606_v31 = vld [vmem:[#allocation86_spill] sm:$0xff] }
 0x465   :  { %10407 = vmatprep.subr.bf16.mxu1 %v19571_v24  ;;  %v19593_v24 = vunpack.c.h.s8.bf16 %v19592_v63  ;;  %v19612_v63 = vld [vmem:[#allocation88_spill] sm:$0xff] }
 0x467   :  { %10345 = vmatpush1.bf16.msra.mxu0 %v19573_v7  ;;  %v19595_v7 = vunpack.c.h.s8.bf16 %v19594_v60 }
 0x468   :  { %10409 = vmatpush1.bf16.msra.mxu1 %v19575_v5  ;;  %10347 = vmatprep.subr.bf16.mxu0 %v19576_v46  ;;  %v19597_v5 = vunpack.c.h.s8.bf16 %v19596_v58  ;;  %v19598_v46 = vld [vmem:[#allocation115_spill] sm:$0xff] }
 0x469   :  { %10411 = vmatprep.subr.bf16.mxu1 %v19577_v39  ;;  %v19599_v39 = vunpack.c.h.s8.bf16 %v19598_v46 }
 0x46b   :  { %10349 = vmatpush1.bf16.msra.mxu0 %v19578_v18  ;;  %v15842_v18 = vpop.f32.mrf.mxu0 }
 0x46c   :  { %10413 = vmatpush1.bf16.msra.mxu1 %v19579_v45  ;;  %10351 = vmatprep.subr.bf16.mxu0 %v19581_v3  ;;  %v15844_v45 = vpop.f32.mrf.mxu1  ;;  %v19602_v3 = vunpack.c.l.s8.bf16 %v19594_v60  ;;  %v19614_v60 = vld [vmem:[#allocation119_spill] sm:$0xff] }
 0x46d   :  { %10415 = vmatprep.subr.bf16.mxu1 %v19583_v11  ;;  %19600 = vst [vmem:[#allocation11_spill] sm:$0xff] %v15844_v45  ;;  %v15850_v43 = vpop.f32.mrf.mxu0 }
 0x46e   :  { %v15852_v11 = vpop.f32.mrf.mxu1 }
 0x46f   :  { %10353 = vmatpush1.bf16.msra.mxu0 %v19585_v57  ;;  %19603 = vst [vmem:[#allocation27_spill] sm:$0xff] %v15852_v11  ;;  %v19605_v57 = vunpack.c.l.s8.bf16 %v19598_v46  ;;  %v19618_v46 = vunpack.c.l.s8.bf16 %v19606_v31 }
 0x470   :  { %10417 = vmatpush1.bf16.msra.mxu1 %v19587_v59  ;;  %10355 = vmatprep.subr.bf16.mxu0 %v19588_v1  ;;  %v19607_v59 = vunpack.c.h.s8.bf16 %v19606_v31  ;;  %v19608_v1 = vld [vmem:[#allocation117_spill] sm:$0xff] }
 0x471   :  { %10419 = vmatprep.subr.bf16.mxu1 %v19589_v53  ;;  %v19609_v53 = vunpack.c.h.s8.bf16 %v19608_v1 }
 0x473   :  { %10357 = vmatpush1.bf16.msra.mxu0 %v19590_v28  ;;  %v15862_v28 = vpop.f32.mrf.mxu0 }
 0x474   :  { %10421 = vmatpush1.bf16.msra.mxu1 %v19591_v23  ;;  %10359 = vmatprep.subr.bf16.mxu0 %v19593_v24  ;;  %19610 = vst [vmem:[#allocation12_spill] sm:$0xff] %v15862_v28  ;;  %v15864_v23 = vpop.f32.mrf.mxu1  ;;  %v19613_v24 = vunpack.c.h.s8.bf16 %v19612_v63 }
 0x475   :  { %10423 = vmatprep.subr.bf16.mxu1 %v19595_v7  ;;  %19611 = vst [vmem:[#allocation29_spill] sm:$0xff] %v15864_v23  ;;  %v19615_v7 = vunpack.c.h.s8.bf16 %v19614_v60  ;;  %v15870_v58 = vpop.f32.mrf.mxu0  ;;  %v19691_v23 = vld [vmem:[#allocation142_spill] sm:$0xff] }
 0x476   :  { %19616 = vst [vmem:[#allocation13_spill] sm:$0xff] %v15870_v58 }
 0x477   :  { %10361 = vmatpush1.bf16.msra.mxu0 %v19597_v5  ;;  %v15872_v5 = vpop.f32.mrf.mxu1 }
 0x478   :  { %10425 = vmatpush1.bf16.msra.mxu1 %v19599_v39  ;;  %10363 = vmatprep.subr.bf16.mxu0 %v19601_v12  ;;  %19617 = vst [vmem:[#allocation31_spill] sm:$0xff] %v15872_v5  ;;  %v19619_v39 = vunpack.c.l.s8.bf16 %v19608_v1  ;;  %v19620_v12 = vunpack.c.l.s8.bf16 %v19612_v63 }
 0x479   :  { %10427 = vmatprep.subr.bf16.mxu1 %v19602_v3  ;;  %v19621_v3 = vunpack.c.l.s8.bf16 %v19614_v60 }
 0x47b   :  { %10365 = vmatpush1.bf16.msra.mxu0 %v19604_v8  ;;  %v15882_v8 = vpop.f32.mrf.mxu0 }
 0x47c   :  { %10429 = vmatpush1.bf16.msra.mxu1 %v19605_v57  ;;  %10367 = vmatprep.subr.bf16.mxu0 %v19607_v59  ;;  %19622 = vst [vmem:[#allocation14_spill] sm:$0xff] %v15882_v8  ;;  %v15884_v57 = vpop.f32.mrf.mxu1  ;;  %v19624_v59 = vld [vmem:[#allocation90_spill] sm:$0xff] }
 0x47d   :  { %10431 = vmatprep.subr.bf16.mxu1 %v19609_v53  ;;  %19623 = vst [vmem:[#allocation33_spill] sm:$0xff] %v15884_v57  ;;  %v19625_v53 = vunpack.c.h.s8.bf16 %v19624_v59  ;;  %v15890_v31 = vpop.f32.mrf.mxu0 }
 0x47e   :  { %19628 = vst [vmem:[#allocation15_spill] sm:$0xff] %v15890_v31  ;;  %v15892_v1 = vpop.f32.mrf.mxu1 }
 0x47f   :  { %10369 = vmatpush2.bf16.msra.mxu0 %v19613_v24  ;;  %v19626_v24 = vld [vmem:[#allocation121_spill] sm:$0xff]  ;;  %19629 = vst [vmem:[#allocation35_spill] sm:$0xff] %v15892_v1 }
 0x480   :  { %10433 = vmatpush2.bf16.msra.mxu1 %v19615_v7  ;;  %10371 = vmatprep.subr.bf16.mxu0 %v19618_v46  ;;  %v19627_v7 = vunpack.c.h.s8.bf16 %v19626_v24  ;;  %v19630_v46 = vld [vmem:[#allocation92_spill] sm:$0xff]  ;;  %v15904_v50 = vpop.f32.mrf.mxu1 }
 0x481   :  { %10435 = vmatprep.subr.bf16.mxu1 %v19619_v39  ;;  %v19631_v63 = vunpack.c.h.s8.bf16 %v19630_v46  ;;  %v19632_v39 = vld [vmem:[#allocation123_spill] sm:$0xff]  ;;  %19637 = vst [vmem:[#allocation37_spill] sm:$0xff] %v15904_v50 }
 0x482   :  { %v19633_v60 = vunpack.c.h.s8.bf16 %v19632_v39  ;;  %v19639_v37 = vunpack.c.l.s8.bf16 %v19632_v39  ;;  %v15912_v42 = vpop.f32.mrf.mxu1  ;;  %v19648_v50 = vld [vmem:[#allocation127_spill] sm:$0xff] }
 0x483   :  { %10373 = vmatpush2.bf16.msra.mxu0 %v19620_v12  ;;  %v19634_v12 = vunpack.c.l.s8.bf16 %v19624_v59  ;;  %19641 = vst [vmem:[#allocation39_spill] sm:$0xff] %v15912_v42 }
 0x484   :  { %10437 = vmatpush2.bf16.msra.mxu1 %v19621_v3  ;;  %10375 = vmatprep.subr.bf16.mxu0 %v19625_v53  ;;  %v19635_v3 = vunpack.c.l.s8.bf16 %v19626_v24  ;;  %v15902_v53 = vpop.f32.mrf.mxu0  ;;  %v15924_v39 = vpop.f32.mrf.mxu1 }
 0x485   :  { %10439 = vmatprep.subr.bf16.mxu1 %v19627_v7  ;;  %19636 = vst [vmem:[#allocation16_spill] sm:$0xff] %v15902_v53  ;;  %v19638_v7 = vunpack.c.l.s8.bf16 %v19630_v46  ;;  %v19649_v53 = vunpack.c.h.s8.bf16 %v19648_v50  ;;  %19651 = vst [vmem:[#allocation41_spill] sm:$0xff] %v15924_v39  ;;  %v19660_v39 = vld [vmem:[#allocation129_spill] sm:$0xff] }
 0x486   :  { %v15932_v42 = vpop.f32.mrf.mxu1 }
 0x487   :  { %10377 = vmatpush2.bf16.msra.mxu0 %v19631_v63  ;;  %v15910_v63 = vpop.f32.mrf.mxu0  ;;  %19655 = vst [vmem:[#allocation43_spill] sm:$0xff] %v15932_v42  ;;  %v19666_v42 = vld [vmem:[#allocation131_spill] sm:$0xff] }
 0x488   :  { %10441 = vmatpush2.bf16.msra.mxu1 %v19633_v60  ;;  %10379 = vmatprep.subr.bf16.mxu0 %v19634_v12  ;;  %19640 = vst [vmem:[#allocation17_spill] sm:$0xff] %v15910_v63  ;;  %v19642_v60 = vld [vmem:[#allocation94_spill] sm:$0xff]  ;;  %v19644_v12 = vld [vmem:[#allocation125_spill] sm:$0xff]  ;;  %v19661_v63 = vunpack.c.h.s8.bf16 %v19660_v39 }
 0x489   :  { %10443 = vmatprep.subr.bf16.mxu1 %v19635_v3  ;;  %v19643_v59 = vunpack.c.h.s8.bf16 %v19642_v60  ;;  %v19645_v24 = vunpack.c.h.s8.bf16 %v19644_v12  ;;  %v19646_v3 = vld [vmem:[#allocation96_spill] sm:$0xff]  ;;  %v15922_v46 = vpop.f32.mrf.mxu0 }
 0x48a   :  { %v19647_v13 = vunpack.c.h.s8.bf16 %v19646_v3  ;;  %19650 = vst [vmem:[#allocation18_spill] sm:$0xff] %v15922_v46 }
 0x48b   :  { %10381 = vmatpush2.bf16.msra.mxu0 %v19638_v7  ;;  %v19653_v7 = vunpack.c.l.s8.bf16 %v19644_v12  ;;  %v15944_v12 = vpop.f32.mrf.mxu1 }
 0x48c   :  { %10445 = vmatpush2.bf16.msra.mxu1 %v19639_v37  ;;  %10383 = vmatprep.subr.bf16.mxu0 %v19643_v59  ;;  %v19652_v37 = vunpack.c.l.s8.bf16 %v19642_v60  ;;  %v15930_v59 = vpop.f32.mrf.mxu0  ;;  %19663 = vst [vmem:[#allocation45_spill] sm:$0xff] %v15944_v12  ;;  %v19672_v12 = vunpack.c.l.s8.bf16 %v19666_v42 }
 0x48d   :  { %10447 = vmatprep.subr.bf16.mxu1 %v19645_v24  ;;  %19654 = vst [vmem:[#allocation19_spill] sm:$0xff] %v15930_v59  ;;  %v19656_v24 = vunpack.c.l.s8.bf16 %v19646_v3  ;;  %v19667_v59 = vunpack.c.h.s8.bf16 %v19666_v42  ;;  %v19678_v42 = vld [vmem:[#allocation104_spill] sm:$0xff] }
 0x48e   :  { %v15942_v60 = vpop.f32.mrf.mxu0 }
 0x48f   :  { %10385 = vmatpush2.bf16.msra.mxu0 %v19647_v13  ;;  %v19657_v13 = vunpack.c.l.s8.bf16 %v19648_v50  ;;  %19662 = vst [vmem:[#allocation20_spill] sm:$0xff] %v15942_v60  ;;  %v6048_v50 = vpop.f32.mrf.mxu1 }
 0x490   :  { %10449 = vmatpush2.bf16.msra.mxu1 %v19649_v53  ;;  %10387 = vmatprep.subr.bf16.mxu0 %v19652_v37  ;;  %v19658_v53 = vld [vmem:[#allocation98_spill] sm:$0xff]  ;;  %v19664_v37 = vld [vmem:[#allocation100_spill] sm:$0xff]  ;;  %v15950_v3 = vpop.f32.mrf.mxu0 }
 0x491   :  { %10451 = vmatprep.subr.bf16.mxu1 %v19653_v7  ;;  %v19659_v46 = vunpack.c.h.s8.bf16 %v19658_v53  ;;  %v19665_v7 = vunpack.c.h.s8.bf16 %v19664_v37  ;;  %19668 = vst [vmem:[#allocation21_spill] sm:$0xff] %v15950_v3  ;;  %v6050_v60 = vpop.f32.mrf.mxu1  ;;  %v19676_v3 = vld [vmem:[#allocation133_spill] sm:$0xff] }
 0x492   :  { %v19677_v57 = vunpack.c.h.s8.bf16 %v19676_v3 }
 0x493   :  { %10389 = vmatpush2.bf16.msra.mxu0 %v19656_v24  ;;  %v19669_v24 = vunpack.c.l.s8.bf16 %v19658_v53 }
 0x494   :  { %10453 = vmatpush2.bf16.msra.mxu1 %v19657_v13  ;;  %10391 = vmatprep.subr.bf16.mxu0 %v19659_v46  ;;  %v19670_v46 = vunpack.c.l.s8.bf16 %v19660_v39  ;;  %v19671_v13 = vunpack.c.l.s8.bf16 %v19664_v37 }
 0x495   :  { %10455 = vmatprep.subr.bf16.mxu1 %v19661_v63  ;;  %v8016_v63 = vlaneseq }
 0x497   :  { %10393 = vmatpush2.bf16.msra.mxu0 %v19665_v7  ;;  %v15960_v7 = vpop.f32.mrf.mxu0  ;;  %v15966_v53 = vshrl.u32 %v8016_v63, 7 }
 0x498   :  { %10457 = vmatpush2.bf16.msra.mxu1 %v19667_v59  ;;  %10395 = vmatprep.subr.bf16.mxu0 %v19669_v24  ;;  %19673 = vst [vmem:[#allocation47_spill] sm:$0xff] %v15960_v7  ;;  %v19674_v59 = vld [vmem:[#allocation102_spill] sm:$0xff] }
 0x499   :  { %10459 = vmatprep.subr.bf16.mxu1 %v19670_v46  ;;  %v19675_v1 = vunpack.c.h.s8.bf16 %v19674_v59  ;;  %v19680_v46 = vld [vmem:[#allocation135_spill] sm:$0xff]  ;;  %v19682_v8 = vunpack.c.l.s8.bf16 %v19674_v59  ;;  %v15979_v31 = vsub.s32 0, %v15966_v53 }
 0x49b   :  { %10397 = vmatpush2.bf16.msra.mxu0 %v19671_v13  ;;  %v19681_v13 = vunpack.c.h.s8.bf16 %v19680_v46 }
 0x49c   :  { %10461 = vmatpush2.bf16.msra.mxu1 %v19672_v12  ;;  %10463 = vmatprep.subr.bf16.mxu0 %v19675_v1  ;;  %v19679_v12 = vunpack.c.h.s8.bf16 %v19678_v42 }
 0x49d   :  { %10527 = vmatprep.subr.bf16.mxu1 %v19677_v57  ;;  %v19683_v57 = vunpack.c.l.s8.bf16 %v19676_v3  ;;  %v19685_v3 = vunpack.c.l.s8.bf16 %v19678_v42 }
 0x49e   :  { %v6119_v39 = vpop.f32.mrf.mxu0  ;;  %6544 = vmatmul.mubr.f32.vlgmr.msra.gmra.mxu0 %v15497_v51 }
 0x49f   :  { %v6190_v24 = vpop.f32.mrf.mxu1  ;;  %6615 = vmatmul.mubr.f32.vlgmr.msra.gmra.mxu1 %v15500_v40  ;;  %v6120_v37 = vadd.f32 %v6119_v39, %v6048_v50  ;;  %10465 = vmatpush1.bf16.msra.mxu0 %v19679_v12  ;;  %v15982_v50 = vsub.s32 1, %v15966_v53  ;;  %v15986_v39 = vld [vmem:[#allocation7] sm:$0xff]  ;;  %v19684_v12 = vld [vmem:[#allocation139_spill] sm:$0xff] }
 0x4a0   :  { %10529 = vmatpush1.bf16.msra.mxu1 %v19681_v13  ;;  %v6121_v7 = vpop.f32.mrf.mxu0  ;;  %10467 = vmatprep.subr.bf16.mxu0 %v19682_v8  ;;  %v8019_v58 = vrot.slane %v15986_v39, %v15979_v31 }
 0x4a1   :  { %v6192_v1 = vpop.f32.mrf.mxu1  ;;  %10531 = vmatprep.subr.bf16.mxu1 %v19683_v57  ;;  %v6191_v63 = vadd.f32 %v6190_v24, %v6120_v37  ;;  %v6122_v5 = vadd.f32 %v6121_v7, %v6050_v60  ;;  %6685 = vmatprep.mubr.f32.mxu0 %v15164_v20  ;;  %v19686_v24 = vunpack.c.l.s8.bf16 %v19680_v46  ;;  %v19687_v37 = vld [vmem:[#allocation106_spill] sm:$0xff]  ;;  %v19689_v7 = vld [vmem:[#allocation137_spill] sm:$0xff]  ;;  %v19694_v46 = vld [vmem:[#allocation140_spill] sm:$0xff] }
 0x4a2   :  { %6756 = vmatprep.mubr.f32.mxu1 %v15367_v15  ;;  %v19688_v60 = vunpack.c.h.s8.bf16 %v19687_v37  ;;  %v19690_v13 = vunpack.c.h.s8.bf16 %v19689_v7 }
 0x4a3   :  { %v7974_v59 = vsub.f32 %v19684_v12, %v6191_v63  ;;  %v6193_v8 = vadd.f32 %v6192_v1, %v6122_v5  ;;  %10469 = vmatpush1.bf16.msra.mxu0 %v19685_v3  ;;  %v8023_v5 = vrot.slane %v15986_v39, %v15982_v50  ;;  %v19692_v1 = vld [vmem:[#allocation108_spill] sm:$0xff]  ;;  %v19695_v12 = vunpack.c.h.s8.bf16 %v19694_v46 }
 0x4a4   :  { %10533 = vmatpush1.bf16.msra.mxu1 %v19686_v24  ;;  %10471 = vmatprep.subr.bf16.mxu0 %v19688_v60  ;;  %v19693_v63 = vunpack.c.h.s8.bf16 %v19692_v1  ;;  %v19696_v3 = vunpack.c.l.s8.bf16 %v19687_v37  ;;  %v19704_v37 = vld [vmem:[#allocation112_spill] sm:$0xff] }
 0x4a5   :  { %10535 = vmatprep.subr.bf16.mxu1 %v19690_v13  ;;  %v7992_v57 = vand.u32 2147483647, %v7974_v59  ;;  %v7975_v28 = vsub.f32 %v19691_v23, %v6193_v8  ;;  %v19697_v59 = vunpack.c.l.s8.bf16 %v19689_v7  ;;  %v19698_v23 = vunpack.c.l.s8.bf16 %v19692_v1  ;;  %v19700_v8 = vld [vmem:[#allocation110_spill] sm:$0xff]  ;;  %v19706_v7 = vld [vmem:[#allocation145_spill] sm:$0xff] }
 0x4a6   :  { %v19711_v1 = vunpack.c.l.s8.bf16 %v19706_v7 }
 0x4a7   :  { %v7993_v42 = vand.u32 2147483647, %v7975_v28  ;;  %10473 = vmatpush1.bf16.msra.mxu0 %v19693_v63  ;;  %v8106_v24 = vmul.f32 %v8019_v58, %v7992_v57  ;;  %v19699_v28 = vunpack.c.l.s8.bf16 %v19694_v46  ;;  %v19701_v63 = vunpack.c.h.s8.bf16 %v19700_v8  ;;  %v19712_v46 = vld [vmem:[#allocation114_spill] sm:$0xff] }
 0x4a8   :  { %10537 = vmatpush1.bf16.msra.mxu1 %v19695_v12  ;;  %10475 = vmatprep.subr.bf16.mxu0 %v19696_v3  ;;  %v19702_v12 = vld [vmem:[#allocation143_spill] sm:$0xff]  ;;  %v19705_v3 = vunpack.c.h.s8.bf16 %v19704_v37  ;;  %v19707_v58 = vunpack.c.h.s8.bf16 %v19706_v7  ;;  %v19708_v57 = vunpack.c.l.s8.bf16 %v19700_v8  ;;  %v19724_v7 = vld [vmem:[#allocation118_spill] sm:$0xff] }
 0x4a9   :  { %10539 = vmatprep.subr.bf16.mxu1 %v19697_v59  ;;  %v8107_v60 = vmul.f32 %v8023_v5, %v7993_v42  ;;  %v19703_v45 = vunpack.c.h.s8.bf16 %v19702_v12  ;;  %v19709_v5 = vunpack.c.l.s8.bf16 %v19702_v12  ;;  %v19710_v42 = vunpack.c.l.s8.bf16 %v19704_v37  ;;  %v19714_v59 = vld [vmem:[#allocation147_spill] sm:$0xff] }
 0x4aa   :  { %v19721_v12 = vunpack.c.l.s8.bf16 %v19714_v59 }
 0x4ab   :  { %v16010_v13 = vadd.f32 %v8107_v60, %v8106_v24  ;;  %10477 = vmatpush1.bf16.msra.mxu0 %v19698_v23  ;;  %v19715_v24 = vunpack.c.h.s8.bf16 %v19714_v59  ;;  %v19716_v60 = vld [vmem:[#allocation116_spill] sm:$0xff]  ;;  %v19732_v59 = vunpack.c.l.s8.bf16 %v19724_v7 }
 0x4ac   :  { %10541 = vmatpush1.bf16.msra.mxu1 %v19699_v28  ;;  %10479 = vmatprep.subr.bf16.mxu0 %v19701_v63  ;;  %v19717_v23 = vunpack.c.h.s8.bf16 %v19716_v60  ;;  %v19718_v28 = vld [vmem:[#allocation149_spill] sm:$0xff]  ;;  %v19720_v63 = vunpack.c.l.s8.bf16 %v19712_v46  ;;  %v19722_v37 = vunpack.c.l.s8.bf16 %v19716_v60 }
 0x4ad   :  { %10543 = vmatprep.subr.bf16.mxu1 %v19703_v45  ;;  %v19713_v45 = vunpack.c.h.s8.bf16 %v19712_v46  ;;  %v19719_v8 = vunpack.c.h.s8.bf16 %v19718_v28  ;;  %v19730_v46 = vld [vmem:[#allocation153_spill] sm:$0xff] }
 0x4af   :  { %10481 = vmatpush1.bf16.msra.mxu0 %v19705_v3  ;;  %v19723_v3 = vunpack.c.l.s8.bf16 %v19718_v28  ;;  %v19736_v28 = vld [vmem:[#allocation122_spill] sm:$0xff] }
 0x4b0   :  { %10545 = vmatpush1.bf16.msra.mxu1 %v19707_v58  ;;  %10483 = vmatprep.subr.bf16.mxu0 %v19708_v57  ;;  %v19725_v58 = vunpack.c.h.s8.bf16 %v19724_v7  ;;  %v19726_v57 = vld [vmem:[#allocation151_spill] sm:$0xff]  ;;  %v19742_v7 = vld [vmem:[#allocation157_spill] sm:$0xff] }
 0x4b1   :  { %10547 = vmatprep.subr.bf16.mxu1 %v19709_v5  ;;  %v19727_v5 = vunpack.c.h.s8.bf16 %v19726_v57 }
 0x4b3   :  { %10485 = vmatpush1.bf16.msra.mxu0 %v19710_v42  ;;  %v19728_v42 = vld [vmem:[#allocation120_spill] sm:$0xff] }
 0x4b4   :  { %10549 = vmatpush1.bf16.msra.mxu1 %v19711_v1  ;;  %10487 = vmatprep.subr.bf16.mxu0 %v19713_v45  ;;  %v19729_v1 = vunpack.c.h.s8.bf16 %v19728_v42  ;;  %v19731_v45 = vunpack.c.h.s8.bf16 %v19730_v46  ;;  %v19734_v60 = vunpack.c.l.s8.bf16 %v19728_v42 }
 0x4b5   :  { %10551 = vmatprep.subr.bf16.mxu1 %v19715_v24  ;;  %v19733_v24 = vunpack.c.l.s8.bf16 %v19726_v57  ;;  %v19744_v57 = vunpack.c.l.s8.bf16 %v19736_v28 }
 0x4b7   :  { %10489 = vmatpush1.bf16.msra.mxu0 %v19717_v23  ;;  %v19735_v23 = vunpack.c.l.s8.bf16 %v19730_v46  ;;  %v19748_v46 = vld [vmem:[#allocation126_spill] sm:$0xff] }
 0x4b8   :  { %10553 = vmatpush1.bf16.msra.mxu1 %v19719_v8  ;;  %10491 = vmatprep.subr.bf16.mxu0 %v19720_v63  ;;  %v19737_v8 = vunpack.c.h.s8.bf16 %v19736_v28  ;;  %v19738_v63 = vld [vmem:[#allocation155_spill] sm:$0xff]  ;;  %v19754_v28 = vld [vmem:[#allocation161_spill] sm:$0xff] }
 0x4b9   :  { %10555 = vmatprep.subr.bf16.mxu1 %v19721_v12  ;;  %v19739_v12 = vunpack.c.h.s8.bf16 %v19738_v63 }
 0x4bb   :  { %10493 = vmatpush1.bf16.msra.mxu0 %v19722_v37  ;;  %v19740_v37 = vld [vmem:[#allocation124_spill] sm:$0xff] }
 0x4bc   :  { %10557 = vmatpush1.bf16.msra.mxu1 %v19723_v3  ;;  %10495 = vmatprep.subr.bf16.mxu0 %v19725_v58  ;;  %v19741_v3 = vunpack.c.h.s8.bf16 %v19740_v37  ;;  %v19743_v58 = vunpack.c.h.s8.bf16 %v19742_v7  ;;  %v19746_v42 = vunpack.c.l.s8.bf16 %v19740_v37 }
 0x4bd   :  { %10559 = vmatprep.subr.bf16.mxu1 %v19727_v5  ;;  %v19745_v5 = vunpack.c.l.s8.bf16 %v19738_v63  ;;  %v19756_v63 = vunpack.c.l.s8.bf16 %v19748_v46 }
 0x4bf   :  { %10497 = vmatpush2.bf16.msra.mxu0 %v19729_v1  ;;  %v19747_v1 = vunpack.c.l.s8.bf16 %v19742_v7  ;;  %v19760_v7 = vld [vmem:[#allocation130_spill] sm:$0xff] }
 0x4c0   :  { %10561 = vmatpush2.bf16.msra.mxu1 %v19731_v45  ;;  %10499 = vmatprep.subr.bf16.mxu0 %v19732_v59  ;;  %v19749_v45 = vunpack.c.h.s8.bf16 %v19748_v46  ;;  %v19750_v59 = vld [vmem:[#allocation159_spill] sm:$0xff]  ;;  %v19766_v46 = vld [vmem:[#allocation165_spill] sm:$0xff] }
 0x4c1   :  { %10563 = vmatprep.subr.bf16.mxu1 %v19733_v24  ;;  %v19751_v24 = vunpack.c.h.s8.bf16 %v19750_v59 }
 0x4c3   :  { %10501 = vmatpush2.bf16.msra.mxu0 %v19734_v60  ;;  %v19752_v60 = vld [vmem:[#allocation128_spill] sm:$0xff] }
 0x4c4   :  { %10565 = vmatpush2.bf16.msra.mxu1 %v19735_v23  ;;  %10503 = vmatprep.subr.bf16.mxu0 %v19737_v8  ;;  %v19753_v23 = vunpack.c.h.s8.bf16 %v19752_v60  ;;  %v19755_v8 = vunpack.c.h.s8.bf16 %v19754_v28  ;;  %v19758_v37 = vunpack.c.l.s8.bf16 %v19752_v60 }
 0x4c5   :  { %10567 = vmatprep.subr.bf16.mxu1 %v19739_v12  ;;  %v19757_v12 = vunpack.c.l.s8.bf16 %v19750_v59  ;;  %v19768_v59 = vunpack.c.l.s8.bf16 %v19760_v7 }
 0x4c7   :  { %10505 = vmatpush2.bf16.msra.mxu0 %v19741_v3  ;;  %v19759_v3 = vunpack.c.l.s8.bf16 %v19754_v28  ;;  %v19772_v28 = vld [vmem:[#allocation134_spill] sm:$0xff] }
 0x4c8   :  { %10569 = vmatpush2.bf16.msra.mxu1 %v19743_v58  ;;  %10507 = vmatprep.subr.bf16.mxu0 %v19744_v57  ;;  %v19761_v58 = vunpack.c.h.s8.bf16 %v19760_v7  ;;  %v19762_v57 = vld [vmem:[#allocation163_spill] sm:$0xff]  ;;  %v19778_v7 = vld [vmem:[#allocation169_spill] sm:$0xff] }
 0x4c9   :  { %10571 = vmatprep.subr.bf16.mxu1 %v19745_v5  ;;  %v19763_v5 = vunpack.c.h.s8.bf16 %v19762_v57 }
 0x4cb   :  { %10509 = vmatpush2.bf16.msra.mxu0 %v19746_v42  ;;  %v19764_v42 = vld [vmem:[#allocation132_spill] sm:$0xff] }
 0x4cc   :  { %10573 = vmatpush2.bf16.msra.mxu1 %v19747_v1  ;;  %10511 = vmatprep.subr.bf16.mxu0 %v19749_v45  ;;  %v19765_v1 = vunpack.c.h.s8.bf16 %v19764_v42  ;;  %v19767_v45 = vunpack.c.h.s8.bf16 %v19766_v46  ;;  %v19770_v60 = vunpack.c.l.s8.bf16 %v19764_v42 }
 0x4cd   :  { %10575 = vmatprep.subr.bf16.mxu1 %v19751_v24  ;;  %v19769_v24 = vunpack.c.l.s8.bf16 %v19762_v57  ;;  %v19780_v57 = vunpack.c.l.s8.bf16 %v19772_v28 }
 0x4cf   :  { %10513 = vmatpush2.bf16.msra.mxu0 %v19753_v23  ;;  %v19771_v23 = vunpack.c.l.s8.bf16 %v19766_v46  ;;  %v19784_v46 = vld [vmem:[#allocation138_spill] sm:$0xff] }
 0x4d0   :  { %10577 = vmatpush2.bf16.msra.mxu1 %v19755_v8  ;;  %10515 = vmatprep.subr.bf16.mxu0 %v19756_v63  ;;  %v19773_v8 = vunpack.c.h.s8.bf16 %v19772_v28  ;;  %v19774_v63 = vld [vmem:[#allocation167_spill] sm:$0xff]  ;;  %v19790_v28 = vld [vmem:[#allocation173_spill] sm:$0xff] }
 0x4d1   :  { %10579 = vmatprep.subr.bf16.mxu1 %v19757_v12  ;;  %v19775_v12 = vunpack.c.h.s8.bf16 %v19774_v63 }
 0x4d3   :  { %10517 = vmatpush2.bf16.msra.mxu0 %v19758_v37  ;;  %v19776_v37 = vld [vmem:[#allocation136_spill] sm:$0xff] }
 0x4d4   :  { %10581 = vmatpush2.bf16.msra.mxu1 %v19759_v3  ;;  %10519 = vmatprep.subr.bf16.mxu0 %v19761_v58  ;;  %v19777_v3 = vunpack.c.h.s8.bf16 %v19776_v37  ;;  %v19779_v58 = vunpack.c.h.s8.bf16 %v19778_v7  ;;  %v19782_v42 = vunpack.c.l.s8.bf16 %v19776_v37 }
 0x4d5   :  { %10583 = vmatprep.subr.bf16.mxu1 %v19763_v5  ;;  %v19781_v5 = vunpack.c.l.s8.bf16 %v19774_v63  ;;  %v19792_v63 = vunpack.c.l.s8.bf16 %v19784_v46 }
 0x4d7   :  { %10521 = vmatpush2.bf16.msra.mxu0 %v19765_v1  ;;  %v19783_v1 = vunpack.c.l.s8.bf16 %v19778_v7  ;;  %v19796_v7 = vld [vmem:[#allocation144_spill] sm:$0xff] }
 0x4d8   :  { %10585 = vmatpush2.bf16.msra.mxu1 %v19767_v45  ;;  %10523 = vmatprep.subr.bf16.mxu0 %v19768_v59  ;;  %v19785_v45 = vunpack.c.h.s8.bf16 %v19784_v46  ;;  %v19786_v59 = vld [vmem:[#allocation171_spill] sm:$0xff] }
 0x4d9   :  { %10587 = vmatprep.subr.bf16.mxu1 %v19769_v24  ;;  %v19787_v24 = vunpack.c.h.s8.bf16 %v19786_v59  ;;  %v19802_v46 = vld [vmem:[#allocation179_spill] sm:$0xff] }
 0x4db   :  { %10525 = vmatpush2.bf16.msra.mxu0 %v19770_v60  ;;  %v19788_v60 = vld [vmem:[#allocation141_spill] sm:$0xff] }
 0x4dc   :  { %10589 = vmatpush2.bf16.msra.mxu1 %v19771_v23  ;;  %10591 = vmatprep.subr.bf16.mxu0 %v19773_v8  ;;  %v19789_v23 = vunpack.c.h.s8.bf16 %v19788_v60  ;;  %v19791_v8 = vunpack.c.h.s8.bf16 %v19790_v28  ;;  %v19794_v37 = vunpack.c.l.s8.bf16 %v19788_v60 }
 0x4dd   :  { %10655 = vmatprep.subr.bf16.mxu1 %v19775_v12  ;;  %v19793_v12 = vunpack.c.l.s8.bf16 %v19786_v59  ;;  %v19804_v59 = vunpack.c.l.s8.bf16 %v19796_v7 }
 0x4de   :  { %6686 = vmatmul.mubr.f32.vlgmr.msra.gmra.mxu0 %v15346_v44 }
 0x4df   :  { %6757 = vmatmul.mubr.f32.vlgmr.msra.gmra.mxu1 %v15497_v51  ;;  %10593 = vmatpush1.bf16.msra.mxu0 %v19777_v3  ;;  %v19795_v3 = vunpack.c.l.s8.bf16 %v19790_v28  ;;  %v19808_v28 = vld [vmem:[#allocation148_spill] sm:$0xff] }
 0x4e0   :  { %10657 = vmatpush1.bf16.msra.mxu1 %v19779_v58  ;;  %10595 = vmatprep.subr.bf16.mxu0 %v19780_v57  ;;  %v19797_v58 = vunpack.c.h.s8.bf16 %v19796_v7  ;;  %v19798_v57 = vld [vmem:[#allocation177_spill] sm:$0xff]  ;;  %v19814_v7 = vld [vmem:[#allocation183_spill] sm:$0xff] }
 0x4e1   :  { %10659 = vmatprep.subr.bf16.mxu1 %v19781_v5  ;;  %6827 = vmatprep.mubr.f32.mxu0 %v15370_v56  ;;  %v19799_v5 = vunpack.c.h.s8.bf16 %v19798_v57 }
 0x4e2   :  { %6898 = vmatprep.mubr.f32.mxu1 %v15164_v20 }
 0x4e3   :  { %10597 = vmatpush1.bf16.msra.mxu0 %v19782_v42  ;;  %v19800_v42 = vld [vmem:[#allocation146_spill] sm:$0xff] }
 0x4e4   :  { %10661 = vmatpush1.bf16.msra.mxu1 %v19783_v1  ;;  %10599 = vmatprep.subr.bf16.mxu0 %v19785_v45  ;;  %v19801_v1 = vunpack.c.h.s8.bf16 %v19800_v42  ;;  %v19803_v45 = vunpack.c.h.s8.bf16 %v19802_v46  ;;  %v19806_v60 = vunpack.c.l.s8.bf16 %v19800_v42 }
 0x4e5   :  { %10663 = vmatprep.subr.bf16.mxu1 %v19787_v24  ;;  %v19805_v24 = vunpack.c.l.s8.bf16 %v19798_v57  ;;  %v19816_v57 = vunpack.c.l.s8.bf16 %v19808_v28 }
 0x4e7   :  { %10601 = vmatpush1.bf16.msra.mxu0 %v19789_v23  ;;  %v19807_v23 = vunpack.c.l.s8.bf16 %v19802_v46  ;;  %v19820_v46 = vld [vmem:[#allocation152_spill] sm:$0xff] }
 0x4e8   :  { %10665 = vmatpush1.bf16.msra.mxu1 %v19791_v8  ;;  %10603 = vmatprep.subr.bf16.mxu0 %v19792_v63  ;;  %v19809_v8 = vunpack.c.h.s8.bf16 %v19808_v28  ;;  %v19810_v63 = vld [vmem:[#allocation181_spill] sm:$0xff]  ;;  %v19826_v28 = vld [vmem:[#allocation187_spill] sm:$0xff] }
 0x4e9   :  { %10667 = vmatprep.subr.bf16.mxu1 %v19793_v12  ;;  %v19811_v12 = vunpack.c.h.s8.bf16 %v19810_v63 }
 0x4eb   :  { %10605 = vmatpush1.bf16.msra.mxu0 %v19794_v37  ;;  %v19812_v37 = vld [vmem:[#allocation150_spill] sm:$0xff] }
 0x4ec   :  { %10669 = vmatpush1.bf16.msra.mxu1 %v19795_v3  ;;  %10607 = vmatprep.subr.bf16.mxu0 %v19797_v58  ;;  %v19813_v3 = vunpack.c.h.s8.bf16 %v19812_v37  ;;  %v19815_v58 = vunpack.c.h.s8.bf16 %v19814_v7  ;;  %v19818_v42 = vunpack.c.l.s8.bf16 %v19812_v37 }
 0x4ed   :  { %10671 = vmatprep.subr.bf16.mxu1 %v19799_v5  ;;  %v19817_v5 = vunpack.c.l.s8.bf16 %v19810_v63  ;;  %v19828_v63 = vunpack.c.l.s8.bf16 %v19820_v46 }
 0x4ef   :  { %10609 = vmatpush1.bf16.msra.mxu0 %v19801_v1  ;;  %v19819_v1 = vunpack.c.l.s8.bf16 %v19814_v7  ;;  %v19832_v7 = vld [vmem:[#allocation156_spill] sm:$0xff] }
 0x4f0   :  { %10673 = vmatpush1.bf16.msra.mxu1 %v19803_v45  ;;  %10611 = vmatprep.subr.bf16.mxu0 %v19804_v59  ;;  %v19821_v45 = vunpack.c.h.s8.bf16 %v19820_v46  ;;  %v19822_v59 = vld [vmem:[#allocation185_spill] sm:$0xff]  ;;  %v19838_v46 = vld [vmem:[#allocation191_spill] sm:$0xff] }
 0x4f1   :  { %10675 = vmatprep.subr.bf16.mxu1 %v19805_v24  ;;  %v19823_v24 = vunpack.c.h.s8.bf16 %v19822_v59 }
 0x4f3   :  { %10613 = vmatpush1.bf16.msra.mxu0 %v19806_v60  ;;  %v19824_v60 = vld [vmem:[#allocation154_spill] sm:$0xff] }
 0x4f4   :  { %10677 = vmatpush1.bf16.msra.mxu1 %v19807_v23  ;;  %10615 = vmatprep.subr.bf16.mxu0 %v19809_v8  ;;  %v19825_v23 = vunpack.c.h.s8.bf16 %v19824_v60  ;;  %v19827_v8 = vunpack.c.h.s8.bf16 %v19826_v28  ;;  %v19830_v37 = vunpack.c.l.s8.bf16 %v19824_v60 }
 0x4f5   :  { %10679 = vmatprep.subr.bf16.mxu1 %v19811_v12  ;;  %v19829_v12 = vunpack.c.l.s8.bf16 %v19822_v59  ;;  %v19840_v59 = vunpack.c.l.s8.bf16 %v19832_v7 }
 0x4f7   :  { %10617 = vmatpush1.bf16.msra.mxu0 %v19813_v3  ;;  %v19831_v3 = vunpack.c.l.s8.bf16 %v19826_v28  ;;  %v19844_v28 = vld [vmem:[#allocation160_spill] sm:$0xff] }
 0x4f8   :  { %10681 = vmatpush1.bf16.msra.mxu1 %v19815_v58  ;;  %10619 = vmatprep.subr.bf16.mxu0 %v19816_v57  ;;  %v19833_v58 = vunpack.c.h.s8.bf16 %v19832_v7  ;;  %v19834_v57 = vld [vmem:[#allocation189_spill] sm:$0xff]  ;;  %v19850_v7 = vld [vmem:[#allocation195_spill] sm:$0xff] }
 0x4f9   :  { %10683 = vmatprep.subr.bf16.mxu1 %v19817_v5  ;;  %v19835_v5 = vunpack.c.h.s8.bf16 %v19834_v57 }
 0x4fb   :  { %10621 = vmatpush1.bf16.msra.mxu0 %v19818_v42  ;;  %v19836_v42 = vld [vmem:[#allocation158_spill] sm:$0xff] }
 0x4fc   :  { %10685 = vmatpush1.bf16.msra.mxu1 %v19819_v1  ;;  %10623 = vmatprep.subr.bf16.mxu0 %v19821_v45  ;;  %v19837_v1 = vunpack.c.h.s8.bf16 %v19836_v42  ;;  %v19839_v45 = vunpack.c.h.s8.bf16 %v19838_v46  ;;  %v19842_v60 = vunpack.c.l.s8.bf16 %v19836_v42 }
 0x4fd   :  { %10687 = vmatprep.subr.bf16.mxu1 %v19823_v24  ;;  %v19841_v24 = vunpack.c.l.s8.bf16 %v19834_v57  ;;  %v19852_v57 = vunpack.c.l.s8.bf16 %v19844_v28 }
 0x4ff   :  { %10625 = vmatpush2.bf16.msra.mxu0 %v19825_v23  ;;  %v19843_v23 = vunpack.c.l.s8.bf16 %v19838_v46  ;;  %v19856_v46 = vld [vmem:[#allocation164_spill] sm:$0xff] }
 0x500   :  { %10689 = vmatpush2.bf16.msra.mxu1 %v19827_v8  ;;  %10627 = vmatprep.subr.bf16.mxu0 %v19828_v63  ;;  %v19845_v8 = vunpack.c.h.s8.bf16 %v19844_v28  ;;  %v19846_v63 = vld [vmem:[#allocation193_spill] sm:$0xff]  ;;  %v19862_v28 = vld [vmem:[#allocation199_spill] sm:$0xff] }
 0x501   :  { %10691 = vmatprep.subr.bf16.mxu1 %v19829_v12  ;;  %v19847_v12 = vunpack.c.h.s8.bf16 %v19846_v63 }
 0x503   :  { %10629 = vmatpush2.bf16.msra.mxu0 %v19830_v37  ;;  %v19848_v37 = vld [vmem:[#allocation162_spill] sm:$0xff] }
 0x504   :  { %10693 = vmatpush2.bf16.msra.mxu1 %v19831_v3  ;;  %10631 = vmatprep.subr.bf16.mxu0 %v19833_v58  ;;  %v19849_v3 = vunpack.c.h.s8.bf16 %v19848_v37  ;;  %v19851_v58 = vunpack.c.h.s8.bf16 %v19850_v7  ;;  %v19854_v42 = vunpack.c.l.s8.bf16 %v19848_v37  ;;  %v19864_v37 = vunpack.c.l.s8.bf16 %v19856_v46 }
 0x505   :  { %10695 = vmatprep.subr.bf16.mxu1 %v19835_v5  ;;  %v19853_v5 = vunpack.c.l.s8.bf16 %v19846_v63  ;;  %v6261_v63 = vpop.f32.mrf.mxu0 }
 0x507   :  { %10633 = vmatpush2.bf16.msra.mxu0 %v19837_v1  ;;  %v19855_v1 = vunpack.c.l.s8.bf16 %v19850_v7 }
 0x508   :  { %10697 = vmatpush2.bf16.msra.mxu1 %v19839_v45  ;;  %10635 = vmatprep.subr.bf16.mxu0 %v19840_v59  ;;  %v19857_v45 = vunpack.c.h.s8.bf16 %v19856_v46  ;;  %v19858_v59 = vld [vmem:[#allocation197_spill] sm:$0xff] }
 0x509   :  { %10699 = vmatprep.subr.bf16.mxu1 %v19841_v24  ;;  %v19859_v24 = vunpack.c.h.s8.bf16 %v19858_v59 }
 0x50b   :  { %10637 = vmatpush2.bf16.msra.mxu0 %v19842_v60  ;;  %v19860_v60 = vld [vmem:[#allocation166_spill] sm:$0xff] }
 0x50c   :  { %10701 = vmatpush2.bf16.msra.mxu1 %v19843_v23  ;;  %10639 = vmatprep.subr.bf16.mxu0 %v19845_v8  ;;  %v19861_v23 = vunpack.c.h.s8.bf16 %v19860_v60  ;;  %v19863_v8 = vunpack.c.h.s8.bf16 %v19862_v28  ;;  %v19866_v7 = vunpack.c.l.s8.bf16 %v19860_v60 }
 0x50d   :  { %10703 = vmatprep.subr.bf16.mxu1 %v19847_v12  ;;  %v6332_v12 = vpop.f32.mrf.mxu1 }
 0x50f   :  { %10641 = vmatpush2.bf16.msra.mxu0 %v19849_v3  ;;  %v19865_v3 = vunpack.c.l.s8.bf16 %v19858_v59 }
 0x510   :  { %10705 = vmatpush2.bf16.msra.mxu1 %v19851_v58  ;;  %10643 = vmatprep.subr.bf16.mxu0 %v19852_v57  ;;  %v19867_v58 = vunpack.c.l.s8.bf16 %v19862_v28  ;;  %v6263_v57 = vpop.f32.mrf.mxu0  ;;  %v19872_v28 = vld [vmem:[#allocation170_spill] sm:$0xff] }
 0x511   :  { %10707 = vmatprep.subr.bf16.mxu1 %v19853_v5  ;;  %v6334_v5 = vpop.f32.mrf.mxu1 }
 0x512   :  { %v6335_v59 = vadd.f32 %v6334_v5, %v6263_v57  ;;  %v19879_v57 = vsub.s32 2, %v15966_v53 }
 0x513   :  { %10645 = vmatpush2.bf16.msra.mxu0 %v19854_v42  ;;  %v19868_v42 = vld [vmem:[#allocation168_spill] sm:$0xff] }
 0x514   :  { %10709 = vmatpush2.bf16.msra.mxu1 %v19855_v1  ;;  %10647 = vmatprep.subr.bf16.mxu0 %v19857_v45  ;;  %v19869_v1 = vunpack.c.h.s8.bf16 %v19868_v42  ;;  %v19870_v45 = vld [vmem:[#allocation201_spill] sm:$0xff]  ;;  %v8027_v5 = vrot.slane %v15986_v39, %v19879_v57 }
 0x515   :  { %10711 = vmatprep.subr.bf16.mxu1 %v19859_v24  ;;  %v19871_v24 = vunpack.c.h.s8.bf16 %v19870_v45 }
 0x517   :  { %10649 = vmatpush2.bf16.msra.mxu0 %v19861_v23  ;;  %v6333_v23 = vadd.f32 %v6332_v12, %v6261_v63  ;;  %v19876_v63 = vunpack.c.l.s8.bf16 %v19868_v42  ;;  %v19877_v12 = vunpack.c.l.s8.bf16 %v19870_v45  ;;  %v19881_v45 = vunpack.c.l.s8.bf16 %v19872_v28 }
 0x518   :  { %10713 = vmatpush2.bf16.msra.mxu1 %v19863_v8  ;;  %10651 = vmatprep.subr.bf16.mxu0 %v19864_v37  ;;  %v19873_v37 = vunpack.c.h.s8.bf16 %v19872_v28 }
 0x519   :  { %10715 = vmatprep.subr.bf16.mxu1 %v19865_v3  ;;  %v19874_v3 = vld [vmem:[#allocation203_spill] sm:$0xff] }
 0x51b   :  { %10653 = vmatpush2.bf16.msra.mxu0 %v19866_v7  ;;  %v19875_v7 = vunpack.c.h.s8.bf16 %v19874_v3 }
 0x51c   :  { %10717 = vmatpush2.bf16.msra.mxu1 %v19867_v58  ;;  %10719 = vmatprep.subr.bf16.mxu0 %v19869_v1  ;;  %v18857_v58 = vsub.s32 3, %v15966_v53 }
 0x51d   :  { %10783 = vmatprep.subr.bf16.mxu1 %v19871_v24  ;;  %v19878_v24 = vld [vmem:[#allocation175_spill] sm:$0xff] }
 0x51e   :  { %v6403_v8 = vpop.f32.mrf.mxu0  ;;  %6828 = vmatmul.mubr.f32.vlgmr.msra.gmra.mxu0 %v15500_v40  ;;  %v8031_v42 = vrot.slane %v15986_v39, %v18857_v58  ;;  %v19889_v58 = vld [vmem:[#allocation207_spill] sm:$0xff] }
 0x51f   :  { %6899 = vmatmul.mubr.f32.vlgmr.msra.gmra.mxu1 %v15346_v44  ;;  %v6404_v60 = vadd.f32 %v6403_v8, %v6333_v23  ;;  %10721 = vmatpush1.bf16.msra.mxu0 %v19873_v37  ;;  %v19880_v37 = vld [vmem:[#allocation176_spill] sm:$0xff]  ;;  %v19890_v28 = vunpack.c.h.s8.bf16 %v19889_v58 }
 0x520   :  { %10785 = vmatpush1.bf16.msra.mxu1 %v19875_v7  ;;  %v6405_v1 = vpop.f32.mrf.mxu0  ;;  %10723 = vmatprep.subr.bf16.mxu0 %v19876_v63  ;;  %v19883_v63 = vld [vmem:[#allocation172_spill] sm:$0xff] }
 0x521   :  { %10787 = vmatprep.subr.bf16.mxu1 %v19877_v12  ;;  %v7976_v46 = vsub.f32 %v19878_v24, %v6404_v60  ;;  %v6406_v23 = vadd.f32 %v6405_v1, %v6335_v59  ;;  %6969 = vmatprep.mubr.f32.mxu0 %v15367_v15  ;;  %v19882_v60 = vunpack.c.l.s8.bf16 %v19874_v3  ;;  %v19884_v12 = vunpack.c.h.s8.bf16 %v19883_v63  ;;  %v19885_v59 = vld [vmem:[#allocation205_spill] sm:$0xff] }
 0x522   :  { %7040 = vmatprep.mubr.f32.mxu1 %v15370_v56  ;;  %v19886_v1 = vunpack.c.h.s8.bf16 %v19885_v59  ;;  %v19891_v3 = vunpack.c.l.s8.bf16 %v19883_v63 }
 0x523   :  { %v7994_v8 = vand.u32 2147483647, %v7976_v46  ;;  %v7977_v7 = vsub.f32 %v19880_v37, %v6406_v23  ;;  %10725 = vmatpush1.bf16.msra.mxu0 %v19881_v45  ;;  %v19887_v37 = vld [vmem:[#allocation174_spill] sm:$0xff]  ;;  %v19892_v45 = vunpack.c.l.s8.bf16 %v19885_v59 }
 0x524   :  { %10789 = vmatpush1.bf16.msra.mxu1 %v19882_v60  ;;  %10727 = vmatprep.subr.bf16.mxu0 %v19884_v12  ;;  %v19888_v11 = vunpack.c.h.s8.bf16 %v19887_v37  ;;  %v19899_v12 = vld [vmem:[#allocation180_spill] sm:$0xff] }
 0x525   :  { %10791 = vmatprep.subr.bf16.mxu1 %v19886_v1  ;;  %v8108_v24 = vmul.f32 %v8027_v5, %v7994_v8  ;;  %v7995_v46 = vand.u32 2147483647, %v7977_v7  ;;  %v19893_v5 = vunpack.c.l.s8.bf16 %v19887_v37  ;;  %v19895_v8 = vld [vmem:[#allocation178_spill] sm:$0xff]  ;;  %v19900_v63 = vunpack.c.h.s8.bf16 %v19899_v12  ;;  %v19901_v1 = vld [vmem:[#allocation211_spill] sm:$0xff] }
 0x526   :  { %v19896_v7 = vunpack.c.h.s8.bf16 %v19895_v8  ;;  %v19902_v59 = vunpack.c.h.s8.bf16 %v19901_v1 }
 0x527   :  { %v8125_v57 = vadd.f32 %v16010_v13, %v8108_v24  ;;  %v8109_v23 = vmul.f32 %v8031_v42, %v7995_v46  ;;  %10729 = vmatpush1.bf16.msra.mxu0 %v19888_v11  ;;  %v19894_v13 = vunpack.c.l.s8.bf16 %v19889_v58  ;;  %v19897_v11 = vld [vmem:[#allocation209_spill] sm:$0xff]  ;;  %v19903_v24 = vunpack.c.l.s8.bf16 %v19895_v8 }
 0x528   :  { %10793 = vmatpush1.bf16.msra.mxu1 %v19890_v28  ;;  %10731 = vmatprep.subr.bf16.mxu0 %v19891_v3  ;;  %v19898_v42 = vunpack.c.h.s8.bf16 %v19897_v11  ;;  %v19904_v46 = vunpack.c.l.s8.bf16 %v19897_v11  ;;  %v19905_v58 = vunpack.c.l.s8.bf16 %v19899_v12  ;;  %v19909_v28 = vld [vmem:[#allocation213_spill] sm:$0xff] }
 0x529   :  { %10795 = vmatprep.subr.bf16.mxu1 %v19892_v45  ;;  %v16287_v60 = vadd.f32 %v8125_v57, %v8109_v23  ;;  %v19906_v57 = vunpack.c.l.s8.bf16 %v19901_v1  ;;  %v19907_v23 = vld [vmem:[#allocation182_spill] sm:$0xff]  ;;  %v19910_v3 = vunpack.c.h.s8.bf16 %v19909_v28  ;;  %v19911_v45 = vld [vmem:[#allocation184_spill] sm:$0xff]  ;;  %v19916_v11 = vunpack.c.l.s8.bf16 %v19909_v28 }
 0x52a   :  { %v19908_v37 = vunpack.c.h.s8.bf16 %v19907_v23 }
 0x52b   :  { %10733 = vmatpush1.bf16.msra.mxu0 %v19893_v5  ;;  %v19912_v5 = vunpack.c.h.s8.bf16 %v19911_v45 }
 0x52c   :  { %10797 = vmatpush1.bf16.msra.mxu1 %v19894_v13  ;;  %10735 = vmatprep.subr.bf16.mxu0 %v19896_v7  ;;  %v19913_v13 = vld [vmem:[#allocation215_spill] sm:$0xff]  ;;  %v19915_v7 = vunpack.c.l.s8.bf16 %v19907_v23 }
 0x52d   :  { %10799 = vmatprep.subr.bf16.mxu1 %v19898_v42  ;;  %v19914_v8 = vunpack.c.h.s8.bf16 %v19913_v13  ;;  %v19917_v42 = vunpack.c.l.s8.bf16 %v19911_v45  ;;  %v19918_v12 = vunpack.c.l.s8.bf16 %v19913_v13 }
 0x52f   :  { %10737 = vmatpush1.bf16.msra.mxu0 %v19900_v63  ;;  %v19919_v63 = vld [vmem:[#allocation186_spill] sm:$0xff] }
 0x530   :  { %10801 = vmatpush1.bf16.msra.mxu1 %v19902_v59  ;;  %10739 = vmatprep.subr.bf16.mxu0 %v19903_v24  ;;  %v19920_v1 = vunpack.c.h.s8.bf16 %v19919_v63  ;;  %v19921_v59 = vld [vmem:[#allocation217_spill] sm:$0xff] }
 0x531   :  { %10803 = vmatprep.subr.bf16.mxu1 %v19904_v46  ;;  %v19922_v24 = vunpack.c.h.s8.bf16 %v19921_v59  ;;  %v19923_v46 = vld [vmem:[#allocation188_spill] sm:$0xff]  ;;  %v19928_v28 = vunpack.c.l.s8.bf16 %v19921_v59 }
 0x533   :  { %10741 = vmatpush1.bf16.msra.mxu0 %v19905_v58  ;;  %v19924_v58 = vunpack.c.h.s8.bf16 %v19923_v46 }
 0x534   :  { %10805 = vmatpush1.bf16.msra.mxu1 %v19906_v57  ;;  %10743 = vmatprep.subr.bf16.mxu0 %v19908_v37  ;;  %v19925_v57 = vld [vmem:[#allocation219_spill] sm:$0xff]  ;;  %v19927_v37 = vunpack.c.l.s8.bf16 %v19919_v63 }
 0x535   :  { %10807 = vmatprep.subr.bf16.mxu1 %v19910_v3  ;;  %v19926_v23 = vunpack.c.h.s8.bf16 %v19925_v57  ;;  %v19929_v3 = vunpack.c.l.s8.bf16 %v19923_v46  ;;  %v19930_v45 = vunpack.c.l.s8.bf16 %v19925_v57 }
 0x537   :  { %10745 = vmatpush1.bf16.msra.mxu0 %v19912_v5  ;;  %v19931_v5 = vld [vmem:[#allocation190_spill] sm:$0xff] }
 0x538   :  { %10809 = vmatpush1.bf16.msra.mxu1 %v19914_v8  ;;  %10747 = vmatprep.subr.bf16.mxu0 %v19915_v7  ;;  %v19932_v13 = vunpack.c.h.s8.bf16 %v19931_v5  ;;  %v19933_v8 = vld [vmem:[#allocation221_spill] sm:$0xff] }
 0x539   :  { %10811 = vmatprep.subr.bf16.mxu1 %v19916_v11  ;;  %v19934_v7 = vunpack.c.h.s8.bf16 %v19933_v8  ;;  %v19935_v11 = vld [vmem:[#allocation192_spill] sm:$0xff]  ;;  %v19940_v59 = vunpack.c.l.s8.bf16 %v19933_v8 }
 0x53b   :  { %10749 = vmatpush1.bf16.msra.mxu0 %v19917_v42  ;;  %v19936_v42 = vunpack.c.h.s8.bf16 %v19935_v11 }
 0x53c   :  { %10813 = vmatpush1.bf16.msra.mxu1 %v19918_v12  ;;  %10751 = vmatprep.subr.bf16.mxu0 %v19920_v1  ;;  %v19937_v12 = vld [vmem:[#allocation223_spill] sm:$0xff]  ;;  %v19939_v1 = vunpack.c.l.s8.bf16 %v19931_v5 }
 0x53d   :  { %10815 = vmatprep.subr.bf16.mxu1 %v19922_v24  ;;  %v19938_v63 = vunpack.c.h.s8.bf16 %v19937_v12  ;;  %v19941_v24 = vunpack.c.l.s8.bf16 %v19935_v11  ;;  %v19942_v46 = vunpack.c.l.s8.bf16 %v19937_v12 }
 0x53f   :  { %10753 = vmatpush2.bf16.msra.mxu0 %v19924_v58  ;;  %v19943_v58 = vld [vmem:[#allocation194_spill] sm:$0xff] }
 0x540   :  { %10817 = vmatpush2.bf16.msra.mxu1 %v19926_v23  ;;  %10755 = vmatprep.subr.bf16.mxu0 %v19927_v37  ;;  %v19944_v57 = vunpack.c.h.s8.bf16 %v19943_v58  ;;  %v19945_v23 = vld [vmem:[#allocation225_spill] sm:$0xff] }
 0x541   :  { %10819 = vmatprep.subr.bf16.mxu1 %v19928_v28  ;;  %v19946_v37 = vunpack.c.h.s8.bf16 %v19945_v23  ;;  %v19947_v28 = vld [vmem:[#allocation196_spill] sm:$0xff]  ;;  %v19952_v8 = vunpack.c.l.s8.bf16 %v19945_v23 }
 0x543   :  { %10757 = vmatpush2.bf16.msra.mxu0 %v19929_v3  ;;  %v19948_v3 = vunpack.c.h.s8.bf16 %v19947_v28 }
 0x544   :  { %10821 = vmatpush2.bf16.msra.mxu1 %v19930_v45  ;;  %10759 = vmatprep.subr.bf16.mxu0 %v19932_v13  ;;  %v19949_v45 = vld [vmem:[#allocation227_spill] sm:$0xff]  ;;  %v19951_v13 = vunpack.c.l.s8.bf16 %v19943_v58 }
 0x545   :  { %10823 = vmatprep.subr.bf16.mxu1 %v19934_v7  ;;  %v19950_v5 = vunpack.c.h.s8.bf16 %v19949_v45  ;;  %v19953_v7 = vunpack.c.l.s8.bf16 %v19947_v28  ;;  %v19954_v11 = vunpack.c.l.s8.bf16 %v19949_v45 }
 0x547   :  { %10761 = vmatpush2.bf16.msra.mxu0 %v19936_v42  ;;  %v19955_v42 = vld [vmem:[#allocation198_spill] sm:$0xff] }
 0x548   :  { %10825 = vmatpush2.bf16.msra.mxu1 %v19938_v63  ;;  %10763 = vmatprep.subr.bf16.mxu0 %v19939_v1  ;;  %v19956_v12 = vunpack.c.h.s8.bf16 %v19955_v42  ;;  %v19957_v63 = vld [vmem:[#allocation229_spill] sm:$0xff]  ;;  %v19963_v23 = vunpack.c.l.s8.bf16 %v19955_v42 }
 0x549   :  { %10827 = vmatprep.subr.bf16.mxu1 %v19940_v59  ;;  %v19958_v1 = vunpack.c.h.s8.bf16 %v19957_v63  ;;  %v19959_v59 = vld [vmem:[#allocation200_spill] sm:$0xff] }
 0x54a   :  { %v19965_v28 = vunpack.c.l.s8.bf16 %v19959_v59 }
 0x54b   :  { %10765 = vmatpush2.bf16.msra.mxu0 %v19941_v24  ;;  %v19960_v24 = vunpack.c.h.s8.bf16 %v19959_v59 }
 0x54c   :  { %10829 = vmatpush2.bf16.msra.mxu1 %v19942_v46  ;;  %10767 = vmatprep.subr.bf16.mxu0 %v19944_v57  ;;  %v19961_v46 = vld [vmem:[#allocation231_spill] sm:$0xff]  ;;  %v6474_v57 = vpop.f32.mrf.mxu1 }
 0x54d   :  { %10831 = vmatprep.subr.bf16.mxu1 %v19946_v37  ;;  %v19962_v58 = vunpack.c.h.s8.bf16 %v19961_v46  ;;  %v19964_v37 = vunpack.c.l.s8.bf16 %v19957_v63  ;;  %v8034_v63 = vsub.s32 4, %v15966_v53 }
 0x54e   :  { %v6476_v45 = vpop.f32.mrf.mxu1 }
 0x54f   :  { %10769 = vmatpush2.bf16.msra.mxu0 %v19948_v3  ;;  %v19966_v3 = vunpack.c.l.s8.bf16 %v19961_v46 }
 0x550   :  { %10833 = vmatpush2.bf16.msra.mxu1 %v19950_v5  ;;  %10771 = vmatprep.subr.bf16.mxu0 %v19951_v13  ;;  %v19967_v5 = vld [vmem:[#allocation202_spill] sm:$0xff] }
 0x551   :  { %10835 = vmatprep.subr.bf16.mxu1 %v19952_v8  ;;  %v19968_v13 = vunpack.c.h.s8.bf16 %v19967_v5  ;;  %v19969_v8 = vld [vmem:[#allocation233_spill] sm:$0xff] }
 0x553   :  { %10773 = vmatpush2.bf16.msra.mxu0 %v19953_v7  ;;  %v19970_v7 = vunpack.c.h.s8.bf16 %v19969_v8 }
 0x554   :  { %10837 = vmatpush2.bf16.msra.mxu1 %v19954_v11  ;;  %10775 = vmatprep.subr.bf16.mxu0 %v19956_v12 }
 0x555   :  { %10839 = vmatprep.subr.bf16.mxu1 %v19958_v1  ;;  %v19971_v1 = vld [vmem:[#allocation204_spill] sm:$0xff] }
 0x556   :  { %v19972_v59 = vunpack.c.h.s8.bf16 %v19971_v1 }
 0x557   :  { %10777 = vmatpush2.bf16.msra.mxu0 %v19960_v24  ;;  %v19973_v24 = vld [vmem:[#allocation235_spill] sm:$0xff] }
 0x558   :  { %10841 = vmatpush2.bf16.msra.mxu1 %v19962_v58  ;;  %10779 = vmatprep.subr.bf16.mxu0 %v19963_v23  ;;  %v19974_v46 = vunpack.c.h.s8.bf16 %v19973_v24 }
 0x559   :  { %10843 = vmatprep.subr.bf16.mxu1 %v19964_v37  ;;  %v19975_v37 = vunpack.c.l.s8.bf16 %v19967_v5  ;;  %v19978_v5 = vunpack.c.l.s8.bf16 %v19971_v1  ;;  %v19985_v1 = vld [vmem:[#allocation208_spill] sm:$0xff] }
 0x55b   :  { %10781 = vmatpush2.bf16.msra.mxu0 %v19965_v28  ;;  %v19976_v28 = vunpack.c.l.s8.bf16 %v19969_v8  ;;  %v19979_v8 = vunpack.c.l.s8.bf16 %v19973_v24  ;;  %v19987_v24 = vld [vmem:[#allocation240_spill] sm:$0xff] }
 0x55c   :  { %10845 = vmatpush2.bf16.msra.mxu1 %v19966_v3  ;;  %10847 = vmatprep.subr.bf16.mxu0 %v19968_v13 }
 0x55d   :  { %10911 = vmatprep.subr.bf16.mxu1 %v19970_v7  ;;  %v19977_v7 = vld [vmem:[#allocation239_spill] sm:$0xff] }
 0x55e   :  { %v6545_v11 = vpop.f32.mrf.mxu0  ;;  %6970 = vmatmul.mubr.f32.vlgmr.msra.gmra.mxu0 %v15497_v51 }
 0x55f   :  { %v6616_v42 = vpop.f32.mrf.mxu1  ;;  %7041 = vmatmul.mubr.f32.vlgmr.msra.gmra.mxu1 %v15500_v40  ;;  %v6546_v12 = vadd.f32 %v6545_v11, %v6474_v57  ;;  %10849 = vmatpush1.bf16.msra.mxu0 %v19972_v59  ;;  %v8038_v57 = vsub.s32 5, %v15966_v53  ;;  %v8035_v59 = vrot.slane %v15986_v39, %v8034_v63 }
 0x560   :  { %10913 = vmatpush1.bf16.msra.mxu1 %v19974_v46  ;;  %v6547_v58 = vpop.f32.mrf.mxu0  ;;  %10851 = vmatprep.subr.bf16.mxu0 %v19975_v37 }
 0x561   :  { %v6618_v23 = vpop.f32.mrf.mxu1  ;;  %10915 = vmatprep.subr.bf16.mxu1 %v19976_v28  ;;  %v6617_v3 = vadd.f32 %v6616_v42, %v6546_v12  ;;  %v6548_v13 = vadd.f32 %v6547_v58, %v6476_v45  ;;  %7111 = vmatprep.mubr.f32.mxu0 %v15164_v20  ;;  %v19980_v45 = vld [vmem:[#allocation206_spill] sm:$0xff]  ;;  %v19982_v12 = vld [vmem:[#allocation237_spill] sm:$0xff] }
 0x562   :  { %7182 = vmatprep.mubr.f32.mxu1 %v15367_v15  ;;  %v19981_v42 = vunpack.c.h.s8.bf16 %v19980_v45  ;;  %v19983_v58 = vunpack.c.h.s8.bf16 %v19982_v12  ;;  %v19984_v28 = vld [vmem:[#allocation242_spill] sm:$0xff] }
 0x563   :  { %v7978_v11 = vsub.f32 %v19977_v7, %v6617_v3  ;;  %v6619_v46 = vadd.f32 %v6618_v23, %v6548_v13  ;;  %10853 = vmatpush1.bf16.msra.mxu0 %v19978_v5  ;;  %v8039_v7 = vrot.slane %v15986_v39, %v8038_v57  ;;  %v19986_v5 = vunpack.c.h.s8.bf16 %v19985_v1 }
 0x564   :  { %10917 = vmatpush1.bf16.msra.mxu1 %v19979_v8  ;;  %10855 = vmatprep.subr.bf16.mxu0 %v19981_v42  ;;  %v19988_v8 = vunpack.c.h.s8.bf16 %v19987_v24  ;;  %v19989_v42 = vunpack.c.l.s8.bf16 %v19980_v45 }
 0x565   :  { %10919 = vmatprep.subr.bf16.mxu1 %v19983_v58  ;;  %v7996_v37 = vand.u32 2147483647, %v7978_v11  ;;  %v7979_v3 = vsub.f32 %v19984_v28, %v6619_v46  ;;  %v19990_v58 = vunpack.c.l.s8.bf16 %v19982_v12 }
 0x567   :  { %v8110_v23 = vmul.f32 %v8035_v59, %v7996_v37  ;;  %v7997_v13 = vand.u32 2147483647, %v7979_v3  ;;  %10857 = vmatpush1.bf16.msra.mxu0 %v19986_v5  ;;  %v19991_v59 = vunpack.c.l.s8.bf16 %v19985_v1  ;;  %v19992_v37 = vunpack.c.l.s8.bf16 %v19987_v24  ;;  %v19993_v3 = vld [vmem:[#allocation210_spill] sm:$0xff] }
 0x568   :  { %10921 = vmatpush1.bf16.msra.mxu1 %v19988_v8  ;;  %10859 = vmatprep.subr.bf16.mxu0 %v19989_v42  ;;  %v19994_v5 = vunpack.c.h.s8.bf16 %v19993_v3  ;;  %v19995_v8 = vld [vmem:[#allocation243_spill] sm:$0xff]  ;;  %v19997_v42 = vld [vmem:[#allocation212_spill] sm:$0xff]  ;;  %v20005_v24 = vld [vmem:[#allocation214_spill] sm:$0xff] }
 0x569   :  { %10923 = vmatprep.subr.bf16.mxu1 %v19990_v58  ;;  %v8127_v11 = vadd.f32 %v16287_v60, %v8110_v23  ;;  %v8111_v46 = vmul.f32 %v8039_v7, %v7997_v13  ;;  %v19996_v45 = vunpack.c.h.s8.bf16 %v19995_v8  ;;  %v19998_v12 = vunpack.c.h.s8.bf16 %v19997_v42  ;;  %v19999_v58 = vld [vmem:[#allocation245_spill] sm:$0xff] }
 0x56a   :  { %v20000_v60 = vunpack.c.h.s8.bf16 %v19999_v58  ;;  %v20001_v7 = vunpack.c.l.s8.bf16 %v19993_v3  ;;  %v20002_v23 = vunpack.c.l.s8.bf16 %v19995_v8  ;;  %v20003_v13 = vunpack.c.l.s8.bf16 %v19997_v42  ;;  %v20011_v3 = vld [vmem:[#allocation249_spill] sm:$0xff] }
 0x56b   :  { %v16432_v28 = vadd.f32 %v8127_v11, %v8111_v46  ;;  %10861 = vmatpush1.bf16.msra.mxu0 %v19991_v59  ;;  %v20004_v1 = vunpack.c.l.s8.bf16 %v19999_v58  ;;  %v20006_v11 = vunpack.c.h.s8.bf16 %v20005_v24  ;;  %v20007_v46 = vld [vmem:[#allocation247_spill] sm:$0xff]  ;;  %v20013_v8 = vunpack.c.l.s8.bf16 %v20005_v24  ;;  %v20023_v24 = vld [vmem:[#allocation253_spill] sm:$0xff] }
 0x56c   :  { %10925 = vmatpush1.bf16.msra.mxu1 %v19992_v37  ;;  %10863 = vmatprep.subr.bf16.mxu0 %v19994_v5  ;;  %v20008_v59 = vunpack.c.h.s8.bf16 %v20007_v46  ;;  %v20009_v37 = vld [vmem:[#allocation216_spill] sm:$0xff]  ;;  %v20014_v42 = vunpack.c.l.s8.bf16 %v20007_v46  ;;  %v20016_v58 = vunpack.c.l.s8.bf16 %v20011_v3 }
 0x56d   :  { %10927 = vmatprep.subr.bf16.mxu1 %v19996_v45  ;;  %v20010_v5 = vunpack.c.h.s8.bf16 %v20009_v37  ;;  %v20012_v45 = vunpack.c.h.s8.bf16 %v20011_v3  ;;  %v20028_v3 = vunpack.c.l.s8.bf16 %v20023_v24 }
 0x56f   :  { %10865 = vmatpush1.bf16.msra.mxu0 %v19998_v12  ;;  %v20015_v12 = vunpack.c.l.s8.bf16 %v20009_v37 }
 0x570   :  { %10929 = vmatpush1.bf16.msra.mxu1 %v20000_v60  ;;  %10867 = vmatprep.subr.bf16.mxu0 %v20001_v7  ;;  %v20017_v60 = vld [vmem:[#allocation218_spill] sm:$0xff] }
 0x571   :  { %10931 = vmatprep.subr.bf16.mxu1 %v20002_v23  ;;  %v20018_v7 = vunpack.c.h.s8.bf16 %v20017_v60  ;;  %v20019_v23 = vld [vmem:[#allocation251_spill] sm:$0xff]  ;;  %v20025_v46 = vunpack.c.l.s8.bf16 %v20017_v60  ;;  %v20035_v60 = vld [vmem:[#allocation257_spill] sm:$0xff] }
 0x572   :  { %v20026_v37 = vunpack.c.l.s8.bf16 %v20019_v23 }
 0x573   :  { %10869 = vmatpush1.bf16.msra.mxu0 %v20003_v13  ;;  %v20020_v13 = vunpack.c.h.s8.bf16 %v20019_v23 }
 0x574   :  { %10933 = vmatpush1.bf16.msra.mxu1 %v20004_v1  ;;  %10871 = vmatprep.subr.bf16.mxu0 %v20006_v11  ;;  %v20021_v1 = vld [vmem:[#allocation220_spill] sm:$0xff] }
 0x575   :  { %10935 = vmatprep.subr.bf16.mxu1 %v20008_v59  ;;  %v20022_v11 = vunpack.c.h.s8.bf16 %v20021_v1  ;;  %v20024_v59 = vunpack.c.h.s8.bf16 %v20023_v24  ;;  %v20040_v24 = vunpack.c.l.s8.bf16 %v20035_v60 }
 0x577   :  { %10873 = vmatpush1.bf16.msra.mxu0 %v20010_v5  ;;  %v20027_v5 = vunpack.c.l.s8.bf16 %v20021_v1 }
 0x578   :  { %10937 = vmatpush1.bf16.msra.mxu1 %v20012_v45  ;;  %10875 = vmatprep.subr.bf16.mxu0 %v20013_v8  ;;  %v20029_v45 = vld [vmem:[#allocation222_spill] sm:$0xff] }
 0x579   :  { %10939 = vmatprep.subr.bf16.mxu1 %v20014_v42  ;;  %v20030_v8 = vunpack.c.h.s8.bf16 %v20029_v45  ;;  %v20031_v42 = vld [vmem:[#allocation255_spill] sm:$0xff]  ;;  %v20037_v23 = vunpack.c.l.s8.bf16 %v20029_v45  ;;  %v20047_v45 = vld [vmem:[#allocation261_spill] sm:$0xff] }
 0x57a   :  { %v20038_v1 = vunpack.c.l.s8.bf16 %v20031_v42 }
 0x57b   :  { %10877 = vmatpush1.bf16.msra.mxu0 %v20015_v12  ;;  %v20032_v12 = vunpack.c.h.s8.bf16 %v20031_v42 }
 0x57c   :  { %10941 = vmatpush1.bf16.msra.mxu1 %v20016_v58  ;;  %10879 = vmatprep.subr.bf16.mxu0 %v20018_v7  ;;  %v20033_v58 = vld [vmem:[#allocation224_spill] sm:$0xff] }
 0x57d   :  { %10943 = vmatprep.subr.bf16.mxu1 %v20020_v13  ;;  %v20034_v7 = vunpack.c.h.s8.bf16 %v20033_v58  ;;  %v20036_v13 = vunpack.c.h.s8.bf16 %v20035_v60  ;;  %v20052_v60 = vunpack.c.l.s8.bf16 %v20047_v45 }
 0x57f   :  { %10881 = vmatpush2.bf16.msra.mxu0 %v20022_v11  ;;  %v20039_v11 = vunpack.c.l.s8.bf16 %v20033_v58 }
 0x580   :  { %10945 = vmatpush2.bf16.msra.mxu1 %v20024_v59  ;;  %10883 = vmatprep.subr.bf16.mxu0 %v20025_v46  ;;  %v20041_v59 = vld [vmem:[#allocation226_spill] sm:$0xff] }
 0x581   :  { %10947 = vmatprep.subr.bf16.mxu1 %v20026_v37  ;;  %v20042_v46 = vunpack.c.h.s8.bf16 %v20041_v59  ;;  %v20043_v37 = vld [vmem:[#allocation259_spill] sm:$0xff]  ;;  %v20049_v42 = vunpack.c.l.s8.bf16 %v20041_v59  ;;  %v20059_v59 = vld [vmem:[#allocation265_spill] sm:$0xff] }
 0x582   :  { %v20050_v58 = vunpack.c.l.s8.bf16 %v20043_v37 }
 0x583   :  { %10885 = vmatpush2.bf16.msra.mxu0 %v20027_v5  ;;  %v20044_v5 = vunpack.c.h.s8.bf16 %v20043_v37 }
 0x584   :  { %10949 = vmatpush2.bf16.msra.mxu1 %v20028_v3  ;;  %10887 = vmatprep.subr.bf16.mxu0 %v20030_v8  ;;  %v20045_v3 = vld [vmem:[#allocation228_spill] sm:$0xff] }
 0x585   :  { %10951 = vmatprep.subr.bf16.mxu1 %v20032_v12  ;;  %v20046_v8 = vunpack.c.h.s8.bf16 %v20045_v3  ;;  %v20048_v12 = vunpack.c.h.s8.bf16 %v20047_v45  ;;  %v20064_v45 = vunpack.c.l.s8.bf16 %v20059_v59 }
 0x587   :  { %10889 = vmatpush2.bf16.msra.mxu0 %v20034_v7  ;;  %v20051_v7 = vunpack.c.l.s8.bf16 %v20045_v3 }
 0x588   :  { %10953 = vmatpush2.bf16.msra.mxu1 %v20036_v13  ;;  %10891 = vmatprep.subr.bf16.mxu0 %v20037_v23  ;;  %v20053_v13 = vld [vmem:[#allocation230_spill] sm:$0xff] }
 0x589   :  { %10955 = vmatprep.subr.bf16.mxu1 %v20038_v1  ;;  %v20054_v23 = vunpack.c.h.s8.bf16 %v20053_v13  ;;  %v20055_v1 = vld [vmem:[#allocation263_spill] sm:$0xff]  ;;  %v20061_v37 = vunpack.c.l.s8.bf16 %v20053_v13  ;;  %v20070_v13 = vunpack.c.h.s8.bf16 %v14103_v21 }
 0x58a   :  { %v20062_v3 = vunpack.c.l.s8.bf16 %v20055_v1 }
 0x58b   :  { %10893 = vmatpush2.bf16.msra.mxu0 %v20039_v11  ;;  %v20056_v11 = vunpack.c.h.s8.bf16 %v20055_v1  ;;  %v20072_v1 = vunpack.c.l.s8.bf16 %v14087_v26 }
 0x58c   :  { %10957 = vmatpush2.bf16.msra.mxu1 %v20040_v24  ;;  %10895 = vmatprep.subr.bf16.mxu0 %v20042_v46  ;;  %v20057_v24 = vld [vmem:[#allocation232_spill] sm:$0xff] }
 0x58d   :  { %10959 = vmatprep.subr.bf16.mxu1 %v20044_v5  ;;  %v20058_v46 = vunpack.c.h.s8.bf16 %v20057_v24  ;;  %v20060_v5 = vunpack.c.h.s8.bf16 %v20059_v59 }
 0x58f   :  { %10897 = vmatpush2.bf16.msra.mxu0 %v20046_v8  ;;  %v20063_v8 = vunpack.c.l.s8.bf16 %v20057_v24  ;;  %v20074_v24 = vunpack.c.l.s8.bf16 %v14103_v21 }
 0x590   :  { %10961 = vmatpush2.bf16.msra.mxu1 %v20048_v12  ;;  %10899 = vmatprep.subr.bf16.mxu0 %v20049_v42  ;;  %v20065_v12 = vld [vmem:[#allocation234_spill] sm:$0xff] }
 0x591   :  { %10963 = vmatprep.subr.bf16.mxu1 %v20050_v58  ;;  %v20066_v42 = vunpack.c.h.s8.bf16 %v20065_v12  ;;  %v20067_v58 = vunpack.c.h.s8.bf16 %v14087_v26  ;;  %v20080_v26 = vunpack.c.h.s8.bf16 %v14137_v14 }
 0x593   :  { %10901 = vmatpush2.bf16.msra.mxu0 %v20051_v7  ;;  %v20068_v7 = vld [vmem:[#allocation236_spill] sm:$0xff] }
 0x594   :  { %10965 = vmatpush2.bf16.msra.mxu1 %v20052_v60  ;;  %10903 = vmatprep.subr.bf16.mxu0 %v20054_v23  ;;  %v20069_v60 = vunpack.c.h.s8.bf16 %v20068_v7  ;;  %v20071_v23 = vunpack.c.l.s8.bf16 %v20065_v12  ;;  %v20084_v12 = vunpack.c.l.s8.bf16 %v14137_v14 }
 0x595   :  { %10967 = vmatprep.subr.bf16.mxu1 %v20056_v11  ;;  %v20073_v11 = vunpack.c.l.s8.bf16 %v20068_v7  ;;  %v20087_v7 = vunpack.c.h.s8.bf16 %v14159_v25 }
 0x597   :  { %10905 = vmatpush2.bf16.msra.mxu0 %v20058_v46  ;;  %v20075_v46 = vld [vmem:[#allocation238_spill] sm:$0xff] }
 0x598   :  { %10969 = vmatpush2.bf16.msra.mxu1 %v20060_v5  ;;  %10907 = vmatprep.subr.bf16.mxu0 %v20061_v37  ;;  %v20076_v59 = vunpack.c.h.s8.bf16 %v20075_v46  ;;  %v20077_v5 = vunpack.c.h.s8.bf16 %v14119_v30  ;;  %v20078_v37 = vld [vmem:[#allocation241_spill] sm:$0xff] }
 0x599   :  { %10971 = vmatprep.subr.bf16.mxu1 %v20062_v3  ;;  %v20079_v3 = vunpack.c.h.s8.bf16 %v20078_v37  ;;  %v20083_v21 = vunpack.c.l.s8.bf16 %v20078_v37 }
 0x59b   :  { %10909 = vmatpush2.bf16.msra.mxu0 %v20063_v8  ;;  %v20081_v8 = vunpack.c.l.s8.bf16 %v20075_v46  ;;  %v20096_v46 = vld [vmem:[#allocation248_spill] sm:$0xff] }
 0x59c   :  { %10973 = vmatpush2.bf16.msra.mxu1 %v20064_v45  ;;  %10975 = vmatprep.subr.bf16.mxu0 %v20066_v42  ;;  %v20082_v45 = vunpack.c.l.s8.bf16 %v14119_v30  ;;  %v20085_v42 = vld [vmem:[#allocation244_spill] sm:$0xff] }
 0x59d   :  { %11039 = vmatprep.subr.bf16.mxu1 %v20067_v58  ;;  %v20086_v58 = vunpack.c.h.s8.bf16 %v20085_v42  ;;  %v20092_v30 = vunpack.c.l.s8.bf16 %v20085_v42 }
 0x59e   :  { %7112 = vmatmul.mubr.f32.vlgmr.msra.gmra.mxu0 %v15346_v44 }
 0x59f   :  { %7183 = vmatmul.mubr.f32.vlgmr.msra.gmra.mxu1 %v15497_v51  ;;  %10977 = vmatpush1.bf16.msra.mxu0 %v20069_v60  ;;  %v20088_v60 = vld [vmem:[#allocation246_spill] sm:$0xff] }
 0x5a0   :  { %11041 = vmatpush1.bf16.msra.mxu1 %v20070_v13  ;;  %10979 = vmatprep.subr.bf16.mxu0 %v20071_v23  ;;  %v20089_v13 = vunpack.c.h.s8.bf16 %v20088_v60  ;;  %v20090_v23 = vld [vmem:[#allocation274_spill] sm:$0xff]  ;;  %v20094_v14 = vunpack.c.l.s8.bf16 %v20088_v60  ;;  %v20110_v60 = vld [vmem:[#allocation280_spill] sm:$0xff] }
 0x5a1   :  { %11043 = vmatprep.subr.bf16.mxu1 %v20072_v1  ;;  %7253 = vmatprep.mubr.f32.mxu0 %v15370_v56  ;;  %v20091_v1 = vunpack.c.h.s8.bf16 %v20090_v23 }
 0x5a2   :  { %7324 = vmatprep.mubr.f32.mxu1 %v15164_v20 }
 0x5a3   :  { %10981 = vmatpush1.bf16.msra.mxu0 %v20073_v11  ;;  %v20093_v11 = vunpack.c.l.s8.bf16 %v14159_v25  ;;  %v20104_v25 = vunpack.c.l.s8.bf16 %v20096_v46 }
 0x5a4   :  { %11045 = vmatpush1.bf16.msra.mxu1 %v20074_v24  ;;  %10983 = vmatprep.subr.bf16.mxu0 %v20076_v59  ;;  %v20095_v24 = vunpack.c.l.s8.bf16 %v20090_v23  ;;  %v20097_v59 = vunpack.c.h.s8.bf16 %v20096_v46  ;;  %v20112_v23 = vld [vmem:[#allocation254_spill] sm:$0xff] }
 0x5a5   :  { %11047 = vmatprep.subr.bf16.mxu1 %v20077_v5  ;;  %v20098_v5 = vld [vmem:[#allocation276_spill] sm:$0xff]  ;;  %v20118_v46 = vunpack.c.l.s8.bf16 %v20112_v23 }
 0x5a6   :  { %v20099_v37 = vunpack.c.h.s8.bf16 %v20098_v5 }
 0x5a7   :  { %10985 = vmatpush1.bf16.msra.mxu0 %v20079_v3  ;;  %v20100_v3 = vld [vmem:[#allocation250_spill] sm:$0xff] }
 0x5a8   :  { %11049 = vmatpush1.bf16.msra.mxu1 %v20080_v26  ;;  %10987 = vmatprep.subr.bf16.mxu0 %v20081_v8  ;;  %v20101_v26 = vunpack.c.h.s8.bf16 %v20100_v3  ;;  %v20102_v8 = vld [vmem:[#allocation278_spill] sm:$0xff] }
 0x5a9   :  { %11051 = vmatprep.subr.bf16.mxu1 %v20082_v45  ;;  %v20103_v45 = vunpack.c.h.s8.bf16 %v20102_v8  ;;  %v20107_v42 = vunpack.c.l.s8.bf16 %v20102_v8  ;;  %v20124_v8 = vld [vmem:[#allocation258_spill] sm:$0xff] }
 0x5ab   :  { %10989 = vmatpush1.bf16.msra.mxu0 %v20083_v21  ;;  %v20105_v21 = vunpack.c.l.s8.bf16 %v20098_v5  ;;  %v20120_v5 = vld [vmem:[#allocation256_spill] sm:$0xff] }
 0x5ac   :  { %11053 = vmatpush1.bf16.msra.mxu1 %v20084_v12  ;;  %10991 = vmatprep.subr.bf16.mxu0 %v20086_v58  ;;  %v20106_v12 = vunpack.c.l.s8.bf16 %v20100_v3  ;;  %v20108_v58 = vld [vmem:[#allocation252_spill] sm:$0xff] }
 0x5ad   :  { %11055 = vmatprep.subr.bf16.mxu1 %v20087_v7  ;;  %v20109_v7 = vunpack.c.h.s8.bf16 %v20108_v58  ;;  %v20122_v3 = vld [vmem:[#allocation284_spill] sm:$0xff] }
 0x5af   :  { %10993 = vmatpush1.bf16.msra.mxu0 %v20089_v13  ;;  %v20111_v13 = vunpack.c.h.s8.bf16 %v20110_v60 }
 0x5b0   :  { %11057 = vmatpush1.bf16.msra.mxu1 %v20091_v1  ;;  %10995 = vmatprep.subr.bf16.mxu0 %v20092_v30  ;;  %v20113_v1 = vunpack.c.h.s8.bf16 %v20112_v23  ;;  %v20114_v30 = vld [vmem:[#allocation282_spill] sm:$0xff]  ;;  %v20134_v23 = vld [vmem:[#allocation288_spill] sm:$0xff] }
 0x5b1   :  { %11059 = vmatprep.subr.bf16.mxu1 %v20093_v11  ;;  %v20115_v11 = vunpack.c.h.s8.bf16 %v20114_v30 }
 0x5b3   :  { %10997 = vmatpush1.bf16.msra.mxu0 %v20094_v14  ;;  %v20116_v14 = vunpack.c.l.s8.bf16 %v20108_v58  ;;  %v20130_v58 = vunpack.c.l.s8.bf16 %v20124_v8 }
 0x5b4   :  { %11061 = vmatpush1.bf16.msra.mxu1 %v20095_v24  ;;  %10999 = vmatprep.subr.bf16.mxu0 %v20097_v59  ;;  %v20117_v24 = vunpack.c.l.s8.bf16 %v20110_v60  ;;  %v20119_v59 = vunpack.c.l.s8.bf16 %v20114_v30  ;;  %v20132_v60 = vld [vmem:[#allocation260_spill] sm:$0xff]  ;;  %v20136_v30 = vld [vmem:[#allocation262_spill] sm:$0xff] }
 0x5b5   :  { %11063 = vmatprep.subr.bf16.mxu1 %v20099_v37  ;;  %v20121_v37 = vunpack.c.h.s8.bf16 %v20120_v5 }
 0x5b7   :  { %11001 = vmatpush1.bf16.msra.mxu0 %v20101_v26  ;;  %v20123_v26 = vunpack.c.h.s8.bf16 %v20122_v3 }
 0x5b8   :  { %11065 = vmatpush1.bf16.msra.mxu1 %v20103_v45  ;;  %11003 = vmatprep.subr.bf16.mxu0 %v20104_v25  ;;  %v20125_v45 = vunpack.c.h.s8.bf16 %v20124_v8  ;;  %v20126_v25 = vld [vmem:[#allocation286_spill] sm:$0xff]  ;;  %v20146_v8 = vld [vmem:[#allocation292_spill] sm:$0xff] }
 0x5b9   :  { %11067 = vmatprep.subr.bf16.mxu1 %v20105_v21  ;;  %v20127_v21 = vunpack.c.h.s8.bf16 %v20126_v25 }
 0x5bb   :  { %11005 = vmatpush1.bf16.msra.mxu0 %v20106_v12  ;;  %v20128_v12 = vunpack.c.l.s8.bf16 %v20120_v5  ;;  %v20142_v5 = vunpack.c.l.s8.bf16 %v20136_v30 }
 0x5bc   :  { %11069 = vmatpush1.bf16.msra.mxu1 %v20107_v42  ;;  %11007 = vmatprep.subr.bf16.mxu0 %v20109_v7  ;;  %v20129_v42 = vunpack.c.l.s8.bf16 %v20122_v3  ;;  %v20131_v7 = vunpack.c.l.s8.bf16 %v20126_v25  ;;  %v20144_v3 = vld [vmem:[#allocation264_spill] sm:$0xff]  ;;  %v20148_v25 = vld [vmem:[#allocation266_spill] sm:$0xff] }
 0x5bd   :  { %11071 = vmatprep.subr.bf16.mxu1 %v20111_v13  ;;  %v20133_v13 = vunpack.c.h.s8.bf16 %v20132_v60 }
 0x5bf   :  { %11009 = vmatpush2.bf16.msra.mxu0 %v20113_v1  ;;  %v20135_v1 = vunpack.c.h.s8.bf16 %v20134_v23 }
 0x5c0   :  { %11073 = vmatpush2.bf16.msra.mxu1 %v20115_v11  ;;  %11011 = vmatprep.subr.bf16.mxu0 %v20116_v14  ;;  %v20137_v11 = vunpack.c.h.s8.bf16 %v20136_v30  ;;  %v20138_v14 = vld [vmem:[#allocation290_spill] sm:$0xff] }
 0x5c1   :  { %11075 = vmatprep.subr.bf16.mxu1 %v20117_v24  ;;  %v20139_v24 = vunpack.c.h.s8.bf16 %v20138_v14 }
 0x5c3   :  { %11013 = vmatpush2.bf16.msra.mxu0 %v20118_v46  ;;  %v20140_v46 = vunpack.c.l.s8.bf16 %v20132_v60  ;;  %v20152_v60 = vunpack.c.l.s8.bf16 %v20144_v3 }
 0x5c4   :  { %11077 = vmatpush2.bf16.msra.mxu1 %v20119_v59  ;;  %11015 = vmatprep.subr.bf16.mxu0 %v20121_v37  ;;  %v20141_v59 = vunpack.c.l.s8.bf16 %v20134_v23  ;;  %v20143_v37 = vunpack.c.l.s8.bf16 %v20138_v14  ;;  %v20154_v23 = vunpack.c.l.s8.bf16 %v20148_v25  ;;  %v20156_v14 = vld [vmem:[#allocation267_spill] sm:$0xff] }
 0x5c5   :  { %11079 = vmatprep.subr.bf16.mxu1 %v20123_v26  ;;  %v20145_v26 = vunpack.c.h.s8.bf16 %v20144_v3 }
 0x5c7   :  { %11017 = vmatpush2.bf16.msra.mxu0 %v20125_v45  ;;  %v20147_v45 = vunpack.c.h.s8.bf16 %v20146_v8 }
 0x5c8   :  { %11081 = vmatpush2.bf16.msra.mxu1 %v20127_v21  ;;  %11019 = vmatprep.subr.bf16.mxu0 %v20128_v12  ;;  %v20149_v21 = vunpack.c.h.s8.bf16 %v20148_v25  ;;  %v20150_v12 = vld [vmem:[#allocation294_spill] sm:$0xff] }
 0x5c9   :  { %11083 = vmatprep.subr.bf16.mxu1 %v20129_v42  ;;  %v20151_v42 = vunpack.c.h.s8.bf16 %v20150_v12 }
 0x5cb   :  { %11021 = vmatpush2.bf16.msra.mxu0 %v20130_v58  ;;  %v6687_v58 = vpop.f32.mrf.mxu0 }
 0x5cc   :  { %11085 = vmatpush2.bf16.msra.mxu1 %v20131_v7  ;;  %11023 = vmatprep.subr.bf16.mxu0 %v20133_v13  ;;  %v6758_v7 = vpop.f32.mrf.mxu1  ;;  %v20153_v13 = vunpack.c.l.s8.bf16 %v20146_v8 }
 0x5cd   :  { %11087 = vmatprep.subr.bf16.mxu1 %v20135_v1  ;;  %v20155_v1 = vunpack.c.l.s8.bf16 %v20150_v12  ;;  %v6689_v30 = vpop.f32.mrf.mxu0 }
 0x5cf   :  { %11025 = vmatpush2.bf16.msra.mxu0 %v20137_v11  ;;  %v6760_v11 = vpop.f32.mrf.mxu1 }
 0x5d0   :  { %11089 = vmatpush2.bf16.msra.mxu1 %v20139_v24  ;;  %11027 = vmatprep.subr.bf16.mxu0 %v20140_v46  ;;  %v20157_v24 = vunpack.c.h.s8.bf16 %v20156_v14  ;;  %v20158_v46 = vld [vmem:[#allocation296_spill] sm:$0xff] }
 0x5d1   :  { %11091 = vmatprep.subr.bf16.mxu1 %v20141_v59  ;;  %v20159_v59 = vunpack.c.h.s8.bf16 %v20158_v46 }
 0x5d3   :  { %11029 = vmatpush2.bf16.msra.mxu0 %v20142_v5  ;;  %v6759_v5 = vadd.f32 %v6758_v7, %v6687_v58  ;;  %v20164_v58 = vunpack.c.l.s8.bf16 %v20156_v14  ;;  %v20165_v7 = vunpack.c.l.s8.bf16 %v20158_v46 }
 0x5d4   :  { %11093 = vmatpush2.bf16.msra.mxu1 %v20143_v37  ;;  %11031 = vmatprep.subr.bf16.mxu0 %v20145_v26  ;;  %v8042_v37 = vsub.s32 6, %v15966_v53  ;;  %v6761_v26 = vadd.f32 %v6760_v11, %v6689_v30 }
 0x5d5   :  { %11095 = vmatprep.subr.bf16.mxu1 %v20147_v45  ;;  %v20160_v45 = vld [vmem:[#allocation268_spill] sm:$0xff] }
 0x5d6   :  { %v20161_v25 = vunpack.c.h.s8.bf16 %v20160_v45  ;;  %v20168_v46 = vunpack.c.l.s8.bf16 %v20160_v45 }
 0x5d7   :  { %11033 = vmatpush2.bf16.msra.mxu0 %v20149_v21  ;;  %v20162_v21 = vld [vmem:[#allocation298_spill] sm:$0xff] }
 0x5d8   :  { %11097 = vmatpush2.bf16.msra.mxu1 %v20151_v42  ;;  %11035 = vmatprep.subr.bf16.mxu0 %v20152_v60  ;;  %v20163_v12 = vunpack.c.h.s8.bf16 %v20162_v21  ;;  %v8046_v42 = vsub.s32 7, %v15966_v53 }
 0x5d9   :  { %11099 = vmatprep.subr.bf16.mxu1 %v20153_v13  ;;  %v20166_v13 = vld [vmem:[#allocation271_spill] sm:$0xff] }
 0x5da   :  { %v8047_v14 = vrot.slane %v15986_v39, %v8046_v42 }
 0x5db   :  { %11037 = vmatpush2.bf16.msra.mxu0 %v20154_v23 }
 0x5dc   :  { %11101 = vmatpush2.bf16.msra.mxu1 %v20155_v1  ;;  %11103 = vmatprep.subr.bf16.mxu0 %v20157_v24  ;;  %v8043_v1 = vrot.slane %v15986_v39, %v8042_v37  ;;  %v20167_v24 = vld [vmem:[#allocation272_spill] sm:$0xff]  ;;  %v20176_v39 = vld [vmem:[#allocation302_spill] sm:$0xff] }
 0x5dd   :  { %11167 = vmatprep.subr.bf16.mxu1 %v20159_v59  ;;  %v20177_v45 = vunpack.c.h.s8.bf16 %v20176_v39 }
 0x5de   :  { %v6829_v3 = vpop.f32.mrf.mxu0  ;;  %7254 = vmatmul.mubr.f32.vlgmr.msra.gmra.mxu0 %v15500_v40 }
 0x5df   :  { %7325 = vmatmul.mubr.f32.vlgmr.msra.gmra.mxu1 %v15346_v44  ;;  %v6830_v8 = vadd.f32 %v6829_v3, %v6759_v5  ;;  %11105 = vmatpush1.bf16.msra.mxu0 %v20161_v25  ;;  %v20169_v5 = vunpack.c.l.s8.bf16 %v20162_v21  ;;  %v20170_v3 = vld [vmem:[#allocation269_spill] sm:$0xff] }
 0x5e0   :  { %11169 = vmatpush1.bf16.msra.mxu1 %v20163_v12  ;;  %v6831_v60 = vpop.f32.mrf.mxu0  ;;  %11107 = vmatprep.subr.bf16.mxu0 %v20164_v58  ;;  %v20178_v21 = vunpack.c.l.s8.bf16 %v20170_v3 }
 0x5e1   :  { %11171 = vmatprep.subr.bf16.mxu1 %v20165_v7  ;;  %v7980_v23 = vsub.f32 %v20166_v13, %v6830_v8  ;;  %v6832_v30 = vadd.f32 %v6831_v60, %v6761_v26  ;;  %7395 = vmatprep.mubr.f32.mxu0 %v15367_v15  ;;  %v20171_v8 = vunpack.c.h.s8.bf16 %v20170_v3  ;;  %v20172_v26 = vld [vmem:[#allocation300_spill] sm:$0xff]  ;;  %v20174_v13 = vld [vmem:[#allocation270_spill] sm:$0xff] }
 0x5e2   :  { %7466 = vmatprep.mubr.f32.mxu1 %v15370_v56  ;;  %v20173_v25 = vunpack.c.h.s8.bf16 %v20172_v26 }
 0x5e3   :  { %v7998_v11 = vand.u32 2147483647, %v7980_v23  ;;  %v7981_v59 = vsub.f32 %v20167_v24, %v6832_v30  ;;  %11109 = vmatpush1.bf16.msra.mxu0 %v20168_v46  ;;  %v20175_v23 = vunpack.c.h.s8.bf16 %v20174_v13  ;;  %v20179_v30 = vunpack.c.l.s8.bf16 %v20172_v26 }
 0x5e4   :  { %11173 = vmatpush1.bf16.msra.mxu1 %v20169_v5  ;;  %11111 = vmatprep.subr.bf16.mxu0 %v20171_v8  ;;  %v20186_v5 = vld [vmem:[#allocation275_spill] sm:$0xff]  ;;  %v20188_v8 = vld [vmem:[#allocation306_spill] sm:$0xff] }
 0x5e5   :  { %11175 = vmatprep.subr.bf16.mxu1 %v20173_v25  ;;  %v8112_v12 = vmul.f32 %v8043_v1, %v7998_v11  ;;  %v7999_v60 = vand.u32 2147483647, %v7981_v59  ;;  %v20180_v1 = vunpack.c.l.s8.bf16 %v20174_v13  ;;  %v20182_v11 = vld [vmem:[#allocation273_spill] sm:$0xff]  ;;  %v20187_v3 = vunpack.c.h.s8.bf16 %v20186_v5 }
 0x5e6   :  { %v20183_v59 = vunpack.c.h.s8.bf16 %v20182_v11  ;;  %v20189_v26 = vunpack.c.h.s8.bf16 %v20188_v8  ;;  %v20190_v25 = vunpack.c.l.s8.bf16 %v20182_v11 }
 0x5e7   :  { %v8129_v58 = vadd.f32 %v16432_v28, %v8112_v12  ;;  %v8113_v7 = vmul.f32 %v8047_v14, %v7999_v60  ;;  %11113 = vmatpush1.bf16.msra.mxu0 %v20175_v23  ;;  %v20181_v28 = vunpack.c.l.s8.bf16 %v20176_v39  ;;  %v20184_v14 = vld [vmem:[#allocation304_spill] sm:$0xff]  ;;  %v20192_v60 = vunpack.c.l.s8.bf16 %v20186_v5 }
 0x5e8   :  { %11177 = vmatpush1.bf16.msra.mxu1 %v20177_v45  ;;  %11115 = vmatprep.subr.bf16.mxu0 %v20178_v21  ;;  %v20185_v46 = vunpack.c.h.s8.bf16 %v20184_v14  ;;  %v20191_v12 = vunpack.c.l.s8.bf16 %v20184_v14  ;;  %v20196_v23 = vld [vmem:[#allocation308_spill] sm:$0xff]  ;;  %v20198_v45 = vld [vmem:[#allocation279_spill] sm:$0xff] }
 0x5e9   :  { %11179 = vmatprep.subr.bf16.mxu1 %v20179_v30  ;;  %v16709_v24 = vadd.f32 %v8129_v58, %v8113_v7  ;;  %v20193_v58 = vunpack.c.l.s8.bf16 %v20188_v8  ;;  %v20194_v7 = vld [vmem:[#allocation277_spill] sm:$0xff]  ;;  %v20197_v39 = vunpack.c.h.s8.bf16 %v20196_v23  ;;  %v20199_v21 = vunpack.c.h.s8.bf16 %v20198_v45  ;;  %v20200_v30 = vld [vmem:[#allocation310_spill] sm:$0xff] }
 0x5ea   :  { %v20195_v13 = vunpack.c.h.s8.bf16 %v20194_v7  ;;  %v20203_v11 = vunpack.c.l.s8.bf16 %v20196_v23  ;;  %v20205_v14 = vunpack.c.l.s8.bf16 %v20200_v30 }
 0x5eb   :  { %11117 = vmatpush1.bf16.msra.mxu0 %v20180_v1  ;;  %v20201_v1 = vunpack.c.h.s8.bf16 %v20200_v30 }
 0x5ec   :  { %11181 = vmatpush1.bf16.msra.mxu1 %v20181_v28  ;;  %11119 = vmatprep.subr.bf16.mxu0 %v20183_v59  ;;  %v20202_v28 = vunpack.c.l.s8.bf16 %v20194_v7  ;;  %v20204_v59 = vunpack.c.l.s8.bf16 %v20198_v45 }
 0x5ed   :  { %11183 = vmatprep.subr.bf16.mxu1 %v20185_v46  ;;  %v20206_v46 = vld [vmem:[#allocation281_spill] sm:$0xff] }
 0x5ee   :  { %v20207_v5 = vunpack.c.h.s8.bf16 %v20206_v46 }
 0x5ef   :  { %11121 = vmatpush1.bf16.msra.mxu0 %v20187_v3  ;;  %v20208_v3 = vld [vmem:[#allocation312_spill] sm:$0xff] }
 0x5f0   :  { %11185 = vmatpush1.bf16.msra.mxu1 %v20189_v26  ;;  %11123 = vmatprep.subr.bf16.mxu0 %v20190_v25  ;;  %v20209_v8 = vunpack.c.h.s8.bf16 %v20208_v3  ;;  %v20210_v26 = vld [vmem:[#allocation283_spill] sm:$0xff]  ;;  %v20215_v7 = vunpack.c.l.s8.bf16 %v20208_v3 }
 0x5f1   :  { %11187 = vmatprep.subr.bf16.mxu1 %v20191_v12  ;;  %v20211_v25 = vunpack.c.h.s8.bf16 %v20210_v26  ;;  %v20212_v12 = vld [vmem:[#allocation314_spill] sm:$0xff] }
 0x5f2   :  { %v20217_v23 = vunpack.c.l.s8.bf16 %v20212_v12 }
 0x5f3   :  { %11125 = vmatpush1.bf16.msra.mxu0 %v20192_v60  ;;  %v20213_v60 = vunpack.c.h.s8.bf16 %v20212_v12 }
 0x5f4   :  { %11189 = vmatpush1.bf16.msra.mxu1 %v20193_v58  ;;  %11127 = vmatprep.subr.bf16.mxu0 %v20195_v13  ;;  %v20214_v58 = vunpack.c.l.s8.bf16 %v20206_v46  ;;  %v20216_v13 = vunpack.c.l.s8.bf16 %v20210_v26 }
 0x5f5   :  { %11191 = vmatprep.subr.bf16.mxu1 %v20197_v39  ;;  %v20218_v39 = vld [vmem:[#allocation285_spill] sm:$0xff] }
 0x5f6   :  { %v20219_v45 = vunpack.c.h.s8.bf16 %v20218_v39 }
 0x5f7   :  { %11129 = vmatpush1.bf16.msra.mxu0 %v20199_v21  ;;  %v20220_v21 = vld [vmem:[#allocation316_spill] sm:$0xff] }
 0x5f8   :  { %11193 = vmatpush1.bf16.msra.mxu1 %v20201_v1  ;;  %11131 = vmatprep.subr.bf16.mxu0 %v20202_v28  ;;  %v20221_v30 = vunpack.c.h.s8.bf16 %v20220_v21  ;;  %v20222_v1 = vld [vmem:[#allocation287_spill] sm:$0xff]  ;;  %v20227_v46 = vunpack.c.l.s8.bf16 %v20220_v21 }
 0x5f9   :  { %11195 = vmatprep.subr.bf16.mxu1 %v20203_v11  ;;  %v20223_v28 = vunpack.c.h.s8.bf16 %v20222_v1  ;;  %v20224_v11 = vld [vmem:[#allocation318_spill] sm:$0xff] }
 0x5fa   :  { %v20229_v3 = vunpack.c.l.s8.bf16 %v20224_v11 }
 0x5fb   :  { %11133 = vmatpush1.bf16.msra.mxu0 %v20204_v59  ;;  %v20225_v59 = vunpack.c.h.s8.bf16 %v20224_v11 }
 0x5fc   :  { %11197 = vmatpush1.bf16.msra.mxu1 %v20205_v14  ;;  %11135 = vmatprep.subr.bf16.mxu0 %v20207_v5  ;;  %v20226_v14 = vunpack.c.l.s8.bf16 %v20218_v39  ;;  %v20228_v5 = vunpack.c.l.s8.bf16 %v20222_v1 }
 0x5fd   :  { %11199 = vmatprep.subr.bf16.mxu1 %v20209_v8  ;;  %v20230_v8 = vld [vmem:[#allocation289_spill] sm:$0xff] }
 0x5fe   :  { %v20231_v26 = vunpack.c.h.s8.bf16 %v20230_v8 }
 0x5ff   :  { %11137 = vmatpush2.bf16.msra.mxu0 %v20211_v25  ;;  %v20232_v25 = vld [vmem:[#allocation320_spill] sm:$0xff] }
 0x600   :  { %11201 = vmatpush2.bf16.msra.mxu1 %v20213_v60  ;;  %11139 = vmatprep.subr.bf16.mxu0 %v20214_v58  ;;  %v20233_v12 = vunpack.c.h.s8.bf16 %v20232_v25  ;;  %v20234_v60 = vld [vmem:[#allocation291_spill] sm:$0xff]  ;;  %v20239_v39 = vunpack.c.l.s8.bf16 %v20232_v25 }
 0x601   :  { %11203 = vmatprep.subr.bf16.mxu1 %v20215_v7  ;;  %v20235_v58 = vunpack.c.h.s8.bf16 %v20234_v60  ;;  %v20236_v7 = vld [vmem:[#allocation322_spill] sm:$0xff] }
 0x602   :  { %v20241_v21 = vunpack.c.l.s8.bf16 %v20236_v7 }
 0x603   :  { %11141 = vmatpush2.bf16.msra.mxu0 %v20216_v13  ;;  %v20237_v13 = vunpack.c.h.s8.bf16 %v20236_v7 }
 0x604   :  { %11205 = vmatpush2.bf16.msra.mxu1 %v20217_v23  ;;  %11143 = vmatprep.subr.bf16.mxu0 %v20219_v45  ;;  %v20238_v23 = vunpack.c.l.s8.bf16 %v20230_v8  ;;  %v20240_v45 = vunpack.c.l.s8.bf16 %v20234_v60 }
 0x605   :  { %11207 = vmatprep.subr.bf16.mxu1 %v20221_v30  ;;  %v20242_v30 = vld [vmem:[#allocation293_spill] sm:$0xff] }
 0x606   :  { %v20243_v1 = vunpack.c.h.s8.bf16 %v20242_v30  ;;  %v20250_v8 = vunpack.c.l.s8.bf16 %v20242_v30 }
 0x607   :  { %11145 = vmatpush2.bf16.msra.mxu0 %v20223_v28  ;;  %v20244_v28 = vld [vmem:[#allocation324_spill] sm:$0xff] }
 0x608   :  { %11209 = vmatpush2.bf16.msra.mxu1 %v20225_v59  ;;  %11147 = vmatprep.subr.bf16.mxu0 %v20226_v14  ;;  %v20245_v11 = vunpack.c.h.s8.bf16 %v20244_v28  ;;  %v20246_v59 = vld [vmem:[#allocation295_spill] sm:$0xff] }
 0x609   :  { %11211 = vmatprep.subr.bf16.mxu1 %v20227_v46  ;;  %v20247_v14 = vunpack.c.h.s8.bf16 %v20246_v59  ;;  %v20248_v46 = vld [vmem:[#allocation326_spill] sm:$0xff]  ;;  %v20252_v25 = vunpack.c.l.s8.bf16 %v20246_v59 }
 0x60b   :  { %11149 = vmatpush2.bf16.msra.mxu0 %v20228_v5  ;;  %v20249_v5 = vunpack.c.h.s8.bf16 %v20248_v46 }
 0x60c   :  { %11213 = vmatpush2.bf16.msra.mxu1 %v20229_v3  ;;  %11151 = vmatprep.subr.bf16.mxu0 %v20231_v26  ;;  %v6900_v3 = vpop.f32.mrf.mxu1  ;;  %v20251_v26 = vunpack.c.l.s8.bf16 %v20244_v28 }
 0x60d   :  { %11215 = vmatprep.subr.bf16.mxu1 %v20233_v12  ;;  %v20253_v12 = vunpack.c.l.s8.bf16 %v20248_v46  ;;  %v16825_v46 = vld [vmem:[#allocation7 + $0x8] sm:$0xff] }
 0x60e   :  { %v6902_v60 = vpop.f32.mrf.mxu1 }
 0x60f   :  { %11153 = vmatpush2.bf16.msra.mxu0 %v20235_v58  ;;  %v20254_v58 = vld [vmem:[#allocation297_spill] sm:$0xff] }
 0x610   :  { %11217 = vmatpush2.bf16.msra.mxu1 %v20237_v13  ;;  %11155 = vmatprep.subr.bf16.mxu0 %v20238_v23  ;;  %v20255_v7 = vunpack.c.h.s8.bf16 %v20254_v58  ;;  %v20256_v13 = vld [vmem:[#allocation328_spill] sm:$0xff] }
 0x611   :  { %11219 = vmatprep.subr.bf16.mxu1 %v20239_v39  ;;  %v20257_v23 = vunpack.c.h.s8.bf16 %v20256_v13 }
 0x613   :  { %11157 = vmatpush2.bf16.msra.mxu0 %v20240_v45 }
 0x614   :  { %11221 = vmatpush2.bf16.msra.mxu1 %v20241_v21  ;;  %11159 = vmatprep.subr.bf16.mxu0 %v20243_v1  ;;  %v4992_v21 = vadd.f32 %v15812_v17, %v15810_v48  ;;  %v20258_v1 = vld [vmem:[#allocation299_spill] sm:$0xff] }
 0x615   :  { %11223 = vmatprep.subr.bf16.mxu1 %v20245_v11  ;;  %v20259_v28 = vunpack.c.h.s8.bf16 %v20258_v1  ;;  %v20260_v11 = vld [vmem:[#allocation330_spill] sm:$0xff] }
 0x616   :  { %v20261_v59 = vunpack.c.h.s8.bf16 %v20260_v11  ;;  %v5063_v48 = vadd.f32 %v15830_v32, %v4992_v21  ;;  %v20266_v32 = vld [vmem:[#allocation301_spill] sm:$0xff] }
 0x617   :  { %11161 = vmatpush2.bf16.msra.mxu0 %v20247_v14  ;;  %v4994_v14 = vadd.f32 %v15824_v27, %v15822_v62 }
 0x618   :  { %11225 = vmatpush2.bf16.msra.mxu1 %v20249_v5  ;;  %11163 = vmatprep.subr.bf16.mxu0 %v20250_v8 }
 0x619   :  { %11227 = vmatprep.subr.bf16.mxu1 %v20251_v26  ;;  %v20262_v26 = vunpack.c.l.s8.bf16 %v20254_v58  ;;  %v5065_v62 = vadd.f32 %v15842_v18, %v4994_v14  ;;  %v20264_v58 = vunpack.c.l.s8.bf16 %v20258_v1  ;;  %v8055_v18 = vrot.slane %v16825_v46, %v15982_v50  ;;  %v20272_v1 = vld [vmem:[#allocation334_spill] sm:$0xff] }
 0x61b   :  { %11165 = vmatpush2.bf16.msra.mxu0 %v20252_v25  ;;  %v20263_v25 = vunpack.c.l.s8.bf16 %v20256_v13  ;;  %v20265_v13 = vunpack.c.l.s8.bf16 %v20260_v11  ;;  %v20274_v11 = vunpack.c.l.s8.bf16 %v20266_v32 }
 0x61c   :  { %11229 = vmatpush2.bf16.msra.mxu1 %v20253_v12  ;;  %11231 = vmatprep.subr.bf16.mxu0 %v20255_v7  ;;  %v8051_v12 = vrot.slane %v16825_v46, %v15979_v31 }
 0x61d   :  { %11295 = vmatprep.subr.bf16.mxu1 %v20257_v23  ;;  %v20267_v23 = vunpack.c.h.s8.bf16 %v20266_v32  ;;  %v20284_v32 = vld [vmem:[#allocation338_spill] sm:$0xff] }
 0x61e   :  { %v6971_v39 = vpop.f32.mrf.mxu0  ;;  %7396 = vmatmul.mubr.f32.vlgmr.msra.gmra.mxu0 %v15497_v51 }
 0x61f   :  { %v7042_v45 = vpop.f32.mrf.mxu1  ;;  %7467 = vmatmul.mubr.f32.vlgmr.msra.gmra.mxu1 %v15500_v40  ;;  %v6972_v30 = vadd.f32 %v6971_v39, %v6900_v3  ;;  %11233 = vmatpush1.bf16.msra.mxu0 %v20259_v28 }
 0x620   :  { %11297 = vmatpush1.bf16.msra.mxu1 %v20261_v59  ;;  %v6973_v5 = vpop.f32.mrf.mxu0  ;;  %11235 = vmatprep.subr.bf16.mxu0 %v20262_v26  ;;  %v20270_v59 = vld [vmem:[#allocation303_spill] sm:$0xff] }
 0x621   :  { %v7044_v8 = vpop.f32.mrf.mxu1  ;;  %11299 = vmatprep.subr.bf16.mxu1 %v20263_v25  ;;  %v7043_v17 = vadd.f32 %v7042_v45, %v6972_v30  ;;  %v6974_v3 = vadd.f32 %v6973_v5, %v6902_v60  ;;  %7537 = vmatprep.mubr.f32.mxu0 %v15164_v20  ;;  %v20268_v60 = vld [vmem:[#allocation332_spill] sm:$0xff]  ;;  %v20271_v14 = vunpack.c.h.s8.bf16 %v20270_v59  ;;  %v20273_v5 = vunpack.c.h.s8.bf16 %v20272_v1 }
 0x622   :  { %7608 = vmatprep.mubr.f32.mxu1 %v15367_v15  ;;  %v20269_v39 = vunpack.c.h.s8.bf16 %v20268_v60 }
 0x623   :  { %v7982_v27 = vsub.f32 %v5063_v48, %v7043_v17  ;;  %v7045_v7 = vadd.f32 %v7044_v8, %v6974_v3  ;;  %11237 = vmatpush1.bf16.msra.mxu0 %v20264_v58  ;;  %v20275_v8 = vunpack.c.l.s8.bf16 %v20268_v60  ;;  %v20276_v17 = vunpack.c.l.s8.bf16 %v20270_v59  ;;  %v20282_v58 = vld [vmem:[#allocation307_spill] sm:$0xff] }
 0x624   :  { %11301 = vmatpush1.bf16.msra.mxu1 %v20265_v13  ;;  %11239 = vmatprep.subr.bf16.mxu0 %v20267_v23  ;;  %v20277_v3 = vunpack.c.l.s8.bf16 %v20272_v1  ;;  %v20283_v13 = vunpack.c.h.s8.bf16 %v20282_v58  ;;  %v20294_v59 = vld [vmem:[#allocation311_spill] sm:$0xff]  ;;  %v20296_v1 = vld [vmem:[#allocation342_spill] sm:$0xff] }
 0x625   :  { %11303 = vmatprep.subr.bf16.mxu1 %v20269_v39  ;;  %v8000_v45 = vand.u32 2147483647, %v7982_v27  ;;  %v7983_v21 = vsub.f32 %v5065_v62, %v7045_v7  ;;  %v20278_v62 = vld [vmem:[#allocation305_spill] sm:$0xff]  ;;  %v20288_v39 = vunpack.c.l.s8.bf16 %v20282_v58  ;;  %v20308_v58 = vld [vmem:[#allocation346_spill] sm:$0xff] }
 0x626   :  { %v20279_v27 = vunpack.c.h.s8.bf16 %v20278_v62  ;;  %v20286_v23 = vunpack.c.l.s8.bf16 %v20278_v62  ;;  %v20304_v62 = vld [vmem:[#allocation344_spill] sm:$0xff] }
 0x627   :  { %v8114_v30 = vmul.f32 %v8051_v12, %v8000_v45  ;;  %v8001_v28 = vand.u32 2147483647, %v7983_v21  ;;  %11241 = vmatpush1.bf16.msra.mxu0 %v20271_v14  ;;  %v20280_v12 = vld [vmem:[#allocation336_spill] sm:$0xff]  ;;  %v20289_v45 = vunpack.c.l.s8.bf16 %v20284_v32  ;;  %v20290_v21 = vld [vmem:[#allocation309_spill] sm:$0xff]  ;;  %v20295_v14 = vunpack.c.h.s8.bf16 %v20294_v59 }
 0x628   :  { %11305 = vmatpush1.bf16.msra.mxu1 %v20273_v5  ;;  %11243 = vmatprep.subr.bf16.mxu0 %v20274_v11  ;;  %v20281_v7 = vunpack.c.h.s8.bf16 %v20280_v12  ;;  %v20287_v60 = vunpack.c.l.s8.bf16 %v20280_v12  ;;  %v20297_v5 = vunpack.c.h.s8.bf16 %v20296_v1  ;;  %v20298_v11 = vunpack.c.l.s8.bf16 %v20290_v21  ;;  %v20306_v12 = vld [vmem:[#allocation315_spill] sm:$0xff] }
 0x629   :  { %11307 = vmatprep.subr.bf16.mxu1 %v20275_v8  ;;  %v8131_v26 = vadd.f32 %v16709_v24, %v8114_v30  ;;  %v8115_v25 = vmul.f32 %v8055_v18, %v8001_v28  ;;  %v20285_v24 = vunpack.c.h.s8.bf16 %v20284_v32  ;;  %v20291_v18 = vunpack.c.h.s8.bf16 %v20290_v21  ;;  %v20292_v30 = vld [vmem:[#allocation340_spill] sm:$0xff] }
 0x62a   :  { %v20293_v28 = vunpack.c.h.s8.bf16 %v20292_v30  ;;  %v20299_v8 = vunpack.c.l.s8.bf16 %v20292_v30  ;;  %v20316_v21 = vld [vmem:[#allocation348_spill] sm:$0xff]  ;;  %v20318_v30 = vld [vmem:[#allocation319_spill] sm:$0xff] }
 0x62b   :  { %v16856_v48 = vadd.f32 %v8131_v26, %v8115_v25  ;;  %11245 = vmatpush1.bf16.msra.mxu0 %v20276_v17  ;;  %v20300_v26 = vunpack.c.l.s8.bf16 %v20294_v59  ;;  %v20301_v25 = vunpack.c.l.s8.bf16 %v20296_v1  ;;  %v20302_v17 = vld [vmem:[#allocation313_spill] sm:$0xff]  ;;  %v20320_v59 = vld [vmem:[#allocation350_spill] sm:$0xff] }
 0x62c   :  { %11309 = vmatpush1.bf16.msra.mxu1 %v20277_v3  ;;  %11247 = vmatprep.subr.bf16.mxu0 %v20279_v27  ;;  %v20303_v3 = vunpack.c.h.s8.bf16 %v20302_v17  ;;  %v20305_v27 = vunpack.c.h.s8.bf16 %v20304_v62  ;;  %v20310_v32 = vunpack.c.l.s8.bf16 %v20302_v17  ;;  %v20328_v17 = vld [vmem:[#allocation352_spill] sm:$0xff] }
 0x62d   :  { %11311 = vmatprep.subr.bf16.mxu1 %v20281_v7  ;;  %v20307_v7 = vunpack.c.h.s8.bf16 %v20306_v12 }
 0x62f   :  { %11249 = vmatpush1.bf16.msra.mxu0 %v20283_v13  ;;  %v20309_v13 = vunpack.c.h.s8.bf16 %v20308_v58 }
 0x630   :  { %11313 = vmatpush1.bf16.msra.mxu1 %v20285_v24  ;;  %11251 = vmatprep.subr.bf16.mxu0 %v20286_v23  ;;  %v20311_v24 = vunpack.c.l.s8.bf16 %v20304_v62  ;;  %v20312_v23 = vunpack.c.l.s8.bf16 %v20306_v12  ;;  %v20330_v62 = vld [vmem:[#allocation323_spill] sm:$0xff]  ;;  %v20332_v12 = vld [vmem:[#allocation354_spill] sm:$0xff] }
 0x631   :  { %11315 = vmatprep.subr.bf16.mxu1 %v20287_v60  ;;  %v20313_v60 = vunpack.c.l.s8.bf16 %v20308_v58 }
 0x633   :  { %11253 = vmatpush1.bf16.msra.mxu0 %v20288_v39  ;;  %v20314_v39 = vld [vmem:[#allocation317_spill] sm:$0xff] }
 0x634   :  { %11317 = vmatpush1.bf16.msra.mxu1 %v20289_v45  ;;  %11255 = vmatprep.subr.bf16.mxu0 %v20291_v18  ;;  %v20315_v45 = vunpack.c.h.s8.bf16 %v20314_v39  ;;  %v20317_v18 = vunpack.c.h.s8.bf16 %v20316_v21  ;;  %v20322_v1 = vunpack.c.l.s8.bf16 %v20314_v39  ;;  %v20340_v39 = vld [vmem:[#allocation356_spill] sm:$0xff] }
 0x635   :  { %11319 = vmatprep.subr.bf16.mxu1 %v20293_v28  ;;  %v20319_v28 = vunpack.c.h.s8.bf16 %v20318_v30 }
 0x637   :  { %11257 = vmatpush1.bf16.msra.mxu0 %v20295_v14  ;;  %v20321_v14 = vunpack.c.h.s8.bf16 %v20320_v59 }
 0x638   :  { %11321 = vmatpush1.bf16.msra.mxu1 %v20297_v5  ;;  %11259 = vmatprep.subr.bf16.mxu0 %v20298_v11  ;;  %v20323_v5 = vunpack.c.l.s8.bf16 %v20316_v21  ;;  %v20324_v11 = vunpack.c.l.s8.bf16 %v20318_v30  ;;  %v20342_v21 = vld [vmem:[#allocation327_spill] sm:$0xff]  ;;  %v20344_v30 = vld [vmem:[#allocation358_spill] sm:$0xff] }
 0x639   :  { %11323 = vmatprep.subr.bf16.mxu1 %v20299_v8  ;;  %v20325_v8 = vunpack.c.l.s8.bf16 %v20320_v59 }
 0x63b   :  { %11261 = vmatpush1.bf16.msra.mxu0 %v20300_v26  ;;  %v20326_v26 = vld [vmem:[#allocation321_spill] sm:$0xff] }
 0x63c   :  { %11325 = vmatpush1.bf16.msra.mxu1 %v20301_v25  ;;  %11263 = vmatprep.subr.bf16.mxu0 %v20303_v3  ;;  %v20327_v25 = vunpack.c.h.s8.bf16 %v20326_v26  ;;  %v20329_v3 = vunpack.c.h.s8.bf16 %v20328_v17  ;;  %v20334_v58 = vunpack.c.l.s8.bf16 %v20326_v26  ;;  %v20352_v26 = vunpack.c.h.s8.bf16 %v14871_v55 }
 0x63d   :  { %11327 = vmatprep.subr.bf16.mxu1 %v20305_v27  ;;  %v20331_v27 = vunpack.c.h.s8.bf16 %v20330_v62 }
 0x63f   :  { %11265 = vmatpush2.bf16.msra.mxu0 %v20307_v7  ;;  %v20333_v7 = vunpack.c.h.s8.bf16 %v20332_v12 }
 0x640   :  { %11329 = vmatpush2.bf16.msra.mxu1 %v20309_v13  ;;  %11267 = vmatprep.subr.bf16.mxu0 %v20310_v32  ;;  %v20335_v13 = vunpack.c.l.s8.bf16 %v20328_v17  ;;  %v20336_v32 = vunpack.c.l.s8.bf16 %v20330_v62 }
 0x641   :  { %11331 = vmatprep.subr.bf16.mxu1 %v20311_v24  ;;  %v20337_v24 = vunpack.c.l.s8.bf16 %v20332_v12 }
 0x643   :  { %11269 = vmatpush2.bf16.msra.mxu0 %v20312_v23  ;;  %v20338_v23 = vld [vmem:[#allocation325_spill] sm:$0xff] }
 0x644   :  { %11333 = vmatpush2.bf16.msra.mxu1 %v20313_v60  ;;  %11271 = vmatprep.subr.bf16.mxu0 %v20315_v45  ;;  %v20339_v60 = vunpack.c.h.s8.bf16 %v20338_v23  ;;  %v20341_v45 = vunpack.c.h.s8.bf16 %v20340_v39  ;;  %v20346_v59 = vunpack.c.l.s8.bf16 %v20338_v23  ;;  %v20364_v23 = vld [vmem:[#allocation335_spill] sm:$0xff] }
 0x645   :  { %11335 = vmatprep.subr.bf16.mxu1 %v20317_v18  ;;  %v20343_v18 = vunpack.c.h.s8.bf16 %v20342_v21 }
 0x647   :  { %11273 = vmatpush2.bf16.msra.mxu0 %v20319_v28  ;;  %v20345_v28 = vunpack.c.h.s8.bf16 %v20344_v30 }
 0x648   :  { %11337 = vmatpush2.bf16.msra.mxu1 %v20321_v14  ;;  %11275 = vmatprep.subr.bf16.mxu0 %v20322_v1  ;;  %v20347_v14 = vunpack.c.l.s8.bf16 %v20340_v39  ;;  %v20348_v1 = vunpack.c.l.s8.bf16 %v20342_v21 }
 0x649   :  { %11339 = vmatprep.subr.bf16.mxu1 %v20323_v5  ;;  %v20349_v5 = vunpack.c.l.s8.bf16 %v20344_v30 }
 0x64b   :  { %11277 = vmatpush2.bf16.msra.mxu0 %v20324_v11  ;;  %v20350_v11 = vld [vmem:[#allocation329_spill] sm:$0xff] }
 0x64c   :  { %11341 = vmatpush2.bf16.msra.mxu1 %v20325_v8  ;;  %11279 = vmatprep.subr.bf16.mxu0 %v20327_v25  ;;  %v20351_v8 = vunpack.c.h.s8.bf16 %v20350_v11  ;;  %v20353_v25 = vld [vmem:[#allocation331_spill] sm:$0xff]  ;;  %v20356_v62 = vunpack.c.l.s8.bf16 %v20350_v11 }
 0x64d   :  { %11343 = vmatprep.subr.bf16.mxu1 %v20329_v3  ;;  %v20354_v17 = vunpack.c.h.s8.bf16 %v20353_v25  ;;  %v20355_v3 = vunpack.c.h.s8.bf16 %v14887_v61  ;;  %v20358_v12 = vunpack.c.l.s8.bf16 %v20353_v25 }
 0x64f   :  { %11281 = vmatpush2.bf16.msra.mxu0 %v20331_v27  ;;  %v20357_v27 = vunpack.c.l.s8.bf16 %v14871_v55  ;;  %v20366_v55 = vld [vmem:[#allocation364_spill] sm:$0xff] }
 0x650   :  { %11345 = vmatpush2.bf16.msra.mxu1 %v20333_v7  ;;  %11283 = vmatprep.subr.bf16.mxu0 %v20334_v58  ;;  %v20359_v7 = vunpack.c.l.s8.bf16 %v14887_v61  ;;  %v20360_v58 = vld [vmem:[#allocation333_spill] sm:$0xff]  ;;  %v20367_v39 = vunpack.c.h.s8.bf16 %v20366_v55  ;;  %v20370_v61 = vunpack.c.l.s8.bf16 %v20364_v23  ;;  %v20371_v21 = vunpack.c.l.s8.bf16 %v20366_v55 }
 0x651   :  { %11347 = vmatprep.subr.bf16.mxu1 %v20335_v13  ;;  %v20361_v13 = vunpack.c.h.s8.bf16 %v20360_v58 }
 0x653   :  { %11285 = vmatpush2.bf16.msra.mxu0 %v20336_v32  ;;  %v20362_v32 = vld [vmem:[#allocation362_spill] sm:$0xff] }
 0x654   :  { %11349 = vmatpush2.bf16.msra.mxu1 %v20337_v24  ;;  %11287 = vmatprep.subr.bf16.mxu0 %v20339_v60  ;;  %v20363_v24 = vunpack.c.h.s8.bf16 %v20362_v32  ;;  %v20365_v60 = vunpack.c.h.s8.bf16 %v20364_v23 }
 0x655   :  { %11351 = vmatprep.subr.bf16.mxu1 %v20341_v45  ;;  %v20369_v45 = vunpack.c.l.s8.bf16 %v20362_v32 }
 0x657   :  { %11289 = vmatpush2.bf16.msra.mxu0 %v20343_v18  ;;  %v20372_v18 = vld [vmem:[#allocation337_spill] sm:$0xff] }
 0x658   :  { %11353 = vmatpush2.bf16.msra.mxu1 %v20345_v28  ;;  %11291 = vmatprep.subr.bf16.mxu0 %v20346_v59  ;;  %v20373_v30 = vunpack.c.h.s8.bf16 %v20372_v18  ;;  %v20374_v28 = vld [vmem:[#allocation366_spill] sm:$0xff] }
 0x659   :  { %11355 = vmatprep.subr.bf16.mxu1 %v20347_v14  ;;  %v20375_v59 = vunpack.c.h.s8.bf16 %v20374_v28  ;;  %v20376_v14 = vld [vmem:[#allocation339_spill] sm:$0xff] }
 0x65a   :  { %v20382_v25 = vunpack.c.l.s8.bf16 %v20376_v14 }
 0x65b   :  { %11293 = vmatpush2.bf16.msra.mxu0 %v20348_v1  ;;  %v20377_v1 = vunpack.c.h.s8.bf16 %v20376_v14 }
 0x65c   :  { %11357 = vmatpush2.bf16.msra.mxu1 %v20349_v5  ;;  %11359 = vmatprep.subr.bf16.mxu0 %v20351_v8  ;;  %v20378_v5 = vld [vmem:[#allocation368_spill] sm:$0xff]  ;;  %v20380_v8 = vunpack.c.l.s8.bf16 %v20372_v18 }
 0x65d   :  { %11423 = vmatprep.subr.bf16.mxu1 %v20352_v26  ;;  %v20379_v11 = vunpack.c.h.s8.bf16 %v20378_v5  ;;  %v20381_v26 = vunpack.c.l.s8.bf16 %v20374_v28 }
 0x65e   :  { %7538 = vmatmul.mubr.f32.vlgmr.msra.gmra.mxu0 %v15346_v44 }
 0x65f   :  { %7609 = vmatmul.mubr.f32.vlgmr.msra.gmra.mxu1 %v15497_v51  ;;  %11361 = vmatpush1.bf16.msra.mxu0 %v20354_v17  ;;  %v20383_v17 = vunpack.c.l.s8.bf16 %v20378_v5 }
 0x660   :  { %11425 = vmatpush1.bf16.msra.mxu1 %v20355_v3  ;;  %11363 = vmatprep.subr.bf16.mxu0 %v20356_v62  ;;  %v20384_v3 = vld [vmem:[#allocation341_spill] sm:$0xff] }
 0x661   :  { %11427 = vmatprep.subr.bf16.mxu1 %v20357_v27  ;;  %7679 = vmatprep.mubr.f32.mxu0 %v15370_v56  ;;  %v20385_v62 = vunpack.c.h.s8.bf16 %v20384_v3  ;;  %v20386_v27 = vld [vmem:[#allocation370_spill] sm:$0xff] }
 0x662   :  { %7750 = vmatprep.mubr.f32.mxu1 %v15164_v20  ;;  %v20368_v20 = vunpack.c.l.s8.bf16 %v20360_v58  ;;  %v20393_v23 = vunpack.c.l.s8.bf16 %v20386_v27 }
 0x663   :  { %11365 = vmatpush1.bf16.msra.mxu0 %v20358_v12  ;;  %v20387_v12 = vunpack.c.h.s8.bf16 %v20386_v27 }
 0x664   :  { %11429 = vmatpush1.bf16.msra.mxu1 %v20359_v7  ;;  %11367 = vmatprep.subr.bf16.mxu0 %v20361_v13  ;;  %v20388_v7 = vld [vmem:[#allocation343_spill] sm:$0xff]  ;;  %v20390_v13 = vld [vmem:[#allocation372_spill] sm:$0xff] }
 0x665   :  { %11431 = vmatprep.subr.bf16.mxu1 %v20363_v24  ;;  %v20389_v58 = vunpack.c.h.s8.bf16 %v20388_v7  ;;  %v20391_v32 = vunpack.c.h.s8.bf16 %v20390_v13  ;;  %v20392_v24 = vunpack.c.l.s8.bf16 %v20384_v3  ;;  %v20395_v55 = vunpack.c.l.s8.bf16 %v20390_v13 }
 0x667   :  { %11369 = vmatpush1.bf16.msra.mxu0 %v20365_v60  ;;  %v20394_v60 = vunpack.c.l.s8.bf16 %v20388_v7 }
 0x668   :  { %11433 = vmatpush1.bf16.msra.mxu1 %v20367_v39  ;;  %11371 = vmatprep.subr.bf16.mxu0 %v20368_v20  ;;  %v20396_v39 = vld [vmem:[#allocation345_spill] sm:$0xff] }
 0x669   :  { %11435 = vmatprep.subr.bf16.mxu1 %v20369_v45  ;;  %v20397_v20 = vunpack.c.h.s8.bf16 %v20396_v39  ;;  %v20398_v45 = vld [vmem:[#allocation374_spill] sm:$0xff] }
 0x66a   :  { %v20405_v14 = vunpack.c.l.s8.bf16 %v20398_v45 }
 0x66b   :  { %11373 = vmatpush1.bf16.msra.mxu0 %v20370_v61  ;;  %v20399_v61 = vunpack.c.h.s8.bf16 %v20398_v45 }
 0x66c   :  { %11437 = vmatpush1.bf16.msra.mxu1 %v20371_v21  ;;  %11375 = vmatprep.subr.bf16.mxu0 %v20373_v30  ;;  %v20400_v21 = vld [vmem:[#allocation347_spill] sm:$0xff]  ;;  %v20402_v30 = vld [vmem:[#allocation376_spill] sm:$0xff] }
 0x66d   :  { %11439 = vmatprep.subr.bf16.mxu1 %v20375_v59  ;;  %v20401_v18 = vunpack.c.h.s8.bf16 %v20400_v21  ;;  %v20403_v28 = vunpack.c.h.s8.bf16 %v20402_v30  ;;  %v20404_v59 = vunpack.c.l.s8.bf16 %v20396_v39  ;;  %v20407_v5 = vunpack.c.l.s8.bf16 %v20402_v30  ;;  %v20431_v30 = vld [vmem:[#allocation357_spill] sm:$0xff] }
 0x66f   :  { %11377 = vmatpush1.bf16.msra.mxu0 %v20377_v1  ;;  %v20406_v1 = vunpack.c.l.s8.bf16 %v20400_v21 }
 0x670   :  { %11441 = vmatpush1.bf16.msra.mxu1 %v20379_v11  ;;  %11379 = vmatprep.subr.bf16.mxu0 %v20380_v8  ;;  %v20408_v11 = vld [vmem:[#allocation349_spill] sm:$0xff] }
 0x671   :  { %11443 = vmatprep.subr.bf16.mxu1 %v20381_v26  ;;  %v20409_v8 = vunpack.c.h.s8.bf16 %v20408_v11  ;;  %v20410_v26 = vld [vmem:[#allocation378_spill] sm:$0xff] }
 0x672   :  { %v20417_v7 = vunpack.c.l.s8.bf16 %v20410_v26 }
 0x673   :  { %11381 = vmatpush1.bf16.msra.mxu0 %v20382_v25  ;;  %v20411_v25 = vunpack.c.h.s8.bf16 %v20410_v26  ;;  %v20440_v26 = vunpack.c.l.s8.bf16 %v15115_v4 }
 0x674   :  { %11445 = vmatpush1.bf16.msra.mxu1 %v20383_v17  ;;  %11383 = vmatprep.subr.bf16.mxu0 %v20385_v62  ;;  %v20412_v17 = vld [vmem:[#allocation351_spill] sm:$0xff]  ;;  %v20414_v62 = vld [vmem:[#allocation380_spill] sm:$0xff] }
 0x675   :  { %11447 = vmatprep.subr.bf16.mxu1 %v20387_v12  ;;  %v20413_v3 = vunpack.c.h.s8.bf16 %v20412_v17  ;;  %v20415_v27 = vunpack.c.h.s8.bf16 %v20414_v62  ;;  %v20416_v12 = vunpack.c.l.s8.bf16 %v20408_v11  ;;  %v20419_v13 = vunpack.c.l.s8.bf16 %v20414_v62  ;;  %v20444_v62 = vld [vmem:[#allocation361_spill] sm:$0xff] }
 0x676   :  { %v20437_v11 = vunpack.c.l.s8.bf16 %v20431_v30 }
 0x677   :  { %11385 = vmatpush1.bf16.msra.mxu0 %v20389_v58  ;;  %v20418_v58 = vunpack.c.l.s8.bf16 %v20412_v17 }
 0x678   :  { %11449 = vmatpush1.bf16.msra.mxu1 %v20391_v32  ;;  %11387 = vmatprep.subr.bf16.mxu0 %v20392_v24  ;;  %v20420_v32 = vld [vmem:[#allocation353_spill] sm:$0xff] }
 0x679   :  { %11451 = vmatprep.subr.bf16.mxu1 %v20393_v23  ;;  %v20421_v24 = vunpack.c.h.s8.bf16 %v20420_v32  ;;  %v20422_v23 = vld [vmem:[#allocation382_spill] sm:$0xff]  ;;  %v20427_v45 = vunpack.c.l.s8.bf16 %v20420_v32  ;;  %v20453_v32 = vunpack.c.h.s8.bf16 %v15161_v35 }
 0x67b   :  { %11389 = vmatpush1.bf16.msra.mxu0 %v20394_v60  ;;  %v20423_v60 = vunpack.c.h.s8.bf16 %v20422_v23 }
 0x67c   :  { %11453 = vmatpush1.bf16.msra.mxu1 %v20395_v55  ;;  %11391 = vmatprep.subr.bf16.mxu0 %v20397_v20  ;;  %v20424_v55 = vld [vmem:[#allocation355_spill] sm:$0xff]  ;;  %v20426_v20 = vunpack.c.h.s8.bf16 %v15083_v6 }
 0x67d   :  { %11455 = vmatprep.subr.bf16.mxu1 %v20399_v61  ;;  %v20425_v39 = vunpack.c.h.s8.bf16 %v20424_v55  ;;  %v20428_v61 = vunpack.c.l.s8.bf16 %v20422_v23  ;;  %v20429_v21 = vunpack.c.l.s8.bf16 %v20424_v55  ;;  %v20461_v55 = vld [vmem:[#allocation367_spill] sm:$0xff] }
 0x67f   :  { %11393 = vmatpush2.bf16.msra.mxu0 %v20401_v18  ;;  %v20430_v18 = vunpack.c.l.s8.bf16 %v15083_v6 }
 0x680   :  { %11457 = vmatpush2.bf16.msra.mxu1 %v20403_v28  ;;  %11395 = vmatprep.subr.bf16.mxu0 %v20404_v59  ;;  %v20432_v28 = vunpack.c.h.s8.bf16 %v20431_v30  ;;  %v20433_v59 = vunpack.c.h.s8.bf16 %v15099_v9  ;;  %v20470_v30 = vunpack.c.l.s8.bf16 %v15204_v49 }
 0x681   :  { %11459 = vmatprep.subr.bf16.mxu1 %v20405_v14  ;;  %v20434_v14 = vld [vmem:[#allocation359_spill] sm:$0xff] }
 0x682   :  { %v20439_v6 = vunpack.c.l.s8.bf16 %v20434_v14 }
 0x683   :  { %11397 = vmatpush2.bf16.msra.mxu0 %v20406_v1  ;;  %v20435_v1 = vunpack.c.h.s8.bf16 %v20434_v14  ;;  %v20473_v14 = vunpack.c.h.s8.bf16 %v15216_v33 }
 0x684   :  { %11461 = vmatpush2.bf16.msra.mxu1 %v20407_v5  ;;  %11399 = vmatprep.subr.bf16.mxu0 %v20409_v8  ;;  %v20436_v5 = vunpack.c.h.s8.bf16 %v15115_v4  ;;  %v20438_v8 = vunpack.c.l.s8.bf16 %v15099_v9  ;;  %v20446_v9 = vunpack.c.h.s8.bf16 %v15144_v36  ;;  %v20448_v4 = vunpack.c.l.s8.bf16 %v15131_v52 }
 0x685   :  { %11463 = vmatprep.subr.bf16.mxu1 %v20411_v25  ;;  %v20441_v25 = vld [vmem:[#allocation360_spill] sm:$0xff] }
 0x686   :  { %v20442_v17 = vunpack.c.h.s8.bf16 %v20441_v25 }
 0x687   :  { %11401 = vmatpush2.bf16.msra.mxu0 %v20413_v3  ;;  %v20443_v3 = vunpack.c.h.s8.bf16 %v15131_v52  ;;  %v20456_v52 = vunpack.c.h.s8.bf16 %v15178_v34 }
 0x688   :  { %11465 = vmatpush2.bf16.msra.mxu1 %v20415_v27  ;;  %11403 = vmatprep.subr.bf16.mxu0 %v20416_v12  ;;  %v20445_v27 = vunpack.c.h.s8.bf16 %v20444_v62  ;;  %v20447_v12 = vunpack.c.l.s8.bf16 %v20441_v25 }
 0x689   :  { %11467 = vmatprep.subr.bf16.mxu1 %v20417_v7  ;;  %v20449_v7 = vunpack.c.l.s8.bf16 %v20444_v62 }
 0x68b   :  { %11405 = vmatpush2.bf16.msra.mxu0 %v20418_v58  ;;  %v20451_v58 = vld [vmem:[#allocation363_spill] sm:$0xff] }
 0x68c   :  { %11469 = vmatpush2.bf16.msra.mxu1 %v20419_v13  ;;  %11407 = vmatprep.subr.bf16.mxu0 %v20421_v24  ;;  %v20452_v13 = vunpack.c.h.s8.bf16 %v20451_v58  ;;  %v20454_v24 = vld [vmem:[#allocation365_spill] sm:$0xff] }
 0x68d   :  { %11471 = vmatprep.subr.bf16.mxu1 %v20423_v60  ;;  %v20455_v23 = vunpack.c.h.s8.bf16 %v20454_v24  ;;  %v20460_v60 = vunpack.c.l.s8.bf16 %v15178_v34 }
 0x68f   :  { %11409 = vmatpush2.bf16.msra.mxu0 %v20425_v39  ;;  %v20462_v39 = vunpack.c.h.s8.bf16 %v20461_v55 }
 0x690   :  { %11473 = vmatpush2.bf16.msra.mxu1 %v20426_v20  ;;  %11411 = vmatprep.subr.bf16.mxu0 %v20427_v45  ;;  %v20463_v20 = vunpack.c.h.s8.bf16 %v15192_v47  ;;  %v20464_v45 = vld [vmem:[#allocation369_spill] sm:$0xff] }
 0x691   :  { %11475 = vmatprep.subr.bf16.mxu1 %v20428_v61  ;;  %v20465_v61 = vunpack.c.h.s8.bf16 %v20464_v45  ;;  %v20469_v34 = vunpack.c.l.s8.bf16 %v20464_v45  ;;  %v20511_v45 = vld [vmem:[#allocation385_spill] sm:$0xff] }
 0x693   :  { %11413 = vmatpush2.bf16.msra.mxu0 %v20429_v21  ;;  %v20466_v21 = vunpack.c.h.s8.bf16 %v15204_v49 }
 0x694   :  { %11477 = vmatpush2.bf16.msra.mxu1 %v20430_v18  ;;  %11415 = vmatprep.subr.bf16.mxu0 %v20432_v28  ;;  %v20468_v18 = vunpack.c.l.s8.bf16 %v15192_v47  ;;  %v20471_v28 = vld [vmem:[#allocation371_spill] sm:$0xff] }
 0x695   :  { %11479 = vmatprep.subr.bf16.mxu1 %v20433_v59  ;;  %v20472_v59 = vunpack.c.h.s8.bf16 %v20471_v28  ;;  %v20477_v47 = vunpack.c.l.s8.bf16 %v20471_v28  ;;  %v20520_v28 = vunpack.c.l.s8.bf16 %v15324_v38 }
 0x697   :  { %11417 = vmatpush2.bf16.msra.mxu0 %v20435_v1  ;;  %v20474_v1 = vld [vmem:[#allocation373_spill] sm:$0xff] }
 0x698   :  { %11481 = vmatpush2.bf16.msra.mxu1 %v20436_v5  ;;  %11419 = vmatprep.subr.bf16.mxu0 %v20437_v11  ;;  %v20475_v5 = vunpack.c.h.s8.bf16 %v20474_v1  ;;  %v20476_v11 = vunpack.c.h.s8.bf16 %v15228_v0  ;;  %v20479_v49 = vunpack.c.l.s8.bf16 %v20474_v1 }
 0x699   :  { %11483 = vmatprep.subr.bf16.mxu1 %v20438_v8  ;;  %v20478_v8 = vunpack.c.l.s8.bf16 %v15216_v33 }
 0x69b   :  { %11421 = vmatpush2.bf16.msra.mxu0 %v20439_v6  ;;  %v20480_v6 = vunpack.c.l.s8.bf16 %v15228_v0 }
 0x69c   :  { %11485 = vmatpush2.bf16.msra.mxu1 %v20440_v26  ;;  %11487 = vmatprep.subr.bf16.mxu0 %v20442_v17  ;;  %v20481_v26 = vld [vmem:[#allocation375_spill] sm:$0xff]  ;;  %v20483_v17 = vunpack.c.h.s8.bf16 %v15240_v54 }
 0x69d   :  { %11551 = vmatprep.subr.bf16.mxu1 %v20443_v3  ;;  %v20482_v25 = vunpack.c.h.s8.bf16 %v20481_v26  ;;  %v20484_v3 = vld [vmem:[#allocation377_spill] sm:$0xff]  ;;  %v20487_v33 = vunpack.c.l.s8.bf16 %v20481_v26 }
 0x69e   :  { %7680 = vmatmul.mubr.f32.vlgmr.msra.gmra.mxu0 %v15500_v40  ;;  %v20485_v62 = vunpack.c.h.s8.bf16 %v20484_v3  ;;  %v20489_v0 = vunpack.c.l.s8.bf16 %v20484_v3  ;;  %v20521_v3 = vld [vmem:[#allocation27_spill] sm:$0xff] }
 0x69f   :  { %7751 = vmatmul.mubr.f32.vlgmr.msra.gmra.mxu1 %v15346_v44  ;;  %11489 = vmatpush1.bf16.msra.mxu0 %v20445_v27  ;;  %v20450_v44 = vunpack.c.l.s8.bf16 %v15144_v36  ;;  %v20459_v36 = vunpack.c.l.s8.bf16 %v20454_v24  ;;  %v20486_v27 = vunpack.c.h.s8.bf16 %v15252_v41  ;;  %v20498_v24 = vunpack.c.l.s8.bf16 %v15264_v19 }
 0x6a0   :  { %11553 = vmatpush1.bf16.msra.mxu1 %v20446_v9  ;;  %11491 = vmatprep.subr.bf16.mxu0 %v20447_v12  ;;  %v20488_v9 = vunpack.c.l.s8.bf16 %v15240_v54  ;;  %v20490_v12 = vunpack.c.l.s8.bf16 %v15252_v41 }
 0x6a1   :  { %11555 = vmatprep.subr.bf16.mxu1 %v20448_v4  ;;  %7821 = vmatprep.mubr.f32.mxu0 %v15367_v15  ;;  %v20458_v15 = vunpack.c.l.s8.bf16 %v15161_v35  ;;  %v20467_v35 = vunpack.c.l.s8.bf16 %v20461_v55  ;;  %v20491_v4 = vld [vmem:[#allocation379_spill] sm:$0xff]  ;;  %v20506_v55 = vunpack.c.h.s8.bf16 %v15300_v22 }
 0x6a2   :  { %7892 = vmatprep.mubr.f32.mxu1 %v15370_v56  ;;  %v20457_v56 = vunpack.c.l.s8.bf16 %v20451_v58  ;;  %v20494_v58 = vld [vmem:[#allocation381_spill] sm:$0xff]  ;;  %v20497_v54 = vunpack.c.l.s8.bf16 %v20491_v4 }
 0x6a3   :  { %11493 = vmatpush1.bf16.msra.mxu0 %v20449_v7  ;;  %v20492_v7 = vunpack.c.h.s8.bf16 %v20491_v4  ;;  %v20499_v41 = vunpack.c.l.s8.bf16 %v20494_v58 }
 0x6a4   :  { %11557 = vmatpush1.bf16.msra.mxu1 %v20450_v44  ;;  %11495 = vmatprep.subr.bf16.mxu0 %v20452_v13  ;;  %v20493_v44 = vunpack.c.h.s8.bf16 %v15264_v19  ;;  %v20495_v13 = vunpack.c.h.s8.bf16 %v20494_v58 }
 0x6a5   :  { %11559 = vmatprep.subr.bf16.mxu1 %v20453_v32  ;;  %v20496_v32 = vunpack.c.h.s8.bf16 %v15276_v10 }
 0x6a7   :  { %11497 = vmatpush1.bf16.msra.mxu0 %v20455_v23  ;;  %v20500_v23 = vunpack.c.l.s8.bf16 %v15276_v10 }
 0x6a8   :  { %11561 = vmatpush1.bf16.msra.mxu1 %v20456_v52  ;;  %11499 = vmatprep.subr.bf16.mxu0 %v20457_v56  ;;  %v20501_v52 = vld [vmem:[#allocation383_spill] sm:$0xff] }
 0x6a9   :  { %11563 = vmatprep.subr.bf16.mxu1 %v20458_v15  ;;  %v20502_v56 = vunpack.c.h.s8.bf16 %v20501_v52  ;;  %v20503_v15 = vunpack.c.h.s8.bf16 %v15288_v2  ;;  %v20507_v19 = vunpack.c.l.s8.bf16 %v20501_v52 }
 0x6ab   :  { %11501 = vmatpush1.bf16.msra.mxu0 %v20459_v36  ;;  %v20504_v36 = vld [vmem:[#allocation384_spill] sm:$0xff] }
 0x6ac   :  { %11565 = vmatpush1.bf16.msra.mxu1 %v20460_v60  ;;  %11503 = vmatprep.subr.bf16.mxu0 %v20462_v39  ;;  %v20505_v60 = vunpack.c.h.s8.bf16 %v20504_v36  ;;  %v20508_v39 = vunpack.c.l.s8.bf16 %v15288_v2  ;;  %v20509_v10 = vunpack.c.l.s8.bf16 %v20504_v36  ;;  %v20517_v2 = vunpack.c.l.s8.bf16 %v20511_v45 }
 0x6ad   :  { %11567 = vmatprep.subr.bf16.mxu1 %v20463_v20  ;;  %v20510_v20 = vunpack.c.l.s8.bf16 %v15300_v22 }
 0x6af   :  { %11505 = vmatpush1.bf16.msra.mxu0 %v20465_v61  ;;  %v20512_v61 = vunpack.c.h.s8.bf16 %v20511_v45 }
 0x6b0   :  { %11569 = vmatpush1.bf16.msra.mxu1 %v20466_v21  ;;  %11507 = vmatprep.subr.bf16.mxu0 %v20467_v35  ;;  %v20513_v21 = vunpack.c.h.s8.bf16 %v15312_v16  ;;  %v20514_v35 = vld [vmem:[#allocation386_spill] sm:$0xff] }
 0x6b1   :  { %11571 = vmatprep.subr.bf16.mxu1 %v20468_v18  ;;  %v20515_v18 = vunpack.c.h.s8.bf16 %v20514_v35  ;;  %v20519_v22 = vunpack.c.l.s8.bf16 %v20514_v35 }
 0x6b3   :  { %11509 = vmatpush1.bf16.msra.mxu0 %v20469_v34  ;;  %v20516_v34 = vunpack.c.h.s8.bf16 %v15324_v38 }
 0x6b4   :  { %11573 = vmatpush1.bf16.msra.mxu1 %v20470_v30  ;;  %11511 = vmatprep.subr.bf16.mxu0 %v20472_v59  ;;  %v20518_v30 = vunpack.c.l.s8.bf16 %v15312_v16  ;;  %v7113_v59 = vpop.f32.mrf.mxu0  ;;  %v5205_v16 = vadd.f32 %v15850_v43, %v15832_v29  ;;  %v20526_v29 = vld [vmem:[#allocation31_spill] sm:$0xff] }
 0x6b5   :  { %11575 = vmatprep.subr.bf16.mxu1 %v20473_v14  ;;  %v7184_v14 = vpop.f32.mrf.mxu1 }
 0x6b6   :  { %v7115_v1 = vpop.f32.mrf.mxu0 }
 0x6b7   :  { %11513 = vmatpush1.bf16.msra.mxu0 %v20475_v5 }
 0x6b8   :  { %11577 = vmatpush1.bf16.msra.mxu1 %v20476_v11  ;;  %11515 = vmatprep.subr.bf16.mxu0 %v20477_v47  ;;  %v7255_v5 = vpop.f32.mrf.mxu0  ;;  %v7186_v11 = vpop.f32.mrf.mxu1 }
 0x6b9   :  { %11579 = vmatprep.subr.bf16.mxu1 %v20478_v8 }
 0x6ba   :  { %v7326_v47 = vpop.f32.mrf.mxu1  ;;  %v7257_v8 = vpop.f32.mrf.mxu0 }
 0x6bb   :  { %11517 = vmatpush1.bf16.msra.mxu0 %v20479_v49 }
 0x6bc   :  { %11581 = vmatpush1.bf16.msra.mxu1 %v20480_v6  ;;  %11519 = vmatprep.subr.bf16.mxu0 %v20482_v25  ;;  %v7185_v6 = vadd.f32 %v7184_v14, %v7113_v59  ;;  %v7328_v26 = vpop.f32.mrf.mxu1  ;;  %v20534_v59 = vsub.s32 3, %v15966_v53 }
 0x6bd   :  { %11583 = vmatprep.subr.bf16.mxu1 %v20483_v17 }
 0x6be   :  { %v7256_v25 = vadd.f32 %v7255_v5, %v7185_v6  ;;  %v8063_v14 = vrot.slane %v16825_v46, %v20534_v59  ;;  %v20535_v5 = vld [vmem:[#allocation39_spill] sm:$0xff] }
 0x6bf   :  { %11521 = vmatpush2.bf16.msra.mxu0 %v20485_v62  ;;  %v20522_v62 = vld [vmem:[#allocation11_spill] sm:$0xff] }
 0x6c0   :  { %11585 = vmatpush2.bf16.msra.mxu1 %v20486_v27  ;;  %11523 = vmatprep.subr.bf16.mxu0 %v20487_v33  ;;  %v7187_v33 = vadd.f32 %v7186_v11, %v7115_v1 }
 0x6c1   :  { %11587 = vmatprep.subr.bf16.mxu1 %v20488_v9 }
 0x6c2   :  { %v7258_v4 = vadd.f32 %v7257_v8, %v7187_v33  ;;  %v20537_v8 = vld [vmem:[#allocation18_spill] sm:$0xff] }
 0x6c3   :  { %11525 = vmatpush2.bf16.msra.mxu0 %v20489_v0 }
 0x6c4   :  { %11589 = vmatpush2.bf16.msra.mxu1 %v20490_v12  ;;  %11527 = vmatprep.subr.bf16.mxu0 %v20492_v7 }
 0x6c5   :  { %11591 = vmatprep.subr.bf16.mxu1 %v20493_v44  ;;  %v20524_v44 = vld [vmem:[#allocation29_spill] sm:$0xff] }
 0x6c7   :  { %11529 = vmatpush2.bf16.msra.mxu0 %v20495_v13  ;;  %v20525_v13 = vld [vmem:[#allocation13_spill] sm:$0xff] }
 0x6c8   :  { %11593 = vmatpush2.bf16.msra.mxu1 %v20496_v32  ;;  %11531 = vmatprep.subr.bf16.mxu0 %v20497_v54  ;;  %v5418_v43 = vadd.f32 %v20526_v29, %v20525_v13  ;;  %v20539_v29 = vld [vmem:[#allocation19_spill] sm:$0xff] }
 0x6c9   :  { %11595 = vmatprep.subr.bf16.mxu1 %v20498_v24 }
 0x6cb   :  { %11533 = vmatpush2.bf16.msra.mxu0 %v20499_v41 }
 0x6cc   :  { %11597 = vmatpush2.bf16.msra.mxu1 %v20500_v23  ;;  %11535 = vmatprep.subr.bf16.mxu0 %v20502_v56  ;;  %v20527_v23 = vld [vmem:[#allocation15_spill] sm:$0xff] }
 0x6cd   :  { %11599 = vmatprep.subr.bf16.mxu1 %v20503_v15  ;;  %v5489_v52 = vadd.f32 %v20527_v23, %v5418_v43  ;;  %v20528_v15 = vsub.s32 2, %v15966_v53  ;;  %v20540_v43 = vld [vmem:[#allocation43_spill] sm:$0xff] }
 0x6cf   :  { %11537 = vmatpush2.bf16.msra.mxu0 %v20505_v60  ;;  %v8059_v36 = vrot.slane %v16825_v46, %v20528_v15  ;;  %v20541_v15 = vld [vmem:[#allocation20_spill] sm:$0xff] }
 0x6d0   :  { %11601 = vmatpush2.bf16.msra.mxu1 %v20506_v55  ;;  %11539 = vmatprep.subr.bf16.mxu0 %v20507_v19  ;;  %v20529_v55 = vld [vmem:[#allocation14_spill] sm:$0xff]  ;;  %v20530_v19 = vld [vmem:[#allocation33_spill] sm:$0xff] }
 0x6d1   :  { %11603 = vmatprep.subr.bf16.mxu1 %v20508_v39  ;;  %v5420_v39 = vadd.f32 %v20530_v19, %v20529_v55  ;;  %v20543_v55 = vld [vmem:[#allocation21_spill] sm:$0xff] }
 0x6d3   :  { %11541 = vmatpush2.bf16.msra.mxu0 %v20509_v10  ;;  %v20531_v10 = vld [vmem:[#allocation35_spill] sm:$0xff] }
 0x6d4   :  { %11605 = vmatpush2.bf16.msra.mxu1 %v20510_v20  ;;  %11543 = vmatprep.subr.bf16.mxu0 %v20512_v61  ;;  %v20532_v20 = vld [vmem:[#allocation17_spill] sm:$0xff] }
 0x6d5   :  { %11607 = vmatprep.subr.bf16.mxu1 %v20513_v21  ;;  %v5631_v45 = vadd.f32 %v20532_v20, %v20531_v10 }
 0x6d7   :  { %11545 = vmatpush2.bf16.msra.mxu0 %v20515_v18  ;;  %v5702_v11 = vadd.f32 %v20535_v5, %v5631_v45  ;;  %v20544_v45 = vld [vmem:[#allocation47_spill] sm:$0xff] }
 0x6d8   :  { %11609 = vmatpush2.bf16.msra.mxu1 %v20516_v34  ;;  %11547 = vmatprep.subr.bf16.mxu0 %v20517_v2  ;;  %v20533_v34 = vld [vmem:[#allocation16_spill] sm:$0xff] }
 0x6d9   :  { %11611 = vmatprep.subr.bf16.mxu1 %v20518_v30  ;;  %v5491_v2 = vadd.f32 %v20533_v34, %v5420_v39 }
 0x6db   :  { %11549 = vmatpush2.bf16.msra.mxu0 %v20519_v22 }
 0x6dc   :  { %11613 = vmatpush2.bf16.msra.mxu1 %v20520_v28 }
 0x6de   :  { %7822 = vmatmul.mubr.f32.vlgmr.msra.gmra.mxu0 %v15497_v51  ;;  %v7397_v49 = vpop.f32.mrf.mxu0  ;;  %v5276_v51 = vadd.f32 %v20521_v3, %v5205_v16 }
 0x6df   :  { %7893 = vmatmul.mubr.f32.vlgmr.msra.gmra.mxu1 %v15500_v40  ;;  %v7468_v38 = vpop.f32.mrf.mxu1  ;;  %v20523_v40 = vld [vmem:[#allocation12_spill] sm:$0xff]  ;;  %v7398_v9 = vadd.f32 %v7397_v49, %v7326_v47  ;;  %v20536_v47 = vld [vmem:[#allocation37_spill] sm:$0xff] }
 0x6e0   :  { %v7399_v17 = vpop.f32.mrf.mxu0  ;;  %v5207_v27 = vadd.f32 %v20523_v40, %v20522_v62  ;;  %v7984_v12 = vsub.f32 %v5276_v51, %v7256_v25  ;;  %v5633_v49 = vadd.f32 %v20537_v8, %v20536_v47 }
 0x6e1   :  { %v7470_v7 = vpop.f32.mrf.mxu1  ;;  %v7469_v32 = vadd.f32 %v7468_v38, %v7398_v9  ;;  %v7400_v54 = vadd.f32 %v7399_v17, %v7328_v26  ;;  %v8067_v26 = vrot.slane %v16825_v46, %v8034_v63  ;;  %v8075_v63 = vrot.slane %v16825_v46, %v8042_v37 }
 0x6e2   :  { %v5278_v58 = vadd.f32 %v20524_v44, %v5207_v27  ;;  %v8002_v56 = vand.u32 2147483647, %v7984_v12  ;;  %v20538_v27 = vld [vmem:[#allocation41_spill] sm:$0xff]  ;;  %v8071_v12 = vrot.slane %v16825_v46, %v8038_v57  ;;  %v8079_v57 = vrot.slane %v16825_v46, %v8046_v42 }
 0x6e3   :  { %v7986_v21 = vsub.f32 %v5489_v52, %v7469_v32  ;;  %v7471_v35 = vadd.f32 %v7470_v7, %v7400_v54  ;;  %v5704_v33 = vadd.f32 %v20538_v27, %v5633_v49  ;;  %v5844_v32 = vadd.f32 %v20540_v43, %v20539_v29 }
 0x6e4   :  { %v7985_v60 = vsub.f32 %v5278_v58, %v7258_v4  ;;  %v8116_v22 = vmul.f32 %v8059_v36, %v8002_v56  ;;  %v8012_v56 = vld [vmem:[#allocation7 + $0x10] sm:$0x3]  ;;  %v20542_v36 = vld [vmem:[#allocation45_spill] sm:$0xff] }
 0x6e5   :  { %v8004_v6 = vand.u32 2147483647, %v7986_v21  ;;  %v7987_v25 = vsub.f32 %v5491_v2, %v7471_v35  ;;  %v5846_v37 = vadd.f32 %v20542_v36, %v20541_v15  ;;  %v5915_v19 = vadd.f32 %v20543_v55, %v5844_v32 }
 0x6e6   :  { %v8003_v28 = vand.u32 2147483647, %v7985_v60  ;;  %v8133_v17 = vadd.f32 %v16856_v48, %v8116_v22  ;;  %v8083_v35 = vrot.slane %v8012_v56, %v15979_v31 }
 0x6e7   :  { %v8118_v9 = vmul.f32 %v8067_v26, %v8004_v6 }
 0x6e8   :  { %v8117_v3 = vmul.f32 %v8063_v14, %v8003_v28 }
 0x6ea   :  { %v8134_v4 = vadd.f32 %v8133_v17, %v8117_v3 }
 0x6ec   :  { %v8135_v58 = vadd.f32 %v8134_v4, %v8118_v9 }
 0x71e   :  { %v7539_v0 = vpop.f32.mrf.mxu0 }
 0x71f   :  { %v7610_v24 = vpop.f32.mrf.mxu1 }
 0x720   :  { %v7541_v41 = vpop.f32.mrf.mxu0  ;;  %v7611_v18 = vadd.f32 %v7610_v24, %v7539_v0  ;;  %v8005_v0 = vand.u32 2147483647, %v7987_v25 }
 0x721   :  { %v7612_v30 = vpop.f32.mrf.mxu1 }
 0x722   :  { %v7613_v38 = vadd.f32 %v7612_v30, %v7541_v41  ;;  %v8119_v13 = vmul.f32 %v8071_v12, %v8005_v0  ;;  %v8087_v30 = vrot.slane %v8012_v56, %v15982_v50 }
 0x724   :  { %v8136_v39 = vadd.f32 %v8135_v58, %v8119_v13 }
 0x75e   :  { %v7681_v61 = vpop.f32.mrf.mxu0 }
 0x75f   :  { %v7682_v1 = vadd.f32 %v7681_v61, %v7611_v18  ;;  %v7752_v40 = vpop.f32.mrf.mxu1  ;;  %v5917_v61 = vadd.f32 %v20544_v45, %v5846_v37 }
 0x760   :  { %v7683_v16 = vpop.f32.mrf.mxu0 }
 0x761   :  { %v7988_v51 = vsub.f32 %v5702_v11, %v7682_v1  ;;  %v7684_v62 = vadd.f32 %v7683_v16, %v7613_v38  ;;  %v7754_v48 = vpop.f32.mrf.mxu1  ;;  %v8144_v11 = vstv %s17279_s4 }
 0x763   :  { %v8006_v7 = vand.u32 2147483647, %v7988_v51  ;;  %v7989_v44 = vsub.f32 %v5704_v33, %v7684_v62 }
 0x765   :  { %v8120_v41 = vmul.f32 %v8075_v63, %v8006_v7  ;;  %v8007_v23 = vand.u32 2147483647, %v7989_v44 }
 0x767   :  { %v8121_v18 = vmul.f32 %v8079_v57, %v8007_v23  ;;  %v8137_v42 = vadd.f32 %v8136_v39, %v8120_v41 }
 0x769   :  { %v8138_v59 = vadd.f32 %v8137_v42, %v8121_v18 }
 0x79e   :  { %v7823_v54 = vpop.f32.mrf.mxu0 }
 0x79f   :  { %v7894_v24 = vpop.f32.mrf.mxu1  ;;  %v7824_v52 = vadd.f32 %v7823_v54, %v7752_v40 }
 0x7a0   :  { %v7825_v60 = vpop.f32.mrf.mxu0 }
 0x7a1   :  { %v7895_v10 = vadd.f32 %v7894_v24, %v7824_v52  ;;  %v7826_v20 = vadd.f32 %v7825_v60, %v7754_v48  ;;  %v7896_v21 = vpop.f32.mrf.mxu1 }
 0x7a3   :  { %v7990_v53 = vsub.f32 %v5915_v19, %v7895_v10  ;;  %v7897_v34 = vadd.f32 %v7896_v21, %v7826_v20 }
 0x7a5   :  { %v8008_v46 = vand.u32 2147483647, %v7990_v53  ;;  %v7991_v2 = vsub.f32 %v5917_v61, %v7897_v34 }
 0x7a7   :  { %v8009_v22 = vand.u32 2147483647, %v7991_v2  ;;  %v8122_v28 = vmul.f32 %v8083_v35, %v8008_v46 }
 0x7a9   :  { %v8123_v14 = vmul.f32 %v8087_v30, %v8009_v22  ;;  %v8139_v1 = vadd.f32 %v8138_v59, %v8122_v28 }
 0x7ab   :  { %v8140_v5 = vadd.f32 %v8139_v1, %v8123_v14 }
 0x7ad   :  { %8141 = vadd.xlane.f32.xlu0 %v8140_v5 }
 0x836   :  { %v8142_v31 = vpop.xlane.xlu0 %8141 }
 0x837   :  { %v8145_v47 = vadd.f32 %v8144_v11, %v8142_v31 }
 0x839   :  { %v8146_v8 = vsub.f32 0.0, %v8145_v47 }
 0x83b   :  { %v8147_v49 = vmul.f32 1.442695, %v8146_v8 }
 0x83d   :  { %11618 = vpow2.f32 %v8147_v49 }
 0x84a   :  { %v11619_v16 = vpop.eup %11618 }
 0x84b   :  { %v8149_v6 = vadd.f32 1.0, %v11619_v16 }
 0x84d   :  { %11620 = vrcp.f32 %v8149_v6 }
 0x85a   :  { %v11621_v50 = vpop.eup %11620 }
 0x85b   :  { %8151 = vst [vmem:[%s17280_s5] sm:$0xff] %v11621_v50 }
 0x85c   :  { %8156 = vsyncpa [#allocation6], 1 }
 0x85d   :  { %8157 = vsyncpa [#allocation8], 1 }

</bundles_post_ra>
